<compile_context>
chip_gen: v7x
topology: tpu7x:2x2x1
jax: 0.10.0
libtpu: 0.0.40
codegen_flags: <defaults>
</compile_context>

<pallas_src>
import functools

import jax
import jax.numpy as jnp
from jax.experimental import pallas as pl
from jax.experimental.pallas import tpu as pltpu


# ---------------------------------------------------------------------------
# Fused forward kernel (one batch element per grid step)
# ---------------------------------------------------------------------------
def _fused_forward_kernel(x00, x01, x10, x11,
                          cw_ref, cb_ref,
                          w1_ref, b1_ref, w2_ref, b2_ref,
                          dw_ref, db_ref,
                          enc_ref, dec_ref,
                          dpad_ref,
                          *, Ho, Wo, Cin, Cc, Co, Henc):
    # phases[(a, b)][0, ci, i, j] == x_pad[n, ci, 2i + a, 2j + b]
    phases = {(0, 0): x00, (0, 1): x01, (1, 0): x10, (1, 1): x11}

    # ---- encoder: Conv2d(Cin, Cc, k=3, s=2, p=1) + ReLU -------------------
    # Planar VPU taps; phase refs are re-sliced inside the co loop so only a
    # few (Ho, Wo) planes are live at a time (scales to full resolution).
    conv_planes = []
    for co in range(Cc):
        acc = jnp.full((Ho, Wo), cb_ref[co], jnp.float32)
        for ci in range(Cin):
            for kh in range(3):
                for kw in range(3):
                    ref = phases[(kh % 2, kw % 2)]
                    a, b = kh // 2, kw // 2
                    w = cw_ref[((co * Cin + ci) * 3 + kh) * 3 + kw]  # SMEM scalar
                    acc = acc + w * ref[0, ci, a:a + Ho, b:b + Wo]
        conv_planes.append(jnp.maximum(acc, 0.0))

    # ---- fc1: encoded = relu(W1 . flatten(conv) + b1) ---------------------
    # W1 is pre-permuted to (c, o, i, j); the 28-wide feature axis stays on
    # the leading (vreg-major) dim, so no activation relayout is needed.
    enc = b1_ref[...]                                        # (Henc, 1, 1)
    for c in range(Cc):
        prod = conv_planes[c][None, :, :] * w1_ref[c]        # (Henc, Ho, Wo)
        part = jnp.sum(prod, axis=2, keepdims=True)          # (Henc, Ho, 1)
        enc = enc + jnp.sum(part, axis=1, keepdims=True)     # (Henc, 1, 1)
    enc = jnp.maximum(enc, 0.0)
    enc_ref[0] = enc

    # ---- fc2: dec = relu(W2^T . encoded + b2), written zero-padded --------
    enc_b = jnp.broadcast_to(enc, (Henc, Ho, Wo))
    dpad_ref[...] = jnp.zeros_like(dpad_ref)                 # (Cc, Ho+1, Wo+1)
    for c in range(Cc):
        d = jnp.sum(enc_b * w2_ref[c], axis=0) + b2_ref[c]   # (Ho, Wo)
        dpad_ref[c, 0:Ho, 0:Wo] = jnp.maximum(d, 0.0)

    # ---- decoder: ConvTranspose2d(Cc, Co, k=3, s=2, p=1, op=1) + Sigmoid --
    # Output-parity decomposition (no 75%-zero dilated buffer).
    # taps[(py, px)] = (dh, dw, kh, kw) terms contributing to parity (py, px).
    taps = {(0, 0): ((0, 0, 1, 1),),
            (0, 1): ((0, 1, 1, 0), (0, 0, 1, 2)),
            (1, 0): ((1, 0, 0, 1), (0, 0, 2, 1)),
            (1, 1): ((1, 1, 0, 0), (1, 0, 0, 2), (0, 1, 2, 0), (0, 0, 2, 2))}
    for (py, px), tap_list in taps.items():
        for co in range(Co):
            acc = jnp.full((Ho, Wo), db_ref[co], jnp.float32)
            for dh, dw, kh, kw in tap_list:
                for ci in range(Cc):
                    w = dw_ref[((ci * Co + co) * 3 + kh) * 3 + kw]  # SMEM scalar
                    acc = acc + w * dpad_ref[ci, dh:dh + Ho, dw:dw + Wo]
            dec_ref[0, (py * 2 + px) * Co + co] = jax.nn.sigmoid(acc)


# ---------------------------------------------------------------------------
# Forward pass matching Autoencoder_gate.forward
# ---------------------------------------------------------------------------
def autoencoder_forward(x_nchw, prep):
    N, Cin, H, W = x_nchw.shape
    Ho, Wo = H // 2, W // 2
    Cc, Co, Henc = 4, 3, 28

    x = x_nchw.astype(jnp.float32)
    # Cheap XLA-side prep: pad once and split into the 4 stride-2 parity
    # phases so every conv tap becomes a dense, unit-stride slice in-kernel.
    # TODO(synk): at the full 480x270 size, fold this repack (and the final
    # parity interleave below) into the kernel via sublane-strided / packed
    # stores to cut the extra HBM pass; it is negligible at 16x16.
    x_pad = jnp.pad(x, ((0, 0), (0, 0), (1, 1), (1, 1)))
    x_ph = [x_pad[:, :, a::2, b::2] for a in (0, 1) for b in (0, 1)]  # (N,Cin,Ho+1,Wo+1)

    kernel = functools.partial(_fused_forward_kernel,
                               Ho=Ho, Wo=Wo, Cin=Cin, Cc=Cc, Co=Co, Henc=Henc)
    ph_spec = pl.BlockSpec((1, Cin, Ho + 1, Wo + 1), lambda n: (n, 0, 0, 0))
    smem = pl.BlockSpec(memory_space=pltpu.MemorySpace.SMEM)

    def resident(shape):
        # Whole (tiny) weight array, constant block index -> stays VMEM-resident.
        return pl.BlockSpec(shape, lambda n: (0,) * len(shape))

    enc4, dec_ph = pl.pallas_call(
        kernel,
        out_shape=(jax.ShapeDtypeStruct((N, Henc, 1, 1), jnp.float32),
                   jax.ShapeDtypeStruct((N, 4 * Co, Ho, Wo), jnp.float32)),
        grid=(N,),
        in_specs=[ph_spec, ph_spec, ph_spec, ph_spec,
                  smem, smem,                       # conv_w, conv_b
                  resident((Cc, Henc, Ho, Wo)),     # W1 (c, o, i, j)
                  resident((Henc, 1, 1)),           # b1
                  resident((Cc, Henc, Ho, Wo)),     # W2 (c, o, i, j)
                  resident((Cc, Ho, Wo)),           # b2 (c, i, j)
                  smem, smem],                      # deconv_w, deconv_b
        out_specs=(pl.BlockSpec((1, Henc, 1, 1), lambda n: (n, 0, 0, 0)),
                   pl.BlockSpec((1, 4 * Co, Ho, Wo), lambda n: (n, 0, 0, 0))),
        scratch_shapes=[pltpu.VMEM((Cc, Ho + 1, Wo + 1), jnp.float32)],
        compiler_params=pltpu.CompilerParams(dimension_semantics=("parallel",)),
    )(x_ph[0], x_ph[1], x_ph[2], x_ph[3],
      prep["conv_w"], prep["conv_b"],
      prep["w1"], prep["b1"], prep["w2"], prep["b2"],
      prep["deconv_w"], prep["deconv_b"])

    encoded = enc4.reshape(N, Henc)
    # Parity planes -> NCHW interleave (3 KB per image; contiguous reshape +
    # one tiny XLA transpose).
    decoded = (dec_ph.reshape(N, 2, 2, Co, Ho, Wo)
               .transpose(0, 3, 4, 1, 5, 2)
               .reshape(N, Co, H, W))
    return decoded, encoded


# ---------------------------------------------------------------------------
# Parameters (torch layouts) + one-time preparation for the kernel
# ---------------------------------------------------------------------------
def init_params(key, H, W):
    Ho, Wo = H // 2, W // 2
    flat = 4 * Ho * Wo
    ks = jax.random.split(key, 8)
    scale = 0.05
    return {
        "conv_w": scale * jax.random.normal(ks[0], (4, 3, 3, 3), jnp.float32),   # (Cout,Cin,kH,kW)
        "conv_b": scale * jax.random.normal(ks[1], (4,), jnp.float32),
        "fc1_w": scale * jax.random.normal(ks[2], (flat, 28), jnp.float32),      # (in, out)
        "fc1_b": scale * jax.random.normal(ks[3], (28,), jnp.float32),
        "fc2_w": scale * jax.random.normal(ks[4], (28, flat), jnp.float32),      # (in, out)
        "fc2_b": scale * jax.random.normal(ks[5], (flat,), jnp.float32),
        "deconv_w": scale * jax.random.normal(ks[6], (4, 3, 3, 3), jnp.float32), # (Cin,Cout,kH,kW)
        "deconv_b": scale * jax.random.normal(ks[7], (3,), jnp.float32),
    }


def prepare_params(params, Ho, Wo, Cc=4, Henc=28):
    """One-time host repack: fc weights to per-channel (c,o,i,j) planes,
    conv/deconv weights flattened for SMEM scalar reads."""
    w1 = params["fc1_w"].reshape(Cc, Ho, Wo, Henc).transpose(0, 3, 1, 2)   # (c,o,i,j)
    w2 = params["fc2_w"].reshape(Henc, Cc, Ho, Wo).transpose(1, 0, 2, 3)   # (c,o,i,j)
    return {
        "conv_w": params["conv_w"].reshape(-1).astype(jnp.float32),   # ((co*Cin+ci)*3+kh)*3+kw
        "conv_b": params["conv_b"].astype(jnp.float32),
        "w1": w1.astype(jnp.float32),
        "b1": params["fc1_b"].reshape(Henc, 1, 1).astype(jnp.float32),
        "w2": w2.astype(jnp.float32),
        "b2": params["fc2_b"].reshape(Cc, Ho, Wo).astype(jnp.float32),
        "deconv_w": params["deconv_w"].reshape(-1).astype(jnp.float32),  # ((ci*Co+co)*3+kh)*3+kw
        "deconv_b": params["deconv_b"].astype(jnp.float32),
    }


# ---------------------------------------------------------------------------
# Pure-JAX reference (previously validated numerically)
# ---------------------------------------------------------------------------
def reference_forward(x_nchw, params):
    N, Cin, H, W = x_nchw.shape
    Ho, Wo = H // 2, W // 2
    flat = 4 * Ho * Wo
    x = jnp.transpose(x_nchw, (0, 2, 3, 1))
    x_pad = jnp.pad(x, ((0, 0), (1, 1), (1, 1), (0, 0)))
    cols = [x_pad[:, kh:kh + 2 * Ho - 1:2, kw:kw + 2 * Wo - 1:2, :]
            for kh in range(3) for kw in range(3)]
    patches = jnp.concatenate(cols, axis=-1).reshape(N * Ho * Wo, 9 * Cin)
    wc = jnp.transpose(params["conv_w"], (2, 3, 1, 0)).reshape(9 * Cin, 4)
    conv = jnp.maximum(patches @ wc + params["conv_b"], 0.0)
    conv = conv.reshape(N, Ho, Wo, 4).transpose(0, 3, 1, 2).reshape(N, flat)
    encoded = jnp.maximum(conv @ params["fc1_w"] + params["fc1_b"], 0.0)
    dec = jnp.maximum(encoded @ params["fc2_w"] + params["fc2_b"], 0.0)
    dec = dec.reshape(N, 4, Ho, Wo).transpose(0, 2, 3, 1)
    dil = jnp.zeros((N, 2 * Ho - 1, 2 * Wo - 1, 4), jnp.float32)
    dil = dil.at[:, ::2, ::2, :].set(dec)
    dil_pad = jnp.pad(dil, ((0, 0), (1, 2), (1, 2), (0, 0)))
    cols = [dil_pad[:, kh:kh + H, kw:kw + W, :] for kh in range(3) for kw in range(3)]
    patches = jnp.concatenate(cols, axis=-1).reshape(N * H * W, 36)
    wt = params["deconv_w"][:, :, ::-1, ::-1]
    wt = jnp.transpose(wt, (2, 3, 0, 1)).reshape(36, 3)
    out = jax.nn.sigmoid(patches @ wt + params["deconv_b"])
    decoded = out.reshape(N, H, W, 3).transpose(0, 3, 1, 2)
    return decoded, encoded


if __name__ == "__main__":
    H = W = 16
    N = 2
    key = jax.random.PRNGKey(0)
    k_x, k_p = jax.random.split(key)
    x = jax.random.uniform(k_x, (N, 3, H, W), jnp.float32)
    params = init_params(k_p, H, W)
    prep = prepare_params(params, H // 2, W // 2)

    decoded, encoded = jax.jit(autoencoder_forward)(x, prep)
    jax.block_until_ready((decoded, encoded))

    assert decoded.shape == (N, 3, H, W), decoded.shape
    assert encoded.shape == (N, 28), encoded.shape

    ref_decoded, ref_encoded = jax.jit(reference_forward)(x, params)
    err_d = float(jnp.max(jnp.abs(decoded - ref_decoded)))
    err_e = float(jnp.max(jnp.abs(encoded - ref_encoded)))
    assert err_d < 1e-3 and err_e < 1e-3, (err_d, err_e)  # full-f32 pipeline
    print("KERNEL_OK")
</pallas_src>

<mosaic_0001>
module attributes {stable_mosaic.version = 11 : i64} {
  func.func @_fused_forward_kernel(%arg0: i32, %arg1: memref<1x3x9x9xf32, #tpu.memory_space<vmem>>, %arg2: memref<1x3x9x9xf32, #tpu.memory_space<vmem>>, %arg3: memref<1x3x9x9xf32, #tpu.memory_space<vmem>>, %arg4: memref<1x3x9x9xf32, #tpu.memory_space<vmem>>, %arg5: memref<108xf32, #tpu.memory_space<smem>>, %arg6: memref<4xf32, #tpu.memory_space<smem>>, %arg7: memref<4x28x8x8xf32, #tpu.memory_space<vmem>>, %arg8: memref<28x1x1xf32, #tpu.memory_space<vmem>>, %arg9: memref<4x28x8x8xf32, #tpu.memory_space<vmem>>, %arg10: memref<4x8x8xf32, #tpu.memory_space<vmem>>, %arg11: memref<108xf32, #tpu.memory_space<smem>>, %arg12: memref<3xf32, #tpu.memory_space<smem>>, %arg13: memref<1x28x1x1xf32, #tpu.memory_space<vmem>>, %arg14: memref<1x12x8x8xf32, #tpu.memory_space<vmem>>, %arg15: memref<4x9x9xf32, #tpu.memory_space<vmem>>) attributes {dimension_semantics = [#tpu.dimension_semantics<parallel>], iteration_bounds = array<i64: 2>, scalar_prefetch = 0 : i64, scratch_operands = 1 : i64, tpu.core_type = #tpu.core_type<tc>, window_params = [{transform_indices = @transform_0, window_bounds = array<i64: 1, 3, 9, 9>}, {transform_indices = @transform_1, window_bounds = array<i64: 1, 3, 9, 9>}, {transform_indices = @transform_2, window_bounds = array<i64: 1, 3, 9, 9>}, {transform_indices = @transform_3, window_bounds = array<i64: 1, 3, 9, 9>}, {transform_indices = @transform_4, window_bounds = array<i64: 108>}, {transform_indices = @transform_5, window_bounds = array<i64: 4>}, {pipeline_mode = #tpu.pipeline_mode<synchronous>, transform_indices = @transform_6, window_bounds = array<i64: 4, 28, 8, 8>}, {pipeline_mode = #tpu.pipeline_mode<synchronous>, transform_indices = @transform_7, window_bounds = array<i64: 28, 1, 1>}, {pipeline_mode = #tpu.pipeline_mode<synchronous>, transform_indices = @transform_8, window_bounds = array<i64: 4, 28, 8, 8>}, {pipeline_mode = #tpu.pipeline_mode<synchronous>, transform_indices = @transform_9, window_bounds = array<i64: 4, 8, 8>}, {transform_indices = @transform_10, window_bounds = array<i64: 108>}, {transform_indices = @transform_11, window_bounds = array<i64: 3>}, {transform_indices = @transform_12, window_bounds = array<i64: 1, 28, 1, 1>}, {transform_indices = @transform_13, window_bounds = array<i64: 1, 12, 8, 8>}]} {
    %c0 = arith.constant 0 : index
    %0 = memref.load %arg6[%c0] : memref<4xf32, #tpu.memory_space<smem>>
    %1 = vector.broadcast %0 : f32 to vector<8x8xf32>
    %c0_0 = arith.constant 0 : index
    %2 = memref.load %arg5[%c0_0] : memref<108xf32, #tpu.memory_space<smem>>
    %c0_1 = arith.constant 0 : index
    %c0_2 = arith.constant 0 : index
    %c0_3 = arith.constant 0 : index
    %c0_4 = arith.constant 0 : index
    %3 = vector.load %arg1[%c0_1, %c0_2, %c0_3, %c0_4] : memref<1x3x9x9xf32, #tpu.memory_space<vmem>>, vector<1x1x8x8xf32>
    %4 = vector.shape_cast %3 : vector<1x1x8x8xf32> to vector<8x8xf32>
    %5 = vector.broadcast %2 : f32 to vector<8x8xf32>
    %6 = arith.mulf %5, %4 : vector<8x8xf32>
    %7 = arith.addf %1, %6 : vector<8x8xf32>
    %c1 = arith.constant 1 : index
    %8 = memref.load %arg5[%c1] : memref<108xf32, #tpu.memory_space<smem>>
    %c0_5 = arith.constant 0 : index
    %c0_6 = arith.constant 0 : index
    %c0_7 = arith.constant 0 : index
    %c0_8 = arith.constant 0 : index
    %9 = vector.load %arg2[%c0_5, %c0_6, %c0_7, %c0_8] : memref<1x3x9x9xf32, #tpu.memory_space<vmem>>, vector<1x1x8x8xf32>
    %10 = vector.shape_cast %9 : vector<1x1x8x8xf32> to vector<8x8xf32>
    %11 = vector.broadcast %8 : f32 to vector<8x8xf32>
    %12 = arith.mulf %11, %10 : vector<8x8xf32>
    %13 = arith.addf %7, %12 : vector<8x8xf32>
    %c2 = arith.constant 2 : index
    %14 = memref.load %arg5[%c2] : memref<108xf32, #tpu.memory_space<smem>>
    %c0_9 = arith.constant 0 : index
    %c0_10 = arith.constant 0 : index
    %c0_11 = arith.constant 0 : index
    %c1_12 = arith.constant 1 : index
    %15 = vector.load %arg1[%c0_9, %c0_10, %c0_11, %c1_12] : memref<1x3x9x9xf32, #tpu.memory_space<vmem>>, vector<1x1x8x8xf32>
    %16 = vector.shape_cast %15 : vector<1x1x8x8xf32> to vector<8x8xf32>
    %17 = vector.broadcast %14 : f32 to vector<8x8xf32>
    %18 = arith.mulf %17, %16 : vector<8x8xf32>
    %19 = arith.addf %13, %18 : vector<8x8xf32>
    %c3 = arith.constant 3 : index
    %20 = memref.load %arg5[%c3] : memref<108xf32, #tpu.memory_space<smem>>
    %c0_13 = arith.constant 0 : index
    %c0_14 = arith.constant 0 : index
    %c0_15 = arith.constant 0 : index
    %c0_16 = arith.constant 0 : index
    %21 = vector.load %arg3[%c0_13, %c0_14, %c0_15, %c0_16] : memref<1x3x9x9xf32, #tpu.memory_space<vmem>>, vector<1x1x8x8xf32>
    %22 = vector.shape_cast %21 : vector<1x1x8x8xf32> to vector<8x8xf32>
    %23 = vector.broadcast %20 : f32 to vector<8x8xf32>
    %24 = arith.mulf %23, %22 : vector<8x8xf32>
    %25 = arith.addf %19, %24 : vector<8x8xf32>
    %c4 = arith.constant 4 : index
    %26 = memref.load %arg5[%c4] : memref<108xf32, #tpu.memory_space<smem>>
    %c0_17 = arith.constant 0 : index
    %c0_18 = arith.constant 0 : index
    %c0_19 = arith.constant 0 : index
    %c0_20 = arith.constant 0 : index
    %27 = vector.load %arg4[%c0_17, %c0_18, %c0_19, %c0_20] : memref<1x3x9x9xf32, #tpu.memory_space<vmem>>, vector<1x1x8x8xf32>
    %28 = vector.shape_cast %27 : vector<1x1x8x8xf32> to vector<8x8xf32>
    %29 = vector.broadcast %26 : f32 to vector<8x8xf32>
    %30 = arith.mulf %29, %28 : vector<8x8xf32>
    %31 = arith.addf %25, %30 : vector<8x8xf32>
    %c5 = arith.constant 5 : index
    %32 = memref.load %arg5[%c5] : memref<108xf32, #tpu.memory_space<smem>>
    %c0_21 = arith.constant 0 : index
    %c0_22 = arith.constant 0 : index
    %c0_23 = arith.constant 0 : index
    %c1_24 = arith.constant 1 : index
    %33 = vector.load %arg3[%c0_21, %c0_22, %c0_23, %c1_24] : memref<1x3x9x9xf32, #tpu.memory_space<vmem>>, vector<1x1x8x8xf32>
    %34 = vector.shape_cast %33 : vector<1x1x8x8xf32> to vector<8x8xf32>
    %35 = vector.broadcast %32 : f32 to vector<8x8xf32>
    %36 = arith.mulf %35, %34 : vector<8x8xf32>
    %37 = arith.addf %31, %36 : vector<8x8xf32>
    %c6 = arith.constant 6 : index
    %38 = memref.load %arg5[%c6] : memref<108xf32, #tpu.memory_space<smem>>
    %c0_25 = arith.constant 0 : index
    %c0_26 = arith.constant 0 : index
    %c1_27 = arith.constant 1 : index
    %c0_28 = arith.constant 0 : index
    %39 = vector.load %arg1[%c0_25, %c0_26, %c1_27, %c0_28] : memref<1x3x9x9xf32, #tpu.memory_space<vmem>>, vector<1x1x8x8xf32>
    %40 = vector.shape_cast %39 : vector<1x1x8x8xf32> to vector<8x8xf32>
    %41 = vector.broadcast %38 : f32 to vector<8x8xf32>
    %42 = arith.mulf %41, %40 : vector<8x8xf32>
    %43 = arith.addf %37, %42 : vector<8x8xf32>
    %c7 = arith.constant 7 : index
    %44 = memref.load %arg5[%c7] : memref<108xf32, #tpu.memory_space<smem>>
    %c0_29 = arith.constant 0 : index
    %c0_30 = arith.constant 0 : index
    %c1_31 = arith.constant 1 : index
    %c0_32 = arith.constant 0 : index
    %45 = vector.load %arg2[%c0_29, %c0_30, %c1_31, %c0_32] : memref<1x3x9x9xf32, #tpu.memory_space<vmem>>, vector<1x1x8x8xf32>
    %46 = vector.shape_cast %45 : vector<1x1x8x8xf32> to vector<8x8xf32>
    %47 = vector.broadcast %44 : f32 to vector<8x8xf32>
    %48 = arith.mulf %47, %46 : vector<8x8xf32>
    %49 = arith.addf %43, %48 : vector<8x8xf32>
    %c8 = arith.constant 8 : index
    %50 = memref.load %arg5[%c8] : memref<108xf32, #tpu.memory_space<smem>>
    %c0_33 = arith.constant 0 : index
    %c0_34 = arith.constant 0 : index
    %c1_35 = arith.constant 1 : index
    %c1_36 = arith.constant 1 : index
    %51 = vector.load %arg1[%c0_33, %c0_34, %c1_35, %c1_36] : memref<1x3x9x9xf32, #tpu.memory_space<vmem>>, vector<1x1x8x8xf32>
    %52 = vector.shape_cast %51 : vector<1x1x8x8xf32> to vector<8x8xf32>
    %53 = vector.broadcast %50 : f32 to vector<8x8xf32>
    %54 = arith.mulf %53, %52 : vector<8x8xf32>
    %55 = arith.addf %49, %54 : vector<8x8xf32>
    %c9 = arith.constant 9 : index
    %56 = memref.load %arg5[%c9] : memref<108xf32, #tpu.memory_space<smem>>
    %c0_37 = arith.constant 0 : index
    %c1_38 = arith.constant 1 : index
    %c0_39 = arith.constant 0 : index
    %c0_40 = arith.constant 0 : index
    %57 = vector.load %arg1[%c0_37, %c1_38, %c0_39, %c0_40] : memref<1x3x9x9xf32, #tpu.memory_space<vmem>>, vector<1x1x8x8xf32>
    %58 = vector.shape_cast %57 : vector<1x1x8x8xf32> to vector<8x8xf32>
    %59 = vector.broadcast %56 : f32 to vector<8x8xf32>
    %60 = arith.mulf %59, %58 : vector<8x8xf32>
    %61 = arith.addf %55, %60 : vector<8x8xf32>
    %c10 = arith.constant 10 : index
    %62 = memref.load %arg5[%c10] : memref<108xf32, #tpu.memory_space<smem>>
    %c0_41 = arith.constant 0 : index
    %c1_42 = arith.constant 1 : index
    %c0_43 = arith.constant 0 : index
    %c0_44 = arith.constant 0 : index
    %63 = vector.load %arg2[%c0_41, %c1_42, %c0_43, %c0_44] : memref<1x3x9x9xf32, #tpu.memory_space<vmem>>, vector<1x1x8x8xf32>
    %64 = vector.shape_cast %63 : vector<1x1x8x8xf32> to vector<8x8xf32>
    %65 = vector.broadcast %62 : f32 to vector<8x8xf32>
    %66 = arith.mulf %65, %64 : vector<8x8xf32>
    %67 = arith.addf %61, %66 : vector<8x8xf32>
    %c11 = arith.constant 11 : index
    %68 = memref.load %arg5[%c11] : memref<108xf32, #tpu.memory_space<smem>>
    %c0_45 = arith.constant 0 : index
    %c1_46 = arith.constant 1 : index
    %c0_47 = arith.constant 0 : index
    %c1_48 = arith.constant 1 : index
    %69 = vector.load %arg1[%c0_45, %c1_46, %c0_47, %c1_48] : memref<1x3x9x9xf32, #tpu.memory_space<vmem>>, vector<1x1x8x8xf32>
    %70 = vector.shape_cast %69 : vector<1x1x8x8xf32> to vector<8x8xf32>
    %71 = vector.broadcast %68 : f32 to vector<8x8xf32>
    %72 = arith.mulf %71, %70 : vector<8x8xf32>
    %73 = arith.addf %67, %72 : vector<8x8xf32>
    %c12 = arith.constant 12 : index
    %74 = memref.load %arg5[%c12] : memref<108xf32, #tpu.memory_space<smem>>
    %c0_49 = arith.constant 0 : index
    %c1_50 = arith.constant 1 : index
    %c0_51 = arith.constant 0 : index
    %c0_52 = arith.constant 0 : index
    %75 = vector.load %arg3[%c0_49, %c1_50, %c0_51, %c0_52] : memref<1x3x9x9xf32, #tpu.memory_space<vmem>>, vector<1x1x8x8xf32>
    %76 = vector.shape_cast %75 : vector<1x1x8x8xf32> to vector<8x8xf32>
    %77 = vector.broadcast %74 : f32 to vector<8x8xf32>
    %78 = arith.mulf %77, %76 : vector<8x8xf32>
    %79 = arith.addf %73, %78 : vector<8x8xf32>
    %c13 = arith.constant 13 : index
    %80 = memref.load %arg5[%c13] : memref<108xf32, #tpu.memory_space<smem>>
    %c0_53 = arith.constant 0 : index
    %c1_54 = arith.constant 1 : index
    %c0_55 = arith.constant 0 : index
    %c0_56 = arith.constant 0 : index
    %81 = vector.load %arg4[%c0_53, %c1_54, %c0_55, %c0_56] : memref<1x3x9x9xf32, #tpu.memory_space<vmem>>, vector<1x1x8x8xf32>
    %82 = vector.shape_cast %81 : vector<1x1x8x8xf32> to vector<8x8xf32>
    %83 = vector.broadcast %80 : f32 to vector<8x8xf32>
    %84 = arith.mulf %83, %82 : vector<8x8xf32>
    %85 = arith.addf %79, %84 : vector<8x8xf32>
    %c14 = arith.constant 14 : index
    %86 = memref.load %arg5[%c14] : memref<108xf32, #tpu.memory_space<smem>>
    %c0_57 = arith.constant 0 : index
    %c1_58 = arith.constant 1 : index
    %c0_59 = arith.constant 0 : index
    %c1_60 = arith.constant 1 : index
    %87 = vector.load %arg3[%c0_57, %c1_58, %c0_59, %c1_60] : memref<1x3x9x9xf32, #tpu.memory_space<vmem>>, vector<1x1x8x8xf32>
    %88 = vector.shape_cast %87 : vector<1x1x8x8xf32> to vector<8x8xf32>
    %89 = vector.broadcast %86 : f32 to vector<8x8xf32>
    %90 = arith.mulf %89, %88 : vector<8x8xf32>
    %91 = arith.addf %85, %90 : vector<8x8xf32>
    %c15 = arith.constant 15 : index
    %92 = memref.load %arg5[%c15] : memref<108xf32, #tpu.memory_space<smem>>
    %c0_61 = arith.constant 0 : index
    %c1_62 = arith.constant 1 : index
    %c1_63 = arith.constant 1 : index
    %c0_64 = arith.constant 0 : index
    %93 = vector.load %arg1[%c0_61, %c1_62, %c1_63, %c0_64] : memref<1x3x9x9xf32, #tpu.memory_space<vmem>>, vector<1x1x8x8xf32>
    %94 = vector.shape_cast %93 : vector<1x1x8x8xf32> to vector<8x8xf32>
    %95 = vector.broadcast %92 : f32 to vector<8x8xf32>
    %96 = arith.mulf %95, %94 : vector<8x8xf32>
    %97 = arith.addf %91, %96 : vector<8x8xf32>
    %c16 = arith.constant 16 : index
    %98 = memref.load %arg5[%c16] : memref<108xf32, #tpu.memory_space<smem>>
    %c0_65 = arith.constant 0 : index
    %c1_66 = arith.constant 1 : index
    %c1_67 = arith.constant 1 : index
    %c0_68 = arith.constant 0 : index
    %99 = vector.load %arg2[%c0_65, %c1_66, %c1_67, %c0_68] : memref<1x3x9x9xf32, #tpu.memory_space<vmem>>, vector<1x1x8x8xf32>
    %100 = vector.shape_cast %99 : vector<1x1x8x8xf32> to vector<8x8xf32>
    %101 = vector.broadcast %98 : f32 to vector<8x8xf32>
    %102 = arith.mulf %101, %100 : vector<8x8xf32>
    %103 = arith.addf %97, %102 : vector<8x8xf32>
    %c17 = arith.constant 17 : index
    %104 = memref.load %arg5[%c17] : memref<108xf32, #tpu.memory_space<smem>>
    %c0_69 = arith.constant 0 : index
    %c1_70 = arith.constant 1 : index
    %c1_71 = arith.constant 1 : index
    %c1_72 = arith.constant 1 : index
    %105 = vector.load %arg1[%c0_69, %c1_70, %c1_71, %c1_72] : memref<1x3x9x9xf32, #tpu.memory_space<vmem>>, vector<1x1x8x8xf32>
    %106 = vector.shape_cast %105 : vector<1x1x8x8xf32> to vector<8x8xf32>
    %107 = vector.broadcast %104 : f32 to vector<8x8xf32>
    %108 = arith.mulf %107, %106 : vector<8x8xf32>
    %109 = arith.addf %103, %108 : vector<8x8xf32>
    %c18 = arith.constant 18 : index
    %110 = memref.load %arg5[%c18] : memref<108xf32, #tpu.memory_space<smem>>
    %c0_73 = arith.constant 0 : index
    %c2_74 = arith.constant 2 : index
    %c0_75 = arith.constant 0 : index
    %c0_76 = arith.constant 0 : index
    %111 = vector.load %arg1[%c0_73, %c2_74, %c0_75, %c0_76] : memref<1x3x9x9xf32, #tpu.memory_space<vmem>>, vector<1x1x8x8xf32>
    %112 = vector.shape_cast %111 : vector<1x1x8x8xf32> to vector<8x8xf32>
    %113 = vector.broadcast %110 : f32 to vector<8x8xf32>
    %114 = arith.mulf %113, %112 : vector<8x8xf32>
    %115 = arith.addf %109, %114 : vector<8x8xf32>
    %c19 = arith.constant 19 : index
    %116 = memref.load %arg5[%c19] : memref<108xf32, #tpu.memory_space<smem>>
    %c0_77 = arith.constant 0 : index
    %c2_78 = arith.constant 2 : index
    %c0_79 = arith.constant 0 : index
    %c0_80 = arith.constant 0 : index
    %117 = vector.load %arg2[%c0_77, %c2_78, %c0_79, %c0_80] : memref<1x3x9x9xf32, #tpu.memory_space<vmem>>, vector<1x1x8x8xf32>
    %118 = vector.shape_cast %117 : vector<1x1x8x8xf32> to vector<8x8xf32>
    %119 = vector.broadcast %116 : f32 to vector<8x8xf32>
    %120 = arith.mulf %119, %118 : vector<8x8xf32>
    %121 = arith.addf %115, %120 : vector<8x8xf32>
    %c20 = arith.constant 20 : index
    %122 = memref.load %arg5[%c20] : memref<108xf32, #tpu.memory_space<smem>>
    %c0_81 = arith.constant 0 : index
    %c2_82 = arith.constant 2 : index
    %c0_83 = arith.constant 0 : index
    %c1_84 = arith.constant 1 : index
    %123 = vector.load %arg1[%c0_81, %c2_82, %c0_83, %c1_84] : memref<1x3x9x9xf32, #tpu.memory_space<vmem>>, vector<1x1x8x8xf32>
    %124 = vector.shape_cast %123 : vector<1x1x8x8xf32> to vector<8x8xf32>
    %125 = vector.broadcast %122 : f32 to vector<8x8xf32>
    %126 = arith.mulf %125, %124 : vector<8x8xf32>
    %127 = arith.addf %121, %126 : vector<8x8xf32>
    %c21 = arith.constant 21 : index
    %128 = memref.load %arg5[%c21] : memref<108xf32, #tpu.memory_space<smem>>
    %c0_85 = arith.constant 0 : index
    %c2_86 = arith.constant 2 : index
    %c0_87 = arith.constant 0 : index
    %c0_88 = arith.constant 0 : index
    %129 = vector.load %arg3[%c0_85, %c2_86, %c0_87, %c0_88] : memref<1x3x9x9xf32, #tpu.memory_space<vmem>>, vector<1x1x8x8xf32>
    %130 = vector.shape_cast %129 : vector<1x1x8x8xf32> to vector<8x8xf32>
    %131 = vector.broadcast %128 : f32 to vector<8x8xf32>
    %132 = arith.mulf %131, %130 : vector<8x8xf32>
    %133 = arith.addf %127, %132 : vector<8x8xf32>
    %c22 = arith.constant 22 : index
    %134 = memref.load %arg5[%c22] : memref<108xf32, #tpu.memory_space<smem>>
    %c0_89 = arith.constant 0 : index
    %c2_90 = arith.constant 2 : index
    %c0_91 = arith.constant 0 : index
    %c0_92 = arith.constant 0 : index
    %135 = vector.load %arg4[%c0_89, %c2_90, %c0_91, %c0_92] : memref<1x3x9x9xf32, #tpu.memory_space<vmem>>, vector<1x1x8x8xf32>
    %136 = vector.shape_cast %135 : vector<1x1x8x8xf32> to vector<8x8xf32>
    %137 = vector.broadcast %134 : f32 to vector<8x8xf32>
    %138 = arith.mulf %137, %136 : vector<8x8xf32>
    %139 = arith.addf %133, %138 : vector<8x8xf32>
    %c23 = arith.constant 23 : index
    %140 = memref.load %arg5[%c23] : memref<108xf32, #tpu.memory_space<smem>>
    %c0_93 = arith.constant 0 : index
    %c2_94 = arith.constant 2 : index
    %c0_95 = arith.constant 0 : index
    %c1_96 = arith.constant 1 : index
    %141 = vector.load %arg3[%c0_93, %c2_94, %c0_95, %c1_96] : memref<1x3x9x9xf32, #tpu.memory_space<vmem>>, vector<1x1x8x8xf32>
    %142 = vector.shape_cast %141 : vector<1x1x8x8xf32> to vector<8x8xf32>
    %143 = vector.broadcast %140 : f32 to vector<8x8xf32>
    %144 = arith.mulf %143, %142 : vector<8x8xf32>
    %145 = arith.addf %139, %144 : vector<8x8xf32>
    %c24 = arith.constant 24 : index
    %146 = memref.load %arg5[%c24] : memref<108xf32, #tpu.memory_space<smem>>
    %c0_97 = arith.constant 0 : index
    %c2_98 = arith.constant 2 : index
    %c1_99 = arith.constant 1 : index
    %c0_100 = arith.constant 0 : index
    %147 = vector.load %arg1[%c0_97, %c2_98, %c1_99, %c0_100] : memref<1x3x9x9xf32, #tpu.memory_space<vmem>>, vector<1x1x8x8xf32>
    %148 = vector.shape_cast %147 : vector<1x1x8x8xf32> to vector<8x8xf32>
    %149 = vector.broadcast %146 : f32 to vector<8x8xf32>
    %150 = arith.mulf %149, %148 : vector<8x8xf32>
    %151 = arith.addf %145, %150 : vector<8x8xf32>
    %c25 = arith.constant 25 : index
    %152 = memref.load %arg5[%c25] : memref<108xf32, #tpu.memory_space<smem>>
    %c0_101 = arith.constant 0 : index
    %c2_102 = arith.constant 2 : index
    %c1_103 = arith.constant 1 : index
    %c0_104 = arith.constant 0 : index
    %153 = vector.load %arg2[%c0_101, %c2_102, %c1_103, %c0_104] : memref<1x3x9x9xf32, #tpu.memory_space<vmem>>, vector<1x1x8x8xf32>
    %154 = vector.shape_cast %153 : vector<1x1x8x8xf32> to vector<8x8xf32>
    %155 = vector.broadcast %152 : f32 to vector<8x8xf32>
    %156 = arith.mulf %155, %154 : vector<8x8xf32>
    %157 = arith.addf %151, %156 : vector<8x8xf32>
    %c26 = arith.constant 26 : index
    %158 = memref.load %arg5[%c26] : memref<108xf32, #tpu.memory_space<smem>>
    %c0_105 = arith.constant 0 : index
    %c2_106 = arith.constant 2 : index
    %c1_107 = arith.constant 1 : index
    %c1_108 = arith.constant 1 : index
    %159 = vector.load %arg1[%c0_105, %c2_106, %c1_107, %c1_108] : memref<1x3x9x9xf32, #tpu.memory_space<vmem>>, vector<1x1x8x8xf32>
    %160 = vector.shape_cast %159 : vector<1x1x8x8xf32> to vector<8x8xf32>
    %161 = vector.broadcast %158 : f32 to vector<8x8xf32>
    %162 = arith.mulf %161, %160 : vector<8x8xf32>
    %163 = arith.addf %157, %162 : vector<8x8xf32>
    %cst = arith.constant 0.000000e+00 : f32
    %164 = vector.broadcast %cst : f32 to vector<8x8xf32>
    %165 = arith.maximumf %163, %164 : vector<8x8xf32>
    %c1_109 = arith.constant 1 : index
    %166 = memref.load %arg6[%c1_109] : memref<4xf32, #tpu.memory_space<smem>>
    %167 = vector.broadcast %166 : f32 to vector<8x8xf32>
    %c27 = arith.constant 27 : index
    %168 = memref.load %arg5[%c27] : memref<108xf32, #tpu.memory_space<smem>>
    %c0_110 = arith.constant 0 : index
    %c0_111 = arith.constant 0 : index
    %c0_112 = arith.constant 0 : index
    %c0_113 = arith.constant 0 : index
    %169 = vector.load %arg1[%c0_110, %c0_111, %c0_112, %c0_113] : memref<1x3x9x9xf32, #tpu.memory_space<vmem>>, vector<1x1x8x8xf32>
    %170 = vector.shape_cast %169 : vector<1x1x8x8xf32> to vector<8x8xf32>
    %171 = vector.broadcast %168 : f32 to vector<8x8xf32>
    %172 = arith.mulf %171, %170 : vector<8x8xf32>
    %173 = arith.addf %167, %172 : vector<8x8xf32>
    %c28 = arith.constant 28 : index
    %174 = memref.load %arg5[%c28] : memref<108xf32, #tpu.memory_space<smem>>
    %c0_114 = arith.constant 0 : index
    %c0_115 = arith.constant 0 : index
    %c0_116 = arith.constant 0 : index
    %c0_117 = arith.constant 0 : index
    %175 = vector.load %arg2[%c0_114, %c0_115, %c0_116, %c0_117] : memref<1x3x9x9xf32, #tpu.memory_space<vmem>>, vector<1x1x8x8xf32>
    %176 = vector.shape_cast %175 : vector<1x1x8x8xf32> to vector<8x8xf32>
    %177 = vector.broadcast %174 : f32 to vector<8x8xf32>
    %178 = arith.mulf %177, %176 : vector<8x8xf32>
    %179 = arith.addf %173, %178 : vector<8x8xf32>
    %c29 = arith.constant 29 : index
    %180 = memref.load %arg5[%c29] : memref<108xf32, #tpu.memory_space<smem>>
    %c0_118 = arith.constant 0 : index
    %c0_119 = arith.constant 0 : index
    %c0_120 = arith.constant 0 : index
    %c1_121 = arith.constant 1 : index
    %181 = vector.load %arg1[%c0_118, %c0_119, %c0_120, %c1_121] : memref<1x3x9x9xf32, #tpu.memory_space<vmem>>, vector<1x1x8x8xf32>
    %182 = vector.shape_cast %181 : vector<1x1x8x8xf32> to vector<8x8xf32>
    %183 = vector.broadcast %180 : f32 to vector<8x8xf32>
    %184 = arith.mulf %183, %182 : vector<8x8xf32>
    %185 = arith.addf %179, %184 : vector<8x8xf32>
    %c30 = arith.constant 30 : index
    %186 = memref.load %arg5[%c30] : memref<108xf32, #tpu.memory_space<smem>>
    %c0_122 = arith.constant 0 : index
    %c0_123 = arith.constant 0 : index
    %c0_124 = arith.constant 0 : index
    %c0_125 = arith.constant 0 : index
    %187 = vector.load %arg3[%c0_122, %c0_123, %c0_124, %c0_125] : memref<1x3x9x9xf32, #tpu.memory_space<vmem>>, vector<1x1x8x8xf32>
    %188 = vector.shape_cast %187 : vector<1x1x8x8xf32> to vector<8x8xf32>
    %189 = vector.broadcast %186 : f32 to vector<8x8xf32>
    %190 = arith.mulf %189, %188 : vector<8x8xf32>
    %191 = arith.addf %185, %190 : vector<8x8xf32>
    %c31 = arith.constant 31 : index
    %192 = memref.load %arg5[%c31] : memref<108xf32, #tpu.memory_space<smem>>
    %c0_126 = arith.constant 0 : index
    %c0_127 = arith.constant 0 : index
    %c0_128 = arith.constant 0 : index
    %c0_129 = arith.constant 0 : index
    %193 = vector.load %arg4[%c0_126, %c0_127, %c0_128, %c0_129] : memref<1x3x9x9xf32, #tpu.memory_space<vmem>>, vector<1x1x8x8xf32>
    %194 = vector.shape_cast %193 : vector<1x1x8x8xf32> to vector<8x8xf32>
    %195 = vector.broadcast %192 : f32 to vector<8x8xf32>
    %196 = arith.mulf %195, %194 : vector<8x8xf32>
    %197 = arith.addf %191, %196 : vector<8x8xf32>
    %c32 = arith.constant 32 : index
    %198 = memref.load %arg5[%c32] : memref<108xf32, #tpu.memory_space<smem>>
    %c0_130 = arith.constant 0 : index
    %c0_131 = arith.constant 0 : index
    %c0_132 = arith.constant 0 : index
    %c1_133 = arith.constant 1 : index
    %199 = vector.load %arg3[%c0_130, %c0_131, %c0_132, %c1_133] : memref<1x3x9x9xf32, #tpu.memory_space<vmem>>, vector<1x1x8x8xf32>
    %200 = vector.shape_cast %199 : vector<1x1x8x8xf32> to vector<8x8xf32>
    %201 = vector.broadcast %198 : f32 to vector<8x8xf32>
    %202 = arith.mulf %201, %200 : vector<8x8xf32>
    %203 = arith.addf %197, %202 : vector<8x8xf32>
    %c33 = arith.constant 33 : index
    %204 = memref.load %arg5[%c33] : memref<108xf32, #tpu.memory_space<smem>>
    %c0_134 = arith.constant 0 : index
    %c0_135 = arith.constant 0 : index
    %c1_136 = arith.constant 1 : index
    %c0_137 = arith.constant 0 : index
    %205 = vector.load %arg1[%c0_134, %c0_135, %c1_136, %c0_137] : memref<1x3x9x9xf32, #tpu.memory_space<vmem>>, vector<1x1x8x8xf32>
    %206 = vector.shape_cast %205 : vector<1x1x8x8xf32> to vector<8x8xf32>
    %207 = vector.broadcast %204 : f32 to vector<8x8xf32>
    %208 = arith.mulf %207, %206 : vector<8x8xf32>
    %209 = arith.addf %203, %208 : vector<8x8xf32>
    %c34 = arith.constant 34 : index
    %210 = memref.load %arg5[%c34] : memref<108xf32, #tpu.memory_space<smem>>
    %c0_138 = arith.constant 0 : index
    %c0_139 = arith.constant 0 : index
    %c1_140 = arith.constant 1 : index
    %c0_141 = arith.constant 0 : index
    %211 = vector.load %arg2[%c0_138, %c0_139, %c1_140, %c0_141] : memref<1x3x9x9xf32, #tpu.memory_space<vmem>>, vector<1x1x8x8xf32>
    %212 = vector.shape_cast %211 : vector<1x1x8x8xf32> to vector<8x8xf32>
    %213 = vector.broadcast %210 : f32 to vector<8x8xf32>
    %214 = arith.mulf %213, %212 : vector<8x8xf32>
    %215 = arith.addf %209, %214 : vector<8x8xf32>
    %c35 = arith.constant 35 : index
    %216 = memref.load %arg5[%c35] : memref<108xf32, #tpu.memory_space<smem>>
    %c0_142 = arith.constant 0 : index
    %c0_143 = arith.constant 0 : index
    %c1_144 = arith.constant 1 : index
    %c1_145 = arith.constant 1 : index
    %217 = vector.load %arg1[%c0_142, %c0_143, %c1_144, %c1_145] : memref<1x3x9x9xf32, #tpu.memory_space<vmem>>, vector<1x1x8x8xf32>
    %218 = vector.shape_cast %217 : vector<1x1x8x8xf32> to vector<8x8xf32>
    %219 = vector.broadcast %216 : f32 to vector<8x8xf32>
    %220 = arith.mulf %219, %218 : vector<8x8xf32>
    %221 = arith.addf %215, %220 : vector<8x8xf32>
    %c36 = arith.constant 36 : index
    %222 = memref.load %arg5[%c36] : memref<108xf32, #tpu.memory_space<smem>>
    %c0_146 = arith.constant 0 : index
    %c1_147 = arith.constant 1 : index
    %c0_148 = arith.constant 0 : index
    %c0_149 = arith.constant 0 : index
    %223 = vector.load %arg1[%c0_146, %c1_147, %c0_148, %c0_149] : memref<1x3x9x9xf32, #tpu.memory_space<vmem>>, vector<1x1x8x8xf32>
    %224 = vector.shape_cast %223 : vector<1x1x8x8xf32> to vector<8x8xf32>
    %225 = vector.broadcast %222 : f32 to vector<8x8xf32>
    %226 = arith.mulf %225, %224 : vector<8x8xf32>
    %227 = arith.addf %221, %226 : vector<8x8xf32>
    %c37 = arith.constant 37 : index
    %228 = memref.load %arg5[%c37] : memref<108xf32, #tpu.memory_space<smem>>
    %c0_150 = arith.constant 0 : index
    %c1_151 = arith.constant 1 : index
    %c0_152 = arith.constant 0 : index
    %c0_153 = arith.constant 0 : index
    %229 = vector.load %arg2[%c0_150, %c1_151, %c0_152, %c0_153] : memref<1x3x9x9xf32, #tpu.memory_space<vmem>>, vector<1x1x8x8xf32>
    %230 = vector.shape_cast %229 : vector<1x1x8x8xf32> to vector<8x8xf32>
    %231 = vector.broadcast %228 : f32 to vector<8x8xf32>
    %232 = arith.mulf %231, %230 : vector<8x8xf32>
    %233 = arith.addf %227, %232 : vector<8x8xf32>
    %c38 = arith.constant 38 : index
    %234 = memref.load %arg5[%c38] : memref<108xf32, #tpu.memory_space<smem>>
    %c0_154 = arith.constant 0 : index
    %c1_155 = arith.constant 1 : index
    %c0_156 = arith.constant 0 : index
    %c1_157 = arith.constant 1 : index
    %235 = vector.load %arg1[%c0_154, %c1_155, %c0_156, %c1_157] : memref<1x3x9x9xf32, #tpu.memory_space<vmem>>, vector<1x1x8x8xf32>
    %236 = vector.shape_cast %235 : vector<1x1x8x8xf32> to vector<8x8xf32>
    %237 = vector.broadcast %234 : f32 to vector<8x8xf32>
    %238 = arith.mulf %237, %236 : vector<8x8xf32>
    %239 = arith.addf %233, %238 : vector<8x8xf32>
    %c39 = arith.constant 39 : index
    %240 = memref.load %arg5[%c39] : memref<108xf32, #tpu.memory_space<smem>>
    %c0_158 = arith.constant 0 : index
    %c1_159 = arith.constant 1 : index
    %c0_160 = arith.constant 0 : index
    %c0_161 = arith.constant 0 : index
    %241 = vector.load %arg3[%c0_158, %c1_159, %c0_160, %c0_161] : memref<1x3x9x9xf32, #tpu.memory_space<vmem>>, vector<1x1x8x8xf32>
    %242 = vector.shape_cast %241 : vector<1x1x8x8xf32> to vector<8x8xf32>
    %243 = vector.broadcast %240 : f32 to vector<8x8xf32>
    %244 = arith.mulf %243, %242 : vector<8x8xf32>
    %245 = arith.addf %239, %244 : vector<8x8xf32>
    %c40 = arith.constant 40 : index
    %246 = memref.load %arg5[%c40] : memref<108xf32, #tpu.memory_space<smem>>
    %c0_162 = arith.constant 0 : index
    %c1_163 = arith.constant 1 : index
    %c0_164 = arith.constant 0 : index
    %c0_165 = arith.constant 0 : index
    %247 = vector.load %arg4[%c0_162, %c1_163, %c0_164, %c0_165] : memref<1x3x9x9xf32, #tpu.memory_space<vmem>>, vector<1x1x8x8xf32>
    %248 = vector.shape_cast %247 : vector<1x1x8x8xf32> to vector<8x8xf32>
    %249 = vector.broadcast %246 : f32 to vector<8x8xf32>
    %250 = arith.mulf %249, %248 : vector<8x8xf32>
    %251 = arith.addf %245, %250 : vector<8x8xf32>
    %c41 = arith.constant 41 : index
    %252 = memref.load %arg5[%c41] : memref<108xf32, #tpu.memory_space<smem>>
    %c0_166 = arith.constant 0 : index
    %c1_167 = arith.constant 1 : index
    %c0_168 = arith.constant 0 : index
    %c1_169 = arith.constant 1 : index
    %253 = vector.load %arg3[%c0_166, %c1_167, %c0_168, %c1_169] : memref<1x3x9x9xf32, #tpu.memory_space<vmem>>, vector<1x1x8x8xf32>
    %254 = vector.shape_cast %253 : vector<1x1x8x8xf32> to vector<8x8xf32>
    %255 = vector.broadcast %252 : f32 to vector<8x8xf32>
    %256 = arith.mulf %255, %254 : vector<8x8xf32>
    %257 = arith.addf %251, %256 : vector<8x8xf32>
    %c42 = arith.constant 42 : index
    %258 = memref.load %arg5[%c42] : memref<108xf32, #tpu.memory_space<smem>>
    %c0_170 = arith.constant 0 : index
    %c1_171 = arith.constant 1 : index
    %c1_172 = arith.constant 1 : index
    %c0_173 = arith.constant 0 : index
    %259 = vector.load %arg1[%c0_170, %c1_171, %c1_172, %c0_173] : memref<1x3x9x9xf32, #tpu.memory_space<vmem>>, vector<1x1x8x8xf32>
    %260 = vector.shape_cast %259 : vector<1x1x8x8xf32> to vector<8x8xf32>
    %261 = vector.broadcast %258 : f32 to vector<8x8xf32>
    %262 = arith.mulf %261, %260 : vector<8x8xf32>
    %263 = arith.addf %257, %262 : vector<8x8xf32>
    %c43 = arith.constant 43 : index
    %264 = memref.load %arg5[%c43] : memref<108xf32, #tpu.memory_space<smem>>
    %c0_174 = arith.constant 0 : index
    %c1_175 = arith.constant 1 : index
    %c1_176 = arith.constant 1 : index
    %c0_177 = arith.constant 0 : index
    %265 = vector.load %arg2[%c0_174, %c1_175, %c1_176, %c0_177] : memref<1x3x9x9xf32, #tpu.memory_space<vmem>>, vector<1x1x8x8xf32>
    %266 = vector.shape_cast %265 : vector<1x1x8x8xf32> to vector<8x8xf32>
    %267 = vector.broadcast %264 : f32 to vector<8x8xf32>
    %268 = arith.mulf %267, %266 : vector<8x8xf32>
    %269 = arith.addf %263, %268 : vector<8x8xf32>
    %c44 = arith.constant 44 : index
    %270 = memref.load %arg5[%c44] : memref<108xf32, #tpu.memory_space<smem>>
    %c0_178 = arith.constant 0 : index
    %c1_179 = arith.constant 1 : index
    %c1_180 = arith.constant 1 : index
    %c1_181 = arith.constant 1 : index
    %271 = vector.load %arg1[%c0_178, %c1_179, %c1_180, %c1_181] : memref<1x3x9x9xf32, #tpu.memory_space<vmem>>, vector<1x1x8x8xf32>
    %272 = vector.shape_cast %271 : vector<1x1x8x8xf32> to vector<8x8xf32>
    %273 = vector.broadcast %270 : f32 to vector<8x8xf32>
    %274 = arith.mulf %273, %272 : vector<8x8xf32>
    %275 = arith.addf %269, %274 : vector<8x8xf32>
    %c45 = arith.constant 45 : index
    %276 = memref.load %arg5[%c45] : memref<108xf32, #tpu.memory_space<smem>>
    %c0_182 = arith.constant 0 : index
    %c2_183 = arith.constant 2 : index
    %c0_184 = arith.constant 0 : index
    %c0_185 = arith.constant 0 : index
    %277 = vector.load %arg1[%c0_182, %c2_183, %c0_184, %c0_185] : memref<1x3x9x9xf32, #tpu.memory_space<vmem>>, vector<1x1x8x8xf32>
    %278 = vector.shape_cast %277 : vector<1x1x8x8xf32> to vector<8x8xf32>
    %279 = vector.broadcast %276 : f32 to vector<8x8xf32>
    %280 = arith.mulf %279, %278 : vector<8x8xf32>
    %281 = arith.addf %275, %280 : vector<8x8xf32>
    %c46 = arith.constant 46 : index
    %282 = memref.load %arg5[%c46] : memref<108xf32, #tpu.memory_space<smem>>
    %c0_186 = arith.constant 0 : index
    %c2_187 = arith.constant 2 : index
    %c0_188 = arith.constant 0 : index
    %c0_189 = arith.constant 0 : index
    %283 = vector.load %arg2[%c0_186, %c2_187, %c0_188, %c0_189] : memref<1x3x9x9xf32, #tpu.memory_space<vmem>>, vector<1x1x8x8xf32>
    %284 = vector.shape_cast %283 : vector<1x1x8x8xf32> to vector<8x8xf32>
    %285 = vector.broadcast %282 : f32 to vector<8x8xf32>
    %286 = arith.mulf %285, %284 : vector<8x8xf32>
    %287 = arith.addf %281, %286 : vector<8x8xf32>
    %c47 = arith.constant 47 : index
    %288 = memref.load %arg5[%c47] : memref<108xf32, #tpu.memory_space<smem>>
    %c0_190 = arith.constant 0 : index
    %c2_191 = arith.constant 2 : index
    %c0_192 = arith.constant 0 : index
    %c1_193 = arith.constant 1 : index
    %289 = vector.load %arg1[%c0_190, %c2_191, %c0_192, %c1_193] : memref<1x3x9x9xf32, #tpu.memory_space<vmem>>, vector<1x1x8x8xf32>
    %290 = vector.shape_cast %289 : vector<1x1x8x8xf32> to vector<8x8xf32>
    %291 = vector.broadcast %288 : f32 to vector<8x8xf32>
    %292 = arith.mulf %291, %290 : vector<8x8xf32>
    %293 = arith.addf %287, %292 : vector<8x8xf32>
    %c48 = arith.constant 48 : index
    %294 = memref.load %arg5[%c48] : memref<108xf32, #tpu.memory_space<smem>>
    %c0_194 = arith.constant 0 : index
    %c2_195 = arith.constant 2 : index
    %c0_196 = arith.constant 0 : index
    %c0_197 = arith.constant 0 : index
    %295 = vector.load %arg3[%c0_194, %c2_195, %c0_196, %c0_197] : memref<1x3x9x9xf32, #tpu.memory_space<vmem>>, vector<1x1x8x8xf32>
    %296 = vector.shape_cast %295 : vector<1x1x8x8xf32> to vector<8x8xf32>
    %297 = vector.broadcast %294 : f32 to vector<8x8xf32>
    %298 = arith.mulf %297, %296 : vector<8x8xf32>
    %299 = arith.addf %293, %298 : vector<8x8xf32>
    %c49 = arith.constant 49 : index
    %300 = memref.load %arg5[%c49] : memref<108xf32, #tpu.memory_space<smem>>
    %c0_198 = arith.constant 0 : index
    %c2_199 = arith.constant 2 : index
    %c0_200 = arith.constant 0 : index
    %c0_201 = arith.constant 0 : index
    %301 = vector.load %arg4[%c0_198, %c2_199, %c0_200, %c0_201] : memref<1x3x9x9xf32, #tpu.memory_space<vmem>>, vector<1x1x8x8xf32>
    %302 = vector.shape_cast %301 : vector<1x1x8x8xf32> to vector<8x8xf32>
    %303 = vector.broadcast %300 : f32 to vector<8x8xf32>
    %304 = arith.mulf %303, %302 : vector<8x8xf32>
    %305 = arith.addf %299, %304 : vector<8x8xf32>
    %c50 = arith.constant 50 : index
    %306 = memref.load %arg5[%c50] : memref<108xf32, #tpu.memory_space<smem>>
    %c0_202 = arith.constant 0 : index
    %c2_203 = arith.constant 2 : index
    %c0_204 = arith.constant 0 : index
    %c1_205 = arith.constant 1 : index
    %307 = vector.load %arg3[%c0_202, %c2_203, %c0_204, %c1_205] : memref<1x3x9x9xf32, #tpu.memory_space<vmem>>, vector<1x1x8x8xf32>
    %308 = vector.shape_cast %307 : vector<1x1x8x8xf32> to vector<8x8xf32>
    %309 = vector.broadcast %306 : f32 to vector<8x8xf32>
    %310 = arith.mulf %309, %308 : vector<8x8xf32>
    %311 = arith.addf %305, %310 : vector<8x8xf32>
    %c51 = arith.constant 51 : index
    %312 = memref.load %arg5[%c51] : memref<108xf32, #tpu.memory_space<smem>>
    %c0_206 = arith.constant 0 : index
    %c2_207 = arith.constant 2 : index
    %c1_208 = arith.constant 1 : index
    %c0_209 = arith.constant 0 : index
    %313 = vector.load %arg1[%c0_206, %c2_207, %c1_208, %c0_209] : memref<1x3x9x9xf32, #tpu.memory_space<vmem>>, vector<1x1x8x8xf32>
    %314 = vector.shape_cast %313 : vector<1x1x8x8xf32> to vector<8x8xf32>
    %315 = vector.broadcast %312 : f32 to vector<8x8xf32>
    %316 = arith.mulf %315, %314 : vector<8x8xf32>
    %317 = arith.addf %311, %316 : vector<8x8xf32>
    %c52 = arith.constant 52 : index
    %318 = memref.load %arg5[%c52] : memref<108xf32, #tpu.memory_space<smem>>
    %c0_210 = arith.constant 0 : index
    %c2_211 = arith.constant 2 : index
    %c1_212 = arith.constant 1 : index
    %c0_213 = arith.constant 0 : index
    %319 = vector.load %arg2[%c0_210, %c2_211, %c1_212, %c0_213] : memref<1x3x9x9xf32, #tpu.memory_space<vmem>>, vector<1x1x8x8xf32>
    %320 = vector.shape_cast %319 : vector<1x1x8x8xf32> to vector<8x8xf32>
    %321 = vector.broadcast %318 : f32 to vector<8x8xf32>
    %322 = arith.mulf %321, %320 : vector<8x8xf32>
    %323 = arith.addf %317, %322 : vector<8x8xf32>
    %c53 = arith.constant 53 : index
    %324 = memref.load %arg5[%c53] : memref<108xf32, #tpu.memory_space<smem>>
    %c0_214 = arith.constant 0 : index
    %c2_215 = arith.constant 2 : index
    %c1_216 = arith.constant 1 : index
    %c1_217 = arith.constant 1 : index
    %325 = vector.load %arg1[%c0_214, %c2_215, %c1_216, %c1_217] : memref<1x3x9x9xf32, #tpu.memory_space<vmem>>, vector<1x1x8x8xf32>
    %326 = vector.shape_cast %325 : vector<1x1x8x8xf32> to vector<8x8xf32>
    %327 = vector.broadcast %324 : f32 to vector<8x8xf32>
    %328 = arith.mulf %327, %326 : vector<8x8xf32>
    %329 = arith.addf %323, %328 : vector<8x8xf32>
    %cst_218 = arith.constant 0.000000e+00 : f32
    %330 = vector.broadcast %cst_218 : f32 to vector<8x8xf32>
    %331 = arith.maximumf %329, %330 : vector<8x8xf32>
    %c2_219 = arith.constant 2 : index
    %332 = memref.load %arg6[%c2_219] : memref<4xf32, #tpu.memory_space<smem>>
    %333 = vector.broadcast %332 : f32 to vector<8x8xf32>
    %c54 = arith.constant 54 : index
    %334 = memref.load %arg5[%c54] : memref<108xf32, #tpu.memory_space<smem>>
    %c0_220 = arith.constant 0 : index
    %c0_221 = arith.constant 0 : index
    %c0_222 = arith.constant 0 : index
    %c0_223 = arith.constant 0 : index
    %335 = vector.load %arg1[%c0_220, %c0_221, %c0_222, %c0_223] : memref<1x3x9x9xf32, #tpu.memory_space<vmem>>, vector<1x1x8x8xf32>
    %336 = vector.shape_cast %335 : vector<1x1x8x8xf32> to vector<8x8xf32>
    %337 = vector.broadcast %334 : f32 to vector<8x8xf32>
    %338 = arith.mulf %337, %336 : vector<8x8xf32>
    %339 = arith.addf %333, %338 : vector<8x8xf32>
    %c55 = arith.constant 55 : index
    %340 = memref.load %arg5[%c55] : memref<108xf32, #tpu.memory_space<smem>>
    %c0_224 = arith.constant 0 : index
    %c0_225 = arith.constant 0 : index
    %c0_226 = arith.constant 0 : index
    %c0_227 = arith.constant 0 : index
    %341 = vector.load %arg2[%c0_224, %c0_225, %c0_226, %c0_227] : memref<1x3x9x9xf32, #tpu.memory_space<vmem>>, vector<1x1x8x8xf32>
    %342 = vector.shape_cast %341 : vector<1x1x8x8xf32> to vector<8x8xf32>
    %343 = vector.broadcast %340 : f32 to vector<8x8xf32>
    %344 = arith.mulf %343, %342 : vector<8x8xf32>
    %345 = arith.addf %339, %344 : vector<8x8xf32>
    %c56 = arith.constant 56 : index
    %346 = memref.load %arg5[%c56] : memref<108xf32, #tpu.memory_space<smem>>
    %c0_228 = arith.constant 0 : index
    %c0_229 = arith.constant 0 : index
    %c0_230 = arith.constant 0 : index
    %c1_231 = arith.constant 1 : index
    %347 = vector.load %arg1[%c0_228, %c0_229, %c0_230, %c1_231] : memref<1x3x9x9xf32, #tpu.memory_space<vmem>>, vector<1x1x8x8xf32>
    %348 = vector.shape_cast %347 : vector<1x1x8x8xf32> to vector<8x8xf32>
    %349 = vector.broadcast %346 : f32 to vector<8x8xf32>
    %350 = arith.mulf %349, %348 : vector<8x8xf32>
    %351 = arith.addf %345, %350 : vector<8x8xf32>
    %c57 = arith.constant 57 : index
    %352 = memref.load %arg5[%c57] : memref<108xf32, #tpu.memory_space<smem>>
    %c0_232 = arith.constant 0 : index
    %c0_233 = arith.constant 0 : index
    %c0_234 = arith.constant 0 : index
    %c0_235 = arith.constant 0 : index
    %353 = vector.load %arg3[%c0_232, %c0_233, %c0_234, %c0_235] : memref<1x3x9x9xf32, #tpu.memory_space<vmem>>, vector<1x1x8x8xf32>
    %354 = vector.shape_cast %353 : vector<1x1x8x8xf32> to vector<8x8xf32>
    %355 = vector.broadcast %352 : f32 to vector<8x8xf32>
    %356 = arith.mulf %355, %354 : vector<8x8xf32>
    %357 = arith.addf %351, %356 : vector<8x8xf32>
    %c58 = arith.constant 58 : index
    %358 = memref.load %arg5[%c58] : memref<108xf32, #tpu.memory_space<smem>>
    %c0_236 = arith.constant 0 : index
    %c0_237 = arith.constant 0 : index
    %c0_238 = arith.constant 0 : index
    %c0_239 = arith.constant 0 : index
    %359 = vector.load %arg4[%c0_236, %c0_237, %c0_238, %c0_239] : memref<1x3x9x9xf32, #tpu.memory_space<vmem>>, vector<1x1x8x8xf32>
    %360 = vector.shape_cast %359 : vector<1x1x8x8xf32> to vector<8x8xf32>
    %361 = vector.broadcast %358 : f32 to vector<8x8xf32>
    %362 = arith.mulf %361, %360 : vector<8x8xf32>
    %363 = arith.addf %357, %362 : vector<8x8xf32>
    %c59 = arith.constant 59 : index
    %364 = memref.load %arg5[%c59] : memref<108xf32, #tpu.memory_space<smem>>
    %c0_240 = arith.constant 0 : index
    %c0_241 = arith.constant 0 : index
    %c0_242 = arith.constant 0 : index
    %c1_243 = arith.constant 1 : index
    %365 = vector.load %arg3[%c0_240, %c0_241, %c0_242, %c1_243] : memref<1x3x9x9xf32, #tpu.memory_space<vmem>>, vector<1x1x8x8xf32>
    %366 = vector.shape_cast %365 : vector<1x1x8x8xf32> to vector<8x8xf32>
    %367 = vector.broadcast %364 : f32 to vector<8x8xf32>
    %368 = arith.mulf %367, %366 : vector<8x8xf32>
    %369 = arith.addf %363, %368 : vector<8x8xf32>
    %c60 = arith.constant 60 : index
    %370 = memref.load %arg5[%c60] : memref<108xf32, #tpu.memory_space<smem>>
    %c0_244 = arith.constant 0 : index
    %c0_245 = arith.constant 0 : index
    %c1_246 = arith.constant 1 : index
    %c0_247 = arith.constant 0 : index
    %371 = vector.load %arg1[%c0_244, %c0_245, %c1_246, %c0_247] : memref<1x3x9x9xf32, #tpu.memory_space<vmem>>, vector<1x1x8x8xf32>
    %372 = vector.shape_cast %371 : vector<1x1x8x8xf32> to vector<8x8xf32>
    %373 = vector.broadcast %370 : f32 to vector<8x8xf32>
    %374 = arith.mulf %373, %372 : vector<8x8xf32>
    %375 = arith.addf %369, %374 : vector<8x8xf32>
    %c61 = arith.constant 61 : index
    %376 = memref.load %arg5[%c61] : memref<108xf32, #tpu.memory_space<smem>>
    %c0_248 = arith.constant 0 : index
    %c0_249 = arith.constant 0 : index
    %c1_250 = arith.constant 1 : index
    %c0_251 = arith.constant 0 : index
    %377 = vector.load %arg2[%c0_248, %c0_249, %c1_250, %c0_251] : memref<1x3x9x9xf32, #tpu.memory_space<vmem>>, vector<1x1x8x8xf32>
    %378 = vector.shape_cast %377 : vector<1x1x8x8xf32> to vector<8x8xf32>
    %379 = vector.broadcast %376 : f32 to vector<8x8xf32>
    %380 = arith.mulf %379, %378 : vector<8x8xf32>
    %381 = arith.addf %375, %380 : vector<8x8xf32>
    %c62 = arith.constant 62 : index
    %382 = memref.load %arg5[%c62] : memref<108xf32, #tpu.memory_space<smem>>
    %c0_252 = arith.constant 0 : index
    %c0_253 = arith.constant 0 : index
    %c1_254 = arith.constant 1 : index
    %c1_255 = arith.constant 1 : index
    %383 = vector.load %arg1[%c0_252, %c0_253, %c1_254, %c1_255] : memref<1x3x9x9xf32, #tpu.memory_space<vmem>>, vector<1x1x8x8xf32>
    %384 = vector.shape_cast %383 : vector<1x1x8x8xf32> to vector<8x8xf32>
    %385 = vector.broadcast %382 : f32 to vector<8x8xf32>
    %386 = arith.mulf %385, %384 : vector<8x8xf32>
    %387 = arith.addf %381, %386 : vector<8x8xf32>
    %c63 = arith.constant 63 : index
    %388 = memref.load %arg5[%c63] : memref<108xf32, #tpu.memory_space<smem>>
    %c0_256 = arith.constant 0 : index
    %c1_257 = arith.constant 1 : index
    %c0_258 = arith.constant 0 : index
    %c0_259 = arith.constant 0 : index
    %389 = vector.load %arg1[%c0_256, %c1_257, %c0_258, %c0_259] : memref<1x3x9x9xf32, #tpu.memory_space<vmem>>, vector<1x1x8x8xf32>
    %390 = vector.shape_cast %389 : vector<1x1x8x8xf32> to vector<8x8xf32>
    %391 = vector.broadcast %388 : f32 to vector<8x8xf32>
    %392 = arith.mulf %391, %390 : vector<8x8xf32>
    %393 = arith.addf %387, %392 : vector<8x8xf32>
    %c64 = arith.constant 64 : index
    %394 = memref.load %arg5[%c64] : memref<108xf32, #tpu.memory_space<smem>>
    %c0_260 = arith.constant 0 : index
    %c1_261 = arith.constant 1 : index
    %c0_262 = arith.constant 0 : index
    %c0_263 = arith.constant 0 : index
    %395 = vector.load %arg2[%c0_260, %c1_261, %c0_262, %c0_263] : memref<1x3x9x9xf32, #tpu.memory_space<vmem>>, vector<1x1x8x8xf32>
    %396 = vector.shape_cast %395 : vector<1x1x8x8xf32> to vector<8x8xf32>
    %397 = vector.broadcast %394 : f32 to vector<8x8xf32>
    %398 = arith.mulf %397, %396 : vector<8x8xf32>
    %399 = arith.addf %393, %398 : vector<8x8xf32>
    %c65 = arith.constant 65 : index
    %400 = memref.load %arg5[%c65] : memref<108xf32, #tpu.memory_space<smem>>
    %c0_264 = arith.constant 0 : index
    %c1_265 = arith.constant 1 : index
    %c0_266 = arith.constant 0 : index
    %c1_267 = arith.constant 1 : index
    %401 = vector.load %arg1[%c0_264, %c1_265, %c0_266, %c1_267] : memref<1x3x9x9xf32, #tpu.memory_space<vmem>>, vector<1x1x8x8xf32>
    %402 = vector.shape_cast %401 : vector<1x1x8x8xf32> to vector<8x8xf32>
    %403 = vector.broadcast %400 : f32 to vector<8x8xf32>
    %404 = arith.mulf %403, %402 : vector<8x8xf32>
    %405 = arith.addf %399, %404 : vector<8x8xf32>
    %c66 = arith.constant 66 : index
    %406 = memref.load %arg5[%c66] : memref<108xf32, #tpu.memory_space<smem>>
    %c0_268 = arith.constant 0 : index
    %c1_269 = arith.constant 1 : index
    %c0_270 = arith.constant 0 : index
    %c0_271 = arith.constant 0 : index
    %407 = vector.load %arg3[%c0_268, %c1_269, %c0_270, %c0_271] : memref<1x3x9x9xf32, #tpu.memory_space<vmem>>, vector<1x1x8x8xf32>
    %408 = vector.shape_cast %407 : vector<1x1x8x8xf32> to vector<8x8xf32>
    %409 = vector.broadcast %406 : f32 to vector<8x8xf32>
    %410 = arith.mulf %409, %408 : vector<8x8xf32>
    %411 = arith.addf %405, %410 : vector<8x8xf32>
    %c67 = arith.constant 67 : index
    %412 = memref.load %arg5[%c67] : memref<108xf32, #tpu.memory_space<smem>>
    %c0_272 = arith.constant 0 : index
    %c1_273 = arith.constant 1 : index
    %c0_274 = arith.constant 0 : index
    %c0_275 = arith.constant 0 : index
    %413 = vector.load %arg4[%c0_272, %c1_273, %c0_274, %c0_275] : memref<1x3x9x9xf32, #tpu.memory_space<vmem>>, vector<1x1x8x8xf32>
    %414 = vector.shape_cast %413 : vector<1x1x8x8xf32> to vector<8x8xf32>
    %415 = vector.broadcast %412 : f32 to vector<8x8xf32>
    %416 = arith.mulf %415, %414 : vector<8x8xf32>
    %417 = arith.addf %411, %416 : vector<8x8xf32>
    %c68 = arith.constant 68 : index
    %418 = memref.load %arg5[%c68] : memref<108xf32, #tpu.memory_space<smem>>
    %c0_276 = arith.constant 0 : index
    %c1_277 = arith.constant 1 : index
    %c0_278 = arith.constant 0 : index
    %c1_279 = arith.constant 1 : index
    %419 = vector.load %arg3[%c0_276, %c1_277, %c0_278, %c1_279] : memref<1x3x9x9xf32, #tpu.memory_space<vmem>>, vector<1x1x8x8xf32>
    %420 = vector.shape_cast %419 : vector<1x1x8x8xf32> to vector<8x8xf32>
    %421 = vector.broadcast %418 : f32 to vector<8x8xf32>
    %422 = arith.mulf %421, %420 : vector<8x8xf32>
    %423 = arith.addf %417, %422 : vector<8x8xf32>
    %c69 = arith.constant 69 : index
    %424 = memref.load %arg5[%c69] : memref<108xf32, #tpu.memory_space<smem>>
    %c0_280 = arith.constant 0 : index
    %c1_281 = arith.constant 1 : index
    %c1_282 = arith.constant 1 : index
    %c0_283 = arith.constant 0 : index
    %425 = vector.load %arg1[%c0_280, %c1_281, %c1_282, %c0_283] : memref<1x3x9x9xf32, #tpu.memory_space<vmem>>, vector<1x1x8x8xf32>
    %426 = vector.shape_cast %425 : vector<1x1x8x8xf32> to vector<8x8xf32>
    %427 = vector.broadcast %424 : f32 to vector<8x8xf32>
    %428 = arith.mulf %427, %426 : vector<8x8xf32>
    %429 = arith.addf %423, %428 : vector<8x8xf32>
    %c70 = arith.constant 70 : index
    %430 = memref.load %arg5[%c70] : memref<108xf32, #tpu.memory_space<smem>>
    %c0_284 = arith.constant 0 : index
    %c1_285 = arith.constant 1 : index
    %c1_286 = arith.constant 1 : index
    %c0_287 = arith.constant 0 : index
    %431 = vector.load %arg2[%c0_284, %c1_285, %c1_286, %c0_287] : memref<1x3x9x9xf32, #tpu.memory_space<vmem>>, vector<1x1x8x8xf32>
    %432 = vector.shape_cast %431 : vector<1x1x8x8xf32> to vector<8x8xf32>
    %433 = vector.broadcast %430 : f32 to vector<8x8xf32>
    %434 = arith.mulf %433, %432 : vector<8x8xf32>
    %435 = arith.addf %429, %434 : vector<8x8xf32>
    %c71 = arith.constant 71 : index
    %436 = memref.load %arg5[%c71] : memref<108xf32, #tpu.memory_space<smem>>
    %c0_288 = arith.constant 0 : index
    %c1_289 = arith.constant 1 : index
    %c1_290 = arith.constant 1 : index
    %c1_291 = arith.constant 1 : index
    %437 = vector.load %arg1[%c0_288, %c1_289, %c1_290, %c1_291] : memref<1x3x9x9xf32, #tpu.memory_space<vmem>>, vector<1x1x8x8xf32>
    %438 = vector.shape_cast %437 : vector<1x1x8x8xf32> to vector<8x8xf32>
    %439 = vector.broadcast %436 : f32 to vector<8x8xf32>
    %440 = arith.mulf %439, %438 : vector<8x8xf32>
    %441 = arith.addf %435, %440 : vector<8x8xf32>
    %c72 = arith.constant 72 : index
    %442 = memref.load %arg5[%c72] : memref<108xf32, #tpu.memory_space<smem>>
    %c0_292 = arith.constant 0 : index
    %c2_293 = arith.constant 2 : index
    %c0_294 = arith.constant 0 : index
    %c0_295 = arith.constant 0 : index
    %443 = vector.load %arg1[%c0_292, %c2_293, %c0_294, %c0_295] : memref<1x3x9x9xf32, #tpu.memory_space<vmem>>, vector<1x1x8x8xf32>
    %444 = vector.shape_cast %443 : vector<1x1x8x8xf32> to vector<8x8xf32>
    %445 = vector.broadcast %442 : f32 to vector<8x8xf32>
    %446 = arith.mulf %445, %444 : vector<8x8xf32>
    %447 = arith.addf %441, %446 : vector<8x8xf32>
    %c73 = arith.constant 73 : index
    %448 = memref.load %arg5[%c73] : memref<108xf32, #tpu.memory_space<smem>>
    %c0_296 = arith.constant 0 : index
    %c2_297 = arith.constant 2 : index
    %c0_298 = arith.constant 0 : index
    %c0_299 = arith.constant 0 : index
    %449 = vector.load %arg2[%c0_296, %c2_297, %c0_298, %c0_299] : memref<1x3x9x9xf32, #tpu.memory_space<vmem>>, vector<1x1x8x8xf32>
    %450 = vector.shape_cast %449 : vector<1x1x8x8xf32> to vector<8x8xf32>
    %451 = vector.broadcast %448 : f32 to vector<8x8xf32>
    %452 = arith.mulf %451, %450 : vector<8x8xf32>
    %453 = arith.addf %447, %452 : vector<8x8xf32>
    %c74 = arith.constant 74 : index
    %454 = memref.load %arg5[%c74] : memref<108xf32, #tpu.memory_space<smem>>
    %c0_300 = arith.constant 0 : index
    %c2_301 = arith.constant 2 : index
    %c0_302 = arith.constant 0 : index
    %c1_303 = arith.constant 1 : index
    %455 = vector.load %arg1[%c0_300, %c2_301, %c0_302, %c1_303] : memref<1x3x9x9xf32, #tpu.memory_space<vmem>>, vector<1x1x8x8xf32>
    %456 = vector.shape_cast %455 : vector<1x1x8x8xf32> to vector<8x8xf32>
    %457 = vector.broadcast %454 : f32 to vector<8x8xf32>
    %458 = arith.mulf %457, %456 : vector<8x8xf32>
    %459 = arith.addf %453, %458 : vector<8x8xf32>
    %c75 = arith.constant 75 : index
    %460 = memref.load %arg5[%c75] : memref<108xf32, #tpu.memory_space<smem>>
    %c0_304 = arith.constant 0 : index
    %c2_305 = arith.constant 2 : index
    %c0_306 = arith.constant 0 : index
    %c0_307 = arith.constant 0 : index
    %461 = vector.load %arg3[%c0_304, %c2_305, %c0_306, %c0_307] : memref<1x3x9x9xf32, #tpu.memory_space<vmem>>, vector<1x1x8x8xf32>
    %462 = vector.shape_cast %461 : vector<1x1x8x8xf32> to vector<8x8xf32>
    %463 = vector.broadcast %460 : f32 to vector<8x8xf32>
    %464 = arith.mulf %463, %462 : vector<8x8xf32>
    %465 = arith.addf %459, %464 : vector<8x8xf32>
    %c76 = arith.constant 76 : index
    %466 = memref.load %arg5[%c76] : memref<108xf32, #tpu.memory_space<smem>>
    %c0_308 = arith.constant 0 : index
    %c2_309 = arith.constant 2 : index
    %c0_310 = arith.constant 0 : index
    %c0_311 = arith.constant 0 : index
    %467 = vector.load %arg4[%c0_308, %c2_309, %c0_310, %c0_311] : memref<1x3x9x9xf32, #tpu.memory_space<vmem>>, vector<1x1x8x8xf32>
    %468 = vector.shape_cast %467 : vector<1x1x8x8xf32> to vector<8x8xf32>
    %469 = vector.broadcast %466 : f32 to vector<8x8xf32>
    %470 = arith.mulf %469, %468 : vector<8x8xf32>
    %471 = arith.addf %465, %470 : vector<8x8xf32>
    %c77 = arith.constant 77 : index
    %472 = memref.load %arg5[%c77] : memref<108xf32, #tpu.memory_space<smem>>
    %c0_312 = arith.constant 0 : index
    %c2_313 = arith.constant 2 : index
    %c0_314 = arith.constant 0 : index
    %c1_315 = arith.constant 1 : index
    %473 = vector.load %arg3[%c0_312, %c2_313, %c0_314, %c1_315] : memref<1x3x9x9xf32, #tpu.memory_space<vmem>>, vector<1x1x8x8xf32>
    %474 = vector.shape_cast %473 : vector<1x1x8x8xf32> to vector<8x8xf32>
    %475 = vector.broadcast %472 : f32 to vector<8x8xf32>
    %476 = arith.mulf %475, %474 : vector<8x8xf32>
    %477 = arith.addf %471, %476 : vector<8x8xf32>
    %c78 = arith.constant 78 : index
    %478 = memref.load %arg5[%c78] : memref<108xf32, #tpu.memory_space<smem>>
    %c0_316 = arith.constant 0 : index
    %c2_317 = arith.constant 2 : index
    %c1_318 = arith.constant 1 : index
    %c0_319 = arith.constant 0 : index
    %479 = vector.load %arg1[%c0_316, %c2_317, %c1_318, %c0_319] : memref<1x3x9x9xf32, #tpu.memory_space<vmem>>, vector<1x1x8x8xf32>
    %480 = vector.shape_cast %479 : vector<1x1x8x8xf32> to vector<8x8xf32>
    %481 = vector.broadcast %478 : f32 to vector<8x8xf32>
    %482 = arith.mulf %481, %480 : vector<8x8xf32>
    %483 = arith.addf %477, %482 : vector<8x8xf32>
    %c79 = arith.constant 79 : index
    %484 = memref.load %arg5[%c79] : memref<108xf32, #tpu.memory_space<smem>>
    %c0_320 = arith.constant 0 : index
    %c2_321 = arith.constant 2 : index
    %c1_322 = arith.constant 1 : index
    %c0_323 = arith.constant 0 : index
    %485 = vector.load %arg2[%c0_320, %c2_321, %c1_322, %c0_323] : memref<1x3x9x9xf32, #tpu.memory_space<vmem>>, vector<1x1x8x8xf32>
    %486 = vector.shape_cast %485 : vector<1x1x8x8xf32> to vector<8x8xf32>
    %487 = vector.broadcast %484 : f32 to vector<8x8xf32>
    %488 = arith.mulf %487, %486 : vector<8x8xf32>
    %489 = arith.addf %483, %488 : vector<8x8xf32>
    %c80 = arith.constant 80 : index
    %490 = memref.load %arg5[%c80] : memref<108xf32, #tpu.memory_space<smem>>
    %c0_324 = arith.constant 0 : index
    %c2_325 = arith.constant 2 : index
    %c1_326 = arith.constant 1 : index
    %c1_327 = arith.constant 1 : index
    %491 = vector.load %arg1[%c0_324, %c2_325, %c1_326, %c1_327] : memref<1x3x9x9xf32, #tpu.memory_space<vmem>>, vector<1x1x8x8xf32>
    %492 = vector.shape_cast %491 : vector<1x1x8x8xf32> to vector<8x8xf32>
    %493 = vector.broadcast %490 : f32 to vector<8x8xf32>
    %494 = arith.mulf %493, %492 : vector<8x8xf32>
    %495 = arith.addf %489, %494 : vector<8x8xf32>
    %cst_328 = arith.constant 0.000000e+00 : f32
    %496 = vector.broadcast %cst_328 : f32 to vector<8x8xf32>
    %497 = arith.maximumf %495, %496 : vector<8x8xf32>
    %c3_329 = arith.constant 3 : index
    %498 = memref.load %arg6[%c3_329] : memref<4xf32, #tpu.memory_space<smem>>
    %499 = vector.broadcast %498 : f32 to vector<8x8xf32>
    %c81 = arith.constant 81 : index
    %500 = memref.load %arg5[%c81] : memref<108xf32, #tpu.memory_space<smem>>
    %c0_330 = arith.constant 0 : index
    %c0_331 = arith.constant 0 : index
    %c0_332 = arith.constant 0 : index
    %c0_333 = arith.constant 0 : index
    %501 = vector.load %arg1[%c0_330, %c0_331, %c0_332, %c0_333] : memref<1x3x9x9xf32, #tpu.memory_space<vmem>>, vector<1x1x8x8xf32>
    %502 = vector.shape_cast %501 : vector<1x1x8x8xf32> to vector<8x8xf32>
    %503 = vector.broadcast %500 : f32 to vector<8x8xf32>
    %504 = arith.mulf %503, %502 : vector<8x8xf32>
    %505 = arith.addf %499, %504 : vector<8x8xf32>
    %c82 = arith.constant 82 : index
    %506 = memref.load %arg5[%c82] : memref<108xf32, #tpu.memory_space<smem>>
    %c0_334 = arith.constant 0 : index
    %c0_335 = arith.constant 0 : index
    %c0_336 = arith.constant 0 : index
    %c0_337 = arith.constant 0 : index
    %507 = vector.load %arg2[%c0_334, %c0_335, %c0_336, %c0_337] : memref<1x3x9x9xf32, #tpu.memory_space<vmem>>, vector<1x1x8x8xf32>
    %508 = vector.shape_cast %507 : vector<1x1x8x8xf32> to vector<8x8xf32>
    %509 = vector.broadcast %506 : f32 to vector<8x8xf32>
    %510 = arith.mulf %509, %508 : vector<8x8xf32>
    %511 = arith.addf %505, %510 : vector<8x8xf32>
    %c83 = arith.constant 83 : index
    %512 = memref.load %arg5[%c83] : memref<108xf32, #tpu.memory_space<smem>>
    %c0_338 = arith.constant 0 : index
    %c0_339 = arith.constant 0 : index
    %c0_340 = arith.constant 0 : index
    %c1_341 = arith.constant 1 : index
    %513 = vector.load %arg1[%c0_338, %c0_339, %c0_340, %c1_341] : memref<1x3x9x9xf32, #tpu.memory_space<vmem>>, vector<1x1x8x8xf32>
    %514 = vector.shape_cast %513 : vector<1x1x8x8xf32> to vector<8x8xf32>
    %515 = vector.broadcast %512 : f32 to vector<8x8xf32>
    %516 = arith.mulf %515, %514 : vector<8x8xf32>
    %517 = arith.addf %511, %516 : vector<8x8xf32>
    %c84 = arith.constant 84 : index
    %518 = memref.load %arg5[%c84] : memref<108xf32, #tpu.memory_space<smem>>
    %c0_342 = arith.constant 0 : index
    %c0_343 = arith.constant 0 : index
    %c0_344 = arith.constant 0 : index
    %c0_345 = arith.constant 0 : index
    %519 = vector.load %arg3[%c0_342, %c0_343, %c0_344, %c0_345] : memref<1x3x9x9xf32, #tpu.memory_space<vmem>>, vector<1x1x8x8xf32>
    %520 = vector.shape_cast %519 : vector<1x1x8x8xf32> to vector<8x8xf32>
    %521 = vector.broadcast %518 : f32 to vector<8x8xf32>
    %522 = arith.mulf %521, %520 : vector<8x8xf32>
    %523 = arith.addf %517, %522 : vector<8x8xf32>
    %c85 = arith.constant 85 : index
    %524 = memref.load %arg5[%c85] : memref<108xf32, #tpu.memory_space<smem>>
    %c0_346 = arith.constant 0 : index
    %c0_347 = arith.constant 0 : index
    %c0_348 = arith.constant 0 : index
    %c0_349 = arith.constant 0 : index
    %525 = vector.load %arg4[%c0_346, %c0_347, %c0_348, %c0_349] : memref<1x3x9x9xf32, #tpu.memory_space<vmem>>, vector<1x1x8x8xf32>
    %526 = vector.shape_cast %525 : vector<1x1x8x8xf32> to vector<8x8xf32>
    %527 = vector.broadcast %524 : f32 to vector<8x8xf32>
    %528 = arith.mulf %527, %526 : vector<8x8xf32>
    %529 = arith.addf %523, %528 : vector<8x8xf32>
    %c86 = arith.constant 86 : index
    %530 = memref.load %arg5[%c86] : memref<108xf32, #tpu.memory_space<smem>>
    %c0_350 = arith.constant 0 : index
    %c0_351 = arith.constant 0 : index
    %c0_352 = arith.constant 0 : index
    %c1_353 = arith.constant 1 : index
    %531 = vector.load %arg3[%c0_350, %c0_351, %c0_352, %c1_353] : memref<1x3x9x9xf32, #tpu.memory_space<vmem>>, vector<1x1x8x8xf32>
    %532 = vector.shape_cast %531 : vector<1x1x8x8xf32> to vector<8x8xf32>
    %533 = vector.broadcast %530 : f32 to vector<8x8xf32>
    %534 = arith.mulf %533, %532 : vector<8x8xf32>
    %535 = arith.addf %529, %534 : vector<8x8xf32>
    %c87 = arith.constant 87 : index
    %536 = memref.load %arg5[%c87] : memref<108xf32, #tpu.memory_space<smem>>
    %c0_354 = arith.constant 0 : index
    %c0_355 = arith.constant 0 : index
    %c1_356 = arith.constant 1 : index
    %c0_357 = arith.constant 0 : index
    %537 = vector.load %arg1[%c0_354, %c0_355, %c1_356, %c0_357] : memref<1x3x9x9xf32, #tpu.memory_space<vmem>>, vector<1x1x8x8xf32>
    %538 = vector.shape_cast %537 : vector<1x1x8x8xf32> to vector<8x8xf32>
    %539 = vector.broadcast %536 : f32 to vector<8x8xf32>
    %540 = arith.mulf %539, %538 : vector<8x8xf32>
    %541 = arith.addf %535, %540 : vector<8x8xf32>
    %c88 = arith.constant 88 : index
    %542 = memref.load %arg5[%c88] : memref<108xf32, #tpu.memory_space<smem>>
    %c0_358 = arith.constant 0 : index
    %c0_359 = arith.constant 0 : index
    %c1_360 = arith.constant 1 : index
    %c0_361 = arith.constant 0 : index
    %543 = vector.load %arg2[%c0_358, %c0_359, %c1_360, %c0_361] : memref<1x3x9x9xf32, #tpu.memory_space<vmem>>, vector<1x1x8x8xf32>
    %544 = vector.shape_cast %543 : vector<1x1x8x8xf32> to vector<8x8xf32>
    %545 = vector.broadcast %542 : f32 to vector<8x8xf32>
    %546 = arith.mulf %545, %544 : vector<8x8xf32>
    %547 = arith.addf %541, %546 : vector<8x8xf32>
    %c89 = arith.constant 89 : index
    %548 = memref.load %arg5[%c89] : memref<108xf32, #tpu.memory_space<smem>>
    %c0_362 = arith.constant 0 : index
    %c0_363 = arith.constant 0 : index
    %c1_364 = arith.constant 1 : index
    %c1_365 = arith.constant 1 : index
    %549 = vector.load %arg1[%c0_362, %c0_363, %c1_364, %c1_365] : memref<1x3x9x9xf32, #tpu.memory_space<vmem>>, vector<1x1x8x8xf32>
    %550 = vector.shape_cast %549 : vector<1x1x8x8xf32> to vector<8x8xf32>
    %551 = vector.broadcast %548 : f32 to vector<8x8xf32>
    %552 = arith.mulf %551, %550 : vector<8x8xf32>
    %553 = arith.addf %547, %552 : vector<8x8xf32>
    %c90 = arith.constant 90 : index
    %554 = memref.load %arg5[%c90] : memref<108xf32, #tpu.memory_space<smem>>
    %c0_366 = arith.constant 0 : index
    %c1_367 = arith.constant 1 : index
    %c0_368 = arith.constant 0 : index
    %c0_369 = arith.constant 0 : index
    %555 = vector.load %arg1[%c0_366, %c1_367, %c0_368, %c0_369] : memref<1x3x9x9xf32, #tpu.memory_space<vmem>>, vector<1x1x8x8xf32>
    %556 = vector.shape_cast %555 : vector<1x1x8x8xf32> to vector<8x8xf32>
    %557 = vector.broadcast %554 : f32 to vector<8x8xf32>
    %558 = arith.mulf %557, %556 : vector<8x8xf32>
    %559 = arith.addf %553, %558 : vector<8x8xf32>
    %c91 = arith.constant 91 : index
    %560 = memref.load %arg5[%c91] : memref<108xf32, #tpu.memory_space<smem>>
    %c0_370 = arith.constant 0 : index
    %c1_371 = arith.constant 1 : index
    %c0_372 = arith.constant 0 : index
    %c0_373 = arith.constant 0 : index
    %561 = vector.load %arg2[%c0_370, %c1_371, %c0_372, %c0_373] : memref<1x3x9x9xf32, #tpu.memory_space<vmem>>, vector<1x1x8x8xf32>
    %562 = vector.shape_cast %561 : vector<1x1x8x8xf32> to vector<8x8xf32>
    %563 = vector.broadcast %560 : f32 to vector<8x8xf32>
    %564 = arith.mulf %563, %562 : vector<8x8xf32>
    %565 = arith.addf %559, %564 : vector<8x8xf32>
    %c92 = arith.constant 92 : index
    %566 = memref.load %arg5[%c92] : memref<108xf32, #tpu.memory_space<smem>>
    %c0_374 = arith.constant 0 : index
    %c1_375 = arith.constant 1 : index
    %c0_376 = arith.constant 0 : index
    %c1_377 = arith.constant 1 : index
    %567 = vector.load %arg1[%c0_374, %c1_375, %c0_376, %c1_377] : memref<1x3x9x9xf32, #tpu.memory_space<vmem>>, vector<1x1x8x8xf32>
    %568 = vector.shape_cast %567 : vector<1x1x8x8xf32> to vector<8x8xf32>
    %569 = vector.broadcast %566 : f32 to vector<8x8xf32>
    %570 = arith.mulf %569, %568 : vector<8x8xf32>
    %571 = arith.addf %565, %570 : vector<8x8xf32>
    %c93 = arith.constant 93 : index
    %572 = memref.load %arg5[%c93] : memref<108xf32, #tpu.memory_space<smem>>
    %c0_378 = arith.constant 0 : index
    %c1_379 = arith.constant 1 : index
    %c0_380 = arith.constant 0 : index
    %c0_381 = arith.constant 0 : index
    %573 = vector.load %arg3[%c0_378, %c1_379, %c0_380, %c0_381] : memref<1x3x9x9xf32, #tpu.memory_space<vmem>>, vector<1x1x8x8xf32>
    %574 = vector.shape_cast %573 : vector<1x1x8x8xf32> to vector<8x8xf32>
    %575 = vector.broadcast %572 : f32 to vector<8x8xf32>
    %576 = arith.mulf %575, %574 : vector<8x8xf32>
    %577 = arith.addf %571, %576 : vector<8x8xf32>
    %c94 = arith.constant 94 : index
    %578 = memref.load %arg5[%c94] : memref<108xf32, #tpu.memory_space<smem>>
    %c0_382 = arith.constant 0 : index
    %c1_383 = arith.constant 1 : index
    %c0_384 = arith.constant 0 : index
    %c0_385 = arith.constant 0 : index
    %579 = vector.load %arg4[%c0_382, %c1_383, %c0_384, %c0_385] : memref<1x3x9x9xf32, #tpu.memory_space<vmem>>, vector<1x1x8x8xf32>
    %580 = vector.shape_cast %579 : vector<1x1x8x8xf32> to vector<8x8xf32>
    %581 = vector.broadcast %578 : f32 to vector<8x8xf32>
    %582 = arith.mulf %581, %580 : vector<8x8xf32>
    %583 = arith.addf %577, %582 : vector<8x8xf32>
    %c95 = arith.constant 95 : index
    %584 = memref.load %arg5[%c95] : memref<108xf32, #tpu.memory_space<smem>>
    %c0_386 = arith.constant 0 : index
    %c1_387 = arith.constant 1 : index
    %c0_388 = arith.constant 0 : index
    %c1_389 = arith.constant 1 : index
    %585 = vector.load %arg3[%c0_386, %c1_387, %c0_388, %c1_389] : memref<1x3x9x9xf32, #tpu.memory_space<vmem>>, vector<1x1x8x8xf32>
    %586 = vector.shape_cast %585 : vector<1x1x8x8xf32> to vector<8x8xf32>
    %587 = vector.broadcast %584 : f32 to vector<8x8xf32>
    %588 = arith.mulf %587, %586 : vector<8x8xf32>
    %589 = arith.addf %583, %588 : vector<8x8xf32>
    %c96 = arith.constant 96 : index
    %590 = memref.load %arg5[%c96] : memref<108xf32, #tpu.memory_space<smem>>
    %c0_390 = arith.constant 0 : index
    %c1_391 = arith.constant 1 : index
    %c1_392 = arith.constant 1 : index
    %c0_393 = arith.constant 0 : index
    %591 = vector.load %arg1[%c0_390, %c1_391, %c1_392, %c0_393] : memref<1x3x9x9xf32, #tpu.memory_space<vmem>>, vector<1x1x8x8xf32>
    %592 = vector.shape_cast %591 : vector<1x1x8x8xf32> to vector<8x8xf32>
    %593 = vector.broadcast %590 : f32 to vector<8x8xf32>
    %594 = arith.mulf %593, %592 : vector<8x8xf32>
    %595 = arith.addf %589, %594 : vector<8x8xf32>
    %c97 = arith.constant 97 : index
    %596 = memref.load %arg5[%c97] : memref<108xf32, #tpu.memory_space<smem>>
    %c0_394 = arith.constant 0 : index
    %c1_395 = arith.constant 1 : index
    %c1_396 = arith.constant 1 : index
    %c0_397 = arith.constant 0 : index
    %597 = vector.load %arg2[%c0_394, %c1_395, %c1_396, %c0_397] : memref<1x3x9x9xf32, #tpu.memory_space<vmem>>, vector<1x1x8x8xf32>
    %598 = vector.shape_cast %597 : vector<1x1x8x8xf32> to vector<8x8xf32>
    %599 = vector.broadcast %596 : f32 to vector<8x8xf32>
    %600 = arith.mulf %599, %598 : vector<8x8xf32>
    %601 = arith.addf %595, %600 : vector<8x8xf32>
    %c98 = arith.constant 98 : index
    %602 = memref.load %arg5[%c98] : memref<108xf32, #tpu.memory_space<smem>>
    %c0_398 = arith.constant 0 : index
    %c1_399 = arith.constant 1 : index
    %c1_400 = arith.constant 1 : index
    %c1_401 = arith.constant 1 : index
    %603 = vector.load %arg1[%c0_398, %c1_399, %c1_400, %c1_401] : memref<1x3x9x9xf32, #tpu.memory_space<vmem>>, vector<1x1x8x8xf32>
    %604 = vector.shape_cast %603 : vector<1x1x8x8xf32> to vector<8x8xf32>
    %605 = vector.broadcast %602 : f32 to vector<8x8xf32>
    %606 = arith.mulf %605, %604 : vector<8x8xf32>
    %607 = arith.addf %601, %606 : vector<8x8xf32>
    %c99 = arith.constant 99 : index
    %608 = memref.load %arg5[%c99] : memref<108xf32, #tpu.memory_space<smem>>
    %c0_402 = arith.constant 0 : index
    %c2_403 = arith.constant 2 : index
    %c0_404 = arith.constant 0 : index
    %c0_405 = arith.constant 0 : index
    %609 = vector.load %arg1[%c0_402, %c2_403, %c0_404, %c0_405] : memref<1x3x9x9xf32, #tpu.memory_space<vmem>>, vector<1x1x8x8xf32>
    %610 = vector.shape_cast %609 : vector<1x1x8x8xf32> to vector<8x8xf32>
    %611 = vector.broadcast %608 : f32 to vector<8x8xf32>
    %612 = arith.mulf %611, %610 : vector<8x8xf32>
    %613 = arith.addf %607, %612 : vector<8x8xf32>
    %c100 = arith.constant 100 : index
    %614 = memref.load %arg5[%c100] : memref<108xf32, #tpu.memory_space<smem>>
    %c0_406 = arith.constant 0 : index
    %c2_407 = arith.constant 2 : index
    %c0_408 = arith.constant 0 : index
    %c0_409 = arith.constant 0 : index
    %615 = vector.load %arg2[%c0_406, %c2_407, %c0_408, %c0_409] : memref<1x3x9x9xf32, #tpu.memory_space<vmem>>, vector<1x1x8x8xf32>
    %616 = vector.shape_cast %615 : vector<1x1x8x8xf32> to vector<8x8xf32>
    %617 = vector.broadcast %614 : f32 to vector<8x8xf32>
    %618 = arith.mulf %617, %616 : vector<8x8xf32>
    %619 = arith.addf %613, %618 : vector<8x8xf32>
    %c101 = arith.constant 101 : index
    %620 = memref.load %arg5[%c101] : memref<108xf32, #tpu.memory_space<smem>>
    %c0_410 = arith.constant 0 : index
    %c2_411 = arith.constant 2 : index
    %c0_412 = arith.constant 0 : index
    %c1_413 = arith.constant 1 : index
    %621 = vector.load %arg1[%c0_410, %c2_411, %c0_412, %c1_413] : memref<1x3x9x9xf32, #tpu.memory_space<vmem>>, vector<1x1x8x8xf32>
    %622 = vector.shape_cast %621 : vector<1x1x8x8xf32> to vector<8x8xf32>
    %623 = vector.broadcast %620 : f32 to vector<8x8xf32>
    %624 = arith.mulf %623, %622 : vector<8x8xf32>
    %625 = arith.addf %619, %624 : vector<8x8xf32>
    %c102 = arith.constant 102 : index
    %626 = memref.load %arg5[%c102] : memref<108xf32, #tpu.memory_space<smem>>
    %c0_414 = arith.constant 0 : index
    %c2_415 = arith.constant 2 : index
    %c0_416 = arith.constant 0 : index
    %c0_417 = arith.constant 0 : index
    %627 = vector.load %arg3[%c0_414, %c2_415, %c0_416, %c0_417] : memref<1x3x9x9xf32, #tpu.memory_space<vmem>>, vector<1x1x8x8xf32>
    %628 = vector.shape_cast %627 : vector<1x1x8x8xf32> to vector<8x8xf32>
    %629 = vector.broadcast %626 : f32 to vector<8x8xf32>
    %630 = arith.mulf %629, %628 : vector<8x8xf32>
    %631 = arith.addf %625, %630 : vector<8x8xf32>
    %c103 = arith.constant 103 : index
    %632 = memref.load %arg5[%c103] : memref<108xf32, #tpu.memory_space<smem>>
    %c0_418 = arith.constant 0 : index
    %c2_419 = arith.constant 2 : index
    %c0_420 = arith.constant 0 : index
    %c0_421 = arith.constant 0 : index
    %633 = vector.load %arg4[%c0_418, %c2_419, %c0_420, %c0_421] : memref<1x3x9x9xf32, #tpu.memory_space<vmem>>, vector<1x1x8x8xf32>
    %634 = vector.shape_cast %633 : vector<1x1x8x8xf32> to vector<8x8xf32>
    %635 = vector.broadcast %632 : f32 to vector<8x8xf32>
    %636 = arith.mulf %635, %634 : vector<8x8xf32>
    %637 = arith.addf %631, %636 : vector<8x8xf32>
    %c104 = arith.constant 104 : index
    %638 = memref.load %arg5[%c104] : memref<108xf32, #tpu.memory_space<smem>>
    %c0_422 = arith.constant 0 : index
    %c2_423 = arith.constant 2 : index
    %c0_424 = arith.constant 0 : index
    %c1_425 = arith.constant 1 : index
    %639 = vector.load %arg3[%c0_422, %c2_423, %c0_424, %c1_425] : memref<1x3x9x9xf32, #tpu.memory_space<vmem>>, vector<1x1x8x8xf32>
    %640 = vector.shape_cast %639 : vector<1x1x8x8xf32> to vector<8x8xf32>
    %641 = vector.broadcast %638 : f32 to vector<8x8xf32>
    %642 = arith.mulf %641, %640 : vector<8x8xf32>
    %643 = arith.addf %637, %642 : vector<8x8xf32>
    %c105 = arith.constant 105 : index
    %644 = memref.load %arg5[%c105] : memref<108xf32, #tpu.memory_space<smem>>
    %c0_426 = arith.constant 0 : index
    %c2_427 = arith.constant 2 : index
    %c1_428 = arith.constant 1 : index
    %c0_429 = arith.constant 0 : index
    %645 = vector.load %arg1[%c0_426, %c2_427, %c1_428, %c0_429] : memref<1x3x9x9xf32, #tpu.memory_space<vmem>>, vector<1x1x8x8xf32>
    %646 = vector.shape_cast %645 : vector<1x1x8x8xf32> to vector<8x8xf32>
    %647 = vector.broadcast %644 : f32 to vector<8x8xf32>
    %648 = arith.mulf %647, %646 : vector<8x8xf32>
    %649 = arith.addf %643, %648 : vector<8x8xf32>
    %c106 = arith.constant 106 : index
    %650 = memref.load %arg5[%c106] : memref<108xf32, #tpu.memory_space<smem>>
    %c0_430 = arith.constant 0 : index
    %c2_431 = arith.constant 2 : index
    %c1_432 = arith.constant 1 : index
    %c0_433 = arith.constant 0 : index
    %651 = vector.load %arg2[%c0_430, %c2_431, %c1_432, %c0_433] : memref<1x3x9x9xf32, #tpu.memory_space<vmem>>, vector<1x1x8x8xf32>
    %652 = vector.shape_cast %651 : vector<1x1x8x8xf32> to vector<8x8xf32>
    %653 = vector.broadcast %650 : f32 to vector<8x8xf32>
    %654 = arith.mulf %653, %652 : vector<8x8xf32>
    %655 = arith.addf %649, %654 : vector<8x8xf32>
    %c107 = arith.constant 107 : index
    %656 = memref.load %arg5[%c107] : memref<108xf32, #tpu.memory_space<smem>>
    %c0_434 = arith.constant 0 : index
    %c2_435 = arith.constant 2 : index
    %c1_436 = arith.constant 1 : index
    %c1_437 = arith.constant 1 : index
    %657 = vector.load %arg1[%c0_434, %c2_435, %c1_436, %c1_437] : memref<1x3x9x9xf32, #tpu.memory_space<vmem>>, vector<1x1x8x8xf32>
    %658 = vector.shape_cast %657 : vector<1x1x8x8xf32> to vector<8x8xf32>
    %659 = vector.broadcast %656 : f32 to vector<8x8xf32>
    %660 = arith.mulf %659, %658 : vector<8x8xf32>
    %661 = arith.addf %655, %660 : vector<8x8xf32>
    %cst_438 = arith.constant 0.000000e+00 : f32
    %662 = vector.broadcast %cst_438 : f32 to vector<8x8xf32>
    %663 = arith.maximumf %661, %662 : vector<8x8xf32>
    %c0_439 = arith.constant 0 : index
    %c0_440 = arith.constant 0 : index
    %c0_441 = arith.constant 0 : index
    %664 = vector.load %arg8[%c0_439, %c0_440, %c0_441] : memref<28x1x1xf32, #tpu.memory_space<vmem>>, vector<28x1x1xf32>
    %665 = vector.shape_cast %165 : vector<8x8xf32> to vector<1x8x8xf32>
    %c0_442 = arith.constant 0 : index
    %c0_443 = arith.constant 0 : index
    %c0_444 = arith.constant 0 : index
    %c0_445 = arith.constant 0 : index
    %666 = vector.load %arg7[%c0_442, %c0_443, %c0_444, %c0_445] : memref<4x28x8x8xf32, #tpu.memory_space<vmem>>, vector<1x28x8x8xf32>
    %667 = vector.shape_cast %666 : vector<1x28x8x8xf32> to vector<28x8x8xf32>
    %668 = vector.broadcast %665 : vector<1x8x8xf32> to vector<28x8x8xf32>
    %669 = arith.mulf %668, %667 : vector<28x8x8xf32>
    %cst_446 = arith.constant dense<0.000000e+00> : vector<28x8xf32>
    %670 = vector.multi_reduction <add>, %669, %cst_446 [2] : vector<28x8x8xf32> to vector<28x8xf32>
    %671 = vector.shape_cast %670 : vector<28x8xf32> to vector<28x8x1xf32>
    %cst_447 = arith.constant dense<0.000000e+00> : vector<28x1xf32>
    %672 = vector.multi_reduction <add>, %671, %cst_447 [1] : vector<28x8x1xf32> to vector<28x1xf32>
    %673 = vector.shape_cast %672 : vector<28x1xf32> to vector<28x1x1xf32>
    %674 = arith.addf %664, %673 : vector<28x1x1xf32>
    %675 = vector.shape_cast %331 : vector<8x8xf32> to vector<1x8x8xf32>
    %c1_448 = arith.constant 1 : index
    %c0_449 = arith.constant 0 : index
    %c0_450 = arith.constant 0 : index
    %c0_451 = arith.constant 0 : index
    %676 = vector.load %arg7[%c1_448, %c0_449, %c0_450, %c0_451] : memref<4x28x8x8xf32, #tpu.memory_space<vmem>>, vector<1x28x8x8xf32>
    %677 = vector.shape_cast %676 : vector<1x28x8x8xf32> to vector<28x8x8xf32>
    %678 = vector.broadcast %675 : vector<1x8x8xf32> to vector<28x8x8xf32>
    %679 = arith.mulf %678, %677 : vector<28x8x8xf32>
    %cst_452 = arith.constant dense<0.000000e+00> : vector<28x8xf32>
    %680 = vector.multi_reduction <add>, %679, %cst_452 [2] : vector<28x8x8xf32> to vector<28x8xf32>
    %681 = vector.shape_cast %680 : vector<28x8xf32> to vector<28x8x1xf32>
    %cst_453 = arith.constant dense<0.000000e+00> : vector<28x1xf32>
    %682 = vector.multi_reduction <add>, %681, %cst_453 [1] : vector<28x8x1xf32> to vector<28x1xf32>
    %683 = vector.shape_cast %682 : vector<28x1xf32> to vector<28x1x1xf32>
    %684 = arith.addf %674, %683 : vector<28x1x1xf32>
    %685 = vector.shape_cast %497 : vector<8x8xf32> to vector<1x8x8xf32>
    %c2_454 = arith.constant 2 : index
    %c0_455 = arith.constant 0 : index
    %c0_456 = arith.constant 0 : index
    %c0_457 = arith.constant 0 : index
    %686 = vector.load %arg7[%c2_454, %c0_455, %c0_456, %c0_457] : memref<4x28x8x8xf32, #tpu.memory_space<vmem>>, vector<1x28x8x8xf32>
    %687 = vector.shape_cast %686 : vector<1x28x8x8xf32> to vector<28x8x8xf32>
    %688 = vector.broadcast %685 : vector<1x8x8xf32> to vector<28x8x8xf32>
    %689 = arith.mulf %688, %687 : vector<28x8x8xf32>
    %cst_458 = arith.constant dense<0.000000e+00> : vector<28x8xf32>
    %690 = vector.multi_reduction <add>, %689, %cst_458 [2] : vector<28x8x8xf32> to vector<28x8xf32>
    %691 = vector.shape_cast %690 : vector<28x8xf32> to vector<28x8x1xf32>
    %cst_459 = arith.constant dense<0.000000e+00> : vector<28x1xf32>
    %692 = vector.multi_reduction <add>, %691, %cst_459 [1] : vector<28x8x1xf32> to vector<28x1xf32>
    %693 = vector.shape_cast %692 : vector<28x1xf32> to vector<28x1x1xf32>
    %694 = arith.addf %684, %693 : vector<28x1x1xf32>
    %695 = vector.shape_cast %663 : vector<8x8xf32> to vector<1x8x8xf32>
    %c3_460 = arith.constant 3 : index
    %c0_461 = arith.constant 0 : index
    %c0_462 = arith.constant 0 : index
    %c0_463 = arith.constant 0 : index
    %696 = vector.load %arg7[%c3_460, %c0_461, %c0_462, %c0_463] : memref<4x28x8x8xf32, #tpu.memory_space<vmem>>, vector<1x28x8x8xf32>
    %697 = vector.shape_cast %696 : vector<1x28x8x8xf32> to vector<28x8x8xf32>
    %698 = vector.broadcast %695 : vector<1x8x8xf32> to vector<28x8x8xf32>
    %699 = arith.mulf %698, %697 : vector<28x8x8xf32>
    %cst_464 = arith.constant dense<0.000000e+00> : vector<28x8xf32>
    %700 = vector.multi_reduction <add>, %699, %cst_464 [2] : vector<28x8x8xf32> to vector<28x8xf32>
    %701 = vector.shape_cast %700 : vector<28x8xf32> to vector<28x8x1xf32>
    %cst_465 = arith.constant dense<0.000000e+00> : vector<28x1xf32>
    %702 = vector.multi_reduction <add>, %701, %cst_465 [1] : vector<28x8x1xf32> to vector<28x1xf32>
    %703 = vector.shape_cast %702 : vector<28x1xf32> to vector<28x1x1xf32>
    %704 = arith.addf %694, %703 : vector<28x1x1xf32>
    %cst_466 = arith.constant 0.000000e+00 : f32
    %705 = vector.broadcast %cst_466 : f32 to vector<28x1x1xf32>
    %706 = arith.maximumf %704, %705 : vector<28x1x1xf32>
    %c0_467 = arith.constant 0 : index
    %c0_468 = arith.constant 0 : index
    %c0_469 = arith.constant 0 : index
    %c0_470 = arith.constant 0 : index
    %707 = vector.load %arg13[%c0_467, %c0_468, %c0_469, %c0_470] : memref<1x28x1x1xf32, #tpu.memory_space<vmem>>, vector<1x28x1x1xf32>
    %708 = vector.shape_cast %707 : vector<1x28x1x1xf32> to vector<28x1x1xf32>
    %709 = vector.shape_cast %706 : vector<28x1x1xf32> to vector<1x28x1x1xf32>
    tpu.vector_store %arg13[%c0_467, %c0_468, %c0_469, %c0_470], %709 {strides = array<i32>} : memref<1x28x1x1xf32, #tpu.memory_space<vmem>>, vector<1x28x1x1xf32>,
    %710 = vector.shape_cast %706 : vector<28x1x1xf32> to vector<28x1x1xf32>
    %711 = vector.broadcast %710 : vector<28x1x1xf32> to vector<28x8x8xf32>
    %cst_471 = arith.constant 0.000000e+00 : f32
    %712 = vector.broadcast %cst_471 : f32 to vector<4x9x9xf32>
    %c0_472 = arith.constant 0 : index
    %c0_473 = arith.constant 0 : index
    %c0_474 = arith.constant 0 : index
    %713 = vector.load %arg15[%c0_472, %c0_473, %c0_474] : memref<4x9x9xf32, #tpu.memory_space<vmem>>, vector<4x9x9xf32>
    tpu.vector_store %arg15[%c0_472, %c0_473, %c0_474], %712 {strides = array<i32>} : memref<4x9x9xf32, #tpu.memory_space<vmem>>, vector<4x9x9xf32>,
    %c0_475 = arith.constant 0 : index
    %c0_476 = arith.constant 0 : index
    %c0_477 = arith.constant 0 : index
    %c0_478 = arith.constant 0 : index
    %714 = vector.load %arg9[%c0_475, %c0_476, %c0_477, %c0_478] : memref<4x28x8x8xf32, #tpu.memory_space<vmem>>, vector<1x28x8x8xf32>
    %715 = vector.shape_cast %714 : vector<1x28x8x8xf32> to vector<28x8x8xf32>
    %716 = arith.mulf %711, %715 : vector<28x8x8xf32>
    %cst_479 = arith.constant dense<0.000000e+00> : vector<8x8xf32>
    %717 = vector.multi_reduction <add>, %716, %cst_479 [0] : vector<28x8x8xf32> to vector<8x8xf32>
    %c0_480 = arith.constant 0 : index
    %c0_481 = arith.constant 0 : index
    %c0_482 = arith.constant 0 : index
    %718 = vector.load %arg10[%c0_480, %c0_481, %c0_482] : memref<4x8x8xf32, #tpu.memory_space<vmem>>, vector<1x8x8xf32>
    %719 = vector.shape_cast %718 : vector<1x8x8xf32> to vector<8x8xf32>
    %720 = arith.addf %717, %719 : vector<8x8xf32>
    %cst_483 = arith.constant 0.000000e+00 : f32
    %721 = vector.broadcast %cst_483 : f32 to vector<8x8xf32>
    %722 = arith.maximumf %720, %721 : vector<8x8xf32>
    %c0_484 = arith.constant 0 : index
    %c0_485 = arith.constant 0 : index
    %c0_486 = arith.constant 0 : index
    %723 = vector.load %arg15[%c0_484, %c0_485, %c0_486] : memref<4x9x9xf32, #tpu.memory_space<vmem>>, vector<1x8x8xf32>
    %724 = vector.shape_cast %723 : vector<1x8x8xf32> to vector<8x8xf32>
    %725 = vector.shape_cast %722 : vector<8x8xf32> to vector<1x8x8xf32>
    tpu.vector_store %arg15[%c0_484, %c0_485, %c0_486], %725 {strides = array<i32>} : memref<4x9x9xf32, #tpu.memory_space<vmem>>, vector<1x8x8xf32>,
    %c1_487 = arith.constant 1 : index
    %c0_488 = arith.constant 0 : index
    %c0_489 = arith.constant 0 : index
    %c0_490 = arith.constant 0 : index
    %726 = vector.load %arg9[%c1_487, %c0_488, %c0_489, %c0_490] : memref<4x28x8x8xf32, #tpu.memory_space<vmem>>, vector<1x28x8x8xf32>
    %727 = vector.shape_cast %726 : vector<1x28x8x8xf32> to vector<28x8x8xf32>
    %728 = arith.mulf %711, %727 : vector<28x8x8xf32>
    %cst_491 = arith.constant dense<0.000000e+00> : vector<8x8xf32>
    %729 = vector.multi_reduction <add>, %728, %cst_491 [0] : vector<28x8x8xf32> to vector<8x8xf32>
    %c1_492 = arith.constant 1 : index
    %c0_493 = arith.constant 0 : index
    %c0_494 = arith.constant 0 : index
    %730 = vector.load %arg10[%c1_492, %c0_493, %c0_494] : memref<4x8x8xf32, #tpu.memory_space<vmem>>, vector<1x8x8xf32>
    %731 = vector.shape_cast %730 : vector<1x8x8xf32> to vector<8x8xf32>
    %732 = arith.addf %729, %731 : vector<8x8xf32>
    %cst_495 = arith.constant 0.000000e+00 : f32
    %733 = vector.broadcast %cst_495 : f32 to vector<8x8xf32>
    %734 = arith.maximumf %732, %733 : vector<8x8xf32>
    %c1_496 = arith.constant 1 : index
    %c0_497 = arith.constant 0 : index
    %c0_498 = arith.constant 0 : index
    %735 = vector.load %arg15[%c1_496, %c0_497, %c0_498] : memref<4x9x9xf32, #tpu.memory_space<vmem>>, vector<1x8x8xf32>
    %736 = vector.shape_cast %735 : vector<1x8x8xf32> to vector<8x8xf32>
    %737 = vector.shape_cast %734 : vector<8x8xf32> to vector<1x8x8xf32>
    tpu.vector_store %arg15[%c1_496, %c0_497, %c0_498], %737 {strides = array<i32>} : memref<4x9x9xf32, #tpu.memory_space<vmem>>, vector<1x8x8xf32>,
    %c2_499 = arith.constant 2 : index
    %c0_500 = arith.constant 0 : index
    %c0_501 = arith.constant 0 : index
    %c0_502 = arith.constant 0 : index
    %738 = vector.load %arg9[%c2_499, %c0_500, %c0_501, %c0_502] : memref<4x28x8x8xf32, #tpu.memory_space<vmem>>, vector<1x28x8x8xf32>
    %739 = vector.shape_cast %738 : vector<1x28x8x8xf32> to vector<28x8x8xf32>
    %740 = arith.mulf %711, %739 : vector<28x8x8xf32>
    %cst_503 = arith.constant dense<0.000000e+00> : vector<8x8xf32>
    %741 = vector.multi_reduction <add>, %740, %cst_503 [0] : vector<28x8x8xf32> to vector<8x8xf32>
    %c2_504 = arith.constant 2 : index
    %c0_505 = arith.constant 0 : index
    %c0_506 = arith.constant 0 : index
    %742 = vector.load %arg10[%c2_504, %c0_505, %c0_506] : memref<4x8x8xf32, #tpu.memory_space<vmem>>, vector<1x8x8xf32>
    %743 = vector.shape_cast %742 : vector<1x8x8xf32> to vector<8x8xf32>
    %744 = arith.addf %741, %743 : vector<8x8xf32>
    %cst_507 = arith.constant 0.000000e+00 : f32
    %745 = vector.broadcast %cst_507 : f32 to vector<8x8xf32>
    %746 = arith.maximumf %744, %745 : vector<8x8xf32>
    %c2_508 = arith.constant 2 : index
    %c0_509 = arith.constant 0 : index
    %c0_510 = arith.constant 0 : index
    %747 = vector.load %arg15[%c2_508, %c0_509, %c0_510] : memref<4x9x9xf32, #tpu.memory_space<vmem>>, vector<1x8x8xf32>
    %748 = vector.shape_cast %747 : vector<1x8x8xf32> to vector<8x8xf32>
    %749 = vector.shape_cast %746 : vector<8x8xf32> to vector<1x8x8xf32>
    tpu.vector_store %arg15[%c2_508, %c0_509, %c0_510], %749 {strides = array<i32>} : memref<4x9x9xf32, #tpu.memory_space<vmem>>, vector<1x8x8xf32>,
    %c3_511 = arith.constant 3 : index
    %c0_512 = arith.constant 0 : index
    %c0_513 = arith.constant 0 : index
    %c0_514 = arith.constant 0 : index
    %750 = vector.load %arg9[%c3_511, %c0_512, %c0_513, %c0_514] : memref<4x28x8x8xf32, #tpu.memory_space<vmem>>, vector<1x28x8x8xf32>
    %751 = vector.shape_cast %750 : vector<1x28x8x8xf32> to vector<28x8x8xf32>
    %752 = arith.mulf %711, %751 : vector<28x8x8xf32>
    %cst_515 = arith.constant dense<0.000000e+00> : vector<8x8xf32>
    %753 = vector.multi_reduction <add>, %752, %cst_515 [0] : vector<28x8x8xf32> to vector<8x8xf32>
    %c3_516 = arith.constant 3 : index
    %c0_517 = arith.constant 0 : index
    %c0_518 = arith.constant 0 : index
    %754 = vector.load %arg10[%c3_516, %c0_517, %c0_518] : memref<4x8x8xf32, #tpu.memory_space<vmem>>, vector<1x8x8xf32>
    %755 = vector.shape_cast %754 : vector<1x8x8xf32> to vector<8x8xf32>
    %756 = arith.addf %753, %755 : vector<8x8xf32>
    %cst_519 = arith.constant 0.000000e+00 : f32
    %757 = vector.broadcast %cst_519 : f32 to vector<8x8xf32>
    %758 = arith.maximumf %756, %757 : vector<8x8xf32>
    %c3_520 = arith.constant 3 : index
    %c0_521 = arith.constant 0 : index
    %c0_522 = arith.constant 0 : index
    %759 = vector.load %arg15[%c3_520, %c0_521, %c0_522] : memref<4x9x9xf32, #tpu.memory_space<vmem>>, vector<1x8x8xf32>
    %760 = vector.shape_cast %759 : vector<1x8x8xf32> to vector<8x8xf32>
    %761 = vector.shape_cast %758 : vector<8x8xf32> to vector<1x8x8xf32>
    tpu.vector_store %arg15[%c3_520, %c0_521, %c0_522], %761 {strides = array<i32>} : memref<4x9x9xf32, #tpu.memory_space<vmem>>, vector<1x8x8xf32>,
    %c0_523 = arith.constant 0 : index
    %762 = memref.load %arg12[%c0_523] : memref<3xf32, #tpu.memory_space<smem>>
    %763 = vector.broadcast %762 : f32 to vector<8x8xf32>
    %c4_524 = arith.constant 4 : index
    %764 = memref.load %arg11[%c4_524] : memref<108xf32, #tpu.memory_space<smem>>
    %c0_525 = arith.constant 0 : index
    %c0_526 = arith.constant 0 : index
    %c0_527 = arith.constant 0 : index
    %765 = vector.load %arg15[%c0_525, %c0_526, %c0_527] : memref<4x9x9xf32, #tpu.memory_space<vmem>>, vector<1x8x8xf32>
    %766 = vector.shape_cast %765 : vector<1x8x8xf32> to vector<8x8xf32>
    %767 = vector.broadcast %764 : f32 to vector<8x8xf32>
    %768 = arith.mulf %767, %766 : vector<8x8xf32>
    %769 = arith.addf %763, %768 : vector<8x8xf32>
    %c31_528 = arith.constant 31 : index
    %770 = memref.load %arg11[%c31_528] : memref<108xf32, #tpu.memory_space<smem>>
    %c1_529 = arith.constant 1 : index
    %c0_530 = arith.constant 0 : index
    %c0_531 = arith.constant 0 : index
    %771 = vector.load %arg15[%c1_529, %c0_530, %c0_531] : memref<4x9x9xf32, #tpu.memory_space<vmem>>, vector<1x8x8xf32>
    %772 = vector.shape_cast %771 : vector<1x8x8xf32> to vector<8x8xf32>
    %773 = vector.broadcast %770 : f32 to vector<8x8xf32>
    %774 = arith.mulf %773, %772 : vector<8x8xf32>
    %775 = arith.addf %769, %774 : vector<8x8xf32>
    %c58_532 = arith.constant 58 : index
    %776 = memref.load %arg11[%c58_532] : memref<108xf32, #tpu.memory_space<smem>>
    %c2_533 = arith.constant 2 : index
    %c0_534 = arith.constant 0 : index
    %c0_535 = arith.constant 0 : index
    %777 = vector.load %arg15[%c2_533, %c0_534, %c0_535] : memref<4x9x9xf32, #tpu.memory_space<vmem>>, vector<1x8x8xf32>
    %778 = vector.shape_cast %777 : vector<1x8x8xf32> to vector<8x8xf32>
    %779 = vector.broadcast %776 : f32 to vector<8x8xf32>
    %780 = arith.mulf %779, %778 : vector<8x8xf32>
    %781 = arith.addf %775, %780 : vector<8x8xf32>
    %c85_536 = arith.constant 85 : index
    %782 = memref.load %arg11[%c85_536] : memref<108xf32, #tpu.memory_space<smem>>
    %c3_537 = arith.constant 3 : index
    %c0_538 = arith.constant 0 : index
    %c0_539 = arith.constant 0 : index
    %783 = vector.load %arg15[%c3_537, %c0_538, %c0_539] : memref<4x9x9xf32, #tpu.memory_space<vmem>>, vector<1x8x8xf32>
    %784 = vector.shape_cast %783 : vector<1x8x8xf32> to vector<8x8xf32>
    %785 = vector.broadcast %782 : f32 to vector<8x8xf32>
    %786 = arith.mulf %785, %784 : vector<8x8xf32>
    %787 = arith.addf %781, %786 : vector<8x8xf32>
    %788 = arith.negf %787 : vector<8x8xf32>
    %789 = math.exp %788 : vector<8x8xf32>
    %cst_540 = arith.constant 1.000000e+00 : f32
    %790 = vector.broadcast %cst_540 : f32 to vector<8x8xf32>
    %791 = arith.addf %790, %789 : vector<8x8xf32>
    %792 = arith.divf %790, %791 : vector<8x8xf32>
    %c0_541 = arith.constant 0 : index
    %c0_542 = arith.constant 0 : index
    %c0_543 = arith.constant 0 : index
    %c0_544 = arith.constant 0 : index
    %793 = vector.load %arg14[%c0_541, %c0_542, %c0_543, %c0_544] : memref<1x12x8x8xf32, #tpu.memory_space<vmem>>, vector<1x1x8x8xf32>
    %794 = vector.shape_cast %793 : vector<1x1x8x8xf32> to vector<8x8xf32>
    %795 = vector.shape_cast %792 : vector<8x8xf32> to vector<1x1x8x8xf32>
    tpu.vector_store %arg14[%c0_541, %c0_542, %c0_543, %c0_544], %795 {strides = array<i32>} : memref<1x12x8x8xf32, #tpu.memory_space<vmem>>, vector<1x1x8x8xf32>,
    %c1_545 = arith.constant 1 : index
    %796 = memref.load %arg12[%c1_545] : memref<3xf32, #tpu.memory_space<smem>>
    %797 = vector.broadcast %796 : f32 to vector<8x8xf32>
    %c13_546 = arith.constant 13 : index
    %798 = memref.load %arg11[%c13_546] : memref<108xf32, #tpu.memory_space<smem>>
    %c0_547 = arith.constant 0 : index
    %c0_548 = arith.constant 0 : index
    %c0_549 = arith.constant 0 : index
    %799 = vector.load %arg15[%c0_547, %c0_548, %c0_549] : memref<4x9x9xf32, #tpu.memory_space<vmem>>, vector<1x8x8xf32>
    %800 = vector.shape_cast %799 : vector<1x8x8xf32> to vector<8x8xf32>
    %801 = vector.broadcast %798 : f32 to vector<8x8xf32>
    %802 = arith.mulf %801, %800 : vector<8x8xf32>
    %803 = arith.addf %797, %802 : vector<8x8xf32>
    %c40_550 = arith.constant 40 : index
    %804 = memref.load %arg11[%c40_550] : memref<108xf32, #tpu.memory_space<smem>>
    %c1_551 = arith.constant 1 : index
    %c0_552 = arith.constant 0 : index
    %c0_553 = arith.constant 0 : index
    %805 = vector.load %arg15[%c1_551, %c0_552, %c0_553] : memref<4x9x9xf32, #tpu.memory_space<vmem>>, vector<1x8x8xf32>
    %806 = vector.shape_cast %805 : vector<1x8x8xf32> to vector<8x8xf32>
    %807 = vector.broadcast %804 : f32 to vector<8x8xf32>
    %808 = arith.mulf %807, %806 : vector<8x8xf32>
    %809 = arith.addf %803, %808 : vector<8x8xf32>
    %c67_554 = arith.constant 67 : index
    %810 = memref.load %arg11[%c67_554] : memref<108xf32, #tpu.memory_space<smem>>
    %c2_555 = arith.constant 2 : index
    %c0_556 = arith.constant 0 : index
    %c0_557 = arith.constant 0 : index
    %811 = vector.load %arg15[%c2_555, %c0_556, %c0_557] : memref<4x9x9xf32, #tpu.memory_space<vmem>>, vector<1x8x8xf32>
    %812 = vector.shape_cast %811 : vector<1x8x8xf32> to vector<8x8xf32>
    %813 = vector.broadcast %810 : f32 to vector<8x8xf32>
    %814 = arith.mulf %813, %812 : vector<8x8xf32>
    %815 = arith.addf %809, %814 : vector<8x8xf32>
    %c94_558 = arith.constant 94 : index
    %816 = memref.load %arg11[%c94_558] : memref<108xf32, #tpu.memory_space<smem>>
    %c3_559 = arith.constant 3 : index
    %c0_560 = arith.constant 0 : index
    %c0_561 = arith.constant 0 : index
    %817 = vector.load %arg15[%c3_559, %c0_560, %c0_561] : memref<4x9x9xf32, #tpu.memory_space<vmem>>, vector<1x8x8xf32>
    %818 = vector.shape_cast %817 : vector<1x8x8xf32> to vector<8x8xf32>
    %819 = vector.broadcast %816 : f32 to vector<8x8xf32>
    %820 = arith.mulf %819, %818 : vector<8x8xf32>
    %821 = arith.addf %815, %820 : vector<8x8xf32>
    %822 = arith.negf %821 : vector<8x8xf32>
    %823 = math.exp %822 : vector<8x8xf32>
    %cst_562 = arith.constant 1.000000e+00 : f32
    %824 = vector.broadcast %cst_562 : f32 to vector<8x8xf32>
    %825 = arith.addf %824, %823 : vector<8x8xf32>
    %826 = arith.divf %824, %825 : vector<8x8xf32>
    %c0_563 = arith.constant 0 : index
    %c1_564 = arith.constant 1 : index
    %c0_565 = arith.constant 0 : index
    %c0_566 = arith.constant 0 : index
    %827 = vector.load %arg14[%c0_563, %c1_564, %c0_565, %c0_566] : memref<1x12x8x8xf32, #tpu.memory_space<vmem>>, vector<1x1x8x8xf32>
    %828 = vector.shape_cast %827 : vector<1x1x8x8xf32> to vector<8x8xf32>
    %829 = vector.shape_cast %826 : vector<8x8xf32> to vector<1x1x8x8xf32>
    tpu.vector_store %arg14[%c0_563, %c1_564, %c0_565, %c0_566], %829 {strides = array<i32>} : memref<1x12x8x8xf32, #tpu.memory_space<vmem>>, vector<1x1x8x8xf32>,
    %c2_567 = arith.constant 2 : index
    %830 = memref.load %arg12[%c2_567] : memref<3xf32, #tpu.memory_space<smem>>
    %831 = vector.broadcast %830 : f32 to vector<8x8xf32>
    %c22_568 = arith.constant 22 : index
    %832 = memref.load %arg11[%c22_568] : memref<108xf32, #tpu.memory_space<smem>>
    %c0_569 = arith.constant 0 : index
    %c0_570 = arith.constant 0 : index
    %c0_571 = arith.constant 0 : index
    %833 = vector.load %arg15[%c0_569, %c0_570, %c0_571] : memref<4x9x9xf32, #tpu.memory_space<vmem>>, vector<1x8x8xf32>
    %834 = vector.shape_cast %833 : vector<1x8x8xf32> to vector<8x8xf32>
    %835 = vector.broadcast %832 : f32 to vector<8x8xf32>
    %836 = arith.mulf %835, %834 : vector<8x8xf32>
    %837 = arith.addf %831, %836 : vector<8x8xf32>
    %c49_572 = arith.constant 49 : index
    %838 = memref.load %arg11[%c49_572] : memref<108xf32, #tpu.memory_space<smem>>
    %c1_573 = arith.constant 1 : index
    %c0_574 = arith.constant 0 : index
    %c0_575 = arith.constant 0 : index
    %839 = vector.load %arg15[%c1_573, %c0_574, %c0_575] : memref<4x9x9xf32, #tpu.memory_space<vmem>>, vector<1x8x8xf32>
    %840 = vector.shape_cast %839 : vector<1x8x8xf32> to vector<8x8xf32>
    %841 = vector.broadcast %838 : f32 to vector<8x8xf32>
    %842 = arith.mulf %841, %840 : vector<8x8xf32>
    %843 = arith.addf %837, %842 : vector<8x8xf32>
    %c76_576 = arith.constant 76 : index
    %844 = memref.load %arg11[%c76_576] : memref<108xf32, #tpu.memory_space<smem>>
    %c2_577 = arith.constant 2 : index
    %c0_578 = arith.constant 0 : index
    %c0_579 = arith.constant 0 : index
    %845 = vector.load %arg15[%c2_577, %c0_578, %c0_579] : memref<4x9x9xf32, #tpu.memory_space<vmem>>, vector<1x8x8xf32>
    %846 = vector.shape_cast %845 : vector<1x8x8xf32> to vector<8x8xf32>
    %847 = vector.broadcast %844 : f32 to vector<8x8xf32>
    %848 = arith.mulf %847, %846 : vector<8x8xf32>
    %849 = arith.addf %843, %848 : vector<8x8xf32>
    %c103_580 = arith.constant 103 : index
    %850 = memref.load %arg11[%c103_580] : memref<108xf32, #tpu.memory_space<smem>>
    %c3_581 = arith.constant 3 : index
    %c0_582 = arith.constant 0 : index
    %c0_583 = arith.constant 0 : index
    %851 = vector.load %arg15[%c3_581, %c0_582, %c0_583] : memref<4x9x9xf32, #tpu.memory_space<vmem>>, vector<1x8x8xf32>
    %852 = vector.shape_cast %851 : vector<1x8x8xf32> to vector<8x8xf32>
    %853 = vector.broadcast %850 : f32 to vector<8x8xf32>
    %854 = arith.mulf %853, %852 : vector<8x8xf32>
    %855 = arith.addf %849, %854 : vector<8x8xf32>
    %856 = arith.negf %855 : vector<8x8xf32>
    %857 = math.exp %856 : vector<8x8xf32>
    %cst_584 = arith.constant 1.000000e+00 : f32
    %858 = vector.broadcast %cst_584 : f32 to vector<8x8xf32>
    %859 = arith.addf %858, %857 : vector<8x8xf32>
    %860 = arith.divf %858, %859 : vector<8x8xf32>
    %c0_585 = arith.constant 0 : index
    %c2_586 = arith.constant 2 : index
    %c0_587 = arith.constant 0 : index
    %c0_588 = arith.constant 0 : index
    %861 = vector.load %arg14[%c0_585, %c2_586, %c0_587, %c0_588] : memref<1x12x8x8xf32, #tpu.memory_space<vmem>>, vector<1x1x8x8xf32>
    %862 = vector.shape_cast %861 : vector<1x1x8x8xf32> to vector<8x8xf32>
    %863 = vector.shape_cast %860 : vector<8x8xf32> to vector<1x1x8x8xf32>
    tpu.vector_store %arg14[%c0_585, %c2_586, %c0_587, %c0_588], %863 {strides = array<i32>} : memref<1x12x8x8xf32, #tpu.memory_space<vmem>>, vector<1x1x8x8xf32>,
    %c0_589 = arith.constant 0 : index
    %864 = memref.load %arg12[%c0_589] : memref<3xf32, #tpu.memory_space<smem>>
    %865 = vector.broadcast %864 : f32 to vector<8x8xf32>
    %c3_590 = arith.constant 3 : index
    %866 = memref.load %arg11[%c3_590] : memref<108xf32, #tpu.memory_space<smem>>
    %c0_591 = arith.constant 0 : index
    %c0_592 = arith.constant 0 : index
    %c1_593 = arith.constant 1 : index
    %867 = vector.load %arg15[%c0_591, %c0_592, %c1_593] : memref<4x9x9xf32, #tpu.memory_space<vmem>>, vector<1x8x8xf32>
    %868 = vector.shape_cast %867 : vector<1x8x8xf32> to vector<8x8xf32>
    %869 = vector.broadcast %866 : f32 to vector<8x8xf32>
    %870 = arith.mulf %869, %868 : vector<8x8xf32>
    %871 = arith.addf %865, %870 : vector<8x8xf32>
    %c30_594 = arith.constant 30 : index
    %872 = memref.load %arg11[%c30_594] : memref<108xf32, #tpu.memory_space<smem>>
    %c1_595 = arith.constant 1 : index
    %c0_596 = arith.constant 0 : index
    %c1_597 = arith.constant 1 : index
    %873 = vector.load %arg15[%c1_595, %c0_596, %c1_597] : memref<4x9x9xf32, #tpu.memory_space<vmem>>, vector<1x8x8xf32>
    %874 = vector.shape_cast %873 : vector<1x8x8xf32> to vector<8x8xf32>
    %875 = vector.broadcast %872 : f32 to vector<8x8xf32>
    %876 = arith.mulf %875, %874 : vector<8x8xf32>
    %877 = arith.addf %871, %876 : vector<8x8xf32>
    %c57_598 = arith.constant 57 : index
    %878 = memref.load %arg11[%c57_598] : memref<108xf32, #tpu.memory_space<smem>>
    %c2_599 = arith.constant 2 : index
    %c0_600 = arith.constant 0 : index
    %c1_601 = arith.constant 1 : index
    %879 = vector.load %arg15[%c2_599, %c0_600, %c1_601] : memref<4x9x9xf32, #tpu.memory_space<vmem>>, vector<1x8x8xf32>
    %880 = vector.shape_cast %879 : vector<1x8x8xf32> to vector<8x8xf32>
    %881 = vector.broadcast %878 : f32 to vector<8x8xf32>
    %882 = arith.mulf %881, %880 : vector<8x8xf32>
    %883 = arith.addf %877, %882 : vector<8x8xf32>
    %c84_602 = arith.constant 84 : index
    %884 = memref.load %arg11[%c84_602] : memref<108xf32, #tpu.memory_space<smem>>
    %c3_603 = arith.constant 3 : index
    %c0_604 = arith.constant 0 : index
    %c1_605 = arith.constant 1 : index
    %885 = vector.load %arg15[%c3_603, %c0_604, %c1_605] : memref<4x9x9xf32, #tpu.memory_space<vmem>>, vector<1x8x8xf32>
    %886 = vector.shape_cast %885 : vector<1x8x8xf32> to vector<8x8xf32>
    %887 = vector.broadcast %884 : f32 to vector<8x8xf32>
    %888 = arith.mulf %887, %886 : vector<8x8xf32>
    %889 = arith.addf %883, %888 : vector<8x8xf32>
    %c5_606 = arith.constant 5 : index
    %890 = memref.load %arg11[%c5_606] : memref<108xf32, #tpu.memory_space<smem>>
    %c0_607 = arith.constant 0 : index
    %c0_608 = arith.constant 0 : index
    %c0_609 = arith.constant 0 : index
    %891 = vector.load %arg15[%c0_607, %c0_608, %c0_609] : memref<4x9x9xf32, #tpu.memory_space<vmem>>, vector<1x8x8xf32>
    %892 = vector.shape_cast %891 : vector<1x8x8xf32> to vector<8x8xf32>
    %893 = vector.broadcast %890 : f32 to vector<8x8xf32>
    %894 = arith.mulf %893, %892 : vector<8x8xf32>
    %895 = arith.addf %889, %894 : vector<8x8xf32>
    %c32_610 = arith.constant 32 : index
    %896 = memref.load %arg11[%c32_610] : memref<108xf32, #tpu.memory_space<smem>>
    %c1_611 = arith.constant 1 : index
    %c0_612 = arith.constant 0 : index
    %c0_613 = arith.constant 0 : index
    %897 = vector.load %arg15[%c1_611, %c0_612, %c0_613] : memref<4x9x9xf32, #tpu.memory_space<vmem>>, vector<1x8x8xf32>
    %898 = vector.shape_cast %897 : vector<1x8x8xf32> to vector<8x8xf32>
    %899 = vector.broadcast %896 : f32 to vector<8x8xf32>
    %900 = arith.mulf %899, %898 : vector<8x8xf32>
    %901 = arith.addf %895, %900 : vector<8x8xf32>
    %c59_614 = arith.constant 59 : index
    %902 = memref.load %arg11[%c59_614] : memref<108xf32, #tpu.memory_space<smem>>
    %c2_615 = arith.constant 2 : index
    %c0_616 = arith.constant 0 : index
    %c0_617 = arith.constant 0 : index
    %903 = vector.load %arg15[%c2_615, %c0_616, %c0_617] : memref<4x9x9xf32, #tpu.memory_space<vmem>>, vector<1x8x8xf32>
    %904 = vector.shape_cast %903 : vector<1x8x8xf32> to vector<8x8xf32>
    %905 = vector.broadcast %902 : f32 to vector<8x8xf32>
    %906 = arith.mulf %905, %904 : vector<8x8xf32>
    %907 = arith.addf %901, %906 : vector<8x8xf32>
    %c86_618 = arith.constant 86 : index
    %908 = memref.load %arg11[%c86_618] : memref<108xf32, #tpu.memory_space<smem>>
    %c3_619 = arith.constant 3 : index
    %c0_620 = arith.constant 0 : index
    %c0_621 = arith.constant 0 : index
    %909 = vector.load %arg15[%c3_619, %c0_620, %c0_621] : memref<4x9x9xf32, #tpu.memory_space<vmem>>, vector<1x8x8xf32>
    %910 = vector.shape_cast %909 : vector<1x8x8xf32> to vector<8x8xf32>
    %911 = vector.broadcast %908 : f32 to vector<8x8xf32>
    %912 = arith.mulf %911, %910 : vector<8x8xf32>
    %913 = arith.addf %907, %912 : vector<8x8xf32>
    %914 = arith.negf %913 : vector<8x8xf32>
    %915 = math.exp %914 : vector<8x8xf32>
    %cst_622 = arith.constant 1.000000e+00 : f32
    %916 = vector.broadcast %cst_622 : f32 to vector<8x8xf32>
    %917 = arith.addf %916, %915 : vector<8x8xf32>
    %918 = arith.divf %916, %917 : vector<8x8xf32>
    %c0_623 = arith.constant 0 : index
    %c3_624 = arith.constant 3 : index
    %c0_625 = arith.constant 0 : index
    %c0_626 = arith.constant 0 : index
    %919 = vector.load %arg14[%c0_623, %c3_624, %c0_625, %c0_626] : memref<1x12x8x8xf32, #tpu.memory_space<vmem>>, vector<1x1x8x8xf32>
    %920 = vector.shape_cast %919 : vector<1x1x8x8xf32> to vector<8x8xf32>
    %921 = vector.shape_cast %918 : vector<8x8xf32> to vector<1x1x8x8xf32>
    tpu.vector_store %arg14[%c0_623, %c3_624, %c0_625, %c0_626], %921 {strides = array<i32>} : memref<1x12x8x8xf32, #tpu.memory_space<vmem>>, vector<1x1x8x8xf32>,
    %c1_627 = arith.constant 1 : index
    %922 = memref.load %arg12[%c1_627] : memref<3xf32, #tpu.memory_space<smem>>
    %923 = vector.broadcast %922 : f32 to vector<8x8xf32>
    %c12_628 = arith.constant 12 : index
    %924 = memref.load %arg11[%c12_628] : memref<108xf32, #tpu.memory_space<smem>>
    %c0_629 = arith.constant 0 : index
    %c0_630 = arith.constant 0 : index
    %c1_631 = arith.constant 1 : index
    %925 = vector.load %arg15[%c0_629, %c0_630, %c1_631] : memref<4x9x9xf32, #tpu.memory_space<vmem>>, vector<1x8x8xf32>
    %926 = vector.shape_cast %925 : vector<1x8x8xf32> to vector<8x8xf32>
    %927 = vector.broadcast %924 : f32 to vector<8x8xf32>
    %928 = arith.mulf %927, %926 : vector<8x8xf32>
    %929 = arith.addf %923, %928 : vector<8x8xf32>
    %c39_632 = arith.constant 39 : index
    %930 = memref.load %arg11[%c39_632] : memref<108xf32, #tpu.memory_space<smem>>
    %c1_633 = arith.constant 1 : index
    %c0_634 = arith.constant 0 : index
    %c1_635 = arith.constant 1 : index
    %931 = vector.load %arg15[%c1_633, %c0_634, %c1_635] : memref<4x9x9xf32, #tpu.memory_space<vmem>>, vector<1x8x8xf32>
    %932 = vector.shape_cast %931 : vector<1x8x8xf32> to vector<8x8xf32>
    %933 = vector.broadcast %930 : f32 to vector<8x8xf32>
    %934 = arith.mulf %933, %932 : vector<8x8xf32>
    %935 = arith.addf %929, %934 : vector<8x8xf32>
    %c66_636 = arith.constant 66 : index
    %936 = memref.load %arg11[%c66_636] : memref<108xf32, #tpu.memory_space<smem>>
    %c2_637 = arith.constant 2 : index
    %c0_638 = arith.constant 0 : index
    %c1_639 = arith.constant 1 : index
    %937 = vector.load %arg15[%c2_637, %c0_638, %c1_639] : memref<4x9x9xf32, #tpu.memory_space<vmem>>, vector<1x8x8xf32>
    %938 = vector.shape_cast %937 : vector<1x8x8xf32> to vector<8x8xf32>
    %939 = vector.broadcast %936 : f32 to vector<8x8xf32>
    %940 = arith.mulf %939, %938 : vector<8x8xf32>
    %941 = arith.addf %935, %940 : vector<8x8xf32>
    %c93_640 = arith.constant 93 : index
    %942 = memref.load %arg11[%c93_640] : memref<108xf32, #tpu.memory_space<smem>>
    %c3_641 = arith.constant 3 : index
    %c0_642 = arith.constant 0 : index
    %c1_643 = arith.constant 1 : index
    %943 = vector.load %arg15[%c3_641, %c0_642, %c1_643] : memref<4x9x9xf32, #tpu.memory_space<vmem>>, vector<1x8x8xf32>
    %944 = vector.shape_cast %943 : vector<1x8x8xf32> to vector<8x8xf32>
    %945 = vector.broadcast %942 : f32 to vector<8x8xf32>
    %946 = arith.mulf %945, %944 : vector<8x8xf32>
    %947 = arith.addf %941, %946 : vector<8x8xf32>
    %c14_644 = arith.constant 14 : index
    %948 = memref.load %arg11[%c14_644] : memref<108xf32, #tpu.memory_space<smem>>
    %c0_645 = arith.constant 0 : index
    %c0_646 = arith.constant 0 : index
    %c0_647 = arith.constant 0 : index
    %949 = vector.load %arg15[%c0_645, %c0_646, %c0_647] : memref<4x9x9xf32, #tpu.memory_space<vmem>>, vector<1x8x8xf32>
    %950 = vector.shape_cast %949 : vector<1x8x8xf32> to vector<8x8xf32>
    %951 = vector.broadcast %948 : f32 to vector<8x8xf32>
    %952 = arith.mulf %951, %950 : vector<8x8xf32>
    %953 = arith.addf %947, %952 : vector<8x8xf32>
    %c41_648 = arith.constant 41 : index
    %954 = memref.load %arg11[%c41_648] : memref<108xf32, #tpu.memory_space<smem>>
    %c1_649 = arith.constant 1 : index
    %c0_650 = arith.constant 0 : index
    %c0_651 = arith.constant 0 : index
    %955 = vector.load %arg15[%c1_649, %c0_650, %c0_651] : memref<4x9x9xf32, #tpu.memory_space<vmem>>, vector<1x8x8xf32>
    %956 = vector.shape_cast %955 : vector<1x8x8xf32> to vector<8x8xf32>
    %957 = vector.broadcast %954 : f32 to vector<8x8xf32>
    %958 = arith.mulf %957, %956 : vector<8x8xf32>
    %959 = arith.addf %953, %958 : vector<8x8xf32>
    %c68_652 = arith.constant 68 : index
    %960 = memref.load %arg11[%c68_652] : memref<108xf32, #tpu.memory_space<smem>>
    %c2_653 = arith.constant 2 : index
    %c0_654 = arith.constant 0 : index
    %c0_655 = arith.constant 0 : index
    %961 = vector.load %arg15[%c2_653, %c0_654, %c0_655] : memref<4x9x9xf32, #tpu.memory_space<vmem>>, vector<1x8x8xf32>
    %962 = vector.shape_cast %961 : vector<1x8x8xf32> to vector<8x8xf32>
    %963 = vector.broadcast %960 : f32 to vector<8x8xf32>
    %964 = arith.mulf %963, %962 : vector<8x8xf32>
    %965 = arith.addf %959, %964 : vector<8x8xf32>
    %c95_656 = arith.constant 95 : index
    %966 = memref.load %arg11[%c95_656] : memref<108xf32, #tpu.memory_space<smem>>
    %c3_657 = arith.constant 3 : index
    %c0_658 = arith.constant 0 : index
    %c0_659 = arith.constant 0 : index
    %967 = vector.load %arg15[%c3_657, %c0_658, %c0_659] : memref<4x9x9xf32, #tpu.memory_space<vmem>>, vector<1x8x8xf32>
    %968 = vector.shape_cast %967 : vector<1x8x8xf32> to vector<8x8xf32>
    %969 = vector.broadcast %966 : f32 to vector<8x8xf32>
    %970 = arith.mulf %969, %968 : vector<8x8xf32>
    %971 = arith.addf %965, %970 : vector<8x8xf32>
    %972 = arith.negf %971 : vector<8x8xf32>
    %973 = math.exp %972 : vector<8x8xf32>
    %cst_660 = arith.constant 1.000000e+00 : f32
    %974 = vector.broadcast %cst_660 : f32 to vector<8x8xf32>
    %975 = arith.addf %974, %973 : vector<8x8xf32>
    %976 = arith.divf %974, %975 : vector<8x8xf32>
    %c0_661 = arith.constant 0 : index
    %c4_662 = arith.constant 4 : index
    %c0_663 = arith.constant 0 : index
    %c0_664 = arith.constant 0 : index
    %977 = vector.load %arg14[%c0_661, %c4_662, %c0_663, %c0_664] : memref<1x12x8x8xf32, #tpu.memory_space<vmem>>, vector<1x1x8x8xf32>
    %978 = vector.shape_cast %977 : vector<1x1x8x8xf32> to vector<8x8xf32>
    %979 = vector.shape_cast %976 : vector<8x8xf32> to vector<1x1x8x8xf32>
    tpu.vector_store %arg14[%c0_661, %c4_662, %c0_663, %c0_664], %979 {strides = array<i32>} : memref<1x12x8x8xf32, #tpu.memory_space<vmem>>, vector<1x1x8x8xf32>,
    %c2_665 = arith.constant 2 : index
    %980 = memref.load %arg12[%c2_665] : memref<3xf32, #tpu.memory_space<smem>>
    %981 = vector.broadcast %980 : f32 to vector<8x8xf32>
    %c21_666 = arith.constant 21 : index
    %982 = memref.load %arg11[%c21_666] : memref<108xf32, #tpu.memory_space<smem>>
    %c0_667 = arith.constant 0 : index
    %c0_668 = arith.constant 0 : index
    %c1_669 = arith.constant 1 : index
    %983 = vector.load %arg15[%c0_667, %c0_668, %c1_669] : memref<4x9x9xf32, #tpu.memory_space<vmem>>, vector<1x8x8xf32>
    %984 = vector.shape_cast %983 : vector<1x8x8xf32> to vector<8x8xf32>
    %985 = vector.broadcast %982 : f32 to vector<8x8xf32>
    %986 = arith.mulf %985, %984 : vector<8x8xf32>
    %987 = arith.addf %981, %986 : vector<8x8xf32>
    %c48_670 = arith.constant 48 : index
    %988 = memref.load %arg11[%c48_670] : memref<108xf32, #tpu.memory_space<smem>>
    %c1_671 = arith.constant 1 : index
    %c0_672 = arith.constant 0 : index
    %c1_673 = arith.constant 1 : index
    %989 = vector.load %arg15[%c1_671, %c0_672, %c1_673] : memref<4x9x9xf32, #tpu.memory_space<vmem>>, vector<1x8x8xf32>
    %990 = vector.shape_cast %989 : vector<1x8x8xf32> to vector<8x8xf32>
    %991 = vector.broadcast %988 : f32 to vector<8x8xf32>
    %992 = arith.mulf %991, %990 : vector<8x8xf32>
    %993 = arith.addf %987, %992 : vector<8x8xf32>
    %c75_674 = arith.constant 75 : index
    %994 = memref.load %arg11[%c75_674] : memref<108xf32, #tpu.memory_space<smem>>
    %c2_675 = arith.constant 2 : index
    %c0_676 = arith.constant 0 : index
    %c1_677 = arith.constant 1 : index
    %995 = vector.load %arg15[%c2_675, %c0_676, %c1_677] : memref<4x9x9xf32, #tpu.memory_space<vmem>>, vector<1x8x8xf32>
    %996 = vector.shape_cast %995 : vector<1x8x8xf32> to vector<8x8xf32>
    %997 = vector.broadcast %994 : f32 to vector<8x8xf32>
    %998 = arith.mulf %997, %996 : vector<8x8xf32>
    %999 = arith.addf %993, %998 : vector<8x8xf32>
    %c102_678 = arith.constant 102 : index
    %1000 = memref.load %arg11[%c102_678] : memref<108xf32, #tpu.memory_space<smem>>
    %c3_679 = arith.constant 3 : index
    %c0_680 = arith.constant 0 : index
    %c1_681 = arith.constant 1 : index
    %1001 = vector.load %arg15[%c3_679, %c0_680, %c1_681] : memref<4x9x9xf32, #tpu.memory_space<vmem>>, vector<1x8x8xf32>
    %1002 = vector.shape_cast %1001 : vector<1x8x8xf32> to vector<8x8xf32>
    %1003 = vector.broadcast %1000 : f32 to vector<8x8xf32>
    %1004 = arith.mulf %1003, %1002 : vector<8x8xf32>
    %1005 = arith.addf %999, %1004 : vector<8x8xf32>
    %c23_682 = arith.constant 23 : index
    %1006 = memref.load %arg11[%c23_682] : memref<108xf32, #tpu.memory_space<smem>>
    %c0_683 = arith.constant 0 : index
    %c0_684 = arith.constant 0 : index
    %c0_685 = arith.constant 0 : index
    %1007 = vector.load %arg15[%c0_683, %c0_684, %c0_685] : memref<4x9x9xf32, #tpu.memory_space<vmem>>, vector<1x8x8xf32>
    %1008 = vector.shape_cast %1007 : vector<1x8x8xf32> to vector<8x8xf32>
    %1009 = vector.broadcast %1006 : f32 to vector<8x8xf32>
    %1010 = arith.mulf %1009, %1008 : vector<8x8xf32>
    %1011 = arith.addf %1005, %1010 : vector<8x8xf32>
    %c50_686 = arith.constant 50 : index
    %1012 = memref.load %arg11[%c50_686] : memref<108xf32, #tpu.memory_space<smem>>
    %c1_687 = arith.constant 1 : index
    %c0_688 = arith.constant 0 : index
    %c0_689 = arith.constant 0 : index
    %1013 = vector.load %arg15[%c1_687, %c0_688, %c0_689] : memref<4x9x9xf32, #tpu.memory_space<vmem>>, vector<1x8x8xf32>
    %1014 = vector.shape_cast %1013 : vector<1x8x8xf32> to vector<8x8xf32>
    %1015 = vector.broadcast %1012 : f32 to vector<8x8xf32>
    %1016 = arith.mulf %1015, %1014 : vector<8x8xf32>
    %1017 = arith.addf %1011, %1016 : vector<8x8xf32>
    %c77_690 = arith.constant 77 : index
    %1018 = memref.load %arg11[%c77_690] : memref<108xf32, #tpu.memory_space<smem>>
    %c2_691 = arith.constant 2 : index
    %c0_692 = arith.constant 0 : index
    %c0_693 = arith.constant 0 : index
    %1019 = vector.load %arg15[%c2_691, %c0_692, %c0_693] : memref<4x9x9xf32, #tpu.memory_space<vmem>>, vector<1x8x8xf32>
    %1020 = vector.shape_cast %1019 : vector<1x8x8xf32> to vector<8x8xf32>
    %1021 = vector.broadcast %1018 : f32 to vector<8x8xf32>
    %1022 = arith.mulf %1021, %1020 : vector<8x8xf32>
    %1023 = arith.addf %1017, %1022 : vector<8x8xf32>
    %c104_694 = arith.constant 104 : index
    %1024 = memref.load %arg11[%c104_694] : memref<108xf32, #tpu.memory_space<smem>>
    %c3_695 = arith.constant 3 : index
    %c0_696 = arith.constant 0 : index
    %c0_697 = arith.constant 0 : index
    %1025 = vector.load %arg15[%c3_695, %c0_696, %c0_697] : memref<4x9x9xf32, #tpu.memory_space<vmem>>, vector<1x8x8xf32>
    %1026 = vector.shape_cast %1025 : vector<1x8x8xf32> to vector<8x8xf32>
    %1027 = vector.broadcast %1024 : f32 to vector<8x8xf32>
    %1028 = arith.mulf %1027, %1026 : vector<8x8xf32>
    %1029 = arith.addf %1023, %1028 : vector<8x8xf32>
    %1030 = arith.negf %1029 : vector<8x8xf32>
    %1031 = math.exp %1030 : vector<8x8xf32>
    %cst_698 = arith.constant 1.000000e+00 : f32
    %1032 = vector.broadcast %cst_698 : f32 to vector<8x8xf32>
    %1033 = arith.addf %1032, %1031 : vector<8x8xf32>
    %1034 = arith.divf %1032, %1033 : vector<8x8xf32>
    %c0_699 = arith.constant 0 : index
    %c5_700 = arith.constant 5 : index
    %c0_701 = arith.constant 0 : index
    %c0_702 = arith.constant 0 : index
    %1035 = vector.load %arg14[%c0_699, %c5_700, %c0_701, %c0_702] : memref<1x12x8x8xf32, #tpu.memory_space<vmem>>, vector<1x1x8x8xf32>
    %1036 = vector.shape_cast %1035 : vector<1x1x8x8xf32> to vector<8x8xf32>
    %1037 = vector.shape_cast %1034 : vector<8x8xf32> to vector<1x1x8x8xf32>
    tpu.vector_store %arg14[%c0_699, %c5_700, %c0_701, %c0_702], %1037 {strides = array<i32>} : memref<1x12x8x8xf32, #tpu.memory_space<vmem>>, vector<1x1x8x8xf32>,
    %c0_703 = arith.constant 0 : index
    %1038 = memref.load %arg12[%c0_703] : memref<3xf32, #tpu.memory_space<smem>>
    %1039 = vector.broadcast %1038 : f32 to vector<8x8xf32>
    %c1_704 = arith.constant 1 : index
    %1040 = memref.load %arg11[%c1_704] : memref<108xf32, #tpu.memory_space<smem>>
    %c0_705 = arith.constant 0 : index
    %c1_706 = arith.constant 1 : index
    %c0_707 = arith.constant 0 : index
    %1041 = vector.load %arg15[%c0_705, %c1_706, %c0_707] : memref<4x9x9xf32, #tpu.memory_space<vmem>>, vector<1x8x8xf32>
    %1042 = vector.shape_cast %1041 : vector<1x8x8xf32> to vector<8x8xf32>
    %1043 = vector.broadcast %1040 : f32 to vector<8x8xf32>
    %1044 = arith.mulf %1043, %1042 : vector<8x8xf32>
    %1045 = arith.addf %1039, %1044 : vector<8x8xf32>
    %c28_708 = arith.constant 28 : index
    %1046 = memref.load %arg11[%c28_708] : memref<108xf32, #tpu.memory_space<smem>>
    %c1_709 = arith.constant 1 : index
    %c1_710 = arith.constant 1 : index
    %c0_711 = arith.constant 0 : index
    %1047 = vector.load %arg15[%c1_709, %c1_710, %c0_711] : memref<4x9x9xf32, #tpu.memory_space<vmem>>, vector<1x8x8xf32>
    %1048 = vector.shape_cast %1047 : vector<1x8x8xf32> to vector<8x8xf32>
    %1049 = vector.broadcast %1046 : f32 to vector<8x8xf32>
    %1050 = arith.mulf %1049, %1048 : vector<8x8xf32>
    %1051 = arith.addf %1045, %1050 : vector<8x8xf32>
    %c55_712 = arith.constant 55 : index
    %1052 = memref.load %arg11[%c55_712] : memref<108xf32, #tpu.memory_space<smem>>
    %c2_713 = arith.constant 2 : index
    %c1_714 = arith.constant 1 : index
    %c0_715 = arith.constant 0 : index
    %1053 = vector.load %arg15[%c2_713, %c1_714, %c0_715] : memref<4x9x9xf32, #tpu.memory_space<vmem>>, vector<1x8x8xf32>
    %1054 = vector.shape_cast %1053 : vector<1x8x8xf32> to vector<8x8xf32>
    %1055 = vector.broadcast %1052 : f32 to vector<8x8xf32>
    %1056 = arith.mulf %1055, %1054 : vector<8x8xf32>
    %1057 = arith.addf %1051, %1056 : vector<8x8xf32>
    %c82_716 = arith.constant 82 : index
    %1058 = memref.load %arg11[%c82_716] : memref<108xf32, #tpu.memory_space<smem>>
    %c3_717 = arith.constant 3 : index
    %c1_718 = arith.constant 1 : index
    %c0_719 = arith.constant 0 : index
    %1059 = vector.load %arg15[%c3_717, %c1_718, %c0_719] : memref<4x9x9xf32, #tpu.memory_space<vmem>>, vector<1x8x8xf32>
    %1060 = vector.shape_cast %1059 : vector<1x8x8xf32> to vector<8x8xf32>
    %1061 = vector.broadcast %1058 : f32 to vector<8x8xf32>
    %1062 = arith.mulf %1061, %1060 : vector<8x8xf32>
    %1063 = arith.addf %1057, %1062 : vector<8x8xf32>
    %c7_720 = arith.constant 7 : index
    %1064 = memref.load %arg11[%c7_720] : memref<108xf32, #tpu.memory_space<smem>>
    %c0_721 = arith.constant 0 : index
    %c0_722 = arith.constant 0 : index
    %c0_723 = arith.constant 0 : index
    %1065 = vector.load %arg15[%c0_721, %c0_722, %c0_723] : memref<4x9x9xf32, #tpu.memory_space<vmem>>, vector<1x8x8xf32>
    %1066 = vector.shape_cast %1065 : vector<1x8x8xf32> to vector<8x8xf32>
    %1067 = vector.broadcast %1064 : f32 to vector<8x8xf32>
    %1068 = arith.mulf %1067, %1066 : vector<8x8xf32>
    %1069 = arith.addf %1063, %1068 : vector<8x8xf32>
    %c34_724 = arith.constant 34 : index
    %1070 = memref.load %arg11[%c34_724] : memref<108xf32, #tpu.memory_space<smem>>
    %c1_725 = arith.constant 1 : index
    %c0_726 = arith.constant 0 : index
    %c0_727 = arith.constant 0 : index
    %1071 = vector.load %arg15[%c1_725, %c0_726, %c0_727] : memref<4x9x9xf32, #tpu.memory_space<vmem>>, vector<1x8x8xf32>
    %1072 = vector.shape_cast %1071 : vector<1x8x8xf32> to vector<8x8xf32>
    %1073 = vector.broadcast %1070 : f32 to vector<8x8xf32>
    %1074 = arith.mulf %1073, %1072 : vector<8x8xf32>
    %1075 = arith.addf %1069, %1074 : vector<8x8xf32>
    %c61_728 = arith.constant 61 : index
    %1076 = memref.load %arg11[%c61_728] : memref<108xf32, #tpu.memory_space<smem>>
    %c2_729 = arith.constant 2 : index
    %c0_730 = arith.constant 0 : index
    %c0_731 = arith.constant 0 : index
    %1077 = vector.load %arg15[%c2_729, %c0_730, %c0_731] : memref<4x9x9xf32, #tpu.memory_space<vmem>>, vector<1x8x8xf32>
    %1078 = vector.shape_cast %1077 : vector<1x8x8xf32> to vector<8x8xf32>
    %1079 = vector.broadcast %1076 : f32 to vector<8x8xf32>
    %1080 = arith.mulf %1079, %1078 : vector<8x8xf32>
    %1081 = arith.addf %1075, %1080 : vector<8x8xf32>
    %c88_732 = arith.constant 88 : index
    %1082 = memref.load %arg11[%c88_732] : memref<108xf32, #tpu.memory_space<smem>>
    %c3_733 = arith.constant 3 : index
    %c0_734 = arith.constant 0 : index
    %c0_735 = arith.constant 0 : index
    %1083 = vector.load %arg15[%c3_733, %c0_734, %c0_735] : memref<4x9x9xf32, #tpu.memory_space<vmem>>, vector<1x8x8xf32>
    %1084 = vector.shape_cast %1083 : vector<1x8x8xf32> to vector<8x8xf32>
    %1085 = vector.broadcast %1082 : f32 to vector<8x8xf32>
    %1086 = arith.mulf %1085, %1084 : vector<8x8xf32>
    %1087 = arith.addf %1081, %1086 : vector<8x8xf32>
    %1088 = arith.negf %1087 : vector<8x8xf32>
    %1089 = math.exp %1088 : vector<8x8xf32>
    %cst_736 = arith.constant 1.000000e+00 : f32
    %1090 = vector.broadcast %cst_736 : f32 to vector<8x8xf32>
    %1091 = arith.addf %1090, %1089 : vector<8x8xf32>
    %1092 = arith.divf %1090, %1091 : vector<8x8xf32>
    %c0_737 = arith.constant 0 : index
    %c6_738 = arith.constant 6 : index
    %c0_739 = arith.constant 0 : index
    %c0_740 = arith.constant 0 : index
    %1093 = vector.load %arg14[%c0_737, %c6_738, %c0_739, %c0_740] : memref<1x12x8x8xf32, #tpu.memory_space<vmem>>, vector<1x1x8x8xf32>
    %1094 = vector.shape_cast %1093 : vector<1x1x8x8xf32> to vector<8x8xf32>
    %1095 = vector.shape_cast %1092 : vector<8x8xf32> to vector<1x1x8x8xf32>
    tpu.vector_store %arg14[%c0_737, %c6_738, %c0_739, %c0_740], %1095 {strides = array<i32>} : memref<1x12x8x8xf32, #tpu.memory_space<vmem>>, vector<1x1x8x8xf32>,
    %c1_741 = arith.constant 1 : index
    %1096 = memref.load %arg12[%c1_741] : memref<3xf32, #tpu.memory_space<smem>>
    %1097 = vector.broadcast %1096 : f32 to vector<8x8xf32>
    %c10_742 = arith.constant 10 : index
    %1098 = memref.load %arg11[%c10_742] : memref<108xf32, #tpu.memory_space<smem>>
    %c0_743 = arith.constant 0 : index
    %c1_744 = arith.constant 1 : index
    %c0_745 = arith.constant 0 : index
    %1099 = vector.load %arg15[%c0_743, %c1_744, %c0_745] : memref<4x9x9xf32, #tpu.memory_space<vmem>>, vector<1x8x8xf32>
    %1100 = vector.shape_cast %1099 : vector<1x8x8xf32> to vector<8x8xf32>
    %1101 = vector.broadcast %1098 : f32 to vector<8x8xf32>
    %1102 = arith.mulf %1101, %1100 : vector<8x8xf32>
    %1103 = arith.addf %1097, %1102 : vector<8x8xf32>
    %c37_746 = arith.constant 37 : index
    %1104 = memref.load %arg11[%c37_746] : memref<108xf32, #tpu.memory_space<smem>>
    %c1_747 = arith.constant 1 : index
    %c1_748 = arith.constant 1 : index
    %c0_749 = arith.constant 0 : index
    %1105 = vector.load %arg15[%c1_747, %c1_748, %c0_749] : memref<4x9x9xf32, #tpu.memory_space<vmem>>, vector<1x8x8xf32>
    %1106 = vector.shape_cast %1105 : vector<1x8x8xf32> to vector<8x8xf32>
    %1107 = vector.broadcast %1104 : f32 to vector<8x8xf32>
    %1108 = arith.mulf %1107, %1106 : vector<8x8xf32>
    %1109 = arith.addf %1103, %1108 : vector<8x8xf32>
    %c64_750 = arith.constant 64 : index
    %1110 = memref.load %arg11[%c64_750] : memref<108xf32, #tpu.memory_space<smem>>
    %c2_751 = arith.constant 2 : index
    %c1_752 = arith.constant 1 : index
    %c0_753 = arith.constant 0 : index
    %1111 = vector.load %arg15[%c2_751, %c1_752, %c0_753] : memref<4x9x9xf32, #tpu.memory_space<vmem>>, vector<1x8x8xf32>
    %1112 = vector.shape_cast %1111 : vector<1x8x8xf32> to vector<8x8xf32>
    %1113 = vector.broadcast %1110 : f32 to vector<8x8xf32>
    %1114 = arith.mulf %1113, %1112 : vector<8x8xf32>
    %1115 = arith.addf %1109, %1114 : vector<8x8xf32>
    %c91_754 = arith.constant 91 : index
    %1116 = memref.load %arg11[%c91_754] : memref<108xf32, #tpu.memory_space<smem>>
    %c3_755 = arith.constant 3 : index
    %c1_756 = arith.constant 1 : index
    %c0_757 = arith.constant 0 : index
    %1117 = vector.load %arg15[%c3_755, %c1_756, %c0_757] : memref<4x9x9xf32, #tpu.memory_space<vmem>>, vector<1x8x8xf32>
    %1118 = vector.shape_cast %1117 : vector<1x8x8xf32> to vector<8x8xf32>
    %1119 = vector.broadcast %1116 : f32 to vector<8x8xf32>
    %1120 = arith.mulf %1119, %1118 : vector<8x8xf32>
    %1121 = arith.addf %1115, %1120 : vector<8x8xf32>
    %c16_758 = arith.constant 16 : index
    %1122 = memref.load %arg11[%c16_758] : memref<108xf32, #tpu.memory_space<smem>>
    %c0_759 = arith.constant 0 : index
    %c0_760 = arith.constant 0 : index
    %c0_761 = arith.constant 0 : index
    %1123 = vector.load %arg15[%c0_759, %c0_760, %c0_761] : memref<4x9x9xf32, #tpu.memory_space<vmem>>, vector<1x8x8xf32>
    %1124 = vector.shape_cast %1123 : vector<1x8x8xf32> to vector<8x8xf32>
    %1125 = vector.broadcast %1122 : f32 to vector<8x8xf32>
    %1126 = arith.mulf %1125, %1124 : vector<8x8xf32>
    %1127 = arith.addf %1121, %1126 : vector<8x8xf32>
    %c43_762 = arith.constant 43 : index
    %1128 = memref.load %arg11[%c43_762] : memref<108xf32, #tpu.memory_space<smem>>
    %c1_763 = arith.constant 1 : index
    %c0_764 = arith.constant 0 : index
    %c0_765 = arith.constant 0 : index
    %1129 = vector.load %arg15[%c1_763, %c0_764, %c0_765] : memref<4x9x9xf32, #tpu.memory_space<vmem>>, vector<1x8x8xf32>
    %1130 = vector.shape_cast %1129 : vector<1x8x8xf32> to vector<8x8xf32>
    %1131 = vector.broadcast %1128 : f32 to vector<8x8xf32>
    %1132 = arith.mulf %1131, %1130 : vector<8x8xf32>
    %1133 = arith.addf %1127, %1132 : vector<8x8xf32>
    %c70_766 = arith.constant 70 : index
    %1134 = memref.load %arg11[%c70_766] : memref<108xf32, #tpu.memory_space<smem>>
    %c2_767 = arith.constant 2 : index
    %c0_768 = arith.constant 0 : index
    %c0_769 = arith.constant 0 : index
    %1135 = vector.load %arg15[%c2_767, %c0_768, %c0_769] : memref<4x9x9xf32, #tpu.memory_space<vmem>>, vector<1x8x8xf32>
    %1136 = vector.shape_cast %1135 : vector<1x8x8xf32> to vector<8x8xf32>
    %1137 = vector.broadcast %1134 : f32 to vector<8x8xf32>
    %1138 = arith.mulf %1137, %1136 : vector<8x8xf32>
    %1139 = arith.addf %1133, %1138 : vector<8x8xf32>
    %c97_770 = arith.constant 97 : index
    %1140 = memref.load %arg11[%c97_770] : memref<108xf32, #tpu.memory_space<smem>>
    %c3_771 = arith.constant 3 : index
    %c0_772 = arith.constant 0 : index
    %c0_773 = arith.constant 0 : index
    %1141 = vector.load %arg15[%c3_771, %c0_772, %c0_773] : memref<4x9x9xf32, #tpu.memory_space<vmem>>, vector<1x8x8xf32>
    %1142 = vector.shape_cast %1141 : vector<1x8x8xf32> to vector<8x8xf32>
    %1143 = vector.broadcast %1140 : f32 to vector<8x8xf32>
    %1144 = arith.mulf %1143, %1142 : vector<8x8xf32>
    %1145 = arith.addf %1139, %1144 : vector<8x8xf32>
    %1146 = arith.negf %1145 : vector<8x8xf32>
    %1147 = math.exp %1146 : vector<8x8xf32>
    %cst_774 = arith.constant 1.000000e+00 : f32
    %1148 = vector.broadcast %cst_774 : f32 to vector<8x8xf32>
    %1149 = arith.addf %1148, %1147 : vector<8x8xf32>
    %1150 = arith.divf %1148, %1149 : vector<8x8xf32>
    %c0_775 = arith.constant 0 : index
    %c7_776 = arith.constant 7 : index
    %c0_777 = arith.constant 0 : index
    %c0_778 = arith.constant 0 : index
    %1151 = vector.load %arg14[%c0_775, %c7_776, %c0_777, %c0_778] : memref<1x12x8x8xf32, #tpu.memory_space<vmem>>, vector<1x1x8x8xf32>
    %1152 = vector.shape_cast %1151 : vector<1x1x8x8xf32> to vector<8x8xf32>
    %1153 = vector.shape_cast %1150 : vector<8x8xf32> to vector<1x1x8x8xf32>
    tpu.vector_store %arg14[%c0_775, %c7_776, %c0_777, %c0_778], %1153 {strides = array<i32>} : memref<1x12x8x8xf32, #tpu.memory_space<vmem>>, vector<1x1x8x8xf32>,
    %c2_779 = arith.constant 2 : index
    %1154 = memref.load %arg12[%c2_779] : memref<3xf32, #tpu.memory_space<smem>>
    %1155 = vector.broadcast %1154 : f32 to vector<8x8xf32>
    %c19_780 = arith.constant 19 : index
    %1156 = memref.load %arg11[%c19_780] : memref<108xf32, #tpu.memory_space<smem>>
    %c0_781 = arith.constant 0 : index
    %c1_782 = arith.constant 1 : index
    %c0_783 = arith.constant 0 : index
    %1157 = vector.load %arg15[%c0_781, %c1_782, %c0_783] : memref<4x9x9xf32, #tpu.memory_space<vmem>>, vector<1x8x8xf32>
    %1158 = vector.shape_cast %1157 : vector<1x8x8xf32> to vector<8x8xf32>
    %1159 = vector.broadcast %1156 : f32 to vector<8x8xf32>
    %1160 = arith.mulf %1159, %1158 : vector<8x8xf32>
    %1161 = arith.addf %1155, %1160 : vector<8x8xf32>
    %c46_784 = arith.constant 46 : index
    %1162 = memref.load %arg11[%c46_784] : memref<108xf32, #tpu.memory_space<smem>>
    %c1_785 = arith.constant 1 : index
    %c1_786 = arith.constant 1 : index
    %c0_787 = arith.constant 0 : index
    %1163 = vector.load %arg15[%c1_785, %c1_786, %c0_787] : memref<4x9x9xf32, #tpu.memory_space<vmem>>, vector<1x8x8xf32>
    %1164 = vector.shape_cast %1163 : vector<1x8x8xf32> to vector<8x8xf32>
    %1165 = vector.broadcast %1162 : f32 to vector<8x8xf32>
    %1166 = arith.mulf %1165, %1164 : vector<8x8xf32>
    %1167 = arith.addf %1161, %1166 : vector<8x8xf32>
    %c73_788 = arith.constant 73 : index
    %1168 = memref.load %arg11[%c73_788] : memref<108xf32, #tpu.memory_space<smem>>
    %c2_789 = arith.constant 2 : index
    %c1_790 = arith.constant 1 : index
    %c0_791 = arith.constant 0 : index
    %1169 = vector.load %arg15[%c2_789, %c1_790, %c0_791] : memref<4x9x9xf32, #tpu.memory_space<vmem>>, vector<1x8x8xf32>
    %1170 = vector.shape_cast %1169 : vector<1x8x8xf32> to vector<8x8xf32>
    %1171 = vector.broadcast %1168 : f32 to vector<8x8xf32>
    %1172 = arith.mulf %1171, %1170 : vector<8x8xf32>
    %1173 = arith.addf %1167, %1172 : vector<8x8xf32>
    %c100_792 = arith.constant 100 : index
    %1174 = memref.load %arg11[%c100_792] : memref<108xf32, #tpu.memory_space<smem>>
    %c3_793 = arith.constant 3 : index
    %c1_794 = arith.constant 1 : index
    %c0_795 = arith.constant 0 : index
    %1175 = vector.load %arg15[%c3_793, %c1_794, %c0_795] : memref<4x9x9xf32, #tpu.memory_space<vmem>>, vector<1x8x8xf32>
    %1176 = vector.shape_cast %1175 : vector<1x8x8xf32> to vector<8x8xf32>
    %1177 = vector.broadcast %1174 : f32 to vector<8x8xf32>
    %1178 = arith.mulf %1177, %1176 : vector<8x8xf32>
    %1179 = arith.addf %1173, %1178 : vector<8x8xf32>
    %c25_796 = arith.constant 25 : index
    %1180 = memref.load %arg11[%c25_796] : memref<108xf32, #tpu.memory_space<smem>>
    %c0_797 = arith.constant 0 : index
    %c0_798 = arith.constant 0 : index
    %c0_799 = arith.constant 0 : index
    %1181 = vector.load %arg15[%c0_797, %c0_798, %c0_799] : memref<4x9x9xf32, #tpu.memory_space<vmem>>, vector<1x8x8xf32>
    %1182 = vector.shape_cast %1181 : vector<1x8x8xf32> to vector<8x8xf32>
    %1183 = vector.broadcast %1180 : f32 to vector<8x8xf32>
    %1184 = arith.mulf %1183, %1182 : vector<8x8xf32>
    %1185 = arith.addf %1179, %1184 : vector<8x8xf32>
    %c52_800 = arith.constant 52 : index
    %1186 = memref.load %arg11[%c52_800] : memref<108xf32, #tpu.memory_space<smem>>
    %c1_801 = arith.constant 1 : index
    %c0_802 = arith.constant 0 : index
    %c0_803 = arith.constant 0 : index
    %1187 = vector.load %arg15[%c1_801, %c0_802, %c0_803] : memref<4x9x9xf32, #tpu.memory_space<vmem>>, vector<1x8x8xf32>
    %1188 = vector.shape_cast %1187 : vector<1x8x8xf32> to vector<8x8xf32>
    %1189 = vector.broadcast %1186 : f32 to vector<8x8xf32>
    %1190 = arith.mulf %1189, %1188 : vector<8x8xf32>
    %1191 = arith.addf %1185, %1190 : vector<8x8xf32>
    %c79_804 = arith.constant 79 : index
    %1192 = memref.load %arg11[%c79_804] : memref<108xf32, #tpu.memory_space<smem>>
    %c2_805 = arith.constant 2 : index
    %c0_806 = arith.constant 0 : index
    %c0_807 = arith.constant 0 : index
    %1193 = vector.load %arg15[%c2_805, %c0_806, %c0_807] : memref<4x9x9xf32, #tpu.memory_space<vmem>>, vector<1x8x8xf32>
    %1194 = vector.shape_cast %1193 : vector<1x8x8xf32> to vector<8x8xf32>
    %1195 = vector.broadcast %1192 : f32 to vector<8x8xf32>
    %1196 = arith.mulf %1195, %1194 : vector<8x8xf32>
    %1197 = arith.addf %1191, %1196 : vector<8x8xf32>
    %c106_808 = arith.constant 106 : index
    %1198 = memref.load %arg11[%c106_808] : memref<108xf32, #tpu.memory_space<smem>>
    %c3_809 = arith.constant 3 : index
    %c0_810 = arith.constant 0 : index
    %c0_811 = arith.constant 0 : index
    %1199 = vector.load %arg15[%c3_809, %c0_810, %c0_811] : memref<4x9x9xf32, #tpu.memory_space<vmem>>, vector<1x8x8xf32>
    %1200 = vector.shape_cast %1199 : vector<1x8x8xf32> to vector<8x8xf32>
    %1201 = vector.broadcast %1198 : f32 to vector<8x8xf32>
    %1202 = arith.mulf %1201, %1200 : vector<8x8xf32>
    %1203 = arith.addf %1197, %1202 : vector<8x8xf32>
    %1204 = arith.negf %1203 : vector<8x8xf32>
    %1205 = math.exp %1204 : vector<8x8xf32>
    %cst_812 = arith.constant 1.000000e+00 : f32
    %1206 = vector.broadcast %cst_812 : f32 to vector<8x8xf32>
    %1207 = arith.addf %1206, %1205 : vector<8x8xf32>
    %1208 = arith.divf %1206, %1207 : vector<8x8xf32>
    %c0_813 = arith.constant 0 : index
    %c8_814 = arith.constant 8 : index
    %c0_815 = arith.constant 0 : index
    %c0_816 = arith.constant 0 : index
    %1209 = vector.load %arg14[%c0_813, %c8_814, %c0_815, %c0_816] : memref<1x12x8x8xf32, #tpu.memory_space<vmem>>, vector<1x1x8x8xf32>
    %1210 = vector.shape_cast %1209 : vector<1x1x8x8xf32> to vector<8x8xf32>
    %1211 = vector.shape_cast %1208 : vector<8x8xf32> to vector<1x1x8x8xf32>
    tpu.vector_store %arg14[%c0_813, %c8_814, %c0_815, %c0_816], %1211 {strides = array<i32>} : memref<1x12x8x8xf32, #tpu.memory_space<vmem>>, vector<1x1x8x8xf32>,
    %c0_817 = arith.constant 0 : index
    %1212 = memref.load %arg12[%c0_817] : memref<3xf32, #tpu.memory_space<smem>>
    %1213 = vector.broadcast %1212 : f32 to vector<8x8xf32>
    %c0_818 = arith.constant 0 : index
    %1214 = memref.load %arg11[%c0_818] : memref<108xf32, #tpu.memory_space<smem>>
    %c0_819 = arith.constant 0 : index
    %c1_820 = arith.constant 1 : index
    %c1_821 = arith.constant 1 : index
    %1215 = vector.load %arg15[%c0_819, %c1_820, %c1_821] : memref<4x9x9xf32, #tpu.memory_space<vmem>>, vector<1x8x8xf32>
    %1216 = vector.shape_cast %1215 : vector<1x8x8xf32> to vector<8x8xf32>
    %1217 = vector.broadcast %1214 : f32 to vector<8x8xf32>
    %1218 = arith.mulf %1217, %1216 : vector<8x8xf32>
    %1219 = arith.addf %1213, %1218 : vector<8x8xf32>
    %c27_822 = arith.constant 27 : index
    %1220 = memref.load %arg11[%c27_822] : memref<108xf32, #tpu.memory_space<smem>>
    %c1_823 = arith.constant 1 : index
    %c1_824 = arith.constant 1 : index
    %c1_825 = arith.constant 1 : index
    %1221 = vector.load %arg15[%c1_823, %c1_824, %c1_825] : memref<4x9x9xf32, #tpu.memory_space<vmem>>, vector<1x8x8xf32>
    %1222 = vector.shape_cast %1221 : vector<1x8x8xf32> to vector<8x8xf32>
    %1223 = vector.broadcast %1220 : f32 to vector<8x8xf32>
    %1224 = arith.mulf %1223, %1222 : vector<8x8xf32>
    %1225 = arith.addf %1219, %1224 : vector<8x8xf32>
    %c54_826 = arith.constant 54 : index
    %1226 = memref.load %arg11[%c54_826] : memref<108xf32, #tpu.memory_space<smem>>
    %c2_827 = arith.constant 2 : index
    %c1_828 = arith.constant 1 : index
    %c1_829 = arith.constant 1 : index
    %1227 = vector.load %arg15[%c2_827, %c1_828, %c1_829] : memref<4x9x9xf32, #tpu.memory_space<vmem>>, vector<1x8x8xf32>
    %1228 = vector.shape_cast %1227 : vector<1x8x8xf32> to vector<8x8xf32>
    %1229 = vector.broadcast %1226 : f32 to vector<8x8xf32>
    %1230 = arith.mulf %1229, %1228 : vector<8x8xf32>
    %1231 = arith.addf %1225, %1230 : vector<8x8xf32>
    %c81_830 = arith.constant 81 : index
    %1232 = memref.load %arg11[%c81_830] : memref<108xf32, #tpu.memory_space<smem>>
    %c3_831 = arith.constant 3 : index
    %c1_832 = arith.constant 1 : index
    %c1_833 = arith.constant 1 : index
    %1233 = vector.load %arg15[%c3_831, %c1_832, %c1_833] : memref<4x9x9xf32, #tpu.memory_space<vmem>>, vector<1x8x8xf32>
    %1234 = vector.shape_cast %1233 : vector<1x8x8xf32> to vector<8x8xf32>
    %1235 = vector.broadcast %1232 : f32 to vector<8x8xf32>
    %1236 = arith.mulf %1235, %1234 : vector<8x8xf32>
    %1237 = arith.addf %1231, %1236 : vector<8x8xf32>
    %c2_834 = arith.constant 2 : index
    %1238 = memref.load %arg11[%c2_834] : memref<108xf32, #tpu.memory_space<smem>>
    %c0_835 = arith.constant 0 : index
    %c1_836 = arith.constant 1 : index
    %c0_837 = arith.constant 0 : index
    %1239 = vector.load %arg15[%c0_835, %c1_836, %c0_837] : memref<4x9x9xf32, #tpu.memory_space<vmem>>, vector<1x8x8xf32>
    %1240 = vector.shape_cast %1239 : vector<1x8x8xf32> to vector<8x8xf32>
    %1241 = vector.broadcast %1238 : f32 to vector<8x8xf32>
    %1242 = arith.mulf %1241, %1240 : vector<8x8xf32>
    %1243 = arith.addf %1237, %1242 : vector<8x8xf32>
    %c29_838 = arith.constant 29 : index
    %1244 = memref.load %arg11[%c29_838] : memref<108xf32, #tpu.memory_space<smem>>
    %c1_839 = arith.constant 1 : index
    %c1_840 = arith.constant 1 : index
    %c0_841 = arith.constant 0 : index
    %1245 = vector.load %arg15[%c1_839, %c1_840, %c0_841] : memref<4x9x9xf32, #tpu.memory_space<vmem>>, vector<1x8x8xf32>
    %1246 = vector.shape_cast %1245 : vector<1x8x8xf32> to vector<8x8xf32>
    %1247 = vector.broadcast %1244 : f32 to vector<8x8xf32>
    %1248 = arith.mulf %1247, %1246 : vector<8x8xf32>
    %1249 = arith.addf %1243, %1248 : vector<8x8xf32>
    %c56_842 = arith.constant 56 : index
    %1250 = memref.load %arg11[%c56_842] : memref<108xf32, #tpu.memory_space<smem>>
    %c2_843 = arith.constant 2 : index
    %c1_844 = arith.constant 1 : index
    %c0_845 = arith.constant 0 : index
    %1251 = vector.load %arg15[%c2_843, %c1_844, %c0_845] : memref<4x9x9xf32, #tpu.memory_space<vmem>>, vector<1x8x8xf32>
    %1252 = vector.shape_cast %1251 : vector<1x8x8xf32> to vector<8x8xf32>
    %1253 = vector.broadcast %1250 : f32 to vector<8x8xf32>
    %1254 = arith.mulf %1253, %1252 : vector<8x8xf32>
    %1255 = arith.addf %1249, %1254 : vector<8x8xf32>
    %c83_846 = arith.constant 83 : index
    %1256 = memref.load %arg11[%c83_846] : memref<108xf32, #tpu.memory_space<smem>>
    %c3_847 = arith.constant 3 : index
    %c1_848 = arith.constant 1 : index
    %c0_849 = arith.constant 0 : index
    %1257 = vector.load %arg15[%c3_847, %c1_848, %c0_849] : memref<4x9x9xf32, #tpu.memory_space<vmem>>, vector<1x8x8xf32>
    %1258 = vector.shape_cast %1257 : vector<1x8x8xf32> to vector<8x8xf32>
    %1259 = vector.broadcast %1256 : f32 to vector<8x8xf32>
    %1260 = arith.mulf %1259, %1258 : vector<8x8xf32>
    %1261 = arith.addf %1255, %1260 : vector<8x8xf32>
    %c6_850 = arith.constant 6 : index
    %1262 = memref.load %arg11[%c6_850] : memref<108xf32, #tpu.memory_space<smem>>
    %c0_851 = arith.constant 0 : index
    %c0_852 = arith.constant 0 : index
    %c1_853 = arith.constant 1 : index
    %1263 = vector.load %arg15[%c0_851, %c0_852, %c1_853] : memref<4x9x9xf32, #tpu.memory_space<vmem>>, vector<1x8x8xf32>
    %1264 = vector.shape_cast %1263 : vector<1x8x8xf32> to vector<8x8xf32>
    %1265 = vector.broadcast %1262 : f32 to vector<8x8xf32>
    %1266 = arith.mulf %1265, %1264 : vector<8x8xf32>
    %1267 = arith.addf %1261, %1266 : vector<8x8xf32>
    %c33_854 = arith.constant 33 : index
    %1268 = memref.load %arg11[%c33_854] : memref<108xf32, #tpu.memory_space<smem>>
    %c1_855 = arith.constant 1 : index
    %c0_856 = arith.constant 0 : index
    %c1_857 = arith.constant 1 : index
    %1269 = vector.load %arg15[%c1_855, %c0_856, %c1_857] : memref<4x9x9xf32, #tpu.memory_space<vmem>>, vector<1x8x8xf32>
    %1270 = vector.shape_cast %1269 : vector<1x8x8xf32> to vector<8x8xf32>
    %1271 = vector.broadcast %1268 : f32 to vector<8x8xf32>
    %1272 = arith.mulf %1271, %1270 : vector<8x8xf32>
    %1273 = arith.addf %1267, %1272 : vector<8x8xf32>
    %c60_858 = arith.constant 60 : index
    %1274 = memref.load %arg11[%c60_858] : memref<108xf32, #tpu.memory_space<smem>>
    %c2_859 = arith.constant 2 : index
    %c0_860 = arith.constant 0 : index
    %c1_861 = arith.constant 1 : index
    %1275 = vector.load %arg15[%c2_859, %c0_860, %c1_861] : memref<4x9x9xf32, #tpu.memory_space<vmem>>, vector<1x8x8xf32>
    %1276 = vector.shape_cast %1275 : vector<1x8x8xf32> to vector<8x8xf32>
    %1277 = vector.broadcast %1274 : f32 to vector<8x8xf32>
    %1278 = arith.mulf %1277, %1276 : vector<8x8xf32>
    %1279 = arith.addf %1273, %1278 : vector<8x8xf32>
    %c87_862 = arith.constant 87 : index
    %1280 = memref.load %arg11[%c87_862] : memref<108xf32, #tpu.memory_space<smem>>
    %c3_863 = arith.constant 3 : index
    %c0_864 = arith.constant 0 : index
    %c1_865 = arith.constant 1 : index
    %1281 = vector.load %arg15[%c3_863, %c0_864, %c1_865] : memref<4x9x9xf32, #tpu.memory_space<vmem>>, vector<1x8x8xf32>
    %1282 = vector.shape_cast %1281 : vector<1x8x8xf32> to vector<8x8xf32>
    %1283 = vector.broadcast %1280 : f32 to vector<8x8xf32>
    %1284 = arith.mulf %1283, %1282 : vector<8x8xf32>
    %1285 = arith.addf %1279, %1284 : vector<8x8xf32>
    %c8_866 = arith.constant 8 : index
    %1286 = memref.load %arg11[%c8_866] : memref<108xf32, #tpu.memory_space<smem>>
    %c0_867 = arith.constant 0 : index
    %c0_868 = arith.constant 0 : index
    %c0_869 = arith.constant 0 : index
    %1287 = vector.load %arg15[%c0_867, %c0_868, %c0_869] : memref<4x9x9xf32, #tpu.memory_space<vmem>>, vector<1x8x8xf32>
    %1288 = vector.shape_cast %1287 : vector<1x8x8xf32> to vector<8x8xf32>
    %1289 = vector.broadcast %1286 : f32 to vector<8x8xf32>
    %1290 = arith.mulf %1289, %1288 : vector<8x8xf32>
    %1291 = arith.addf %1285, %1290 : vector<8x8xf32>
    %c35_870 = arith.constant 35 : index
    %1292 = memref.load %arg11[%c35_870] : memref<108xf32, #tpu.memory_space<smem>>
    %c1_871 = arith.constant 1 : index
    %c0_872 = arith.constant 0 : index
    %c0_873 = arith.constant 0 : index
    %1293 = vector.load %arg15[%c1_871, %c0_872, %c0_873] : memref<4x9x9xf32, #tpu.memory_space<vmem>>, vector<1x8x8xf32>
    %1294 = vector.shape_cast %1293 : vector<1x8x8xf32> to vector<8x8xf32>
    %1295 = vector.broadcast %1292 : f32 to vector<8x8xf32>
    %1296 = arith.mulf %1295, %1294 : vector<8x8xf32>
    %1297 = arith.addf %1291, %1296 : vector<8x8xf32>
    %c62_874 = arith.constant 62 : index
    %1298 = memref.load %arg11[%c62_874] : memref<108xf32, #tpu.memory_space<smem>>
    %c2_875 = arith.constant 2 : index
    %c0_876 = arith.constant 0 : index
    %c0_877 = arith.constant 0 : index
    %1299 = vector.load %arg15[%c2_875, %c0_876, %c0_877] : memref<4x9x9xf32, #tpu.memory_space<vmem>>, vector<1x8x8xf32>
    %1300 = vector.shape_cast %1299 : vector<1x8x8xf32> to vector<8x8xf32>
    %1301 = vector.broadcast %1298 : f32 to vector<8x8xf32>
    %1302 = arith.mulf %1301, %1300 : vector<8x8xf32>
    %1303 = arith.addf %1297, %1302 : vector<8x8xf32>
    %c89_878 = arith.constant 89 : index
    %1304 = memref.load %arg11[%c89_878] : memref<108xf32, #tpu.memory_space<smem>>
    %c3_879 = arith.constant 3 : index
    %c0_880 = arith.constant 0 : index
    %c0_881 = arith.constant 0 : index
    %1305 = vector.load %arg15[%c3_879, %c0_880, %c0_881] : memref<4x9x9xf32, #tpu.memory_space<vmem>>, vector<1x8x8xf32>
    %1306 = vector.shape_cast %1305 : vector<1x8x8xf32> to vector<8x8xf32>
    %1307 = vector.broadcast %1304 : f32 to vector<8x8xf32>
    %1308 = arith.mulf %1307, %1306 : vector<8x8xf32>
    %1309 = arith.addf %1303, %1308 : vector<8x8xf32>
    %1310 = arith.negf %1309 : vector<8x8xf32>
    %1311 = math.exp %1310 : vector<8x8xf32>
    %cst_882 = arith.constant 1.000000e+00 : f32
    %1312 = vector.broadcast %cst_882 : f32 to vector<8x8xf32>
    %1313 = arith.addf %1312, %1311 : vector<8x8xf32>
    %1314 = arith.divf %1312, %1313 : vector<8x8xf32>
    %c0_883 = arith.constant 0 : index
    %c9_884 = arith.constant 9 : index
    %c0_885 = arith.constant 0 : index
    %c0_886 = arith.constant 0 : index
    %1315 = vector.load %arg14[%c0_883, %c9_884, %c0_885, %c0_886] : memref<1x12x8x8xf32, #tpu.memory_space<vmem>>, vector<1x1x8x8xf32>
    %1316 = vector.shape_cast %1315 : vector<1x1x8x8xf32> to vector<8x8xf32>
    %1317 = vector.shape_cast %1314 : vector<8x8xf32> to vector<1x1x8x8xf32>
    tpu.vector_store %arg14[%c0_883, %c9_884, %c0_885, %c0_886], %1317 {strides = array<i32>} : memref<1x12x8x8xf32, #tpu.memory_space<vmem>>, vector<1x1x8x8xf32>,
    %c1_887 = arith.constant 1 : index
    %1318 = memref.load %arg12[%c1_887] : memref<3xf32, #tpu.memory_space<smem>>
    %1319 = vector.broadcast %1318 : f32 to vector<8x8xf32>
    %c9_888 = arith.constant 9 : index
    %1320 = memref.load %arg11[%c9_888] : memref<108xf32, #tpu.memory_space<smem>>
    %c0_889 = arith.constant 0 : index
    %c1_890 = arith.constant 1 : index
    %c1_891 = arith.constant 1 : index
    %1321 = vector.load %arg15[%c0_889, %c1_890, %c1_891] : memref<4x9x9xf32, #tpu.memory_space<vmem>>, vector<1x8x8xf32>
    %1322 = vector.shape_cast %1321 : vector<1x8x8xf32> to vector<8x8xf32>
    %1323 = vector.broadcast %1320 : f32 to vector<8x8xf32>
    %1324 = arith.mulf %1323, %1322 : vector<8x8xf32>
    %1325 = arith.addf %1319, %1324 : vector<8x8xf32>
    %c36_892 = arith.constant 36 : index
    %1326 = memref.load %arg11[%c36_892] : memref<108xf32, #tpu.memory_space<smem>>
    %c1_893 = arith.constant 1 : index
    %c1_894 = arith.constant 1 : index
    %c1_895 = arith.constant 1 : index
    %1327 = vector.load %arg15[%c1_893, %c1_894, %c1_895] : memref<4x9x9xf32, #tpu.memory_space<vmem>>, vector<1x8x8xf32>
    %1328 = vector.shape_cast %1327 : vector<1x8x8xf32> to vector<8x8xf32>
    %1329 = vector.broadcast %1326 : f32 to vector<8x8xf32>
    %1330 = arith.mulf %1329, %1328 : vector<8x8xf32>
    %1331 = arith.addf %1325, %1330 : vector<8x8xf32>
    %c63_896 = arith.constant 63 : index
    %1332 = memref.load %arg11[%c63_896] : memref<108xf32, #tpu.memory_space<smem>>
    %c2_897 = arith.constant 2 : index
    %c1_898 = arith.constant 1 : index
    %c1_899 = arith.constant 1 : index
    %1333 = vector.load %arg15[%c2_897, %c1_898, %c1_899] : memref<4x9x9xf32, #tpu.memory_space<vmem>>, vector<1x8x8xf32>
    %1334 = vector.shape_cast %1333 : vector<1x8x8xf32> to vector<8x8xf32>
    %1335 = vector.broadcast %1332 : f32 to vector<8x8xf32>
    %1336 = arith.mulf %1335, %1334 : vector<8x8xf32>
    %1337 = arith.addf %1331, %1336 : vector<8x8xf32>
    %c90_900 = arith.constant 90 : index
    %1338 = memref.load %arg11[%c90_900] : memref<108xf32, #tpu.memory_space<smem>>
    %c3_901 = arith.constant 3 : index
    %c1_902 = arith.constant 1 : index
    %c1_903 = arith.constant 1 : index
    %1339 = vector.load %arg15[%c3_901, %c1_902, %c1_903] : memref<4x9x9xf32, #tpu.memory_space<vmem>>, vector<1x8x8xf32>
    %1340 = vector.shape_cast %1339 : vector<1x8x8xf32> to vector<8x8xf32>
    %1341 = vector.broadcast %1338 : f32 to vector<8x8xf32>
    %1342 = arith.mulf %1341, %1340 : vector<8x8xf32>
    %1343 = arith.addf %1337, %1342 : vector<8x8xf32>
    %c11_904 = arith.constant 11 : index
    %1344 = memref.load %arg11[%c11_904] : memref<108xf32, #tpu.memory_space<smem>>
    %c0_905 = arith.constant 0 : index
    %c1_906 = arith.constant 1 : index
    %c0_907 = arith.constant 0 : index
    %1345 = vector.load %arg15[%c0_905, %c1_906, %c0_907] : memref<4x9x9xf32, #tpu.memory_space<vmem>>, vector<1x8x8xf32>
    %1346 = vector.shape_cast %1345 : vector<1x8x8xf32> to vector<8x8xf32>
    %1347 = vector.broadcast %1344 : f32 to vector<8x8xf32>
    %1348 = arith.mulf %1347, %1346 : vector<8x8xf32>
    %1349 = arith.addf %1343, %1348 : vector<8x8xf32>
    %c38_908 = arith.constant 38 : index
    %1350 = memref.load %arg11[%c38_908] : memref<108xf32, #tpu.memory_space<smem>>
    %c1_909 = arith.constant 1 : index
    %c1_910 = arith.constant 1 : index
    %c0_911 = arith.constant 0 : index
    %1351 = vector.load %arg15[%c1_909, %c1_910, %c0_911] : memref<4x9x9xf32, #tpu.memory_space<vmem>>, vector<1x8x8xf32>
    %1352 = vector.shape_cast %1351 : vector<1x8x8xf32> to vector<8x8xf32>
    %1353 = vector.broadcast %1350 : f32 to vector<8x8xf32>
    %1354 = arith.mulf %1353, %1352 : vector<8x8xf32>
    %1355 = arith.addf %1349, %1354 : vector<8x8xf32>
    %c65_912 = arith.constant 65 : index
    %1356 = memref.load %arg11[%c65_912] : memref<108xf32, #tpu.memory_space<smem>>
    %c2_913 = arith.constant 2 : index
    %c1_914 = arith.constant 1 : index
    %c0_915 = arith.constant 0 : index
    %1357 = vector.load %arg15[%c2_913, %c1_914, %c0_915] : memref<4x9x9xf32, #tpu.memory_space<vmem>>, vector<1x8x8xf32>
    %1358 = vector.shape_cast %1357 : vector<1x8x8xf32> to vector<8x8xf32>
    %1359 = vector.broadcast %1356 : f32 to vector<8x8xf32>
    %1360 = arith.mulf %1359, %1358 : vector<8x8xf32>
    %1361 = arith.addf %1355, %1360 : vector<8x8xf32>
    %c92_916 = arith.constant 92 : index
    %1362 = memref.load %arg11[%c92_916] : memref<108xf32, #tpu.memory_space<smem>>
    %c3_917 = arith.constant 3 : index
    %c1_918 = arith.constant 1 : index
    %c0_919 = arith.constant 0 : index
    %1363 = vector.load %arg15[%c3_917, %c1_918, %c0_919] : memref<4x9x9xf32, #tpu.memory_space<vmem>>, vector<1x8x8xf32>
    %1364 = vector.shape_cast %1363 : vector<1x8x8xf32> to vector<8x8xf32>
    %1365 = vector.broadcast %1362 : f32 to vector<8x8xf32>
    %1366 = arith.mulf %1365, %1364 : vector<8x8xf32>
    %1367 = arith.addf %1361, %1366 : vector<8x8xf32>
    %c15_920 = arith.constant 15 : index
    %1368 = memref.load %arg11[%c15_920] : memref<108xf32, #tpu.memory_space<smem>>
    %c0_921 = arith.constant 0 : index
    %c0_922 = arith.constant 0 : index
    %c1_923 = arith.constant 1 : index
    %1369 = vector.load %arg15[%c0_921, %c0_922, %c1_923] : memref<4x9x9xf32, #tpu.memory_space<vmem>>, vector<1x8x8xf32>
    %1370 = vector.shape_cast %1369 : vector<1x8x8xf32> to vector<8x8xf32>
    %1371 = vector.broadcast %1368 : f32 to vector<8x8xf32>
    %1372 = arith.mulf %1371, %1370 : vector<8x8xf32>
    %1373 = arith.addf %1367, %1372 : vector<8x8xf32>
    %c42_924 = arith.constant 42 : index
    %1374 = memref.load %arg11[%c42_924] : memref<108xf32, #tpu.memory_space<smem>>
    %c1_925 = arith.constant 1 : index
    %c0_926 = arith.constant 0 : index
    %c1_927 = arith.constant 1 : index
    %1375 = vector.load %arg15[%c1_925, %c0_926, %c1_927] : memref<4x9x9xf32, #tpu.memory_space<vmem>>, vector<1x8x8xf32>
    %1376 = vector.shape_cast %1375 : vector<1x8x8xf32> to vector<8x8xf32>
    %1377 = vector.broadcast %1374 : f32 to vector<8x8xf32>
    %1378 = arith.mulf %1377, %1376 : vector<8x8xf32>
    %1379 = arith.addf %1373, %1378 : vector<8x8xf32>
    %c69_928 = arith.constant 69 : index
    %1380 = memref.load %arg11[%c69_928] : memref<108xf32, #tpu.memory_space<smem>>
    %c2_929 = arith.constant 2 : index
    %c0_930 = arith.constant 0 : index
    %c1_931 = arith.constant 1 : index
    %1381 = vector.load %arg15[%c2_929, %c0_930, %c1_931] : memref<4x9x9xf32, #tpu.memory_space<vmem>>, vector<1x8x8xf32>
    %1382 = vector.shape_cast %1381 : vector<1x8x8xf32> to vector<8x8xf32>
    %1383 = vector.broadcast %1380 : f32 to vector<8x8xf32>
    %1384 = arith.mulf %1383, %1382 : vector<8x8xf32>
    %1385 = arith.addf %1379, %1384 : vector<8x8xf32>
    %c96_932 = arith.constant 96 : index
    %1386 = memref.load %arg11[%c96_932] : memref<108xf32, #tpu.memory_space<smem>>
    %c3_933 = arith.constant 3 : index
    %c0_934 = arith.constant 0 : index
    %c1_935 = arith.constant 1 : index
    %1387 = vector.load %arg15[%c3_933, %c0_934, %c1_935] : memref<4x9x9xf32, #tpu.memory_space<vmem>>, vector<1x8x8xf32>
    %1388 = vector.shape_cast %1387 : vector<1x8x8xf32> to vector<8x8xf32>
    %1389 = vector.broadcast %1386 : f32 to vector<8x8xf32>
    %1390 = arith.mulf %1389, %1388 : vector<8x8xf32>
    %1391 = arith.addf %1385, %1390 : vector<8x8xf32>
    %c17_936 = arith.constant 17 : index
    %1392 = memref.load %arg11[%c17_936] : memref<108xf32, #tpu.memory_space<smem>>
    %c0_937 = arith.constant 0 : index
    %c0_938 = arith.constant 0 : index
    %c0_939 = arith.constant 0 : index
    %1393 = vector.load %arg15[%c0_937, %c0_938, %c0_939] : memref<4x9x9xf32, #tpu.memory_space<vmem>>, vector<1x8x8xf32>
    %1394 = vector.shape_cast %1393 : vector<1x8x8xf32> to vector<8x8xf32>
    %1395 = vector.broadcast %1392 : f32 to vector<8x8xf32>
    %1396 = arith.mulf %1395, %1394 : vector<8x8xf32>
    %1397 = arith.addf %1391, %1396 : vector<8x8xf32>
    %c44_940 = arith.constant 44 : index
    %1398 = memref.load %arg11[%c44_940] : memref<108xf32, #tpu.memory_space<smem>>
    %c1_941 = arith.constant 1 : index
    %c0_942 = arith.constant 0 : index
    %c0_943 = arith.constant 0 : index
    %1399 = vector.load %arg15[%c1_941, %c0_942, %c0_943] : memref<4x9x9xf32, #tpu.memory_space<vmem>>, vector<1x8x8xf32>
    %1400 = vector.shape_cast %1399 : vector<1x8x8xf32> to vector<8x8xf32>
    %1401 = vector.broadcast %1398 : f32 to vector<8x8xf32>
    %1402 = arith.mulf %1401, %1400 : vector<8x8xf32>
    %1403 = arith.addf %1397, %1402 : vector<8x8xf32>
    %c71_944 = arith.constant 71 : index
    %1404 = memref.load %arg11[%c71_944] : memref<108xf32, #tpu.memory_space<smem>>
    %c2_945 = arith.constant 2 : index
    %c0_946 = arith.constant 0 : index
    %c0_947 = arith.constant 0 : index
    %1405 = vector.load %arg15[%c2_945, %c0_946, %c0_947] : memref<4x9x9xf32, #tpu.memory_space<vmem>>, vector<1x8x8xf32>
    %1406 = vector.shape_cast %1405 : vector<1x8x8xf32> to vector<8x8xf32>
    %1407 = vector.broadcast %1404 : f32 to vector<8x8xf32>
    %1408 = arith.mulf %1407, %1406 : vector<8x8xf32>
    %1409 = arith.addf %1403, %1408 : vector<8x8xf32>
    %c98_948 = arith.constant 98 : index
    %1410 = memref.load %arg11[%c98_948] : memref<108xf32, #tpu.memory_space<smem>>
    %c3_949 = arith.constant 3 : index
    %c0_950 = arith.constant 0 : index
    %c0_951 = arith.constant 0 : index
    %1411 = vector.load %arg15[%c3_949, %c0_950, %c0_951] : memref<4x9x9xf32, #tpu.memory_space<vmem>>, vector<1x8x8xf32>
    %1412 = vector.shape_cast %1411 : vector<1x8x8xf32> to vector<8x8xf32>
    %1413 = vector.broadcast %1410 : f32 to vector<8x8xf32>
    %1414 = arith.mulf %1413, %1412 : vector<8x8xf32>
    %1415 = arith.addf %1409, %1414 : vector<8x8xf32>
    %1416 = arith.negf %1415 : vector<8x8xf32>
    %1417 = math.exp %1416 : vector<8x8xf32>
    %cst_952 = arith.constant 1.000000e+00 : f32
    %1418 = vector.broadcast %cst_952 : f32 to vector<8x8xf32>
    %1419 = arith.addf %1418, %1417 : vector<8x8xf32>
    %1420 = arith.divf %1418, %1419 : vector<8x8xf32>
    %c0_953 = arith.constant 0 : index
    %c10_954 = arith.constant 10 : index
    %c0_955 = arith.constant 0 : index
    %c0_956 = arith.constant 0 : index
    %1421 = vector.load %arg14[%c0_953, %c10_954, %c0_955, %c0_956] : memref<1x12x8x8xf32, #tpu.memory_space<vmem>>, vector<1x1x8x8xf32>
    %1422 = vector.shape_cast %1421 : vector<1x1x8x8xf32> to vector<8x8xf32>
    %1423 = vector.shape_cast %1420 : vector<8x8xf32> to vector<1x1x8x8xf32>
    tpu.vector_store %arg14[%c0_953, %c10_954, %c0_955, %c0_956], %1423 {strides = array<i32>} : memref<1x12x8x8xf32, #tpu.memory_space<vmem>>, vector<1x1x8x8xf32>,
    %c2_957 = arith.constant 2 : index
    %1424 = memref.load %arg12[%c2_957] : memref<3xf32, #tpu.memory_space<smem>>
    %1425 = vector.broadcast %1424 : f32 to vector<8x8xf32>
    %c18_958 = arith.constant 18 : index
    %1426 = memref.load %arg11[%c18_958] : memref<108xf32, #tpu.memory_space<smem>>
    %c0_959 = arith.constant 0 : index
    %c1_960 = arith.constant 1 : index
    %c1_961 = arith.constant 1 : index
    %1427 = vector.load %arg15[%c0_959, %c1_960, %c1_961] : memref<4x9x9xf32, #tpu.memory_space<vmem>>, vector<1x8x8xf32>
    %1428 = vector.shape_cast %1427 : vector<1x8x8xf32> to vector<8x8xf32>
    %1429 = vector.broadcast %1426 : f32 to vector<8x8xf32>
    %1430 = arith.mulf %1429, %1428 : vector<8x8xf32>
    %1431 = arith.addf %1425, %1430 : vector<8x8xf32>
    %c45_962 = arith.constant 45 : index
    %1432 = memref.load %arg11[%c45_962] : memref<108xf32, #tpu.memory_space<smem>>
    %c1_963 = arith.constant 1 : index
    %c1_964 = arith.constant 1 : index
    %c1_965 = arith.constant 1 : index
    %1433 = vector.load %arg15[%c1_963, %c1_964, %c1_965] : memref<4x9x9xf32, #tpu.memory_space<vmem>>, vector<1x8x8xf32>
    %1434 = vector.shape_cast %1433 : vector<1x8x8xf32> to vector<8x8xf32>
    %1435 = vector.broadcast %1432 : f32 to vector<8x8xf32>
    %1436 = arith.mulf %1435, %1434 : vector<8x8xf32>
    %1437 = arith.addf %1431, %1436 : vector<8x8xf32>
    %c72_966 = arith.constant 72 : index
    %1438 = memref.load %arg11[%c72_966] : memref<108xf32, #tpu.memory_space<smem>>
    %c2_967 = arith.constant 2 : index
    %c1_968 = arith.constant 1 : index
    %c1_969 = arith.constant 1 : index
    %1439 = vector.load %arg15[%c2_967, %c1_968, %c1_969] : memref<4x9x9xf32, #tpu.memory_space<vmem>>, vector<1x8x8xf32>
    %1440 = vector.shape_cast %1439 : vector<1x8x8xf32> to vector<8x8xf32>
    %1441 = vector.broadcast %1438 : f32 to vector<8x8xf32>
    %1442 = arith.mulf %1441, %1440 : vector<8x8xf32>
    %1443 = arith.addf %1437, %1442 : vector<8x8xf32>
    %c99_970 = arith.constant 99 : index
    %1444 = memref.load %arg11[%c99_970] : memref<108xf32, #tpu.memory_space<smem>>
    %c3_971 = arith.constant 3 : index
    %c1_972 = arith.constant 1 : index
    %c1_973 = arith.constant 1 : index
    %1445 = vector.load %arg15[%c3_971, %c1_972, %c1_973] : memref<4x9x9xf32, #tpu.memory_space<vmem>>, vector<1x8x8xf32>
    %1446 = vector.shape_cast %1445 : vector<1x8x8xf32> to vector<8x8xf32>
    %1447 = vector.broadcast %1444 : f32 to vector<8x8xf32>
    %1448 = arith.mulf %1447, %1446 : vector<8x8xf32>
    %1449 = arith.addf %1443, %1448 : vector<8x8xf32>
    %c20_974 = arith.constant 20 : index
    %1450 = memref.load %arg11[%c20_974] : memref<108xf32, #tpu.memory_space<smem>>
    %c0_975 = arith.constant 0 : index
    %c1_976 = arith.constant 1 : index
    %c0_977 = arith.constant 0 : index
    %1451 = vector.load %arg15[%c0_975, %c1_976, %c0_977] : memref<4x9x9xf32, #tpu.memory_space<vmem>>, vector<1x8x8xf32>
    %1452 = vector.shape_cast %1451 : vector<1x8x8xf32> to vector<8x8xf32>
    %1453 = vector.broadcast %1450 : f32 to vector<8x8xf32>
    %1454 = arith.mulf %1453, %1452 : vector<8x8xf32>
    %1455 = arith.addf %1449, %1454 : vector<8x8xf32>
    %c47_978 = arith.constant 47 : index
    %1456 = memref.load %arg11[%c47_978] : memref<108xf32, #tpu.memory_space<smem>>
    %c1_979 = arith.constant 1 : index
    %c1_980 = arith.constant 1 : index
    %c0_981 = arith.constant 0 : index
    %1457 = vector.load %arg15[%c1_979, %c1_980, %c0_981] : memref<4x9x9xf32, #tpu.memory_space<vmem>>, vector<1x8x8xf32>
    %1458 = vector.shape_cast %1457 : vector<1x8x8xf32> to vector<8x8xf32>
    %1459 = vector.broadcast %1456 : f32 to vector<8x8xf32>
    %1460 = arith.mulf %1459, %1458 : vector<8x8xf32>
    %1461 = arith.addf %1455, %1460 : vector<8x8xf32>
    %c74_982 = arith.constant 74 : index
    %1462 = memref.load %arg11[%c74_982] : memref<108xf32, #tpu.memory_space<smem>>
    %c2_983 = arith.constant 2 : index
    %c1_984 = arith.constant 1 : index
    %c0_985 = arith.constant 0 : index
    %1463 = vector.load %arg15[%c2_983, %c1_984, %c0_985] : memref<4x9x9xf32, #tpu.memory_space<vmem>>, vector<1x8x8xf32>
    %1464 = vector.shape_cast %1463 : vector<1x8x8xf32> to vector<8x8xf32>
    %1465 = vector.broadcast %1462 : f32 to vector<8x8xf32>
    %1466 = arith.mulf %1465, %1464 : vector<8x8xf32>
    %1467 = arith.addf %1461, %1466 : vector<8x8xf32>
    %c101_986 = arith.constant 101 : index
    %1468 = memref.load %arg11[%c101_986] : memref<108xf32, #tpu.memory_space<smem>>
    %c3_987 = arith.constant 3 : index
    %c1_988 = arith.constant 1 : index
    %c0_989 = arith.constant 0 : index
    %1469 = vector.load %arg15[%c3_987, %c1_988, %c0_989] : memref<4x9x9xf32, #tpu.memory_space<vmem>>, vector<1x8x8xf32>
    %1470 = vector.shape_cast %1469 : vector<1x8x8xf32> to vector<8x8xf32>
    %1471 = vector.broadcast %1468 : f32 to vector<8x8xf32>
    %1472 = arith.mulf %1471, %1470 : vector<8x8xf32>
    %1473 = arith.addf %1467, %1472 : vector<8x8xf32>
    %c24_990 = arith.constant 24 : index
    %1474 = memref.load %arg11[%c24_990] : memref<108xf32, #tpu.memory_space<smem>>
    %c0_991 = arith.constant 0 : index
    %c0_992 = arith.constant 0 : index
    %c1_993 = arith.constant 1 : index
    %1475 = vector.load %arg15[%c0_991, %c0_992, %c1_993] : memref<4x9x9xf32, #tpu.memory_space<vmem>>, vector<1x8x8xf32>
    %1476 = vector.shape_cast %1475 : vector<1x8x8xf32> to vector<8x8xf32>
    %1477 = vector.broadcast %1474 : f32 to vector<8x8xf32>
    %1478 = arith.mulf %1477, %1476 : vector<8x8xf32>
    %1479 = arith.addf %1473, %1478 : vector<8x8xf32>
    %c51_994 = arith.constant 51 : index
    %1480 = memref.load %arg11[%c51_994] : memref<108xf32, #tpu.memory_space<smem>>
    %c1_995 = arith.constant 1 : index
    %c0_996 = arith.constant 0 : index
    %c1_997 = arith.constant 1 : index
    %1481 = vector.load %arg15[%c1_995, %c0_996, %c1_997] : memref<4x9x9xf32, #tpu.memory_space<vmem>>, vector<1x8x8xf32>
    %1482 = vector.shape_cast %1481 : vector<1x8x8xf32> to vector<8x8xf32>
    %1483 = vector.broadcast %1480 : f32 to vector<8x8xf32>
    %1484 = arith.mulf %1483, %1482 : vector<8x8xf32>
    %1485 = arith.addf %1479, %1484 : vector<8x8xf32>
    %c78_998 = arith.constant 78 : index
    %1486 = memref.load %arg11[%c78_998] : memref<108xf32, #tpu.memory_space<smem>>
    %c2_999 = arith.constant 2 : index
    %c0_1000 = arith.constant 0 : index
    %c1_1001 = arith.constant 1 : index
    %1487 = vector.load %arg15[%c2_999, %c0_1000, %c1_1001] : memref<4x9x9xf32, #tpu.memory_space<vmem>>, vector<1x8x8xf32>
    %1488 = vector.shape_cast %1487 : vector<1x8x8xf32> to vector<8x8xf32>
    %1489 = vector.broadcast %1486 : f32 to vector<8x8xf32>
    %1490 = arith.mulf %1489, %1488 : vector<8x8xf32>
    %1491 = arith.addf %1485, %1490 : vector<8x8xf32>
    %c105_1002 = arith.constant 105 : index
    %1492 = memref.load %arg11[%c105_1002] : memref<108xf32, #tpu.memory_space<smem>>
    %c3_1003 = arith.constant 3 : index
    %c0_1004 = arith.constant 0 : index
    %c1_1005 = arith.constant 1 : index
    %1493 = vector.load %arg15[%c3_1003, %c0_1004, %c1_1005] : memref<4x9x9xf32, #tpu.memory_space<vmem>>, vector<1x8x8xf32>
    %1494 = vector.shape_cast %1493 : vector<1x8x8xf32> to vector<8x8xf32>
    %1495 = vector.broadcast %1492 : f32 to vector<8x8xf32>
    %1496 = arith.mulf %1495, %1494 : vector<8x8xf32>
    %1497 = arith.addf %1491, %1496 : vector<8x8xf32>
    %c26_1006 = arith.constant 26 : index
    %1498 = memref.load %arg11[%c26_1006] : memref<108xf32, #tpu.memory_space<smem>>
    %c0_1007 = arith.constant 0 : index
    %c0_1008 = arith.constant 0 : index
    %c0_1009 = arith.constant 0 : index
    %1499 = vector.load %arg15[%c0_1007, %c0_1008, %c0_1009] : memref<4x9x9xf32, #tpu.memory_space<vmem>>, vector<1x8x8xf32>
    %1500 = vector.shape_cast %1499 : vector<1x8x8xf32> to vector<8x8xf32>
    %1501 = vector.broadcast %1498 : f32 to vector<8x8xf32>
    %1502 = arith.mulf %1501, %1500 : vector<8x8xf32>
    %1503 = arith.addf %1497, %1502 : vector<8x8xf32>
    %c53_1010 = arith.constant 53 : index
    %1504 = memref.load %arg11[%c53_1010] : memref<108xf32, #tpu.memory_space<smem>>
    %c1_1011 = arith.constant 1 : index
    %c0_1012 = arith.constant 0 : index
    %c0_1013 = arith.constant 0 : index
    %1505 = vector.load %arg15[%c1_1011, %c0_1012, %c0_1013] : memref<4x9x9xf32, #tpu.memory_space<vmem>>, vector<1x8x8xf32>
    %1506 = vector.shape_cast %1505 : vector<1x8x8xf32> to vector<8x8xf32>
    %1507 = vector.broadcast %1504 : f32 to vector<8x8xf32>
    %1508 = arith.mulf %1507, %1506 : vector<8x8xf32>
    %1509 = arith.addf %1503, %1508 : vector<8x8xf32>
    %c80_1014 = arith.constant 80 : index
    %1510 = memref.load %arg11[%c80_1014] : memref<108xf32, #tpu.memory_space<smem>>
    %c2_1015 = arith.constant 2 : index
    %c0_1016 = arith.constant 0 : index
    %c0_1017 = arith.constant 0 : index
    %1511 = vector.load %arg15[%c2_1015, %c0_1016, %c0_1017] : memref<4x9x9xf32, #tpu.memory_space<vmem>>, vector<1x8x8xf32>
    %1512 = vector.shape_cast %1511 : vector<1x8x8xf32> to vector<8x8xf32>
    %1513 = vector.broadcast %1510 : f32 to vector<8x8xf32>
    %1514 = arith.mulf %1513, %1512 : vector<8x8xf32>
    %1515 = arith.addf %1509, %1514 : vector<8x8xf32>
    %c107_1018 = arith.constant 107 : index
    %1516 = memref.load %arg11[%c107_1018] : memref<108xf32, #tpu.memory_space<smem>>
    %c3_1019 = arith.constant 3 : index
    %c0_1020 = arith.constant 0 : index
    %c0_1021 = arith.constant 0 : index
    %1517 = vector.load %arg15[%c3_1019, %c0_1020, %c0_1021] : memref<4x9x9xf32, #tpu.memory_space<vmem>>, vector<1x8x8xf32>
    %1518 = vector.shape_cast %1517 : vector<1x8x8xf32> to vector<8x8xf32>
    %1519 = vector.broadcast %1516 : f32 to vector<8x8xf32>
    %1520 = arith.mulf %1519, %1518 : vector<8x8xf32>
    %1521 = arith.addf %1515, %1520 : vector<8x8xf32>
    %1522 = arith.negf %1521 : vector<8x8xf32>
    %1523 = math.exp %1522 : vector<8x8xf32>
    %cst_1022 = arith.constant 1.000000e+00 : f32
    %1524 = vector.broadcast %cst_1022 : f32 to vector<8x8xf32>
    %1525 = arith.addf %1524, %1523 : vector<8x8xf32>
    %1526 = arith.divf %1524, %1525 : vector<8x8xf32>
    %c0_1023 = arith.constant 0 : index
    %c11_1024 = arith.constant 11 : index
    %c0_1025 = arith.constant 0 : index
    %c0_1026 = arith.constant 0 : index
    %1527 = vector.load %arg14[%c0_1023, %c11_1024, %c0_1025, %c0_1026] : memref<1x12x8x8xf32, #tpu.memory_space<vmem>>, vector<1x1x8x8xf32>
    %1528 = vector.shape_cast %1527 : vector<1x1x8x8xf32> to vector<8x8xf32>
    %1529 = vector.shape_cast %1526 : vector<8x8xf32> to vector<1x1x8x8xf32>
    tpu.vector_store %arg14[%c0_1023, %c11_1024, %c0_1025, %c0_1026], %1529 {strides = array<i32>} : memref<1x12x8x8xf32, #tpu.memory_space<vmem>>, vector<1x1x8x8xf32>,
    return
  }
  func.func @transform_0(%arg0: i32) -> (i32, i32, i32, i32) {
    %c0_i32 = arith.constant 0 : i32
    %c0_i32_0 = arith.constant 0 : i32
    %c0_i32_1 = arith.constant 0 : i32
    %c0_i32_2 = arith.constant 0 : i32
    return %arg0, %c0_i32, %c0_i32_0, %c0_i32_1 : i32, i32, i32, i32
  }
  func.func @transform_1(%arg0: i32) -> (i32, i32, i32, i32) {
    %c0_i32 = arith.constant 0 : i32
    %c0_i32_0 = arith.constant 0 : i32
    %c0_i32_1 = arith.constant 0 : i32
    %c0_i32_2 = arith.constant 0 : i32
    return %arg0, %c0_i32, %c0_i32_0, %c0_i32_1 : i32, i32, i32, i32
  }
  func.func @transform_2(%arg0: i32) -> (i32, i32, i32, i32) {
    %c0_i32 = arith.constant 0 : i32
    %c0_i32_0 = arith.constant 0 : i32
    %c0_i32_1 = arith.constant 0 : i32
    %c0_i32_2 = arith.constant 0 : i32
    return %arg0, %c0_i32, %c0_i32_0, %c0_i32_1 : i32, i32, i32, i32
  }
  func.func @transform_3(%arg0: i32) -> (i32, i32, i32, i32) {
    %c0_i32 = arith.constant 0 : i32
    %c0_i32_0 = arith.constant 0 : i32
    %c0_i32_1 = arith.constant 0 : i32
    %c0_i32_2 = arith.constant 0 : i32
    return %arg0, %c0_i32, %c0_i32_0, %c0_i32_1 : i32, i32, i32, i32
  }
  func.func @transform_4(%arg0: i32) -> i32 {
    %c0_i32 = arith.constant 0 : i32
    %c0_i32_0 = arith.constant 0 : i32
    return %c0_i32 : i32
  }
  func.func @transform_5(%arg0: i32) -> i32 {
    %c0_i32 = arith.constant 0 : i32
    %c0_i32_0 = arith.constant 0 : i32
    return %c0_i32 : i32
  }
  func.func @transform_6(%arg0: i32) -> (i32, i32, i32, i32) {
    %c0_i32 = arith.constant 0 : i32
    %c0_i32_0 = arith.constant 0 : i32
    %c0_i32_1 = arith.constant 0 : i32
    %c0_i32_2 = arith.constant 0 : i32
    %c0_i32_3 = arith.constant 0 : i32
    return %c0_i32, %c0_i32_0, %c0_i32_1, %c0_i32_2 : i32, i32, i32, i32
  }
  func.func @transform_7(%arg0: i32) -> (i32, i32, i32) {
    %c0_i32 = arith.constant 0 : i32
    %c0_i32_0 = arith.constant 0 : i32
    %c0_i32_1 = arith.constant 0 : i32
    %c0_i32_2 = arith.constant 0 : i32
    return %c0_i32, %c0_i32_0, %c0_i32_1 : i32, i32, i32
  }
  func.func @transform_8(%arg0: i32) -> (i32, i32, i32, i32) {
    %c0_i32 = arith.constant 0 : i32
    %c0_i32_0 = arith.constant 0 : i32
    %c0_i32_1 = arith.constant 0 : i32
    %c0_i32_2 = arith.constant 0 : i32
    %c0_i32_3 = arith.constant 0 : i32
    return %c0_i32, %c0_i32_0, %c0_i32_1, %c0_i32_2 : i32, i32, i32, i32
  }
  func.func @transform_9(%arg0: i32) -> (i32, i32, i32) {
    %c0_i32 = arith.constant 0 : i32
    %c0_i32_0 = arith.constant 0 : i32
    %c0_i32_1 = arith.constant 0 : i32
    %c0_i32_2 = arith.constant 0 : i32
    return %c0_i32, %c0_i32_0, %c0_i32_1 : i32, i32, i32
  }
  func.func @transform_10(%arg0: i32) -> i32 {
    %c0_i32 = arith.constant 0 : i32
    %c0_i32_0 = arith.constant 0 : i32
    return %c0_i32 : i32
  }
  func.func @transform_11(%arg0: i32) -> i32 {
    %c0_i32 = arith.constant 0 : i32
    %c0_i32_0 = arith.constant 0 : i32
    return %c0_i32 : i32
  }
  func.func @transform_12(%arg0: i32) -> (i32, i32, i32, i32) {
    %c0_i32 = arith.constant 0 : i32
    %c0_i32_0 = arith.constant 0 : i32
    %c0_i32_1 = arith.constant 0 : i32
    %c0_i32_2 = arith.constant 0 : i32
    return %arg0, %c0_i32, %c0_i32_0, %c0_i32_1 : i32, i32, i32, i32
  }
  func.func @transform_13(%arg0: i32) -> (i32, i32, i32, i32) {
    %c0_i32 = arith.constant 0 : i32
    %c0_i32_0 = arith.constant 0 : i32
    %c0_i32_1 = arith.constant 0 : i32
    %c0_i32_2 = arith.constant 0 : i32
    return %arg0, %c0_i32, %c0_i32_0, %c0_i32_1 : i32, i32, i32, i32
  }
}

</mosaic_0001>

<bundles_post_ra>
// kernel: autoencoder_forward.1
= control target key start
LH: loop header
LB: loop body
LE: loop exit
PB: predicated region body
PF: predicated region fallthrough
CT: control target
= control target key end

     0   :  { %s7850_s0 = inlined_call_operand.vmem [shape: f32[2,3,9,9], index: 0, kind: input, shape index: {}]   ;;  %s7851_s1 = inlined_call_operand.vmem [shape: f32[2,3,9,9], index: 1, kind: input, shape index: {}]   ;;  %s7852_s2 = inlined_call_operand.vmem [shape: f32[2,3,9,9], index: 2, kind: input, shape index: {}]   ;;  %s7853_s3 = inlined_call_operand.vmem [shape: f32[2,3,9,9], index: 3, kind: input, shape index: {}]   ;;  %s7854_s4 = inlined_call_operand.vmem [shape: f32[108], index: 4, kind: input, shape index: {}]   ;;  %s7855_s5 = inlined_call_operand.vmem [shape: f32[4], index: 5, kind: input, shape index: {}]   ;;  %s7856_s6 = inlined_call_operand.vmem [shape: f32[4,28,8,8], index: 6, kind: input, shape index: {}]   ;;  %s7857_s7 = inlined_call_operand.vmem [shape: f32[28,1,1], index: 7, kind: input, shape index: {}]   ;;  %s7858_s8 = inlined_call_operand.vmem [shape: f32[4,28,8,8], index: 8, kind: input, shape index: {}]   ;;  %s7859_s9 = inlined_call_operand.vmem [shape: f32[4,8,8], index: 9, kind: input, shape index: {}]   ;;  %s7860_s10 = inlined_call_operand.vmem [shape: f32[108], index: 10, kind: input, shape index: {}]   ;;  %s7861_s11 = inlined_call_operand.vmem [shape: f32[3], index: 11, kind: input, shape index: {}]   ;;  %s7862_s12 = inlined_call_operand.vmem [shape: f32[2,28,1,1], index: 12, kind: output, shape index: {0}]   ;;  %s7863_s13 = inlined_call_operand.vmem [shape: f32[2,12,8,8], index: 13, kind: output, shape index: {1}]  }
   0x1   :  { %7928 = sst [smem:[#allocation68_spill]] %s7850_s0 }
   0x2   :  { %7929 = sst [smem:[#allocation69_spill]] %s7851_s1 }
   0x3   :  { %7930 = sst [smem:[#allocation70_spill]] %s7852_s2 }
   0x4   :  { %7931 = sst [smem:[#allocation71_spill]] %s7853_s3 }
   0x5   :  { %7932 = sst [smem:[#allocation72_spill]] %s7854_s4 }
   0x6   :  { %7933 = sst [smem:[#allocation73_spill]] %s7855_s5 }
   0x7   :  { %7934 = sst [smem:[#allocation74_spill]] %s7856_s6 }
   0x8   :  { %7935 = sst [smem:[#allocation75_spill]] %s7857_s7 }
   0x9   :  { %7936 = sst [smem:[#allocation76_spill]] %s7858_s8 }
   0xa   :  { %7937 = sst [smem:[#allocation77_spill]] %s7859_s9 }
   0xb   :  { %7938 = sst [smem:[#allocation78_spill]] %s7860_s10 }
   0xc   :  { %7939 = sst [smem:[#allocation79_spill]] %s7861_s11 }
   0xd   :  { %7940 = sst [smem:[#allocation80_spill]] %s7862_s12 }
   0xe   :  { %7941 = sst [smem:[#allocation81_spill]] %s7863_s13 }
   0xf   :  { %19 = vsyncpa [#allocation4], 0 }
  0x10   :  { %20 = vsyncpa [#allocation6], 0 }
  0x11   :  { %21 = vsyncpa [#allocation9], 0  ;;  %s5011_s25 = smov 0  }
  0x12 LB: > { %7942 = sst [smem:[#allocation13_spill]] %s4931_s25  ;;  %s7943_s5 = sld [smem:[#allocation73_spill]]  ;;  %s4931_s25 = sphi %s5011_s25, %s27_s25  }
  0x13   : > { %s5020_s29 = sadd.s32 4294967295, %s4931_s25   ;;  %p4298_p0 = scmp.ge.s32.totalorder %s4931_s25, 1 }
  0x14   : > { %p356_p1 = scmp.lt.s32.totalorder %s4931_s25, 3  ;;  %p4779_p2 = scmp.eq.s32.totalorder %s5020_s29, 0 }
  0x15   : > { %s7945_s4 = sld [smem:[#allocation72_spill]]  ;;  %s7946_s10 = sld [smem:[#allocation78_spill]] }
  0x16   : > { %p5025_p3 = pnand %p4298_p0, %p356_p1  ;;  %s7948_s11 = sld [smem:[#allocation79_spill]] }
  0x18   : > { %s380_s28 = sshll.u32 %s7943_s5, 4  ;;  %p4766_p4 = pneg %p5025_p3  ;;  %s381_s28 = int_to_ptr.vmem [resolvable:$true] %s380_s28 }
  0x19   : > { %s4853_s24 = scalar_lea.vmem %s381_s28, 16  ;;  %p4861_p10 = scmp.lt.s32.totalorder %s381_s28, %s381_s28 }
  0x1a   : > { %p5043_p5 = pnand %p4779_p2, %p4766_p4  ;;  %p4854_p6 = scmp.ne.s32.totalorder %s381_s28, %s4853_s24 }
  0x1b   : > { %s369_s16 = sshll.u32 %s7945_s4, 4  ;;  %s403_s19 = sshll.u32 %s7946_s10, 4  ;;  %s5032_s16 = int_to_ptr.vmem [resolvable:$true] %s369_s16  ;;  %s5039_s19 = int_to_ptr.vmem [resolvable:$true] %s403_s19 }
  0x1c   : > { %s414_s23 = sshll.u32 %s7948_s11, 4  ;;  %p4855_p7 = pneg %p5043_p5  ;;  %s5050_s23 = int_to_ptr.vmem [resolvable:$true] %s414_s23 }
  0x1d   : > { %p4862_p11 = scmp.lt.s32.totalorder %s4853_s24, %s4853_s24 }
  0x1e   : > { %p4856_p8 = pnand %p4855_p7, %p4854_p6 }
  0x1f   : > { %p4863_p12 = por %p4862_p11, %p4861_p10 }
  0x20   : > { %p4857_p9 = pneg %p4856_p8 }
  0x22   : > { %p4864_p13 = pnand %p4863_p12, %p4857_p9 }
  0x24   : > { %4867 = shalt.err (!%p4864_p13)
}
  0x25   : > { %s4933_s26 = smov [#allocation5]   ;;  %s4868_s27 = scalar_lea.vmem %s5032_s16, 16 }
  0x26   : > { %4772 = dma.vmem_to_smem (!%p5043_p5), %s381_s28, 16, %s4933_s26, [#allocation6]  }
  0x27   : > { %p4869_p0 = scmp.ne.s32.totalorder %s5032_s16, %s4868_s27  ;;  %p4876_p6 = scmp.lt.s32.totalorder %s5032_s16, %s5032_s16 }
  0x28   : > { %p4877_p8 = scmp.lt.s32.totalorder %s4868_s27, %s4868_s27 }
  0x29   : > { %p4871_p1 = pnand %p4869_p0, %p4855_p7 }
  0x2a   : > { %p4878_p10 = por %p4877_p8, %p4876_p6 }
  0x2b   : > { %p4872_p4 = pneg %p4871_p1 }
  0x2d   : > { %p4879_p9 = pnand %p4878_p10, %p4872_p4 }
  0x2f   : > { %4882 = shalt.err (!%p4879_p9)
}
  0x30   : > { %s4934_s14 = smov [#allocation3]   ;;  %s4883_s28 = scalar_lea.vmem %s5039_s19, 16 }
  0x31   : > { %4769 = dma.vmem_to_smem (!%p5043_p5), %s5032_s16, 16, %s4934_s14, [#allocation4]  }
  0x32   : > { %p4884_p11 = scmp.ne.s32.totalorder %s5039_s19, %s4883_s28  ;;  %p4891_p0 = scmp.lt.s32.totalorder %s5039_s19, %s5039_s19 }
  0x33   : > { %p4892_p1 = scmp.lt.s32.totalorder %s4883_s28, %s4883_s28 }
  0x34   : > { %p4886_p12 = pnand %p4884_p11, %p4855_p7 }
  0x35   : > { %p4893_p4 = por %p4892_p1, %p4891_p0 }
  0x36   : > { %p4887_p13 = pneg %p4886_p12 }
  0x38   : > { %p4894_p6 = pnand %p4893_p4, %p4887_p13 }
  0x3a   : > { %4897 = shalt.err (!%p4894_p6)
}
  0x3b   : > { %s4935_s15 = smov [#allocation7]   ;;  %s4898_s16 = scalar_lea.vmem %s5050_s23, 16 }
  0x3c   : > { %4775 = dma.vmem_to_smem (!%p5043_p5), %s5039_s19, 16, %s4935_s15, [#allocation6]  }
  0x3d   : > { %p4899_p8 = scmp.ne.s32.totalorder %s5050_s23, %s4898_s16  ;;  %p4906_p11 = scmp.lt.s32.totalorder %s5050_s23, %s5050_s23 }
  0x3e   : > { %p4907_p12 = scmp.lt.s32.totalorder %s4898_s16, %s4898_s16 }
  0x3f   : > { %p4901_p10 = pnand %p4899_p8, %p4855_p7 }
  0x40   : > { %p4908_p13 = por %p4907_p12, %p4906_p11 }
  0x41   : > { %p4902_p9 = pneg %p4901_p10 }
  0x43   : > { %p4909_p0 = pnand %p4908_p13, %p4902_p9 }
  0x45   : > { %4912 = shalt.err (!%p4909_p0)
}
  0x46   : > { %s4936_s17 = smov [#allocation8]   ;;  %459 = sbr.rel (%p5025_p3) target bundleno = 1152 (0x480), region = 68 }
  0x47   : > { %4778 = dma.vmem_to_smem (!%p5043_p5), %s5050_s23, 16, %s4936_s17, [#allocation9]  }
  0x4d   : > { %4918 = dma.done.wait (%p4779_p2), [#allocation4], 16  }
  0x4e   : > { %4920 = vsyncadd (%p4779_p2), [#allocation4], 4294967280 }
  0x4f   : > { %4922 = dma.done.wait (%p4779_p2), [#allocation6], 32  }
  0x50   : > { %4924 = vsyncadd (%p4779_p2), [#allocation6], 4294967264 }
  0x51   : > { %4926 = dma.done.wait (%p4779_p2), [#allocation9], 16  }
  0x52   : > { %4928 = vsyncadd (%p4779_p2), [#allocation9], 4294967280 }
  0x53   : > { %477 = sfence }
  0x54   : > { %p535_p3 = scmp.lt.s32.totalorder %s5020_s29, 1  ;;  %s4321_s30 = sld [smem:[#allocation3 + $0x8]]  ;;  %vm1262_vm0 = vcmask 64512   ;;  %vm2582_vm1 = vcmask 0   ;;  %vm2863_vm2 = vcmask 72704   ;;  %vm2865_vm3 = vcmask 65536  }
  0x55   : > { %s4315_s18 = sld [smem:[#allocation3 + $0x2]]  ;;  %s4326_s19 = sld [smem:[#allocation3 + $0xb]] }
  0x56   : > { %s8107_s29 = smov (!%p535_p3, %s5020_s29), 1  ;;  %s4318_s20 = sld [smem:[#allocation3 + $0x5]] }
  0x57   : > { %7949 = sst [smem:[#allocation14_spill]] %s8107_s29  ;;  %s5108_s21 = smul.u32 48, %s8107_s29 }
  0x58   : > { %s4336_s22 = sld [smem:[#allocation3 + $0x11]]  ;;  %s4331_s23 = sld [smem:[#allocation3 + $0xe]] }
  0x59   : > { %s7950_s0 = sld [smem:[#allocation68_spill]]  ;;  %s7951_s2 = sld [smem:[#allocation70_spill]] }
  0x5a   : > { %v613_v1 = vstv %s4321_s30  ;;  %s5126_s16 = sld [smem:[#allocation3 + $0x17]]  ;;  %s4341_s17 = sld [smem:[#allocation3 + $0x14]] }
  0x5b   : > { %v577_v3 = vstv %s4315_s18  ;;  %v633_v8 = vstv %s4326_s19  ;;  %s7864_s24 = smov 127   ;;  %s4383_s30 = sld [smem:[#allocation3 + $0x38]] }
  0x5c   : > { %v595_v9 = vstv %s4318_s20  ;;  %s4355_s18 = sld [smem:[#allocation3 + $0x1d]]  ;;  %s4358_s19 = sld [smem:[#allocation3 + $0x20]] }
  0x5d   : > { %s4411_s20 = sld [smem:[#allocation3 + $0x53]]  ;;  %s5162_s26 = sld [smem:[#allocation3 + $0x3e]] }
  0x5e   : > { %v671_v13 = vstv %s4336_s22  ;;  %v653_v15 = vstv %s4331_s23  ;;  %s4414_s22 = sld [smem:[#allocation3 + $0x56]]  ;;  %s4386_s23 = sld [smem:[#allocation3 + $0x3b]] }
  0x5f   : > { %s5114_s27 = scalar_lea.vmem %s7950_s0, %s5108_s21  ;;  %s549_s15 = scalar_lea.vmem %s7951_s2, %s5108_s21 }
  0x60   : > { %v5121_v0 = vld [vmem:[%s5114_s27 + $0x1] sm:$0xff]  ;;  %v5131_v6 = vld [vmem:[%s5114_s27 + $0x10] sm:$0xff]  ;;  %v711_v19 = vstv %s5126_s16  ;;  %v691_v21 = vstv %s4341_s17  ;;  %s5164_s14 = sld [smem:[#allocation3 + $0x23]]  ;;  %s564_s28 = sld [smem:[#allocation5]] }
  0x61   : > { %v5124_v2 = vld [vmem:[%s5114_s27] sm:$0xff]  ;;  %v614_v4 = vmul.f32 %v613_v1, %v5121_v0  ;;  %v634_v10 = vmul.f32 %v5131_v6, %v633_v8  ;;  %v5140_v12 = vld [vmem:[%s5114_s27 + $0x11] sm:$0xff]  ;;  %v895_v24 = vstv %s4383_s30  ;;  %s4314_s16 = sld [smem:[#allocation3 + $0x1]]  ;;  %s7952_s1 = sld [smem:[#allocation69_spill]] }
  0x62   : > { %v578_v5 = vmul.f32 %v577_v3, %v5124_v2  ;;  %v5133_v7 = vld [vmem:[%s549_s15] sm:$0xff]  ;;  %v5142_v14 = vld [vmem:[%s549_s15 + $0x10] sm:$0xff]  ;;  %v672_v16 = vmul.f32 %v5140_v12, %v671_v13  ;;  %v748_v25 = vstv %s4355_s18  ;;  %v896_v26 = vmul.f32 %v895_v24, %v5124_v2  ;;  %s5183_s17 = sld [smem:[#allocation3 + $0x5c]]  ;;  %s4382_s30 = sld [smem:[#allocation3 + $0x37]] }
  0x63   : > { %616 = vrot.lane.b32.xlu1 %v614_v4, %s7864_s24  ;;  %v596_v11 = vmul.f32 %v595_v9, %v5133_v7  ;;  %v654_v17 = vmul.f32 %v5142_v14, %v653_v15  ;;  %v5148_v18 = vld [vmem:[%s549_s15 + $0x20] sm:$0xff]  ;;  %v749_v27 = vmul.f32 %v748_v25, %v5124_v2  ;;  %v764_v28 = vstv %s4358_s19  ;;  %s566_s15 = sld [smem:[#allocation3]]  ;;  %s5176_s19 = sld [smem:[#allocation3 + $0x26]] }
  0x64   : > { %580 = vrot.lane.b32.xlu0 %v578_v5, %s7864_s24  ;;  %v5152_v20 = vld [vmem:[%s5114_s27 + $0x20] sm:$0xff]  ;;  %v712_v22 = vmul.f32 %v5148_v18, %v711_v19  ;;  %v1042_v29 = vstv %s4411_s20  ;;  %v765_v30 = vmul.f32 %v764_v28, %v5133_v7  ;;  %v1058_v32 = vstv %s4414_s22  ;;  %s5178_s20 = sld [smem:[#allocation3 + $0x59]]  ;;  %s4354_s0 = sld [smem:[#allocation3 + $0x1c]] }
  0x65   : > { %v692_v23 = vmul.f32 %v5152_v20, %v691_v21  ;;  %v1043_v31 = vmul.f32 %v1042_v29, %v5124_v2  ;;  %v911_v33 = vstv %s4386_s23  ;;  %v1059_v37 = vmul.f32 %v1058_v32, %v5133_v7  ;;  %s5189_s22 = sld [smem:[#allocation3 + $0x41]]  ;;  %s5195_s23 = sld [smem:[#allocation5 + $0x2]] }
  0x66   : > { %v565_v35 = vstv %s564_s28  ;;  %v912_v38 = vmul.f32 %v911_v33, %v5133_v7  ;;  %v927_v41 = vstv %s5162_s26  ;;  %v780_v42 = vstv %s5164_s14  ;;  %s4381_s28 = sld [smem:[#allocation3 + $0x36]]  ;;  %s5205_s26 = sld [smem:[#allocation5 + $0x1]] }
  0x67   : > { %636 = vrot.lane.b32.xlu1 %v634_v10, %s7864_s24  ;;  %s5170_s18 = scalar_lea.vmem %s7952_s1, %s5108_s21  ;;  %v573_v39 = vstv %s4314_s16  ;;  %v928_v45 = vmul.f32 %v927_v41, %v5121_v0  ;;  %v781_v46 = vmul.f32 %v780_v42, %v5121_v0  ;;  %s4353_s14 = sld [smem:[#allocation3 + $0x1b]] }
  0x68   : > { %598 = vrot.lane.b32.xlu0 %v596_v11, %s7864_s24  ;;  %v5181_v34 = vld [vmem:[%s5170_s18] sm:$0xff]  ;;  %s5209_s16 = sld [smem:[#allocation3 + $0x29]]  ;;  %v1090_v50 = vstv %s5183_s17  ;;  %s5212_s1 = sld [smem:[#allocation5 + $0x3]]  ;;  %v891_v56 = vstv %s4382_s30 }
  0x69   : > { %v568_v36 = vstv %s566_s15  ;;  %v574_v43 = vmul.f32 %v573_v39, %v5181_v34  ;;  %s5197_s15 = sld [smem:[#allocation3 + $0x44]]  ;;  %v796_v48 = vstv %s5176_s19  ;;  %s7953_s2 = smov 127   ;;  %v1091_v57 = vmul.f32 %v5131_v6, %v1090_v50 }
  0x6a   : > { %v569_v40 = vmul.f32 %v568_v36, %v5124_v2  ;;  %v1074_v49 = vstv %s5178_s20  ;;  %v797_v51 = vmul.f32 %v5131_v6, %v796_v48  ;;  %s5221_s19 = sld [smem:[#allocation3 + $0x52]]  ;;  %s5223_s20 = sld [smem:[#allocation3 + $0x2c]]  ;;  %v892_v58 = vmul.f32 %v891_v56, %v5181_v34 }
  0x6b   : > { %674 = vrot.lane.b32.xlu1 %v672_v16, %s7864_s24  ;;  %v1075_v52 = vmul.f32 %v1074_v49, %v5121_v0  ;;  %v943_v53 = vstv %s5189_s22  ;;  %s5225_s17 = sld [smem:[#allocation3 + $0x5f]]  ;;  %v885_v54 = vstv %s5195_s23  ;;  %v744_v63 = vstv %s4354_s0  ;;  %s5239_s22 = sld [smem:[#allocation3 + $0x62]] }
  0x6c   : > { %656 = vrot.lane.b32.xlu0 %v654_v17, %s7864_s24  ;;  %v570_v44 = vadd.f32 %v569_v40, %v565_v35  ;;  %v887_v55 = vstv %s4381_s28  ;;  %v944_v60 = vmul.f32 %v5131_v6, %v943_v53  ;;  %v738_v61 = vstv %s5205_s26  ;;  %s4398_s23 = sld [smem:[#allocation3 + $0x47]]  ;;  %s4401_s0 = sld [smem:[#allocation3 + $0x4a]]  ;;  %v5276_v40 = vld [vmem:[%s5114_s27 + $0x21] sm:$0xff] }
  0x6d   : > { %v888_v59 = vmul.f32 %v887_v55, %v5124_v2  ;;  %v740_v62 = vstv %s4353_s14  ;;  %v745_v5 = vmul.f32 %v744_v63, %v5181_v34  ;;  %s4429_s28 = sld [smem:[#allocation3 + $0x65]]  ;;  %s4432_s14 = sld [smem:[#allocation3 + $0x68]] }
  0x6e   : > { %v5203_v47 = vadd.f32 %v574_v43, %v570_v44  ;;  %v741_v4 = vmul.f32 %v740_v62, %v5124_v2  ;;  %v812_v8 = vstv %s5209_s16  ;;  %v1032_v11 = vstv %s5212_s1  ;;  %s4373_s1 = sld [smem:[#allocation3 + $0x2f]]  ;;  %s4404_s30 = sld [smem:[#allocation3 + $0x4d]] }
  0x6f   : > { %714 = vrot.lane.b32.xlu1 %v712_v22, %s7864_s24  ;;  %v959_v1 = vstv %s5197_s15  ;;  %v889_v3 = vadd.f32 %v888_v59, %v885_v54  ;;  %v813_v19 = vmul.f32 %v5142_v14, %v812_v8  ;;  %s4351_s15 = sld [smem:[#allocation3 + $0x1a]]  ;;  %s4379_s26 = sld [smem:[#allocation3 + $0x35]] }
  0x70   : > { %694 = vrot.lane.b32.xlu0 %v692_v23, %s7864_s24  ;;  %v742_v10 = vadd.f32 %v741_v4, %v738_v61  ;;  %v960_v15 = vmul.f32 %v5142_v14, %v959_v1  ;;  %v1038_v17 = vstv %s5221_s19  ;;  %v828_v23 = vstv %s5223_s20  ;;  %s4407_s16 = sld [smem:[#allocation3 + $0x50]]  ;;  %s4435_s19 = sld [smem:[#allocation3 + $0x6b]]  ;;  %v5321_v1 = vld [vmem:[%s5170_s18 + $0x1] sm:$0xff] }
  0x71   : > { %v5241_v9 = vadd.f32 %v892_v58, %v889_v3  ;;  %v1039_v22 = vmul.f32 %v1038_v17, %v5181_v34  ;;  %v1106_v24 = vstv %s5225_s17  ;;  %v1122_v28 = vstv %s5239_s22  ;;  %s4316_s27 = sld [smem:[#allocation3 + $0x3]]  ;;  %s4317_s20 = sld [smem:[#allocation3 + $0x4]] }
  0x72   : > { %v5251_v21 = vadd.f32 %v745_v5, %v742_v10  ;;  %v975_v29 = vstv %s4398_s23  ;;  %v991_v32 = vstv %s4401_s0  ;;  %s4319_s17 = sld [smem:[#allocation3 + $0x6]]  ;;  %s7954_s3 = sld [smem:[#allocation71_spill]] }
  0x73   : > { %898 = vrot.lane.b32.xlu1 %v896_v26, %s7864_s24  ;;  %v992_v34 = vmul.f32 %v5152_v20, %v991_v32  ;;  %s5334_s22 = sld [smem:[#allocation3 + $0x1f]]  ;;  %s5337_s23 = sld [smem:[#allocation3 + $0x21]] }
  0x74   : > { %751 = vrot.lane.b32.xlu0 %v749_v27, %s7864_s24  ;;  %v1107_v27 = vmul.f32 %v5142_v14, %v1106_v24  ;;  %v844_v33 = vstv %s4373_s1  ;;  %v1007_v42 = vstv %s4404_s30  ;;  %s4320_s1 = sld [smem:[#allocation3 + $0x7]]  ;;  %s5308_s30 = sld [smem:[#allocation3 + $0xd]] }
  0x75   : > { %v845_v35 = vmul.f32 %v5152_v20, %v844_v33  ;;  %v729_v41 = vstv %s4351_s15  ;;  %v1008_v44 = vmul.f32 %v5148_v18, %v1007_v42  ;;  %s5306_s15 = sld [smem:[#allocation3 + $0xc]]  ;;  %s5349_s4 = sld [smem:[#allocation3 + $0x55]] }
  0x76   : > { %v730_v43 = vmul.f32 %v5276_v40, %v729_v41  ;;  %v1023_v50 = vstv %s4407_s16  ;;  %s5318_s16 = sld [smem:[#allocation3 + $0x13]]  ;;  %s7955_s6 = sld [smem:[#allocation74_spill]] }
  0x77   : > { %767 = vrot.lane.b32.xlu1 %v765_v30, %s7864_s24  ;;  %v1123_v30 = vmul.f32 %v5140_v12, %v1122_v28  ;;  %v586_v54 = vstv %s4316_s27  ;;  %v591_v56 = vstv %s4317_s20  ;;  %s5325_s27 = sld [smem:[#allocation3 + $0x1e]]  ;;  %s5329_s20 = sld [smem:[#allocation3 + $0x15]] }
  0x78   : > { %1045 = vrot.lane.b32.xlu0 %v1043_v31, %s7864_s24  ;;  %v976_v31 = vmul.f32 %v5140_v12, %v975_v29  ;;  %s5296_s0 = scalar_lea.vmem %s7954_s3, %s5108_s21  ;;  %s5310_s21 = sld [smem:[#allocation3 + $0xf]]  ;;  %v604_v62 = vstv %s4319_s17 }
  0x79   : > { %v5299_v55 = vld [vmem:[%s5296_s0] sm:$0xff]  ;;  %v605_v5 = vmul.f32 %v604_v62, %v5121_v0  ;;  %s5332_s17 = sld [smem:[#allocation3 + $0x16]]  ;;  %s5347_s3 = sld [smem:[#allocation3 + $0x54]] }
  0x7a   : > { %v592_v61 = vmul.f32 %v591_v56, %v5299_v55  ;;  %v609_v3 = vstv %s4320_s1  ;;  %s5339_s1 = sld [smem:[#allocation3 + $0x3a]]  ;;  %s7956_s7 = sld [smem:[#allocation75_spill]] }
  0x7b   : > { %1061 = vrot.lane.b32.xlu1 %v1059_v37, %s7864_s24  ;;  %v1138_v37 = vstv %s4429_s28  ;;  %s5304_s28 = sld [smem:[#allocation3 + $0xa]]  ;;  %v610_v10 = vmul.f32 %v609_v3, %v5321_v1  ;;  %v643_v17 = vstv %s5306_s15  ;;  %s5378_s15 = sld [smem:[#allocation3 + $0x3d]] }
  0x7c   : > { %914 = vrot.lane.b32.xlu0 %v912_v38, %s7864_s24  ;;  %s5214_s24 = sld [smem:[#allocation3 + $0x51]]  ;;  %v1139_v39 = vmul.f32 %v5152_v20, %v1138_v37  ;;  %v644_v32 = vmul.f32 %v5142_v14, %v643_v17  ;;  %s7960_s12 = sld [smem:[#allocation80_spill]] }
  0x7d   : > { %v756_v37 = vstv %s5325_s27  ;;  %s5450_s27 = sld [smem:[#allocation3 + $0x5d]]  ;;  %s7964_s8 = sld [smem:[#allocation76_spill]] }
  0x7e   : > { %s7106_s5 = sld [smem:[#allocation7 + $0x22]]  ;;  %s7126_s10 = sld [smem:[#allocation7 + $0x2b]] }
  0x7f   : > { %930 = vrot.lane.b32.xlu1 %v928_v45, %s7953_s2  ;;  %v876_v45 = vstv %s4379_s26  ;;  %s5314_s26 = sld [smem:[#allocation3 + $0x10]]  ;;  %s7132_s11 = sld [smem:[#allocation7 + $0x46]] }
  0x80   : > { %783 = vrot.lane.b32.xlu0 %v781_v46, %s7953_s2  ;;  %v1154_v46 = vstv %s4432_s14  ;;  %v877_v48 = vmul.f32 %v5276_v40, %v876_v45  ;;  %s5316_s14 = sld [smem:[#allocation3 + $0x12]]  ;;  %s7146_s25 = sld [smem:[#allocation7 + $0x19]] }
  0x81   : > { %v1155_v49 = vmul.f32 %v5148_v18, %v1154_v46  ;;  %v701_v46 = vstv %s5329_s20  ;;  %s5452_s20 = sld [smem:[#allocation3 + $0x42]]  ;;  %s7156_s13 = sld [smem:[#allocation7 + $0x4f]] }
  0x82   : > { %v1034_v13 = vstv %s5214_s24  ;;  %s4376_s24 = sld [smem:[#allocation3 + $0x32]]  ;;  %s8003_s9 = sld [smem:[#allocation77_spill]] }
  0x83   : > { %799 = vrot.lane.b32.xlu1 %v797_v51, %s7953_s2  ;;  %v1035_v16 = vmul.f32 %v1034_v13, %v5124_v2  ;;  %v829_v2 = vmul.f32 %v5140_v12, %v828_v23  ;;  %v1170_v51 = vstv %s4435_s19  ;;  %s5323_s19 = sld [smem:[#allocation3 + $0x39]]  ;;  %v5355_v23 = vld [vmem:[%s5170_s18 + $0x11] sm:$0xff] }
  0x84   : > { %1077 = vrot.lane.b32.xlu0 %v1075_v52, %s7953_s2  ;;  %v1024_v52 = vmul.f32 %v5276_v40, %v1023_v50  ;;  %v1171_v53 = vmul.f32 %v5276_v40, %v1170_v51  ;;  %v760_v50 = vstv %s5334_s22  ;;  %s5461_s22 = sld [smem:[#allocation3 + $0x45]]  ;;  %7978 = sst [smem:[#allocation31_spill]] %s7106_s5 }
  0x85   : > { %v1036_v25 = vadd.f32 %v1035_v16, %v1032_v11  ;;  %v629_v16 = vstv %s5304_s28  ;;  %v667_v28 = vstv %s5314_s26  ;;  %s5370_s28 = sld [smem:[#allocation3 + $0x3c]]  ;;  %v761_v3 = vmul.f32 %v760_v50, %v5299_v55  ;;  %7982 = sst [smem:[#allocation35_spill]] %s7126_s10 }
  0x86   : > { %v681_v29 = vstv %s5316_s14  ;;  %v5389_v41 = vmul.f32 %v5355_v23, %v667_v28  ;;  %s5400_s26 = sld [smem:[#allocation3 + $0x24]]  ;;  %s5414_s14 = sld [smem:[#allocation3 + $0x25]] }
  0x87   : > { %1093 = vrot.lane.b32.xlu1 %v1091_v57, %s7953_s2  ;;  %v5256_v26 = vadd.f32 %v1039_v22, %v1036_v25  ;;  %v587_v57 = vmul.f32 %v586_v54, %v5133_v7  ;;  %v649_v22 = vstv %s5308_s30  ;;  %s5380_s30 = sld [smem:[#allocation3 + $0x22]]  ;;  %v907_v54 = vstv %s5339_s1  ;;  %7983 = sst [smem:[#allocation36_spill]] %s7132_s11 }
  0x88   : > { %946 = vrot.lane.b32.xlu0 %v944_v60, %s7953_s2  ;;  %v860_v36 = vstv %s4376_s24  ;;  %s5301_s24 = sld [smem:[#allocation3 + $0x9]]  ;;  %s5471_s1 = sld [smem:[#allocation3 + $0x2a]] }
  0x89   : > { %v861_v38 = vmul.f32 %v5148_v18, %v860_v36  ;;  %v903_v36 = vstv %s5323_s19  ;;  %s5431_s19 = sld [smem:[#allocation3 + $0x5a]]  ;;  %7985 = sst [smem:[#allocation38_spill]] %s7146_s25 }
  0x8a   : > { %7987 = sst [smem:[#allocation40_spill]] %s7156_s13 }
  0x8b   : > { %962 = vrot.lane.b32.xlu1 %v960_v15, %s7953_s2  ;;  %v5343_v15 = vld [vmem:[%s5170_s18 + $0x10] sm:$0xff] }
  0x8c   : > { %815 = vrot.lane.b32.xlu0 %v813_v19, %s7953_s2 }
  0x8d   : > { %v776_v28 = vstv %s5380_s30  ;;  %s5489_s30 = sld [smem:[#allocation3 + $0x18]] }
  0x8e   : > { %v623_v11 = vstv %s5301_s24  ;;  %s5359_s24 = sld [smem:[#allocation3 + $0x57]] }
  0x8f   : > { %831 = vrot.lane.b32.xlu1 %v829_v2, %s7953_s2  ;;  %v5362_v2 = vld [vmem:[%s5296_s0 + $0x10] sm:$0xff] }
  0x90   : > { %1109 = vrot.lane.b32.xlu0 %v1107_v27, %s7953_s2  ;;  %v662_v27 = vstv %s5310_s21  ;;  %s5398_s21 = sld [smem:[#allocation3 + $0x3f]] }
  0x93   : > { %1125 = vrot.lane.b32.xlu1 %v1123_v30, %s7953_s2  ;;  %v624_v30 = vmul.f32 %v5131_v6, %v623_v11  ;;  %v908_v11 = vmul.f32 %v907_v54, %v5299_v55 }
  0x94   : > { %978 = vrot.lane.b32.xlu0 %v976_v31, %s7953_s2  ;;  %v630_v31 = vmul.f32 %v5343_v15, %v629_v16 }
  0x97   : > { %994 = vrot.lane.b32.xlu1 %v992_v34, %s7953_s2  ;;  %v5373_v34 = vld [vmem:[%s5170_s18 + $0x20] sm:$0xff] }
  0x98   : > { %847 = vrot.lane.b32.xlu0 %v845_v35, %s7953_s2  ;;  %v687_v35 = vstv %s5318_s16  ;;  %s5416_s16 = sld [smem:[#allocation3 + $0x27]] }
  0x99   : > { %v5409_v51 = vmul.f32 %v5373_v34, %v687_v35 }
  0x9b   : > { %863 = vrot.lane.b32.xlu1 %v861_v38, %s7953_s2  ;;  %v5383_v38 = vmul.f32 %v5362_v2, %v649_v22  ;;  %v919_v22 = vstv %s5370_s28  ;;  %s5481_s28 = sld [smem:[#allocation3 + $0x2b]] }
  0x9c   : > { %1141 = vrot.lane.b32.xlu0 %v1139_v39, %s7953_s2  ;;  %v5386_v39 = vmul.f32 %v5140_v12, %v662_v27 }
  0x9f   : > { %732 = vrot.lane.b32.xlu1 %v730_v43, %s7953_s2  ;;  %v5394_v43 = vmul.f32 %v5152_v20, %v681_v29 }
  0xa0   : > { %1010 = vrot.lane.b32.xlu0 %v1008_v44, %s7953_s2 }
  0xa3   : > { %879 = vrot.lane.b32.xlu1 %v877_v48, %s7953_s2  ;;  %v5404_v48 = vld [vmem:[%s5296_s0 + $0x20] sm:$0xff]  ;;  %s5421_s0 = sld [smem:[#allocation3 + $0x58]] }
  0xa4   : > { %1157 = vrot.lane.b32.xlu0 %v1155_v49, %s7953_s2  ;;  %v707_v49 = vstv %s5332_s17  ;;  %s5455_s17 = sld [smem:[#allocation3 + $0x43]] }
  0xa7   : > { %1173 = vrot.lane.b32.xlu1 %v1171_v53, %s7953_s2  ;;  %v757_v53 = vmul.f32 %v756_v37, %v5133_v7  ;;  %v920_v37 = vmul.f32 %v919_v22, %v5121_v0 }
  0xa8   : > { %1026 = vrot.lane.b32.xlu0 %v1024_v52, %s7953_s2  ;;  %v904_v52 = vmul.f32 %v903_v36, %v5133_v7  ;;  %s7148_s2 = sld [smem:[#allocation7 + $0x34]] }
  0xae   : > { %7986 = sst [smem:[#allocation39_spill]] %s7148_s2 }
  0xd5   : > { %v617_v58 = vpop.permute.xlu1 %616 }
  0xd6   : > { %v581_v59 = vpop.permute.xlu0 %580 }
  0xd7   : > { %v583_v60 = vadd.f32 %v581_v59, %v5203_v47  ;;  %v1054_v59 = vstv %s5349_s4  ;;  %s5444_s4 = sld [smem:[#allocation3 + $0x5b]] }
  0xd8   : > { %v1055_v17 = vmul.f32 %v1054_v59, %v5299_v55 }
  0xd9   : > { %v588_v63 = vadd.f32 %v587_v57, %v583_v60  ;;  %v5327_v47 = vpop.permute.xlu1 %636  ;;  %v772_v57 = vstv %s5337_s23  ;;  %v5424_v60 = vmul.f32 %v5148_v18, %v701_v46  ;;  %v792_v46 = vstv %s5414_s14  ;;  %s5463_s23 = sld [smem:[#allocation3 + $0x28]]  ;;  %s5500_s14 = sld [smem:[#allocation3 + $0x19]] }
  0xda   : > { %v599_v4 = vpop.permute.xlu0 %598 }
  0xdb   : > { %v593_v8 = vadd.f32 %v592_v61, %v588_v63  ;;  %v5427_v61 = vmul.f32 %v5404_v48, %v707_v49  ;;  %v804_v49 = vstv %s5416_s16  ;;  %s5507_s16 = sld [smem:[#allocation3 + $0x61]] }
  0xdd   : > { %v601_v13 = vadd.f32 %v599_v4, %v593_v8  ;;  %v5351_v19 = vpop.permute.xlu1 %674  ;;  %v1066_v4 = vstv %s5359_s24  ;;  %s5478_s24 = sld [smem:[#allocation3 + $0x5e]] }
  0xde   : > { %v5357_v24 = vpop.permute.xlu0 %656 }
  0xdf   : > { %v606_v25 = vadd.f32 %v605_v5, %v601_v13  ;;  %v773_v13 = vmul.f32 %v772_v57, %v5121_v0 }
  0xe1   : > { %v611_v33 = vadd.f32 %v610_v10, %v606_v25  ;;  %v5391_v42 = vpop.permute.xlu1 %714 }
  0xe2   : > { %v5396_v44 = vpop.permute.xlu0 %694 }
  0xe3   : > { %v619_v45 = vadd.f32 %v617_v58, %v611_v33  ;;  %v1050_v58 = vstv %s5347_s3  ;;  %s5440_s3 = sld [smem:[#allocation3 + $0x40]]  ;;  %v788_v33 = vstv %s5400_s26  ;;  %s5498_s26 = sld [smem:[#allocation3 + $0x46]] }
  0xe4   : > { %v1051_v16 = vmul.f32 %v1050_v58, %v5133_v7  ;;  %v935_v7 = vstv %s5398_s21  ;;  %v789_v57 = vmul.f32 %v5131_v6, %v788_v33  ;;  %v1082_v58 = vstv %s5431_s19  ;;  %s5492_s21 = sld [smem:[#allocation3 + $0x2d]]  ;;  %s5516_s19 = sld [smem:[#allocation3 + $0x2e]] }
  0xe5   : > { %v625_v56 = vadd.f32 %v624_v30, %v619_v45  ;;  %v899_v62 = vpop.permute.xlu1 %898  ;;  %v1067_v30 = vmul.f32 %v1066_v4, %v5121_v0  ;;  %v777_v45 = vmul.f32 %v776_v28, %v5321_v1  ;;  %v936_v0 = vmul.f32 %v5131_v6, %v935_v7 }
  0xe6   : > { %v752_v63 = vpop.permute.xlu0 %751  ;;  %v901_v8 = vadd.f32 %v899_v62, %v5241_v9  ;;  %v805_v4 = vmul.f32 %v5142_v14, %v804_v49  ;;  %v1083_v22 = vmul.f32 %v5131_v6, %v1082_v58  ;;  %v967_v7 = vstv %s5461_s22  ;;  %s5552_s22 = sld [smem:[#allocation3 + $0x66]] }
  0xe7   : > { %v631_v5 = vadd.f32 %v630_v31, %v625_v56  ;;  %v754_v10 = vadd.f32 %v752_v63, %v5251_v21  ;;  %v923_v31 = vstv %s5378_s15  ;;  %s5487_s15 = sld [smem:[#allocation3 + $0x60]]  ;;  %v808_v6 = vstv %s5463_s23  ;;  %s5560_s23 = sld [smem:[#allocation3 + $0x33]] }
  0xe8   : > { %v905_v27 = vadd.f32 %v904_v52, %v901_v8  ;;  %v924_v56 = vmul.f32 %v923_v31, %v5321_v1  ;;  %v955_v31 = vstv %s5455_s17  ;;  %s5543_s17 = sld [smem:[#allocation3 + $0x64]] }
  0xe9   : > { %v639_v25 = vadd.f32 %v5327_v47, %v631_v5  ;;  %v758_v9 = vadd.f32 %v757_v53, %v754_v10  ;;  %v768_v21 = vpop.permute.xlu1 %767  ;;  %v939_v8 = vstv %s5440_s3  ;;  %s5522_s3 = sld [smem:[#allocation3 + $0x63]] }
  0xea   : > { %v1046_v29 = vpop.permute.xlu0 %1045  ;;  %v909_v36 = vadd.f32 %v908_v11, %v905_v27  ;;  %v1098_v27 = vstv %s5450_s27  ;;  %s5531_s27 = sld [smem:[#allocation3 + $0x30]] }
  0xeb   : > { %v645_v55 = vadd.f32 %v644_v32, %v639_v25  ;;  %v762_v47 = vadd.f32 %v761_v3, %v758_v9  ;;  %v1048_v35 = vadd.f32 %v1046_v29, %v5256_v26  ;;  %v1070_v26 = vstv %s5421_s0  ;;  %s5514_s0 = sld [smem:[#allocation3 + $0x48]] }
  0xec   : > { %v793_v3 = vmul.f32 %v5343_v15, %v792_v46  ;;  %v1071_v5 = vmul.f32 %v1070_v26, %v5321_v1  ;;  %v1086_v25 = vstv %s5444_s4  ;;  %v951_v1 = vstv %s5452_s20  ;;  %s5524_s4 = sld [smem:[#allocation3 + $0x49]]  ;;  %s5541_s20 = sld [smem:[#allocation3 + $0x4b]] }
  0xed   : > { %v651_v50 = vadd.f32 %v5383_v38, %v645_v55  ;;  %v770_v32 = vadd.f32 %v768_v21, %v762_v47  ;;  %v1052_v52 = vadd.f32 %v1051_v16, %v1048_v35  ;;  %v1062_v53 = vpop.permute.xlu1 %1061  ;;  %v940_v29 = vmul.f32 %v5343_v15, %v939_v8 }
  0xee   : > { %v915_v54 = vpop.permute.xlu0 %914  ;;  %v820_v46 = vstv %s5471_s1  ;;  %v968_v26 = vmul.f32 %v5140_v12, %v967_v7  ;;  %v836_v8 = vstv %s5492_s21  ;;  %s5562_s1 = sld [smem:[#allocation3 + $0x4c]]  ;;  %s5587_s21 = sld [smem:[#allocation3 + $0x69]] }
  0xef   : > { %v659_v59 = vadd.f32 %v5357_v24, %v651_v50  ;;  %v774_v62 = vadd.f32 %v773_v13, %v770_v32  ;;  %v1056_v38 = vadd.f32 %v1055_v17, %v1052_v52  ;;  %v917_v63 = vadd.f32 %v915_v54, %v909_v36 }
  0xf0   : > { %v1087_v36 = vmul.f32 %v5343_v15, %v1086_v25  ;;  %v956_v52 = vmul.f32 %v5362_v2, %v955_v31  ;;  %v809_v15 = vmul.f32 %v5362_v2, %v808_v6  ;;  %v821_v58 = vmul.f32 %v5140_v12, %v820_v46  ;;  %v5536_v25 = vld [vmem:[%s5170_s18 + $0x21] sm:$0xff]  ;;  %s5547_s18 = sld [smem:[#allocation3 + $0x31]] }
  0xf1   : > { %v664_v10 = vadd.f32 %v5386_v39, %v659_v59  ;;  %v1064_v11 = vadd.f32 %v1062_v53, %v1056_v38  ;;  %v921_v16 = vadd.f32 %v920_v37, %v917_v63  ;;  %v778_v24 = vadd.f32 %v777_v45, %v774_v62  ;;  %v931_v13 = vpop.permute.xlu1 %930 }
  0xf2   : > { %v784_v17 = vpop.permute.xlu0 %783  ;;  %v1099_v37 = vmul.f32 %v5142_v14, %v1098_v27  ;;  %v952_v45 = vmul.f32 %v5142_v14, %v951_v1  ;;  %v1102_v53 = vstv %s5478_s24  ;;  %v824_v59 = vstv %s5481_s28  ;;  %s5564_s24 = sld [smem:[#allocation3 + $0x67]]  ;;  %s5569_s28 = sld [smem:[#allocation3 + $0x4e]] }
  0xf3   : > { %v669_v39 = vadd.f32 %v5389_v41, %v664_v10  ;;  %v1068_v9 = vadd.f32 %v1067_v30, %v1064_v11  ;;  %v925_v28 = vadd.f32 %v924_v56, %v921_v16  ;;  %v786_v21 = vadd.f32 %v784_v17, %v778_v24 }
  0xf4   : > { %v1114_v62 = vstv %s5487_s15  ;;  %v720_v38 = vstv %s5489_s30  ;;  %v1103_v10 = vmul.f32 %v5362_v2, %v1102_v53  ;;  %v971_v11 = vstv %s5498_s26  ;;  %s5575_s15 = sld [smem:[#allocation3 + $0x34]]  ;;  %s5578_s30 = sld [smem:[#allocation3 + $0x4f]] }
  0xf5   : > { %v677_v33 = vadd.f32 %v5351_v19, %v669_v39  ;;  %v933_v55 = vadd.f32 %v931_v13, %v925_v28  ;;  %v790_v47 = vadd.f32 %v789_v57, %v786_v21  ;;  %v1072_v41 = vadd.f32 %v1071_v5, %v1068_v9  ;;  %v800_v30 = vpop.permute.xlu1 %799  ;;  %s5592_s26 = sld [smem:[#allocation3 + $0x6a]] }
  0xf6   : > { %v1078_v35 = vpop.permute.xlu0 %1077  ;;  %v725_v16 = vstv %s5500_s14  ;;  %v825_v27 = vmul.f32 %v5355_v23, %v824_v59  ;;  %v1115_v1 = vmul.f32 %v5140_v12, %v1114_v62  ;;  %v1118_v2 = vstv %s5507_s16  ;;  %s7220_s14 = sld [smem:[#allocation7 + $0x12]] }
  0xf7   : > { %v683_v49 = vadd.f32 %v5394_v43, %v677_v33  ;;  %v937_v50 = vadd.f32 %v936_v0, %v933_v55  ;;  %v794_v19 = vadd.f32 %v793_v3, %v790_v47  ;;  %v1080_v32 = vadd.f32 %v1078_v35, %v1072_v41  ;;  %s7258_s16 = sld [smem:[#allocation7 + $0x52]] }
  0xf8   : > { %v983_v31 = vstv %s5514_s0  ;;  %v840_v12 = vstv %s5516_s19  ;;  %v726_v7 = vmul.f32 %v5536_v25, %v725_v16  ;;  %v837_v47 = vmul.f32 %v5152_v20, %v836_v8  ;;  %s4748_s19 = smul.u32 28, %s8107_s29  ;;  %s7086_s0 = sld [smem:[#allocation7 + $0x16]] }
  0xf9   : > { %v689_v14 = vadd.f32 %v5409_v51, %v683_v49  ;;  %v802_v43 = vadd.f32 %v800_v30, %v794_v19  ;;  %v1084_v54 = vadd.f32 %v1083_v22, %v1080_v32  ;;  %v941_v56 = vadd.f32 %v940_v29, %v937_v50  ;;  %v1094_v0 = vpop.permute.xlu1 %1093  ;;  %s7158_s29 = sld [smem:[#allocation7 + $0x6a]] }
  0xfa   : > { %v947_v57 = vpop.permute.xlu0 %946  ;;  %v972_v29 = vmul.f32 %v5355_v23, %v971_v11  ;;  %v1119_v35 = vmul.f32 %v5355_v23, %v1118_v2  ;;  %v841_v19 = vmul.f32 %v5373_v34, %v840_v12  ;;  %v852_v32 = vstv %s5531_s27  ;;  %s6425_s27 = scalar_lea.vmem %s7960_s12, %s4748_s19  ;;  %s7092_s19 = sld [smem:[#allocation7 + $0x31]] }
  0xfb   : > { %v697_v51 = vadd.f32 %v5396_v44, %v689_v14  ;;  %v806_v63 = vadd.f32 %v805_v4, %v802_v43  ;;  %v1088_v3 = vadd.f32 %v1087_v36, %v1084_v54  ;;  %v949_v5 = vadd.f32 %v947_v57, %v941_v56  ;;  %s7228_s12 = sld [smem:[#allocation7 + $0x2f]] }
  0xfc   : > { %v1130_v36 = vstv %s5522_s3  ;;  %v999_v56 = vstv %s5541_s20  ;;  %v856_v62 = vstv %s5547_s18  ;;  %s7035_s18 = sld [smem:[#allocation7 + $0x55]]  ;;  %s7094_s3 = sld [smem:[#allocation7 + $0x4c]] }
  0xfd   : > { %v703_v24 = vadd.f32 %v5424_v60, %v697_v51  ;;  %v1096_v13 = vadd.f32 %v1094_v0, %v1088_v3  ;;  %v953_v17 = vadd.f32 %v952_v45, %v949_v5  ;;  %v810_v22 = vadd.f32 %v809_v15, %v806_v63  ;;  %v963_v44 = vpop.permute.xlu1 %962  ;;  %s7096_s20 = sld [smem:[#allocation7 + $0x67]]  ;;  %7997 = sst [smem:[#allocation50_spill]] %s7220_s14 }
  0xfe   : > { %v816_v4 = vpop.permute.xlu0 %815  ;;  %v721_v60 = vmul.f32 %v5276_v40, %v720_v38  ;;  %v1131_v53 = vmul.f32 %v5152_v20, %v1130_v36  ;;  %v1134_v0 = vstv %s5543_s17  ;;  %v853_v38 = vmul.f32 %v5148_v18, %v852_v32  ;;  %s7033_s17 = sld [smem:[#allocation7 + $0x3a]]  ;;  %s7427_s14 = sld [smem:[#allocation7 + $0x27]] }
  0xff   : > { %v709_v39 = vadd.f32 %v5427_v61, %v703_v24  ;;  %v1100_v9 = vadd.f32 %v1099_v37, %v1096_v13  ;;  %v957_v28 = vadd.f32 %v956_v52, %v953_v17  ;;  %v818_v21 = vadd.f32 %v816_v4, %v810_v22  ;;  %7973 = sst [smem:[#allocation26_spill]] %s7086_s0 }
 0x100   : > { %v987_v37 = vstv %s5524_s4  ;;  %v1135_v5 = vmul.f32 %v5373_v34, %v1134_v0  ;;  %v1000_v8 = vmul.f32 %v5148_v18, %v999_v56  ;;  %v857_v16 = vmul.f32 %v5404_v48, %v856_v62  ;;  %s7064_s4 = sld [smem:[#allocation7 + $0x28]]  ;;  %7974 = sst [smem:[#allocation27_spill]] %s7092_s19 }
 0x101   : > { %v965_v6 = vadd.f32 %v963_v44, %v957_v28  ;;  %v822_v33 = vadd.f32 %v821_v58, %v818_v21  ;;  %v1104_v55 = vadd.f32 %v1103_v10, %v1100_v9  ;;  %v717_v61 = vadd.f32 %v5391_v42, %v709_v39  ;;  %v832_v41 = vpop.permute.xlu1 %831  ;;  %7988 = sst [smem:[#allocation41_spill]] %s7158_s29 }
 0x102   : > { %v1110_v30 = vpop.permute.xlu0 %1109  ;;  %v984_v42 = vmul.f32 %v5152_v20, %v983_v31  ;;  %v988_v54 = vmul.f32 %v5373_v34, %v987_v37  ;;  %v1146_v20 = vstv %s5552_s22  ;;  %v868_v24 = vstv %s5560_s23  ;;  %7968 = sst [smem:[#allocation21_spill]] %s7035_s18  ;;  %s7041_s22 = sld [smem:[#allocation8 + $0x1]] }
 0x103   : > { %v969_v45 = vadd.f32 %v968_v26, %v965_v6  ;;  %v826_v46 = vadd.f32 %v825_v27, %v822_v33  ;;  %v1112_v49 = vadd.f32 %v1110_v30, %v1104_v55  ;;  %v722_v50 = vadd.f32 %v721_v60, %v717_v61  ;;  %s7047_s23 = sld [smem:[#allocation7 + $0xd]]  ;;  %7975 = sst [smem:[#allocation28_spill]] %s7094_s3 }
 0x104   : > { %v1003_v13 = vstv %s5562_s1  ;;  %v1150_v4 = vstv %s5564_s24  ;;  %v1147_v27 = vmul.f32 %v5148_v18, %v1146_v20  ;;  %v869_v9 = vmul.f32 %v5276_v40, %v868_v24  ;;  %7967 = sst [smem:[#allocation20_spill]] %s7033_s17  ;;  %s7074_s24 = sld [smem:[#allocation7 + $0x43]] }
 0x105   : > { %v834_v23 = vadd.f32 %v832_v41, %v826_v46  ;;  %v1116_v52 = vadd.f32 %v1115_v1, %v1112_v49  ;;  %v973_v15 = vadd.f32 %v972_v29, %v969_v45  ;;  %v727_v26 = vadd.f32 %v726_v7, %v722_v50  ;;  %v1126_v14 = vpop.permute.xlu1 %1125  ;;  %v1207_v50 = vld [vmem:[%s7955_s6 + $0x8] sm:$0xff]  ;;  %7976 = sst [smem:[#allocation29_spill]] %s7096_s20  ;;  %s7138_s1 = sld [smem:[#allocation7 + $0x61]] }
 0x106   : > { %v979_v43 = vpop.permute.xlu0 %978  ;;  %v1015_v1 = vstv %s5569_s28  ;;  %v1004_v39 = vmul.f32 %v5404_v48, %v1003_v13  ;;  %v872_v29 = vstv %s5575_s15  ;;  %v1151_v31 = vmul.f32 %v5404_v48, %v1150_v4  ;;  %7970 = sst [smem:[#allocation23_spill]] %s7064_s4  ;;  %s7076_s28 = sld [smem:[#allocation7 + $0x5e]] }
 0x107   : > { %v838_v57 = vadd.f32 %v837_v47, %v834_v23  ;;  %v1120_v58 = vadd.f32 %v1119_v35, %v1116_v52  ;;  %v981_v59 = vadd.f32 %v979_v43, %v973_v15  ;;  %v1019_v18 = vstv %s5578_s30  ;;  %v1206_v15 = vld [vmem:[%s7955_s6] sm:$0xff]  ;;  %s7015_s30 = sld [smem:[#allocation8]]  ;;  %s7184_s15 = sld [smem:[#allocation7 + $0xb]] }
 0x108   : > { %v1016_v33 = vmul.f32 %v5276_v40, %v1015_v1  ;;  %v873_v41 = vmul.f32 %v5536_v25, %v872_v29  ;;  %v1162_v36 = vstv %s5587_s21  ;;  %v1020_v37 = vmul.f32 %v5536_v25, %v1019_v18  ;;  %v1220_v29 = vld [vmem:[%s7955_s6 + $0x70] sm:$0xff]  ;;  %s7017_s21 = sld [smem:[#allocation7 + $0x4]] }
 0x109   : > { %v1128_v51 = vadd.f32 %v1126_v14, %v1120_v58  ;;  %v985_v63 = vadd.f32 %v984_v42, %v981_v59  ;;  %v842_v3 = vadd.f32 %v841_v19, %v838_v57  ;;  %v995_v10 = vpop.permute.xlu1 %994  ;;  %v1166_v42 = vstv %s5592_s26  ;;  %s7019_s26 = sld [smem:[#allocation7 + $0x1f]]  ;;  %7969 = sst [smem:[#allocation22_spill]] %s7047_s23 }
 0x10a   : > { %v848_v11 = vpop.permute.xlu0 %847  ;;  %v1163_v52 = vmul.f32 %v5276_v40, %v1162_v36  ;;  %v1167_v56 = vmul.f32 %v5536_v25, %v1166_v42  ;;  %v1208_v40 = vld [vmem:[%s7955_s6 + $0x10] sm:$0xff]  ;;  %7971 = sst [smem:[#allocation24_spill]] %s7074_s24 }
 0x10b   : > { %v1132_v17 = vadd.f32 %v1131_v53, %v1128_v51  ;;  %v989_v22 = vadd.f32 %v988_v54, %v985_v63  ;;  %v850_v44 = vadd.f32 %v848_v11, %v842_v3  ;;  %v1212_v25 = vld [vmem:[%s7955_s6 + $0x30] sm:$0xff]  ;;  %v1209_v51 = vld [vmem:[%s7955_s6 + $0x18] sm:$0xff]  ;;  %v1211_v11 = vld [vmem:[%s7955_s6 + $0x28] sm:$0xff]  ;;  %7984 = sst [smem:[#allocation37_spill]] %s7138_s1 }
 0x10c   : > { %v1224_v36 = vld [vmem:[%s7955_s6 + $0x90] sm:$0xff]  ;;  %7972 = sst [smem:[#allocation25_spill]] %s7076_s28 }
 0x10d   : > { %v997_v34 = vadd.f32 %v995_v10, %v989_v22  ;;  %v854_v2 = vadd.f32 %v853_v38, %v850_v44  ;;  %v1136_v60 = vadd.f32 %v1135_v5, %v1132_v17  ;;  %v864_v28 = vpop.permute.xlu1 %863  ;;  %v1214_v10 = vld [vmem:[%s7955_s6 + $0x40] sm:$0xff]  ;;  %v1216_v22 = vld [vmem:[%s7955_s6 + $0x50] sm:$0xff]  ;;  %v1213_v44 = vld [vmem:[%s7955_s6 + $0x38] sm:$0xff]  ;;  %7999 = sst [smem:[#allocation52_spill]] %s7228_s12  ;;  %s7256_s12 = sld [smem:[#allocation7 + $0x38]] }
 0x10e   : > { %v1142_v21 = vpop.permute.xlu0 %1141  ;;  %7965 = sst [smem:[#allocation18_spill]] %s7017_s21 }
 0x10f   : > { %v1001_v12 = vadd.f32 %v1000_v8, %v997_v34  ;;  %v858_v7 = vadd.f32 %v857_v16, %v854_v2  ;;  %v1144_v6 = vadd.f32 %v1142_v21, %v1136_v60  ;;  %v1218_v2 = vld [vmem:[%s7955_s6 + $0x60] sm:$0xff]  ;;  %v1215_v60 = vld [vmem:[%s7955_s6 + $0x48] sm:$0xff]  ;;  %7966 = sst [smem:[#allocation19_spill]] %s7019_s26 }
 0x110   : > { %8045 = sst [smem:[#allocation22_spill]] %s7427_s14 }
 0x111   : > { %v866_v55 = vadd.f32 %v864_v28, %v858_v7  ;;  %v1148_v61 = vadd.f32 %v1147_v27, %v1144_v6  ;;  %v1005_v47 = vadd.f32 %v1004_v39, %v1001_v12  ;;  %v733_v30 = vpop.permute.xlu1 %732 }
 0x112   : > { %v1011_v35 = vpop.permute.xlu0 %1010  ;;  %v735_v46 = vadd.f32 %v733_v30, %v727_v26  ;;  %v1210_v26 = vld [vmem:[%s7955_s6 + $0x20] sm:$0xff] }
 0x113   : > { %v870_v45 = vadd.f32 %v869_v9, %v866_v55  ;;  %v1013_v48 = vadd.f32 %v1011_v35, %v1005_v47  ;;  %v1152_v49 = vadd.f32 %v1151_v31, %v1148_v61  ;;  %v1217_v31 = vld [vmem:[%s7955_s6 + $0x58] sm:$0xff]  ;;  %v1219_v55 = vld [vmem:[%s7955_s6 + $0x68] sm:$0xff]  ;;  %8005 = sst [smem:[#allocation57_spill]] %s7256_s12 }
 0x114   : > { %v5607_v19 = vmax.f32 %v735_v46, 0.0 }
 0x115   : > { %v1017_v32 = vadd.f32 %v1016_v33, %v1013_v48  ;;  %v5609_v23 = vadd.f32 %v873_v41, %v870_v45  ;;  %v1222_v33 = vld [vmem:[%s7955_s6 + $0x80] sm:$0xff]  ;;  %v880_v41 = vpop.permute.xlu1 %879 }
 0x116   : > { %v1158_v53 = vpop.permute.xlu0 %1157  ;;  %v1235_v54 = vmul.f32 %v1207_v50, %v5607_v19  ;;  %v1234_v0 = vmul.f32 %v1206_v15, %v5607_v19  ;;  %v1238_v59 = vmul.f32 %v1210_v26, %v5607_v19  ;;  %v1236_v38 = vmul.f32 %v1208_v40, %v5607_v19  ;;  %v1225_v40 = vld [vmem:[%s7955_s6 + $0x98] sm:$0xff] }
 0x117   : > { %v1160_v14 = vadd.f32 %v1158_v53, %v1152_v49  ;;  %v5618_v43 = vadd.f32 %v1020_v37, %v1017_v32  ;;  %v1240_v3 = vmul.f32 %v1212_v25, %v5607_v19  ;;  %v1237_v8 = vmul.f32 %v1209_v51, %v5607_v19  ;;  %v1221_v37 = vld [vmem:[%s7955_s6 + $0x78] sm:$0xff]  ;;  %v1226_v32 = vld [vmem:[%s7955_s6 + $0xa0] sm:$0xff] }
 0x118   : > { %v1266_v58 = vsel %vm1262_vm0, %v1235_v54, 0.0  ;;  %v1263_v62 = vsel %vm1262_vm0, %v1234_v0, 0.0  ;;  %v1275_v63 = vsel %vm1262_vm0, %v1238_v59, 0.0  ;;  %v1269_v5 = vsel %vm1262_vm0, %v1236_v38, 0.0  ;;  %v4464_v38 = vld [vmem:[%s7955_s6 + $0x1c0] sm:$0xff] }
 0x119   : > { %v1164_v57 = vadd.f32 %v1163_v52, %v1160_v14  ;;  %1267 = vadd.xlane.f32.xlu1 %v1266_v58  ;;  %1264 = vadd.xlane.f32.xlu0 %v1263_v62  ;;  %v1281_v16 = vsel %vm1262_vm0, %v1240_v3, 0.0  ;;  %v1242_v24 = vmul.f32 %v1214_v10, %v5607_v19  ;;  %v1272_v13 = vsel %vm1262_vm0, %v1237_v8, 0.0  ;;  %v1223_v52 = vld [vmem:[%s7955_s6 + $0x88] sm:$0xff]  ;;  %v1174_v58 = vpop.permute.xlu1 %1173  ;;  %v4436_v25 = vld [vmem:[%s7955_s6 + $0xe0] sm:$0xff]  ;;  %v4439_v10 = vld [vmem:[%s7955_s6 + $0xf8] sm:$0xff] }
 0x11a   : > { %v1239_v17 = vmul.f32 %v1211_v11, %v5607_v19  ;;  %v1244_v27 = vmul.f32 %v1216_v22, %v5607_v19  ;;  %v1241_v34 = vmul.f32 %v1213_v44, %v5607_v19  ;;  %v1246_v9 = vmul.f32 %v1218_v2, %v5607_v19  ;;  %v1027_v49 = vpop.permute.xlu0 %1026  ;;  %v4438_v11 = vld [vmem:[%s7955_s6 + $0xf0] sm:$0xff]  ;;  %v4492_v22 = vld [vmem:[%s7955_s6 + $0x2a0] sm:$0xff]  ;;  %v4465_v44 = vld [vmem:[%s7955_s6 + $0x1c8] sm:$0xff] }
 0x11b   : > { %v5633_v20 = vadd.f32 %v1167_v56, %v1164_v57  ;;  %v1287_v4 = vsel %vm1262_vm0, %v1242_v24, 0.0  ;;  %v1243_v21 = vmul.f32 %v1215_v60, %v5607_v19  ;;  %v1248_v7 = vmul.f32 %v1220_v29, %v5607_v19  ;;  %v4437_v56 = vld [vmem:[%s7955_s6 + $0xe8] sm:$0xff]  ;;  %v4440_v2 = vld [vmem:[%s7955_s6 + $0x100] sm:$0xff]  ;;  %v4466_v60 = vld [vmem:[%s7955_s6 + $0x1d0] sm:$0xff] }
 0x11c   : > { %v1278_v1 = vsel %vm1262_vm0, %v1239_v17, 0.0  ;;  %v1293_v39 = vsel %vm1262_vm0, %v1244_v27, 0.0  ;;  %v1284_v28 = vsel %vm1262_vm0, %v1241_v34, 0.0  ;;  %v1299_v12 = vsel %vm1262_vm0, %v1246_v9, 0.0  ;;  %v4494_v29 = vld [vmem:[%s7955_s6 + $0x2b0] sm:$0xff] }
 0x11d   : > { %1276 = vadd.xlane.f32.xlu1 %v1275_v63  ;;  %1270 = vadd.xlane.f32.xlu0 %v1269_v5  ;;  %v1290_v6 = vsel %vm1262_vm0, %v1243_v21, 0.0  ;;  %v1245_v18 = vmul.f32 %v1217_v31, %v5607_v19  ;;  %v1305_v61 = vsel %vm1262_vm0, %v1248_v7, 0.0  ;;  %v1250_v47 = vmul.f32 %v1222_v33, %v5607_v19  ;;  %v4493_v31 = vld [vmem:[%s7955_s6 + $0x2a8] sm:$0xff]  ;;  %v4468_v33 = vld [vmem:[%s7955_s6 + $0x1e0] sm:$0xff] }
 0x11e   : > { %v1247_v35 = vmul.f32 %v1219_v55, %v5607_v19  ;;  %v882_v45 = vadd.f32 %v880_v41, %v5609_v23  ;;  %v1252_v48 = vmul.f32 %v1224_v36, %v5607_v19  ;;  %v1249_v42 = vmul.f32 %v1221_v37, %v5607_v19  ;;  %v4467_v55 = vld [vmem:[%s7955_s6 + $0x1d8] sm:$0xff]  ;;  %v4441_v36 = vld [vmem:[%s7955_s6 + $0x108] sm:$0xff] }
 0x11f   : > { %v1296_v30 = vsel %vm1262_vm0, %v1245_v18, 0.0  ;;  %v1311_v46 = vsel %vm1262_vm0, %v1250_v47, 0.0  ;;  %v1029_v15 = vadd.f32 %v1027_v49, %v5618_v43  ;;  %v1254_v26 = vmul.f32 %v1226_v32, %v5607_v19  ;;  %v4496_v49 = vld [vmem:[%s7955_s6 + $0x2c0] sm:$0xff] }
 0x120   : > { %v1302_v50 = vsel %vm1262_vm0, %v1247_v35, 0.0  ;;  %v5709_v23 = vmax.f32 %v882_v45, 0.0  ;;  %v1317_v53 = vsel %vm1262_vm0, %v1252_v48, 0.0  ;;  %v1308_v14 = vsel %vm1262_vm0, %v1249_v42, 0.0  ;;  %v4442_v35 = vld [vmem:[%s7955_s6 + $0x110] sm:$0xff] }
 0x121   : > { %1282 = vadd.xlane.f32.xlu1 %v1281_v16  ;;  %1273 = vadd.xlane.f32.xlu0 %v1272_v13  ;;  %v1251_v54 = vmul.f32 %v1223_v52, %v5607_v19  ;;  %v5722_v0 = vmax.f32 %v1029_v15, 0.0  ;;  %v1323_v43 = vsel %vm1262_vm0, %v1254_v26, 0.0  ;;  %v1253_v62 = vmul.f32 %v1225_v40, %v5607_v19  ;;  %v4469_v26 = vld [vmem:[%s7955_s6 + $0x1e8] sm:$0xff] }
 0x122   : > { %v1573_v57 = vmul.f32 %v4437_v56, %v5709_v23  ;;  %v1176_v51 = vadd.f32 %v1174_v58, %v5633_v20  ;;  %v1572_v8 = vmul.f32 %v4436_v25, %v5709_v23  ;;  %v1575_v24 = vmul.f32 %v4439_v10, %v5709_v23  ;;  %v4498_v25 = vld [vmem:[%s7955_s6 + $0x2d0] sm:$0xff]  ;;  %v4472_v10 = vld [vmem:[%s7955_s6 + $0x200] sm:$0xff] }
 0x123   : > { %v1314_v59 = vsel %vm1262_vm0, %v1251_v54, 0.0  ;;  %v1909_v3 = vmul.f32 %v4464_v38, %v5722_v0  ;;  %v1320_v5 = vsel %vm1262_vm0, %v1253_v62, 0.0  ;;  %v1574_v17 = vmul.f32 %v4438_v11, %v5709_v23  ;;  %v4471_v11 = vld [vmem:[%s7955_s6 + $0x1f8] sm:$0xff] }
 0x124   : > { %v1603_v63 = vsel %vm1262_vm0, %v1573_v57, 0.0  ;;  %v5745_v16 = vmax.f32 %v1176_v51, 0.0  ;;  %v1600_v13 = vsel %vm1262_vm0, %v1572_v8, 0.0  ;;  %v1910_v34 = vmul.f32 %v4465_v44, %v5722_v0  ;;  %v4443_v57 = vld [vmem:[%s7955_s6 + $0x118] sm:$0xff]  ;;  %v4497_v51 = vld [vmem:[%s7955_s6 + $0x2c8] sm:$0xff] }
 0x125   : > { %1288 = vadd.xlane.f32.xlu1 %v1287_v4  ;;  %1279 = vadd.xlane.f32.xlu0 %v1278_v1  ;;  %v1937_v20 = vsel %vm1262_vm0, %v1909_v3, 0.0  ;;  %v1609_v4 = vsel %vm1262_vm0, %v1575_v24, 0.0  ;;  %v1606_v1 = vsel %vm1262_vm0, %v1574_v17, 0.0  ;;  %v1576_v9 = vmul.f32 %v4440_v2, %v5709_v23  ;;  %v4445_v44 = vld [vmem:[%s7955_s6 + $0x128] sm:$0xff]  ;;  %v4500_v2 = vld [vmem:[%s7955_s6 + $0x2e0] sm:$0xff] }
 0x126   : > { %v2246_v27 = vmul.f32 %v4492_v22, %v5745_v16  ;;  %v1911_v21 = vmul.f32 %v4466_v60, %v5722_v0  ;;  %v2248_v7 = vmul.f32 %v4494_v29, %v5745_v16  ;;  %v2247_v18 = vmul.f32 %v4493_v31, %v5745_v16  ;;  %v4446_v22 = vld [vmem:[%s7955_s6 + $0x130] sm:$0xff]  ;;  %v4499_v60 = vld [vmem:[%s7955_s6 + $0x2d8] sm:$0xff]  ;;  %v4473_v31 = vld [vmem:[%s7955_s6 + $0x208] sm:$0xff] }
 0x127   : > { %v1913_v47 = vmul.f32 %v4468_v33, %v5722_v0  ;;  %v1578_v45 = vmul.f32 %v4442_v35, %v5709_v23  ;;  %v1577_v48 = vmul.f32 %v4441_v36, %v5709_v23  ;;  %v2250_v32 = vmul.f32 %v4496_v49, %v5745_v16  ;;  %v4474_v29 = vld [vmem:[%s7955_s6 + $0x210] sm:$0xff]  ;;  %v4448_v33 = vld [vmem:[%s7955_s6 + $0x140] sm:$0xff]  ;;  %v4501_v36 = vld [vmem:[%s7955_s6 + $0x2e8] sm:$0xff] }
 0x128   : > { %v2277_v41 = vsel %vm1262_vm0, %v2247_v18, 0.0  ;;  %v1914_v40 = vmul.f32 %v4469_v26, %v5722_v0  ;;  %v1579_v38 = vmul.f32 %v4443_v57, %v5709_v23  ;;  %v2252_v3 = vmul.f32 %v4498_v25, %v5745_v16  ;;  %v4502_v35 = vld [vmem:[%s7955_s6 + $0x2f0] sm:$0xff]  ;;  %v4476_v49 = vld [vmem:[%s7955_s6 + $0x220] sm:$0xff]  ;;  %v4449_v26 = vld [vmem:[%s7955_s6 + $0x148] sm:$0xff] }
 0x129   : > { %1294 = vadd.xlane.f32.xlu1 %v1293_v39  ;;  %1285 = vadd.xlane.f32.xlu0 %v1284_v28  ;;  %v2274_v39 = vsel %vm1262_vm0, %v2246_v27, 0.0  ;;  %v1940_v28 = vsel %vm1262_vm0, %v1910_v34, 0.0  ;;  %v1949_v37 = vsel %vm1262_vm0, %v1913_v47, 0.0  ;;  %v1618_v42 = vsel %vm1262_vm0, %v1578_v45, 0.0  ;;  %v4503_v57 = vld [vmem:[%s7955_s6 + $0x2f8] sm:$0xff]  ;;  %v4478_v25 = vld [vmem:[%s7955_s6 + $0x230] sm:$0xff] }
 0x12a   : > { %v1615_v52 = vsel %vm1262_vm0, %v1577_v48, 0.0  ;;  %v1952_v62 = vsel %vm1262_vm0, %v1914_v40, 0.0  ;;  %v2251_v8 = vmul.f32 %v4497_v51, %v5745_v16  ;;  %v1917_v24 = vmul.f32 %v4472_v10, %v5722_v0 }
 0x12b   : > { %v1916_v17 = vmul.f32 %v4471_v11, %v5722_v0  ;;  %v1582_v27 = vmul.f32 %v4446_v22, %v5709_v23  ;;  %v1581_v34 = vmul.f32 %v4445_v44, %v5709_v23  ;;  %v1918_v18 = vmul.f32 %v4473_v31, %v5722_v0  ;;  %v4452_v11 = vld [vmem:[%s7955_s6 + $0x160] sm:$0xff]  ;;  %v4506_v44 = vld [vmem:[%s7955_s6 + $0x310] sm:$0xff] }
 0x12c   : > { %v1584_v47 = vmul.f32 %v4448_v33, %v5709_v23  ;;  %v2256_v45 = vmul.f32 %v4502_v35, %v5745_v16  ;;  %v2255_v48 = vmul.f32 %v4501_v36, %v5745_v16  ;;  %v1585_v40 = vmul.f32 %v4449_v26, %v5709_v23  ;;  %v4454_v31 = vld [vmem:[%s7955_s6 + $0x170] sm:$0xff] }
 0x12d   : > { %1300 = vadd.xlane.f32.xlu1 %v1299_v12  ;;  %1291 = vadd.xlane.f32.xlu0 %v1290_v6  ;;  %v1612_v12 = vsel %vm1262_vm0, %v1576_v9, 0.0  ;;  %v1943_v6 = vsel %vm1262_vm0, %v1911_v21, 0.0  ;;  %v2254_v9 = vmul.f32 %v4500_v2, %v5745_v16  ;;  %v2253_v21 = vmul.f32 %v4499_v60, %v5745_v16  ;;  %v4480_v60 = vld [vmem:[%s7955_s6 + $0x240] sm:$0xff]  ;;  %v4482_v36 = vld [vmem:[%s7955_s6 + $0x250] sm:$0xff] }
 0x12e   : > { %v4938_v51 = vmov 0  }
 0x12f   : > { %4804 = vset.pattern.permute.xlu0 %v4938_v51  ;;  %4803 = vset.pattern.permute.xlu1 %v4938_v51 }
 0x131   : > { %1306 = vadd.xlane.f32.xlu1 %v1305_v61  ;;  %1297 = vadd.xlane.f32.xlu0 %v1296_v30  ;;  %v2280_v61 = vsel %vm1262_vm0, %v2248_v7, 0.0  ;;  %v1912_v30 = vmul.f32 %v4467_v55, %v5722_v0  ;;  %v1919_v7 = vmul.f32 %v4474_v29, %v5722_v0  ;;  %v4447_v55 = vld [vmem:[%s7955_s6 + $0x138] sm:$0xff] }
 0x135   : > { %1312 = vadd.xlane.f32.xlu1 %v1311_v46  ;;  %1303 = vadd.xlane.f32.xlu0 %v1302_v50  ;;  %v1946_v46 = vsel %vm1262_vm0, %v1912_v30, 0.0  ;;  %v4495_v50 = vld [vmem:[%s7955_s6 + $0x2b8] sm:$0xff]  ;;  %v1583_v30 = vmul.f32 %v4447_v55, %v5709_v23  ;;  %v4508_v55 = vld [vmem:[%s7955_s6 + $0x320] sm:$0xff] }
 0x136   : > { %v2249_v15 = vmul.f32 %v4495_v50, %v5745_v16  ;;  %v4475_v50 = vld [vmem:[%s7955_s6 + $0x218] sm:$0xff] }
 0x138   : > { %v2283_v56 = vsel %vm1262_vm0, %v2249_v15, 0.0  ;;  %v1920_v15 = vmul.f32 %v4475_v50, %v5722_v0  ;;  %v4483_v50 = vld [vmem:[%s7955_s6 + $0x258] sm:$0xff] }
 0x139   : > { %1318 = vadd.xlane.f32.xlu1 %v1317_v53  ;;  %1309 = vadd.xlane.f32.xlu0 %v1308_v14  ;;  %v4470_v53 = vld [vmem:[%s7955_s6 + $0x1f0] sm:$0xff]  ;;  %v2286_v14 = vsel %vm1262_vm0, %v2250_v32, 0.0  ;;  %v1921_v32 = vmul.f32 %v4476_v49, %v5722_v0  ;;  %v4455_v49 = vld [vmem:[%s7955_s6 + $0x178] sm:$0xff] }
 0x13a   : > { %v1915_v54 = vmul.f32 %v4470_v53, %v5722_v0  ;;  %v4450_v53 = vld [vmem:[%s7955_s6 + $0x150] sm:$0xff] }
 0x13c   : > { %v1955_v58 = vsel %vm1262_vm0, %v1915_v54, 0.0  ;;  %v1586_v54 = vmul.f32 %v4450_v53, %v5709_v23 }
 0x13d   : > { %1324 = vadd.xlane.f32.xlu1 %v1323_v43  ;;  %1315 = vadd.xlane.f32.xlu0 %v1314_v59  ;;  %v4444_v43 = vld [vmem:[%s7955_s6 + $0x120] sm:$0xff] }
 0x13e   : > { %v1580_v59 = vmul.f32 %v4444_v43, %v5709_v23  ;;  %v4504_v43 = vld [vmem:[%s7955_s6 + $0x300] sm:$0xff] }
 0x141   : > { %1604 = vadd.xlane.f32.xlu1 %v1603_v63  ;;  %1321 = vadd.xlane.f32.xlu0 %v1320_v5  ;;  %v1624_v63 = vsel %vm1262_vm0, %v1580_v59, 0.0  ;;  %v1621_v5 = vsel %vm1262_vm0, %v1579_v38, 0.0  ;;  %v2258_v59 = vmul.f32 %v4504_v43, %v5745_v16  ;;  %v2257_v38 = vmul.f32 %v4503_v57, %v5745_v16  ;;  %v4484_v57 = vld [vmem:[%s7955_s6 + $0x260] sm:$0xff] }
 0x142   : > { %v1928_v43 = vmul.f32 %v4483_v50, %v5722_v0 }
 0x145   : > { %1938 = vadd.xlane.f32.xlu1 %v1937_v20  ;;  %1601 = vadd.xlane.f32.xlu0 %v1600_v13  ;;  %v2292_v20 = vsel %vm1262_vm0, %v2252_v3, 0.0  ;;  %v2289_v13 = vsel %vm1262_vm0, %v2251_v8, 0.0  ;;  %v2310_v3 = vsel %vm1262_vm0, %v2258_v59, 0.0  ;;  %v2307_v8 = vsel %vm1262_vm0, %v2257_v38, 0.0  ;;  %v4510_v38 = vld [vmem:[%s7955_s6 + $0x330] sm:$0xff] }
 0x149   : > { %1610 = vadd.xlane.f32.xlu1 %v1609_v4  ;;  %1607 = vadd.xlane.f32.xlu0 %v1606_v1  ;;  %v1961_v4 = vsel %vm1262_vm0, %v1917_v24, 0.0  ;;  %v1958_v1 = vsel %vm1262_vm0, %v1916_v17, 0.0 }
 0x14d   : > { %2275 = vadd.xlane.f32.xlu1 %v2274_v39  ;;  %1941 = vadd.xlane.f32.xlu0 %v1940_v28  ;;  %v1630_v39 = vsel %vm1262_vm0, %v1582_v27, 0.0  ;;  %v1627_v28 = vsel %vm1262_vm0, %v1581_v34, 0.0 }
 0x151   : > { %1613 = vadd.xlane.f32.xlu1 %v1612_v12  ;;  %1944 = vadd.xlane.f32.xlu0 %v1943_v6  ;;  %v2298_v12 = vsel %vm1262_vm0, %v2254_v9, 0.0  ;;  %v2295_v6 = vsel %vm1262_vm0, %v2253_v21, 0.0 }
 0x155   : > { %2281 = vadd.xlane.f32.xlu1 %v2280_v61  ;;  %2278 = vadd.xlane.f32.xlu0 %v2277_v41  ;;  %v1967_v61 = vsel %vm1262_vm0, %v1919_v7, 0.0  ;;  %v1964_v41 = vsel %vm1262_vm0, %v1918_v18, 0.0 }
 0x159   : > { %1950 = vadd.xlane.f32.xlu1 %v1949_v37  ;;  %1947 = vadd.xlane.f32.xlu0 %v1946_v46  ;;  %v1636_v37 = vsel %vm1262_vm0, %v1584_v47, 0.0  ;;  %v1633_v46 = vsel %vm1262_vm0, %v1583_v30, 0.0 }
 0x15d   : > { %1619 = vadd.xlane.f32.xlu1 %v1618_v42  ;;  %1616 = vadd.xlane.f32.xlu0 %v1615_v52  ;;  %v2304_v42 = vsel %vm1262_vm0, %v2256_v45, 0.0  ;;  %v2301_v52 = vsel %vm1262_vm0, %v2255_v48, 0.0  ;;  %v4481_v45 = vld [vmem:[%s7955_s6 + $0x248] sm:$0xff] }
 0x15e   : > { %v1926_v26 = vmul.f32 %v4481_v45, %v5722_v0 }
 0x161   : > { %2287 = vadd.xlane.f32.xlu1 %v2286_v14  ;;  %2284 = vadd.xlane.f32.xlu0 %v2283_v56  ;;  %v1973_v14 = vsel %vm1262_vm0, %v1921_v32, 0.0  ;;  %v1970_v56 = vsel %vm1262_vm0, %v1920_v15, 0.0  ;;  %v1927_v32 = vmul.f32 %v4482_v36, %v5722_v0  ;;  %v1228_v15 = vld [vmem:[%s7955_s6 + $0xb0] sm:$0xff] }
 0x163   : > { %v1991_v51 = vsel %vm1262_vm0, %v1927_v32, 0.0 }
 0x165   : > { %1956 = vadd.xlane.f32.xlu1 %v1955_v58  ;;  %1953 = vadd.xlane.f32.xlu0 %v1952_v62  ;;  %v1642_v58 = vsel %vm1262_vm0, %v1586_v54, 0.0  ;;  %v1639_v62 = vsel %vm1262_vm0, %v1585_v40, 0.0  ;;  %v4456_v54 = vld [vmem:[%s7955_s6 + $0x180] sm:$0xff]  ;;  %v1591_v40 = vmul.f32 %v4455_v49, %v5709_v23 }
 0x169   : > { %1625 = vadd.xlane.f32.xlu1 %v1624_v63  ;;  %1622 = vadd.xlane.f32.xlu0 %v1621_v5  ;;  %v4477_v63 = vld [vmem:[%s7955_s6 + $0x228] sm:$0xff]  ;;  %v1923_v5 = vmul.f32 %v4478_v25, %v5722_v0  ;;  %v1229_v25 = vld [vmem:[%s7955_s6 + $0xb8] sm:$0xff] }
 0x16a   : > { %v1922_v10 = vmul.f32 %v4477_v63, %v5722_v0  ;;  %v1592_v63 = vmul.f32 %v4456_v54, %v5709_v23 }
 0x16b   : > { %v1979_v24 = vsel %vm1262_vm0, %v1923_v5, 0.0  ;;  %v4485_v5 = vld [vmem:[%s7955_s6 + $0x268] sm:$0xff] }
 0x16c   : > { %v1976_v17 = vsel %vm1262_vm0, %v1922_v10, 0.0 }
 0x16d   : > { %2293 = vadd.xlane.f32.xlu1 %v2292_v20  ;;  %2290 = vadd.xlane.f32.xlu0 %v2289_v13  ;;  %v4451_v20 = vld [vmem:[%s7955_s6 + $0x158] sm:$0xff]  ;;  %v1588_v13 = vmul.f32 %v4452_v11, %v5709_v23  ;;  %v1929_v11 = vmul.f32 %v4484_v57, %v5722_v0 }
 0x16e   : > { %v1587_v22 = vmul.f32 %v4451_v20, %v5709_v23  ;;  %v4511_v20 = vld [vmem:[%s7955_s6 + $0x338] sm:$0xff] }
 0x16f   : > { %v1648_v27 = vsel %vm1262_vm0, %v1588_v13, 0.0  ;;  %v4458_v13 = vld [vmem:[%s7955_s6 + $0x190] sm:$0xff] }
 0x170   : > { %v1645_v34 = vsel %vm1262_vm0, %v1587_v22, 0.0  ;;  %v1657_v22 = vsel %vm1262_vm0, %v1591_v40, 0.0 }
 0x171   : > { %1962 = vadd.xlane.f32.xlu1 %v1961_v4  ;;  %1959 = vadd.xlane.f32.xlu0 %v1958_v1  ;;  %v4505_v4 = vld [vmem:[%s7955_s6 + $0x308] sm:$0xff]  ;;  %v2260_v1 = vmul.f32 %v4506_v44, %v5745_v16  ;;  %v1994_v44 = vsel %vm1262_vm0, %v1928_v43, 0.0 }
 0x172   : > { %v2259_v2 = vmul.f32 %v4505_v4, %v5745_v16  ;;  %v2264_v4 = vmul.f32 %v4510_v38, %v5745_v16 }
 0x173   : > { %v2316_v9 = vsel %vm1262_vm0, %v2260_v1, 0.0  ;;  %v4486_v1 = vld [vmem:[%s7955_s6 + $0x270] sm:$0xff] }
 0x174   : > { %v2313_v21 = vsel %vm1262_vm0, %v2259_v2, 0.0  ;;  %v1231_v2 = vld [vmem:[%s7955_s6 + $0xc8] sm:$0xff]  ;;  %v6112_v45 = vsel %vm1262_vm0, %v2264_v4, 0.0 }
 0x175   : > { %1631 = vadd.xlane.f32.xlu1 %v1630_v39  ;;  %1628 = vadd.xlane.f32.xlu0 %v1627_v28  ;;  %v4479_v39 = vld [vmem:[%s7955_s6 + $0x238] sm:$0xff]  ;;  %v1925_v28 = vmul.f32 %v4480_v60, %v5722_v0 }
 0x176   : > { %v1924_v29 = vmul.f32 %v4479_v39, %v5722_v0 }
 0x177   : > { %v1985_v7 = vsel %vm1262_vm0, %v1925_v28, 0.0 }
 0x178   : > { %v1982_v18 = vsel %vm1262_vm0, %v1924_v29, 0.0  ;;  %v4459_v29 = vld [vmem:[%s7955_s6 + $0x198] sm:$0xff] }
 0x179   : > { %2299 = vadd.xlane.f32.xlu1 %v2298_v12  ;;  %2296 = vadd.xlane.f32.xlu0 %v2295_v6  ;;  %v4453_v12 = vld [vmem:[%s7955_s6 + $0x168] sm:$0xff]  ;;  %v1590_v6 = vmul.f32 %v4454_v31, %v5709_v23  ;;  %v4487_v31 = vld [vmem:[%s7955_s6 + $0x278] sm:$0xff]  ;;  %v1595_v49 = vmul.f32 %v4459_v29, %v5709_v23 }
 0x17a   : > { %v1589_v33 = vmul.f32 %v4453_v12, %v5709_v23  ;;  %v6089_v12 = vsel %vm1262_vm0, %v1592_v63, 0.0  ;;  %v1932_v50 = vmul.f32 %v4487_v31, %v5722_v0  ;;  %v4461_v63 = vld [vmem:[%s7955_s6 + $0x1a8] sm:$0xff] }
 0x17b   : > { %v1654_v47 = vsel %vm1262_vm0, %v1590_v6, 0.0  ;;  %v4517_v29 = vld [vmem:[%s7955_s6 + $0x368] sm:$0xff] }
 0x17c   : > { %v1651_v30 = vsel %vm1262_vm0, %v1589_v33, 0.0  ;;  %v4513_v33 = vld [vmem:[%s7955_s6 + $0x348] sm:$0xff] }
 0x17d   : > { %1968 = vadd.xlane.f32.xlu1 %v1967_v61  ;;  %1965 = vadd.xlane.f32.xlu0 %v1964_v41  ;;  %v4507_v61 = vld [vmem:[%s7955_s6 + $0x318] sm:$0xff]  ;;  %v2262_v41 = vmul.f32 %v4508_v55, %v5745_v16  ;;  %v1232_v55 = vld [vmem:[%s7955_s6 + $0xd0] sm:$0xff] }
 0x17e   : > { %v2261_v35 = vmul.f32 %v4507_v61, %v5745_v16  ;;  %v6101_v61 = vsel %vm1262_vm0, %v1929_v11, 0.0  ;;  %v6171_v11 = vsel %vm1262_vm0, %v1932_v50, 0.0  ;;  %v2271_v50 = vmul.f32 %v4517_v29, %v5745_v16 }
 0x180   : > { %v2319_v53 = vsel %vm1262_vm0, %v2261_v35, 0.0  ;;  %v4460_v35 = vld [vmem:[%s7955_s6 + $0x1a0] sm:$0xff] }
 0x181   : > { %1637 = vadd.xlane.f32.xlu1 %v1636_v37  ;;  %1634 = vadd.xlane.f32.xlu0 %v1633_v46  ;;  %v1227_v46 = vld [vmem:[%s7955_s6 + $0xa8] sm:$0xff]  ;;  %v1596_v57 = vmul.f32 %v4460_v35, %v5709_v23 }
 0x185   : > { %2305 = vadd.xlane.f32.xlu1 %v2304_v42  ;;  %2302 = vadd.xlane.f32.xlu0 %v2301_v52  ;;  %v2322_v42 = vsel %vm1262_vm0, %v2262_v41, 0.0  ;;  %v4509_v52 = vld [vmem:[%s7955_s6 + $0x328] sm:$0xff] }
 0x186   : > { %v2263_v59 = vmul.f32 %v4509_v52, %v5745_v16 }
 0x188   : > { %v2325_v39 = vsel %vm1262_vm0, %v2263_v59, 0.0  ;;  %v1233_v59 = vld [vmem:[%s7955_s6 + $0xd8] sm:$0xff] }
 0x189   : > { %1974 = vadd.xlane.f32.xlu1 %v1973_v14  ;;  %1971 = vadd.xlane.f32.xlu0 %v1970_v56  ;;  %v1255_v14 = vmul.f32 %v1227_v46, %v5607_v19 }
 0x18b   : > { %v1326_v10 = vsel %vm1262_vm0, %v1255_v14, 0.0  ;;  %v4514_v14 = vld [vmem:[%s7955_s6 + $0x350] sm:$0xff] }
 0x18d   : > { %1643 = vadd.xlane.f32.xlu1 %v1642_v58  ;;  %1640 = vadd.xlane.f32.xlu0 %v1639_v62  ;;  %v1256_v62 = vmul.f32 %v1228_v15, %v5607_v19 }
 0x191   : > { %2311 = vadd.xlane.f32.xlu1 %v2310_v3  ;;  %2308 = vadd.xlane.f32.xlu0 %v2307_v8  ;;  %v4457_v3 = vld [vmem:[%s7955_s6 + $0x188] sm:$0xff]  ;;  %v1988_v8 = vsel %vm1262_vm0, %v1926_v26, 0.0  ;;  %v1260_v26 = vmul.f32 %v1232_v55, %v5607_v19 }
 0x192   : > { %v1593_v28 = vmul.f32 %v4457_v3, %v5709_v23  ;;  %v4489_v3 = vld [vmem:[%s7955_s6 + $0x288] sm:$0xff] }
 0x194   : > { %v6125_v52 = vsel %vm1262_vm0, %v1593_v28, 0.0  ;;  %v1597_v28 = vmul.f32 %v4461_v63, %v5709_v23 }
 0x195   : > { %1980 = vadd.xlane.f32.xlu1 %v1979_v24  ;;  %1977 = vadd.xlane.f32.xlu0 %v1976_v17  ;;  %v1230_v24 = vld [vmem:[%s7955_s6 + $0xc0] sm:$0xff] }
 0x196   : > { %v1258_v6 = vmul.f32 %v1230_v24, %v5607_v19  ;;  %v4515_v24 = vld [vmem:[%s7955_s6 + $0x358] sm:$0xff] }
 0x198   : > { %v6139_v40 = vsel %vm1262_vm0, %v1258_v6, 0.0  ;;  %v2269_v6 = vmul.f32 %v4515_v24, %v5745_v16 }
 0x199   : > { %1649 = vadd.xlane.f32.xlu1 %v1648_v27  ;;  %1646 = vadd.xlane.f32.xlu0 %v1645_v34  ;;  %v1257_v27 = vmul.f32 %v1229_v25, %v5607_v19  ;;  %v4512_v34 = vld [vmem:[%s7955_s6 + $0x340] sm:$0xff] }
 0x19a   : > { %v2266_v41 = vmul.f32 %v4512_v34, %v5745_v16  ;;  %v4462_v34 = vld [vmem:[%s7955_s6 + $0x1b0] sm:$0xff] }
 0x19b   : > { %v6115_v46 = vsel %vm1262_vm0, %v1257_v27, 0.0  ;;  %v6187_v27 = vsel %vm1262_vm0, %v1260_v26, 0.0 }
 0x19c   : > { %v6152_v38 = vsel %vm1262_vm0, %v2266_v41, 0.0 }
 0x19d   : > { %2317 = vadd.xlane.f32.xlu1 %v2316_v9  ;;  %2314 = vadd.xlane.f32.xlu0 %v2313_v21  ;;  %v1329_v9 = vsel %vm1262_vm0, %v1256_v62, 0.0  ;;  %v1930_v21 = vmul.f32 %v4485_v5, %v5722_v0 }
 0x19f   : > { %v6128_v15 = vsel %vm1262_vm0, %v1930_v21, 0.0  ;;  %v1934_v21 = vmul.f32 %v4489_v3, %v5722_v0  ;;  %v4490_v3 = vld [vmem:[%s7955_s6 + $0x290] sm:$0xff] }
 0x1a1   : > { %1986 = vadd.xlane.f32.xlu1 %v1985_v7  ;;  %1983 = vadd.xlane.f32.xlu0 %v1982_v18  ;;  %v2265_v7 = vmul.f32 %v4511_v20, %v5745_v16  ;;  %v1594_v18 = vmul.f32 %v4458_v13, %v5709_v23  ;;  %v2268_v20 = vmul.f32 %v4514_v14, %v5745_v16  ;;  %v4463_v13 = vld [vmem:[%s7955_s6 + $0x1b8] sm:$0xff]  ;;  %v6230_v26 = vsel %vm1262_vm0, %v1934_v21, 0.0 }
 0x1a2   : > { %v6236_v14 = vsel %vm1262_vm0, %v2269_v6, 0.0 }
 0x1a3   : > { %v6136_v54 = vsel %vm1262_vm0, %v2265_v7, 0.0  ;;  %v6142_v43 = vsel %vm1262_vm0, %v1594_v18, 0.0  ;;  %v1599_v18 = vmul.f32 %v4463_v13, %v5709_v23  ;;  %v6215_v41 = vsel %vm1262_vm0, %v2268_v20, 0.0 }
 0x1a5   : > { %1655 = vadd.xlane.f32.xlu1 %v1654_v47  ;;  %1652 = vadd.xlane.f32.xlu0 %v1651_v30  ;;  %v1931_v47 = vmul.f32 %v4486_v1, %v5722_v0  ;;  %v1259_v30 = vmul.f32 %v1231_v2, %v5607_v19  ;;  %v1261_v1 = vmul.f32 %v1233_v59, %v5607_v19  ;;  %v4516_v19 = vld [vmem:[%s7955_s6 + $0x360] sm:$0xff] }
 0x1a6   : > { %v5994_v37 = vpop.xlane.xlu1 %1267  ;;  %v6002_v48 = vpop.xlane.xlu0 %1264 }
 0x1a7   : > { %v6149_v62 = vsel %vm1262_vm0, %v1931_v47, 0.0  ;;  %v6155_v25 = vsel %vm1262_vm0, %v1259_v30, 0.0  ;;  %v1353_v5 = vrot.slane %v5994_v37, 4  ;;  %v1598_v30 = vmul.f32 %v4462_v34, %v5709_v23 }
 0x1a9   : > { %2323 = vadd.xlane.f32.xlu1 %v2322_v42  ;;  %2320 = vadd.xlane.f32.xlu0 %v2319_v53  ;;  %v4488_v42 = vld [vmem:[%s7955_s6 + $0x280] sm:$0xff]  ;;  %v2267_v53 = vmul.f32 %v4513_v33, %v5745_v16  ;;  %v1354_v33 = vadd.f32 %v1353_v5, %v5994_v37  ;;  %v2270_v37 = vmul.f32 %v4516_v19, %v5745_v16 }
 0x1aa   : > { %v6024_v56 = vpop.xlane.xlu1 %1276  ;;  %v6031_v58 = vpop.xlane.xlu0 %1270 }
 0x1ab   : > { %v6184_v4 = vsel %vm1262_vm0, %v2267_v53, 0.0  ;;  %v1371_v2 = vrot.slane %v6024_v56, 4  ;;  %v1359_v31 = vrot.slane %v6031_v58, 4  ;;  %v6227_v53 = vsel %vm1262_vm0, %v1597_v28, 0.0  ;;  %v4519_v28 = vld [vmem:[%s7955_s6 + $0x378] sm:$0xff] }
 0x1ac   : > { %v6262_v24 = vsel %vm1262_vm0, %v2270_v37, 0.0 }
 0x1ad   : > { %1992 = vadd.xlane.f32.xlu1 %v1991_v51  ;;  %1989 = vadd.xlane.f32.xlu0 %v1988_v8  ;;  %v1933_v51 = vmul.f32 %v4488_v42, %v5722_v0  ;;  %v1372_v42 = vadd.f32 %v1371_v2, %v6024_v56  ;;  %v1360_v23 = vadd.f32 %v1359_v31, %v6031_v58  ;;  %v1355_v56 = vrot.slane %v1354_v33, 2  ;;  %v4491_v2 = vld [vmem:[%s7955_s6 + $0x298] sm:$0xff] }
 0x1ae   : > { %v6061_v17 = vpop.xlane.xlu1 %1282  ;;  %v6076_v60 = vpop.xlane.xlu0 %1273  ;;  %v6247_v58 = vsel %vm1262_vm0, %v1598_v30, 0.0 }
 0x1af   : > { %v6207_v7 = vsel %vm1262_vm0, %v1933_v51, 0.0  ;;  %v1383_v55 = vrot.slane %v6061_v17, 4  ;;  %v1373_v13 = vrot.slane %v1372_v42, 2  ;;  %v1361_v21 = vrot.slane %v1360_v23, 2 }
 0x1b0   : > { %v1356_v31 = vadd.f32 %v1355_v56, %v1354_v33 }
 0x1b1   : > { %1327 = vadd.xlane.f32.xlu1 %v1326_v10  ;;  %1658 = vadd.xlane.f32.xlu0 %v1657_v22  ;;  %v6168_v10 = vsel %vm1262_vm0, %v1595_v49, 0.0  ;;  %v1347_v22 = vrot.slane %v6002_v48, 4  ;;  %v6220_v49 = vsel %vm1262_vm0, %v1261_v1, 0.0  ;;  %v1384_v59 = vadd.f32 %v1383_v55, %v6061_v17 }
 0x1b2   : > { %v6109_v36 = vpop.xlane.xlu1 %1288  ;;  %v6122_v32 = vpop.xlane.xlu0 %1279 }
 0x1b3   : > { %v1377_v51 = vrot.slane %v6122_v32, 4  ;;  %v1385_v6 = vrot.slane %v1384_v59, 2 }
 0x1b5   : > { %1995 = vadd.xlane.f32.xlu1 %v1994_v44  ;;  %2326 = vadd.xlane.f32.xlu0 %v2325_v39  ;;  %v6195_v39 = vsel %vm1262_vm0, %v1596_v57, 0.0  ;;  %v6239_v57 = vsel %vm1262_vm0, %v1599_v18, 0.0  ;;  %v1378_v18 = vadd.f32 %v1377_v51, %v6122_v32  ;;  %v1362_v32 = vadd.f32 %v1361_v21, %v1360_v23 }
 0x1b6   : > { %v6165_v8 = vpop.xlane.xlu1 %1294  ;;  %v6181_v44 = vpop.xlane.xlu0 %1285 }
 0x1b7   : > { %v1407_v17 = vrot.slane %v6165_v8, 4  ;;  %v1389_v1 = vrot.slane %v6181_v44, 4 }
 0x1b9   : > { %1330 = vadd.xlane.f32.xlu1 %v1329_v9  ;;  %1661 = vadd.xlane.f32.xlu0 %v6089_v12  ;;  %v1348_v9 = vadd.f32 %v1347_v22, %v6002_v48  ;;  %v1365_v12 = vrot.slane %v6076_v60, 4  ;;  %v1395_v48 = vrot.slane %v6109_v36, 4  ;;  %v1408_v37 = vadd.f32 %v1407_v17, %v6165_v8 }
 0x1ba   : > { %v1301_v47 = vpop.xlane.xlu1 %1300  ;;  %v1292_v35 = vpop.xlane.xlu0 %1291  ;;  %v1390_v33 = vadd.f32 %v1389_v1, %v6181_v44  ;;  %v1357_v8 = vrot.slane %v1356_v31, 1 }
 0x1bb   : > { %v1349_v5 = vrot.slane %v1348_v9, 2  ;;  %v1366_v22 = vadd.f32 %v1365_v12, %v6076_v60  ;;  %v1419_v34 = vrot.slane %v1301_v47, 4  ;;  %v1396_v29 = vadd.f32 %v1395_v48, %v6109_v36 }
 0x1bc   : > { %v1935_v60 = vmul.f32 %v4490_v3, %v5722_v0  ;;  %v1401_v55 = vrot.slane %v1292_v35, 4  ;;  %v1936_v36 = vmul.f32 %v4491_v2, %v5722_v0  ;;  %v1374_v48 = vadd.f32 %v1373_v13, %v1372_v42 }
 0x1bd   : > { %1998 = vadd.xlane.f32.xlu1 %v6101_v61  ;;  %2329 = vadd.xlane.f32.xlu0 %v6112_v45  ;;  %v4518_v61 = vld [vmem:[%s7955_s6 + $0x370] sm:$0xff]  ;;  %v6259_v45 = vsel %vm1262_vm0, %v2271_v50, 0.0  ;;  %v1350_v50 = vadd.f32 %v1349_v5, %v1348_v9  ;;  %v1420_v56 = vadd.f32 %v1419_v34, %v1301_v47  ;;  %v1397_v51 = vrot.slane %v1396_v29, 2  ;;  %s7114_s6 = sld [smem:[#allocation7 + $0x3d]] }
 0x1be   : > { %v6244_v63 = vpop.xlane.xlu1 %1306  ;;  %v6256_v20 = vpop.xlane.xlu0 %1297  ;;  %v2272_v19 = vmul.f32 %v4518_v61, %v5745_v16  ;;  %v1367_v61 = vrot.slane %v1366_v22, 2  ;;  %v2639_v9 = vlaneseq  ;;  %v1386_v3 = vadd.f32 %v1385_v6, %v1384_v59 }
 0x1bf   : > { %v1379_v5 = vrot.slane %v1378_v18, 2  ;;  %v1402_v17 = vadd.f32 %v1401_v55, %v1292_v35  ;;  %v1409_v42 = vrot.slane %v1408_v37, 2  ;;  %v6296_v47 = vsel %vm1262_vm0, %v1935_v60, 0.0 }
 0x1c0   : > { %v1375_v23 = vrot.slane %v1374_v48, 1  ;;  %v1368_v13 = vadd.f32 %v1367_v61, %v1366_v22  ;;  %v1391_v1 = vrot.slane %v1390_v33, 2  ;;  %v1421_v59 = vrot.slane %v1420_v56, 2  ;;  %v1179_v22 = vld [vmem:[%s7956_s7 + $0x1] sm:$0x1] }
 0x1c1   : > { %1333 = vadd.xlane.f32.xlu1 %v6115_v46  ;;  %1664 = vadd.xlane.f32.xlu0 %v6125_v52  ;;  %v2273_v46 = vmul.f32 %v4519_v28, %v5745_v16  ;;  %v6288_v52 = vsel %vm1262_vm0, %v2272_v19, 0.0  ;;  %v1351_v16 = vrot.slane %v1350_v50, 1  ;;  %v1363_v34 = vrot.slane %v1362_v32, 1 }
 0x1c2   : > { %v6278_v30 = vpop.xlane.xlu1 %1312  ;;  %v6281_v12 = vpop.xlane.xlu0 %1303  ;;  %v1398_v35 = vadd.f32 %v1397_v51, %v1396_v29  ;;  %v2640_v2 = vshrl.u32 %v2639_v9, 7  ;;  %v1358_v28 = vadd.f32 %v1357_v8, %v1356_v31  ;;  %v1387_v21 = vrot.slane %v1386_v3, 1  ;;  %v1178_v31 = vld [vmem:[%s7956_s7] sm:$0x1] }
 0x1c3   : > { %v1380_v19 = vadd.f32 %v1379_v5, %v1378_v18  ;;  %v1403_v6 = vrot.slane %v1402_v17, 2  ;;  %v1352_v55 = vadd.f32 %v1351_v16, %v1350_v50  ;;  %v1413_v29 = vrot.slane %v6256_v20, 4  ;;  %v1182_v50 = vld [vmem:[%s7956_s7 + $0x4] sm:$0x1]  ;;  %7979 = sst [smem:[#allocation32_spill]] %s7114_s6 }
 0x1c4   : > { %v1369_v18 = vrot.slane %v1368_v13, 1  ;;  %v1392_v51 = vadd.f32 %v1391_v1, %v1390_v33  ;;  %v1422_v9 = vadd.f32 %v1421_v59, %v1420_v56  ;;  %v1399_v8 = vrot.slane %v1398_v35, 1 }
 0x1c5   : > { %2001 = vadd.xlane.f32.xlu1 %v6128_v15  ;;  %2332 = vadd.xlane.f32.xlu0 %v6136_v54  ;;  %v6299_v15 = vsel %vm1262_vm0, %v1936_v36, 0.0  ;;  %v1431_v54 = vrot.slane %v6244_v63, 4  ;;  %v1410_v36 = vadd.f32 %v1409_v42, %v1408_v37  ;;  %v1364_v37 = vadd.f32 %v1363_v34, %v1362_v32 }
 0x1c6   : > { %v6291_v0 = vpop.xlane.xlu1 %1318  ;;  %v6293_v44 = vpop.xlane.xlu0 %1309  ;;  %v6325_v16 = vadd.f32 %v1358_v28, %v1179_v22  ;;  %v1388_v33 = vadd.f32 %v1387_v21, %v1386_v3  ;;  %v1381_v56 = vrot.slane %v1380_v19, 1  ;;  %v1404_v42 = vadd.f32 %v1403_v6, %v1402_v17 }
 0x1c7   : > { %v1432_v5 = vadd.f32 %v1431_v54, %v6244_v63  ;;  %v6331_v32 = vadd.f32 %v1352_v55, %v1178_v31  ;;  %v1411_v63 = vrot.slane %v1410_v36, 1  ;;  %v1414_v1 = vadd.f32 %v1413_v29, %v6256_v20 }
 0x1c8   : > { %v1370_v3 = vadd.f32 %v1369_v18, %v1368_v13  ;;  %v1423_v17 = vrot.slane %v1422_v9, 1  ;;  %v1400_v21 = vadd.f32 %v1399_v8, %v1398_v35  ;;  %v1443_v22 = vrot.slane %v6278_v30, 4  ;;  %v1186_v13 = vld [vmem:[%s7956_s7 + $0x8] sm:$0x1]  ;;  %v1183_v35 = vld [vmem:[%s7956_s7 + $0x5] sm:$0x1] }
 0x1c9   : > { %1336 = vadd.xlane.f32.xlu1 %v6139_v40  ;;  %1667 = vadd.xlane.f32.xlu0 %v6142_v43  ;;  %v6313_v40 = vsel %vm1262_vm0, %v2273_v46, 0.0  ;;  %v1376_v43 = vadd.f32 %v1375_v23, %v1374_v48  ;;  %v6323_v46 = vsub.s32 0, %v2640_v2  ;;  %v1180_v48 = vld [vmem:[%s7956_s7 + $0x2] sm:$0x1]  ;;  %v1393_v2 = vrot.slane %v1392_v51, 1 }
 0x1ca   : > { %v6304_v60 = vpop.xlane.xlu1 %1324  ;;  %v6310_v61 = vpop.xlane.xlu0 %1315  ;;  %v6341_v28 = vadd.f32 %v1364_v37, %v1180_v48  ;;  %v1433_v6 = vrot.slane %v1432_v5, 2  ;;  %v1382_v55 = vadd.f32 %v1381_v56, %v1380_v19  ;;  %v1405_v29 = vrot.slane %v1404_v42, 1  ;;  %v1188_v19 = vld [vmem:[%s7956_s7 + $0xa] sm:$0x1] }
 0x1cb   : > { %v6339_v54 = vadd.f32 %v1376_v43, %v1182_v50  ;;  %v1412_v18 = vadd.f32 %v1411_v63, %v1410_v36  ;;  %v1415_v50 = vrot.slane %v1414_v1, 2  ;;  %v1424_v56 = vadd.f32 %v1423_v17, %v1422_v9  ;;  %v1185_v36 = vld [vmem:[%s7956_s7 + $0x7] sm:$0x1] }
 0x1cc   : > { %v1434_v63 = vadd.f32 %v1433_v6, %v1432_v5 }
 0x1cd   : > { %2004 = vadd.xlane.f32.xlu1 %v6149_v62  ;;  %2335 = vadd.xlane.f32.xlu0 %v6152_v38  ;;  %v1184_v62 = vld [vmem:[%s7956_s7 + $0x6] sm:$0x1]  ;;  %v1181_v38 = vld [vmem:[%s7956_s7 + $0x3] sm:$0x1]  ;;  %v1416_v5 = vadd.f32 %v1415_v50, %v1414_v1 }
 0x1ce   : > { %v1605_v23 = vpop.xlane.xlu1 %1604  ;;  %v6337_v34 = vpop.xlane.xlu0 %1321  ;;  %v6348_v20 = vadd.f32 %v1388_v33, %v1184_v62  ;;  %v6358_v48 = vadd.f32 %v1370_v3, %v1181_v38  ;;  %v1394_v33 = vadd.f32 %v1393_v2, %v1392_v51  ;;  %v1190_v62 = vld [vmem:[%s7956_s7 + $0xc] sm:$0x1]  ;;  %v6373_v38 = vadd.f32 %v1382_v55, %v1183_v35 }
 0x1cf   : > { %v1690_v59 = vrot.slane %v1605_v23, 4  ;;  %7957 = vst [vmem:[#allocation15_spill] sm:$0xff] %v6337_v34  ;;  %v1406_v51 = vadd.f32 %v1405_v29, %v1404_v42  ;;  %v6384_v55 = vadd.f32 %v1424_v56, %v1190_v62  ;;  %v1455_v35 = vrot.slane %v6291_v0, 4 }
 0x1d1   : > { %1339 = vadd.xlane.f32.xlu1 %v6155_v25  ;;  %v1691_v31 = vadd.f32 %v1690_v59, %v1605_v23  ;;  %1670 = vadd.xlane.f32.xlu0 %v6168_v10  ;;  %v1425_v25 = vrot.slane %v6281_v12, 4  ;;  %v6363_v23 = vadd.f32 %v1400_v21, %v1186_v13  ;;  %v1444_v59 = vadd.f32 %v1443_v22, %v6278_v30  ;;  %v1187_v13 = vld [vmem:[%s7956_s7 + $0x9] sm:$0x1] }
 0x1d2   : > { %v1939_v43 = vpop.xlane.xlu1 %1938  ;;  %v1602_v8 = vpop.xlane.xlu0 %1601  ;;  %v6376_v21 = vadd.f32 %v1412_v18, %v1188_v19  ;;  %7959 = vst [vmem:[#allocation17_spill] sm:$0xff] %v6384_v55 }
 0x1d3   : > { %v2021_v37 = vrot.slane %v1939_v43, 4  ;;  %v1684_v10 = vrot.slane %v1602_v8, 4  ;;  %v1692_v9 = vrot.slane %v1691_v31, 2  ;;  %v1426_v30 = vadd.f32 %v1425_v25, %v6281_v12 }
 0x1d4   : > { %7958 = vst [vmem:[#allocation16_spill] sm:$0xff] %v6376_v21 }
 0x1d5   : > { %v2022_v3 = vadd.f32 %v2021_v37, %v1939_v43  ;;  %2007 = vadd.xlane.f32.xlu1 %v6171_v11  ;;  %v1685_v2 = vadd.f32 %v1684_v10, %v1602_v8  ;;  %2338 = vadd.xlane.f32.xlu0 %v6184_v4  ;;  %v6382_v11 = vadd.f32 %v1394_v33, %v1185_v36  ;;  %v1435_v43 = vrot.slane %v1434_v63, 1 }
 0x1d6   : > { %v1611_v17 = vpop.xlane.xlu1 %1610  ;;  %v1608_v22 = vpop.xlane.xlu0 %1607  ;;  %v1445_v4 = vrot.slane %v1444_v59, 2  ;;  %v6388_v37 = vadd.f32 %v1406_v51, %v1187_v13  ;;  %v1693_v1 = vadd.f32 %v1692_v9, %v1691_v31  ;;  %v1417_v8 = vrot.slane %v1416_v5, 1 }
 0x1d7   : > { %v2023_v6 = vrot.slane %v2022_v3, 2  ;;  %v1686_v42 = vrot.slane %v1685_v2, 2  ;;  %v1696_v29 = vrot.slane %v1608_v22, 4  ;;  %v1702_v18 = vrot.slane %v1611_v17, 4 }
 0x1d8   : > { %v1427_v19 = vrot.slane %v1426_v30, 2  ;;  %v1437_v36 = vrot.slane %v6293_v44, 4  ;;  %v1436_v21 = vadd.f32 %v1435_v43, %v1434_v63  ;;  %v1694_v9 = vrot.slane %v1693_v1, 1 }
 0x1d9   : > { %1342 = vadd.xlane.f32.xlu1 %v6187_v27  ;;  %v1687_v50 = vadd.f32 %v1686_v42, %v1685_v2  ;;  %v1697_v12 = vadd.f32 %v1696_v29, %v1608_v22  ;;  %1673 = vadd.xlane.f32.xlu0 %v6195_v39  ;;  %v2024_v33 = vadd.f32 %v2023_v6, %v2022_v3 }
 0x1da   : > { %v2276_v25 = vpop.xlane.xlu1 %2275  ;;  %v1942_v10 = vpop.xlane.xlu0 %1941  ;;  %v6392_v27 = vadd.f32 %v1445_v4, %v1444_v59  ;;  %v1703_v51 = vadd.f32 %v1702_v18, %v1611_v17  ;;  %v6396_v39 = vadd.f32 %v1455_v35, %v6291_v0  ;;  %v6399_v59 = vadd.f32 %v1417_v8, %v1416_v5  ;;  %v1192_v0 = vld [vmem:[%s7956_s7 + $0xe] sm:$0x1] }
 0x1db   : > { %v2358_v56 = vrot.slane %v2276_v25, 4  ;;  %v1688_v62 = vrot.slane %v1687_v50, 1  ;;  %v1698_v34 = vrot.slane %v1697_v12, 2  ;;  %v2027_v55 = vrot.slane %v1942_v10, 4 }
 0x1dc   : > { %v2025_v6 = vrot.slane %v2024_v33, 1  ;;  %v6401_v17 = vadd.f32 %v1427_v19, %v1426_v30  ;;  %v6409_v5 = vadd.f32 %v1437_v36, %v6293_v44  ;;  %v1695_v30 = vadd.f32 %v1694_v9, %v1693_v1 }
 0x1dd   : > { %v2359_v31 = vadd.f32 %v2358_v56, %v2276_v25  ;;  %2010 = vadd.xlane.f32.xlu1 %v6207_v7  ;;  %v1689_v2 = vadd.f32 %v1688_v62, %v1687_v50  ;;  %v2028_v3 = vadd.f32 %v2027_v55, %v1942_v10  ;;  %2341 = vadd.xlane.f32.xlu0 %v6215_v41  ;;  %v1704_v41 = vrot.slane %v1703_v51, 2 }
 0x1de   : > { %v1614_v13 = vpop.xlane.xlu1 %1613  ;;  %v1699_v22 = vadd.f32 %v1698_v34, %v1697_v12  ;;  %v1945_v63 = vpop.xlane.xlu0 %1944  ;;  %v2026_v12 = vadd.f32 %v2025_v6, %v2024_v33  ;;  %v6413_v56 = vadd.f32 %v1436_v21, %v1192_v0 }
 0x1df   : > { %v2360_v42 = vrot.slane %v2359_v31, 2  ;;  %v1708_v29 = vrot.slane %v1614_v13, 4  ;;  %v2029_v43 = vrot.slane %v2028_v3, 2  ;;  %v2033_v7 = vrot.slane %v1945_v63, 4 }
 0x1e0   : > { %v1852_v55 = vadd.f32 %v1689_v2, %v6331_v32  ;;  %v1700_v25 = vrot.slane %v1699_v22, 1 }
 0x1e1   : > { %v2361_v4 = vadd.f32 %v2360_v42, %v2359_v31  ;;  %v1709_v34 = vadd.f32 %v1708_v29, %v1614_v13  ;;  %1345 = vadd.xlane.f32.xlu1 %v6220_v49  ;;  %v2030_v35 = vadd.f32 %v2029_v43, %v2028_v3  ;;  %v2034_v18 = vadd.f32 %v2033_v7, %v1945_v63 }
 0x1e2   : > { %1676 = vadd.xlane.f32.xlu0 %v6227_v53  ;;  %v2282_v50 = vpop.xlane.xlu1 %2281  ;;  %v2279_v32 = vpop.xlane.xlu0 %2278  ;;  %v6415_v31 = vadd.f32 %v1704_v41, %v1703_v51  ;;  %v2189_v44 = vadd.f32 %v2026_v12, %v1852_v55  ;;  %v1853_v53 = vadd.f32 %v1695_v30, %v6325_v16  ;;  %v1701_v21 = vadd.f32 %v1700_v25, %v1699_v22 }
 0x1e3   : > { %v2362_v8 = vrot.slane %v2361_v4, 1  ;;  %v2370_v19 = vrot.slane %v2282_v50, 4  ;;  %v1710_v10 = vrot.slane %v1709_v34, 2  ;;  %v2035_v62 = vrot.slane %v2034_v18, 2 }
 0x1e4   : > { %v2364_v49 = vrot.slane %v2279_v32, 4  ;;  %v2031_v33 = vrot.slane %v2030_v35, 1  ;;  %v1706_v43 = vrot.slane %v6415_v31, 1 }
 0x1e5   : > { %v2363_v1 = vadd.f32 %v2362_v8, %v2361_v4  ;;  %v2371_v36 = vadd.f32 %v2370_v19, %v2282_v50  ;;  %2013 = vadd.xlane.f32.xlu1 %v6230_v26  ;;  %v2036_v9 = vadd.f32 %v2035_v62, %v2034_v18  ;;  %v1711_v26 = vadd.f32 %v1710_v10, %v1709_v34 }
 0x1e6   : > { %v2365_v2 = vadd.f32 %v2364_v49, %v2279_v32  ;;  %2344 = vadd.xlane.f32.xlu0 %v6236_v14  ;;  %v1951_v3 = vpop.xlane.xlu1 %1950  ;;  %v1948_v51 = vpop.xlane.xlu0 %1947  ;;  %v2032_v0 = vadd.f32 %v2031_v33, %v2030_v35  ;;  %v1854_v34 = vadd.f32 %v1701_v21, %v6341_v28  ;;  %v1447_v33 = vrot.slane %v6392_v27, 1 }
 0x1e7   : > { %v6420_v13 = vadd.f32 %v2363_v1, %v2189_v44  ;;  %v2372_v6 = vrot.slane %v2371_v36, 2  ;;  %v2045_v42 = vrot.slane %v1951_v3, 4  ;;  %v2037_v29 = vrot.slane %v2036_v9, 1 }
 0x1e8   : > { %v2366_v16 = vrot.slane %v2365_v2, 2  ;;  %v2039_v63 = vrot.slane %v1948_v51, 4 }
 0x1e9   : > { %v2373_v14 = vadd.f32 %v2372_v6, %v2371_v36  ;;  %v2046_v7 = vadd.f32 %v2045_v42, %v1951_v3  ;;  %1682 = vadd.xlane.f32.xlu1 %v6239_v57  ;;  %v2554_v22 = vmax.f32 %v6420_v13, 0.0  ;;  %v2038_v55 = vadd.f32 %v2037_v29, %v2036_v9 }
 0x1ea   : > { %v2367_v41 = vadd.f32 %v2366_v16, %v2365_v2  ;;  %v2040_v4 = vadd.f32 %v2039_v63, %v1948_v51  ;;  %1679 = vadd.xlane.f32.xlu0 %v6247_v58  ;;  %v1620_v30 = vpop.xlane.xlu1 %1619  ;;  %v1617_v25 = vpop.xlane.xlu0 %1616  ;;  %v1712_v57 = vrot.slane %v1711_v26, 1  ;;  %v2190_v58 = vadd.f32 %v2032_v0, %v1853_v53  ;;  %v1189_v53 = vld [vmem:[%s7956_s7 + $0xb] sm:$0x1] }
 0x1eb   : > { %v2374_v18 = vrot.slane %v2373_v14, 1  ;;  %v2047_v50 = vrot.slane %v2046_v7, 2  ;;  %v1720_v12 = vrot.slane %v1620_v30, 4  ;;  %2583 = vst.msk [vmem:[%s6425_s27] sm:$0x1] %vm2582_vm1, %v2554_v22  ;;  %v1714_v35 = vrot.slane %v1617_v25, 4 }
 0x1ec   : > { %v2368_v8 = vrot.slane %v2367_v41, 1  ;;  %v2041_v19 = vrot.slane %v2040_v4, 2  ;;  %v2191_v32 = vadd.f32 %v2038_v55, %v1854_v34  ;;  %v1457_v6 = vrot.slane %v6396_v39, 2 }
 0x1ed   : > { %v2375_v10 = vadd.f32 %v2374_v18, %v2373_v14  ;;  %v2048_v62 = vadd.f32 %v2047_v50, %v2046_v7  ;;  %v1721_v49 = vadd.f32 %v1720_v12, %v1620_v30  ;;  %2350 = vadd.xlane.f32.xlu1 %v6259_v45  ;;  %v1715_v1 = vadd.f32 %v1714_v35, %v1617_v25 }
 0x1ee   : > { %v2369_v28 = vadd.f32 %v2368_v8, %v2367_v41  ;;  %v2042_v44 = vadd.f32 %v2041_v19, %v2040_v4  ;;  %2347 = vadd.xlane.f32.xlu0 %v6262_v24  ;;  %v2288_v36 = vpop.xlane.xlu1 %2287  ;;  %v2285_v21 = vpop.xlane.xlu0 %2284  ;;  %v1713_v29 = vadd.f32 %v1712_v57, %v1711_v26  ;;  %v1707_v14 = vadd.f32 %v1706_v43, %v6415_v31 }
 0x1ef   : > { %v6439_v9 = vadd.f32 %v2375_v10, %v2191_v32  ;;  %v2049_v2 = vrot.slane %v2048_v62, 1  ;;  %v2382_v3 = vrot.slane %v2288_v36, 4  ;;  %v1722_v51 = vrot.slane %v1721_v49, 2 }
 0x1f0   : > { %v6442_v42 = vadd.f32 %v2369_v28, %v2190_v58  ;;  %v2376_v45 = vrot.slane %v2285_v21, 4  ;;  %v2043_v24 = vrot.slane %v2042_v44, 1  ;;  %v1716_v7 = vrot.slane %v1715_v1, 2 }
 0x1f1   : > { %v2383_v16 = vadd.f32 %v2382_v3, %v2288_v36  ;;  %2353 = vadd.xlane.f32.xlu1 %v6288_v52  ;;  %v2556_v63 = vmax.f32 %v6439_v9, 0.0  ;;  %v1467_v4 = vrot.slane %v6304_v60, 4  ;;  %v2050_v26 = vadd.f32 %v2049_v2, %v2048_v62 }
 0x1f2   : > { %v2377_v0 = vadd.f32 %v2376_v45, %v2285_v21  ;;  %2016 = vadd.xlane.f32.xlu0 %v6296_v47  ;;  %v1957_v55 = vpop.xlane.xlu1 %1956  ;;  %v2555_v41 = vmax.f32 %v6442_v42, 0.0  ;;  %v1954_v18 = vpop.xlane.xlu0 %1953  ;;  %v6458_v52 = vadd.f32 %v6399_v59, %v1189_v53  ;;  %v1723_v31 = vadd.f32 %v1722_v51, %v1721_v49 }
 0x1f3   : > { %v2384_v30 = vrot.slane %v2383_v16, 2  ;;  %v2057_v34 = vrot.slane %v1957_v55, 4  ;;  %2585 = vst.msk [vmem:[%s6425_s27 + $0x2] sm:$0x1] %vm2582_vm1, %v2556_v63  ;;  %v2051_v50 = vrot.slane %v1954_v18, 4  ;;  %v1856_v47 = vadd.f32 %v1713_v29, %v6339_v54 }
 0x1f4   : > { %v2378_v43 = vrot.slane %v2377_v0, 2  ;;  %2584 = vst.msk [vmem:[%s6425_s27 + $0x1] sm:$0x1] %vm2582_vm1, %v2555_v41  ;;  %v2044_v12 = vadd.f32 %v2043_v24, %v2042_v44  ;;  %v1855_v8 = vadd.f32 %v1707_v14, %v6358_v48  ;;  %v1717_v19 = vadd.f32 %v1716_v7, %v1715_v1 }
 0x1f5   : > { %v2385_v25 = vadd.f32 %v2384_v30, %v2383_v16  ;;  %v2058_v57 = vadd.f32 %v2057_v34, %v1957_v55  ;;  %v2052_v32 = vadd.f32 %v2051_v50, %v1954_v18  ;;  %v2193_v10 = vadd.f32 %v2050_v26, %v1856_v47 }
 0x1f6   : > { %v2379_v35 = vadd.f32 %v2378_v43, %v2377_v0  ;;  %2019 = vadd.xlane.f32.xlu0 %v6299_v15  ;;  %v1626_v59 = vpop.xlane.xlu1 %1625  ;;  %v1623_v28 = vpop.xlane.xlu0 %1622  ;;  %v1724_v36 = vrot.slane %v1723_v31, 1  ;;  %v2192_v44 = vadd.f32 %v2044_v12, %v1855_v8  ;;  %v1718_v48 = vrot.slane %v1717_v19, 1 }
 0x1f7   : > { %v2386_v62 = vrot.slane %v2385_v25, 1  ;;  %v2059_v49 = vrot.slane %v2058_v57, 2  ;;  %v1732_v58 = vrot.slane %v1626_v59, 4  ;;  %v2053_v3 = vrot.slane %v2052_v32, 2 }
 0x1f8   : > { %v2380_v2 = vrot.slane %v2379_v35, 1  ;;  %v1726_v54 = vrot.slane %v1623_v28, 4  ;;  %v1429_v55 = vrot.slane %v6401_v17, 1  ;;  %v1725_v18 = vadd.f32 %v1724_v36, %v1723_v31 }
 0x1f9   : > { %v2387_v21 = vadd.f32 %v2386_v62, %v2385_v25  ;;  %v2060_v51 = vadd.f32 %v2059_v49, %v2058_v57  ;;  %v1733_v45 = vadd.f32 %v1732_v58, %v1626_v59  ;;  %v2054_v53 = vadd.f32 %v2053_v3, %v2052_v32 }
 0x1fa   : > { %v2381_v1 = vadd.f32 %v2380_v2, %v2379_v35  ;;  %v1727_v29 = vadd.f32 %v1726_v54, %v1623_v28  ;;  %2356 = vadd.xlane.f32.xlu0 %v6313_v40  ;;  %v2294_v15 = vpop.xlane.xlu1 %2293  ;;  %v2291_v0 = vpop.xlane.xlu0 %2290  ;;  %v1719_v40 = vadd.f32 %v1718_v48, %v1717_v19  ;;  %v2642_v62 = vrot.slane %v2554_v22, %v6323_v46 }
 0x1fb   : > { %v6468_v24 = vadd.f32 %v2387_v21, %v2193_v10  ;;  %v2061_v16 = vrot.slane %v2060_v51, 1  ;;  %v1734_v14 = vrot.slane %v1733_v45, 2  ;;  %v2394_v7 = vrot.slane %v2294_v15, 4 }
 0x1fc   : > { %v2529_v26 = vadd.f32 %v2381_v1, %v2192_v44  ;;  %v2055_v30 = vrot.slane %v2054_v53, 1  ;;  %v2388_v34 = vrot.slane %v2291_v0, 4  ;;  %v1728_v43 = vrot.slane %v1727_v29, 2 }
 0x1fd   : > { %v2395_v50 = vadd.f32 %v2394_v7, %v2294_v15  ;;  %v2558_v47 = vmax.f32 %v6468_v24, 0.0  ;;  %v1735_v12 = vadd.f32 %v1734_v14, %v1733_v45  ;;  %v2062_v35 = vadd.f32 %v2061_v16, %v2060_v51 }
 0x1fe   : > { %v2389_v25 = vadd.f32 %v2388_v34, %v2291_v0  ;;  %v1963_v57 = vpop.xlane.xlu1 %1962  ;;  %v2557_v8 = vmax.f32 %v2529_v26, 0.0  ;;  %v1960_v10 = vpop.xlane.xlu0 %1959  ;;  %v2056_v31 = vadd.f32 %v2055_v30, %v2054_v53  ;;  %v2650_v19 = vrot.slane %v2556_v63, %v6323_v46 }
 0x1ff   : > { %v2396_v32 = vrot.slane %v2395_v50, 2  ;;  %v2069_v59 = vrot.slane %v1963_v57, 4  ;;  %2587 = vst.msk [vmem:[%s6425_s27 + $0x4] sm:$0x1] %vm2582_vm1, %v2558_v47  ;;  %v2063_v58 = vrot.slane %v1960_v10, 4  ;;  %v1858_v28 = vadd.f32 %v1725_v18, %v6348_v20 }
 0x200   : > { %v2390_v49 = vrot.slane %v2389_v25, 2  ;;  %2586 = vst.msk [vmem:[%s6425_s27 + $0x3] sm:$0x1] %vm2582_vm1, %v2557_v8  ;;  %v1729_v36 = vadd.f32 %v1728_v43, %v1727_v29  ;;  %v1857_v13 = vadd.f32 %v1719_v40, %v6373_v38  ;;  %v1736_v22 = vrot.slane %v1735_v12, 1 }
 0x201   : > { %v2397_v2 = vadd.f32 %v2396_v32, %v2395_v50  ;;  %v2070_v3 = vadd.f32 %v2069_v59, %v1963_v57  ;;  %v2064_v44 = vadd.f32 %v2063_v58, %v1960_v10  ;;  %v2195_v51 = vadd.f32 %v2062_v35, %v1858_v28 }
 0x202   : > { %v2391_v54 = vadd.f32 %v2390_v49, %v2389_v25  ;;  %v1632_v21 = vpop.xlane.xlu1 %1631  ;;  %2752 = vperm.xlu1 %4803, %v2642_v62   ;;  %v1629_v9 = vpop.xlane.xlu0 %1628  ;;  %v2194_v63 = vadd.f32 %v2056_v31, %v1857_v13  ;;  %v1730_v20 = vrot.slane %v1729_v36, 1  ;;  %v1737_v0 = vadd.f32 %v1736_v22, %v1735_v12 }
 0x203   : > { %v2398_v45 = vrot.slane %v2397_v2, 1  ;;  %v2071_v48 = vrot.slane %v2070_v3, 2  ;;  %v1744_v1 = vrot.slane %v1632_v21, 4  ;;  %v2065_v15 = vrot.slane %v2064_v44, 2 }
 0x204   : > { %v2392_v53 = vrot.slane %v2391_v54, 1  ;;  %v1738_v16 = vrot.slane %v1629_v9, 4  ;;  %v2654_v59 = vrot.slane %v2557_v8, %v6323_v46  ;;  %v1731_v10 = vadd.f32 %v1730_v20, %v1729_v36 }
 0x205   : > { %v2399_v29 = vadd.f32 %v2398_v45, %v2397_v2  ;;  %v2072_v14 = vadd.f32 %v2071_v48, %v2070_v3  ;;  %v1745_v7 = vadd.f32 %v1744_v1, %v1632_v21  ;;  %v2066_v26 = vadd.f32 %v2065_v15, %v2064_v44 }
 0x206   : > { %v2393_v38 = vadd.f32 %v2392_v53, %v2391_v54  ;;  %v1739_v30 = vadd.f32 %v1738_v16, %v1629_v9  ;;  %v2300_v34 = vpop.xlane.xlu1 %2299  ;;  %2760 = vperm.xlu1 %4803, %v2650_v19   ;;  %v2297_v25 = vpop.xlane.xlu0 %2296  ;;  %v2646_v8 = vrot.slane %v2555_v41, %v6323_v46  ;;  %v1860_v36 = vadd.f32 %v1737_v0, %v6363_v23 }
 0x207   : > { %v6486_v18 = vadd.f32 %v2399_v29, %v2195_v51  ;;  %v2073_v43 = vrot.slane %v2072_v14, 1  ;;  %v1746_v50 = vrot.slane %v1745_v7, 2  ;;  %v2406_v40 = vrot.slane %v2300_v34, 4 }
 0x208   : > { %v2531_v57 = vadd.f32 %v2393_v38, %v2194_v63  ;;  %v2067_v35 = vrot.slane %v2066_v26, 1  ;;  %v2400_v32 = vrot.slane %v2297_v25, 4  ;;  %v1740_v62 = vrot.slane %v1739_v30, 2 }
 0x209   : > { %v2407_v12 = vadd.f32 %v2406_v40, %v2300_v34  ;;  %v2560_v31 = vmax.f32 %v6486_v18, 0.0  ;;  %v2074_v49 = vadd.f32 %v2073_v43, %v2072_v14  ;;  %v1747_v58 = vadd.f32 %v1746_v50, %v1745_v7 }
 0x20a   : > { %v2401_v19 = vadd.f32 %v2400_v32, %v2297_v25  ;;  %v1969_v28 = vpop.xlane.xlu1 %1968  ;;  %2764 = vperm.xlu1 %4803, %v2654_v59   ;;  %v2559_v2 = vmax.f32 %v2531_v57, 0.0  ;;  %v2068_v3 = vadd.f32 %v2067_v35, %v2066_v26  ;;  %v1966_v54 = vpop.xlane.xlu0 %1965  ;;  %v2658_v51 = vrot.slane %v2558_v47, %v6323_v46 }
 0x20b   : > { %v2408_v13 = vrot.slane %v2407_v12, 2  ;;  %v2081_v22 = vrot.slane %v1969_v28, 4  ;;  %2589 = vst.msk [vmem:[%s6425_s27 + $0x6] sm:$0x1] %vm2582_vm1, %v2560_v31  ;;  %v2075_v21 = vrot.slane %v1966_v54, 4  ;;  %v1859_v45 = vadd.f32 %v1731_v10, %v6382_v11 }
 0x20c   : > { %v2402_v44 = vrot.slane %v2401_v19, 2  ;;  %2588 = vst.msk [vmem:[%s6425_s27 + $0x5] sm:$0x1] %vm2582_vm1, %v2559_v2  ;;  %v1741_v48 = vadd.f32 %v1740_v62, %v1739_v30  ;;  %v2197_v63 = vadd.f32 %v2074_v49, %v1860_v36  ;;  %v1748_v42 = vrot.slane %v1747_v58, 1 }
 0x20d   : > { %v2409_v1 = vadd.f32 %v2408_v13, %v2407_v12  ;;  %v2082_v9 = vadd.f32 %v2081_v22, %v1969_v28  ;;  %v2076_v53 = vadd.f32 %v2075_v21, %v1966_v54  ;;  %v2196_v23 = vadd.f32 %v2068_v3, %v1859_v45 }
 0x20e   : > { %v2403_v41 = vadd.f32 %v2402_v44, %v2401_v19  ;;  %v1638_v15 = vpop.xlane.xlu1 %1637  ;;  %2768 = vperm.xlu1 %4803, %v2658_v51   ;;  %v1635_v14 = vpop.xlane.xlu0 %1634  ;;  %v2662_v11 = vrot.slane %v2559_v2, %v6323_v46  ;;  %v1742_v0 = vrot.slane %v1741_v48, 1  ;;  %v1749_v34 = vadd.f32 %v1748_v42, %v1747_v58 }
 0x20f   : > { %v2410_v16 = vrot.slane %v2409_v1, 1  ;;  %v2083_v20 = vrot.slane %v2082_v9, 2  ;;  %v1756_v29 = vrot.slane %v1638_v15, 4  ;;  %v2077_v47 = vrot.slane %v2076_v53, 2 }
 0x210   : > { %v2404_v24 = vrot.slane %v2403_v41, 1  ;;  %v1750_v7 = vrot.slane %v1635_v14, 4  ;;  %2756 = vperm.xlu0 %4804, %v2646_v8   ;;  %v2666_v49 = vrot.slane %v2560_v31, %v6323_v46  ;;  %v1439_v19 = vrot.slane %v6409_v5, 2  ;;  %v7961_v31 = vld [vmem:[#allocation16_spill] sm:$0xff] }
 0x211   : > { %v2411_v38 = vadd.f32 %v2410_v16, %v2409_v1  ;;  %v2084_v26 = vadd.f32 %v2083_v20, %v2082_v9  ;;  %v1757_v30 = vadd.f32 %v1756_v29, %v1638_v15  ;;  %v2078_v43 = vadd.f32 %v2077_v47, %v2076_v53 }
 0x212   : > { %v2405_v18 = vadd.f32 %v2404_v24, %v2403_v41  ;;  %v1751_v50 = vadd.f32 %v1750_v7, %v1635_v14  ;;  %v2306_v40 = vpop.xlane.xlu1 %2305  ;;  %2772 = vperm.xlu1 %4803, %v2662_v11   ;;  %v2303_v59 = vpop.xlane.xlu0 %2302  ;;  %v1743_v28 = vadd.f32 %v1742_v0, %v1741_v48  ;;  %v1449_v36 = vrot.slane %v6310_v61, 4 }
 0x213   : > { %v2534_v25 = vadd.f32 %v2411_v38, %v2197_v63  ;;  %v2085_v57 = vrot.slane %v2084_v26, 1  ;;  %v1758_v35 = vrot.slane %v1757_v30, 2  ;;  %v2418_v32 = vrot.slane %v2306_v40, 4 }
 0x214   : > { %v2533_v10 = vadd.f32 %v2405_v18, %v2196_v23  ;;  %v1752_v62 = vrot.slane %v1751_v50, 2  ;;  %v2412_v12 = vrot.slane %v2303_v59, 4  ;;  %v2079_v13 = vrot.slane %v2078_v43, 1 }
 0x215   : > { %v2419_v58 = vadd.f32 %v2418_v32, %v2306_v40  ;;  %v2562_v2 = vmax.f32 %v2534_v25, 0.0  ;;  %v2086_v3 = vadd.f32 %v2085_v57, %v2084_v26  ;;  %v1759_v44 = vadd.f32 %v1758_v35, %v1757_v30 }
 0x216   : > { %v2413_v22 = vadd.f32 %v2412_v12, %v2303_v59  ;;  %v1975_v54 = vpop.xlane.xlu1 %1974  ;;  %2776 = vperm.xlu1 %4803, %v2666_v49   ;;  %v2561_v8 = vmax.f32 %v2533_v10, 0.0  ;;  %v1972_v45 = vpop.xlane.xlu0 %1971  ;;  %v1862_v1 = vadd.f32 %v1749_v34, %v7961_v31  ;;  %v1753_v48 = vadd.f32 %v1752_v62, %v1751_v50 }
 0x217   : > { %v2420_v21 = vrot.slane %v2419_v58, 2  ;;  %v2093_v51 = vrot.slane %v1975_v54, 4  ;;  %2591 = vst.msk [vmem:[%s6425_s27 + $0x8] sm:$0x1] %vm2582_vm1, %v2562_v2  ;;  %v2087_v63 = vrot.slane %v1972_v45, 4  ;;  %v1861_v42 = vadd.f32 %v1743_v28, %v6388_v37 }
 0x218   : > { %v2414_v9 = vrot.slane %v2413_v22, 2  ;;  %2590 = vst.msk [vmem:[%s6425_s27 + $0x7] sm:$0x1] %vm2582_vm1, %v2561_v8  ;;  %v2670_v15 = vrot.slane %v2561_v8, %v6323_v46  ;;  %v2199_v23 = vadd.f32 %v2086_v3, %v1862_v1  ;;  %v2080_v16 = vadd.f32 %v2079_v13, %v2078_v43 }
 0x219   : > { %v2421_v41 = vadd.f32 %v2420_v21, %v2419_v58  ;;  %v2094_v53 = vadd.f32 %v2093_v51, %v1975_v54  ;;  %v2088_v29 = vadd.f32 %v2087_v63, %v1972_v45  ;;  %v1760_v24 = vrot.slane %v1759_v44, 1  ;;  %v7962_v45 = vld [vmem:[#allocation17_spill] sm:$0xff] }
 0x21a   : > { %v2415_v20 = vadd.f32 %v2414_v9, %v2413_v22  ;;  %v1644_v14 = vpop.xlane.xlu1 %1643  ;;  %2780 = vperm.xlu1 %4803, %v2670_v15   ;;  %v1641_v0 = vpop.xlane.xlu0 %1640  ;;  %v1754_v38 = vrot.slane %v1753_v48, 1  ;;  %v2674_v40 = vrot.slane %v2562_v2, %v6323_v46  ;;  %v6517_v43 = vadd.f32 %v1447_v33, %v6392_v27 }
 0x21b   : > { %v2422_v47 = vrot.slane %v2421_v41, 1  ;;  %v2095_v7 = vrot.slane %v2094_v53, 2  ;;  %v1768_v11 = vrot.slane %v1644_v14, 4  ;;  %v2089_v30 = vrot.slane %v2088_v29, 2 }
 0x21c   : > { %v2416_v26 = vrot.slane %v2415_v20, 1  ;;  %v1762_v34 = vrot.slane %v1641_v0, 4  ;;  %v2198_v25 = vadd.f32 %v2080_v16, %v1861_v42  ;;  %v1761_v59 = vadd.f32 %v1760_v24, %v1759_v44 }
 0x21d   : > { %v2423_v37 = vadd.f32 %v2422_v47, %v2421_v41  ;;  %v2096_v18 = vadd.f32 %v2095_v7, %v2094_v53  ;;  %v1769_v50 = vadd.f32 %v1768_v11, %v1644_v14  ;;  %v2090_v35 = vadd.f32 %v2089_v30, %v2088_v29 }
 0x21e   : > { %v2417_v57 = vadd.f32 %v2416_v26, %v2415_v20  ;;  %v2312_v32 = vpop.xlane.xlu1 %2311  ;;  %v1763_v62 = vadd.f32 %v1762_v34, %v1641_v0  ;;  %2784 = vperm.xlu1 %4803, %v2674_v40   ;;  %v2309_v49 = vpop.xlane.xlu0 %2308  ;;  %v1755_v28 = vadd.f32 %v1754_v38, %v1753_v48  ;;  %v6522_v27 = vadd.f32 %v1457_v6, %v6396_v39  ;;  %v1191_v40 = vld [vmem:[%s7956_s7 + $0xd] sm:$0x1] }
 0x21f   : > { %v2536_v10 = vadd.f32 %v2423_v37, %v2199_v23  ;;  %v2430_v12 = vrot.slane %v2312_v32, 4  ;;  %v1770_v3 = vrot.slane %v1769_v50, 2  ;;  %v2424_v2 = vrot.slane %v2309_v49, 4 }
 0x220   : > { %v2535_v58 = vadd.f32 %v2417_v57, %v2198_v25  ;;  %v2097_v33 = vrot.slane %v2096_v18, 1  ;;  %v1430_v54 = vadd.f32 %v1429_v55, %v6401_v17  ;;  %v2091_v8 = vrot.slane %v2090_v35, 1 }
 0x221   : > { %v2431_v13 = vadd.f32 %v2430_v12, %v2312_v32  ;;  %v2564_v22 = vmax.f32 %v2536_v10, 0.0  ;;  %v2425_v44 = vadd.f32 %v2424_v2, %v2309_v49  ;;  %v1864_v31 = vadd.f32 %v1761_v59, %v7962_v45 }
 0x222   : > { %v1981_v21 = vpop.xlane.xlu1 %1980  ;;  %v2563_v51 = vmax.f32 %v2535_v58, 0.0  ;;  %v1764_v1 = vrot.slane %v1763_v62, 2  ;;  %v1978_v63 = vpop.xlane.xlu0 %1977  ;;  %v1863_v39 = vadd.f32 %v1755_v28, %v6458_v52  ;;  %v1771_v6 = vadd.f32 %v1770_v3, %v1769_v50 }
 0x223   : > { %v2432_v48 = vrot.slane %v2431_v13, 2  ;;  %v2105_v9 = vrot.slane %v1981_v21, 4  ;;  %2593 = vst.msk [vmem:[%s6425_s27 + $0xa] sm:$0x1] %vm2582_vm1, %v2564_v22  ;;  %v2426_v42 = vrot.slane %v2425_v44, 2  ;;  %v2099_v41 = vrot.slane %v1978_v63, 4 }
 0x224   : > { %2592 = vst.msk [vmem:[%s6425_s27 + $0x9] sm:$0x1] %vm2582_vm1, %v2563_v51  ;;  %v2098_v17 = vadd.f32 %v2097_v33, %v2096_v18  ;;  %v2682_v15 = vrot.slane %v2564_v22, %v6323_v46  ;;  %v2092_v23 = vadd.f32 %v2091_v8, %v2090_v35  ;;  %v2678_v29 = vrot.slane %v2563_v51, %v6323_v46 }
 0x225   : > { %v2433_v55 = vadd.f32 %v2432_v48, %v2431_v13  ;;  %v2106_v53 = vadd.f32 %v2105_v9, %v1981_v21  ;;  %v2427_v16 = vadd.f32 %v2426_v42, %v2425_v44  ;;  %v2100_v20 = vadd.f32 %v2099_v41, %v1978_v63 }
 0x226   : > { %v1650_v14 = vpop.xlane.xlu1 %1649  ;;  %v1765_v24 = vadd.f32 %v1764_v1, %v1763_v62  ;;  %2792 = vperm.xlu0 %4804, %v2682_v15   ;;  %v1647_v11 = vpop.xlane.xlu0 %1646  ;;  %v1772_v0 = vrot.slane %v1771_v6, 1  ;;  %2788 = vperm.xlu1 %4803, %v2678_v29   ;;  %v6538_v34 = vadd.f32 %v1439_v19, %v6409_v5  ;;  %v2201_v37 = vadd.f32 %v2098_v17, %v1864_v31 }
 0x227   : > { %v2434_v47 = vrot.slane %v2433_v55, 1  ;;  %v2107_v7 = vrot.slane %v2106_v53, 2  ;;  %v1780_v52 = vrot.slane %v1650_v14, 4  ;;  %v2428_v38 = vrot.slane %v2427_v16, 1 }
 0x228   : > { %v2101_v26 = vrot.slane %v2100_v20, 2  ;;  %v1774_v30 = vrot.slane %v1647_v11, 4  ;;  %v6546_v25 = vadd.f32 %v1449_v36, %v6310_v61  ;;  %v2200_v57 = vadd.f32 %v2092_v23, %v1863_v39 }
 0x229   : > { %v2435_v18 = vadd.f32 %v2434_v47, %v2433_v55  ;;  %v2108_v50 = vadd.f32 %v2107_v7, %v2106_v53  ;;  %v2429_v35 = vadd.f32 %v2428_v38, %v2427_v16  ;;  %v1781_v62 = vadd.f32 %v1780_v52, %v1650_v14 }
 0x22a   : > { %v2102_v32 = vadd.f32 %v2101_v26, %v2100_v20  ;;  %v2318_v59 = vpop.xlane.xlu1 %2317  ;;  %v1775_v5 = vadd.f32 %v1774_v30, %v1647_v11  ;;  %v2315_v12 = vpop.xlane.xlu0 %2314  ;;  %v1773_v49 = vadd.f32 %v1772_v0, %v1771_v6  ;;  %v1766_v28 = vrot.slane %v1765_v24, 1  ;;  %v1194_v0 = vld [vmem:[%s7956_s7 + $0x10] sm:$0x1] }
 0x22b   : > { %v2538_v10 = vadd.f32 %v2435_v18, %v2201_v37  ;;  %v2442_v19 = vrot.slane %v2318_v59, 4  ;;  %v2537_v58 = vadd.f32 %v2429_v35, %v2200_v57  ;;  %v2436_v3 = vrot.slane %v2315_v12, 4 }
 0x22c   : > { %v1528_v2 = vadd.f32 %v1430_v54, %v1191_v40  ;;  %v2109_v33 = vrot.slane %v2108_v50, 1  ;;  %v1441_v61 = vrot.slane %v6538_v34, 1  ;;  %v2103_v36 = vrot.slane %v2102_v32, 1 }
 0x22d   : > { %v2443_v13 = vadd.f32 %v2442_v19, %v2318_v59  ;;  %v2566_v22 = vmax.f32 %v2538_v10, 0.0  ;;  %v2437_v8 = vadd.f32 %v2436_v3, %v2315_v12  ;;  %v2565_v21 = vmax.f32 %v2537_v58, 0.0  ;;  %v1193_v12 = vld [vmem:[%s7956_s7 + $0xf] sm:$0x1] }
 0x22e   : > { %v1987_v44 = vpop.xlane.xlu1 %1986  ;;  %v1782_v51 = vrot.slane %v1781_v62, 2  ;;  %v1776_v45 = vrot.slane %v1775_v5, 2  ;;  %v1984_v48 = vpop.xlane.xlu0 %1983  ;;  %v1866_v9 = vadd.f32 %v1773_v49, %v6413_v56  ;;  %v1767_v54 = vadd.f32 %v1766_v28, %v1765_v24 }
 0x22f   : > { %v2444_v31 = vrot.slane %v2443_v13, 2  ;;  %v2117_v1 = vrot.slane %v1987_v44, 4  ;;  %2595 = vst.msk [vmem:[%s6425_s27 + $0xc] sm:$0x1] %vm2582_vm1, %v2566_v22  ;;  %v2438_v63 = vrot.slane %v2437_v8, 2  ;;  %v2111_v39 = vrot.slane %v1984_v48, 4 }
 0x230   : > { %2594 = vst.msk [vmem:[%s6425_s27 + $0xb] sm:$0x1] %vm2582_vm1, %v2565_v21  ;;  %v2110_v6 = vadd.f32 %v2109_v33, %v2108_v50  ;;  %v2690_v17 = vrot.slane %v2566_v22, %v6323_v46  ;;  %v2104_v55 = vadd.f32 %v2103_v36, %v2102_v32  ;;  %v2686_v23 = vrot.slane %v2565_v21, %v6323_v46 }
 0x231   : > { %v2445_v42 = vadd.f32 %v2444_v31, %v2443_v13  ;;  %v2118_v41 = vadd.f32 %v2117_v1, %v1987_v44  ;;  %v2439_v53 = vadd.f32 %v2438_v63, %v2437_v8  ;;  %v2112_v15 = vadd.f32 %v2111_v39, %v1984_v48 }
 0x232   : > { %v1656_v16 = vpop.xlane.xlu1 %1655  ;;  %v1783_v20 = vadd.f32 %v1782_v51, %v1781_v62  ;;  %v1777_v29 = vadd.f32 %v1776_v45, %v1775_v5  ;;  %2800 = vperm.xlu0 %4804, %v2690_v17   ;;  %v1653_v24 = vpop.xlane.xlu0 %1652  ;;  %v1865_v47 = vadd.f32 %v1767_v54, %v1528_v2  ;;  %2796 = vperm.xlu1 %4803, %v2686_v23   ;;  %v1451_v38 = vrot.slane %v6546_v25, 2 }
 0x233   : > { %v2446_v14 = vrot.slane %v2445_v42, 1  ;;  %v2119_v56 = vrot.slane %v2118_v41, 2  ;;  %v2440_v7 = vrot.slane %v2439_v53, 1  ;;  %v2113_v52 = vrot.slane %v2112_v15, 2 }
 0x234   : > { %v1786_v11 = vrot.slane %v1653_v24, 4  ;;  %v2203_v26 = vadd.f32 %v2110_v6, %v1866_v9  ;;  %v1442_v18 = vadd.f32 %v1441_v61, %v6538_v34  ;;  %v2202_v50 = vadd.f32 %v2104_v55, %v1865_v47 }
 0x235   : > { %v2447_v30 = vadd.f32 %v2446_v14, %v2445_v42  ;;  %v2120_v37 = vadd.f32 %v2119_v56, %v2118_v41  ;;  %v2441_v40 = vadd.f32 %v2440_v7, %v2439_v53  ;;  %v2114_v57 = vadd.f32 %v2113_v52, %v2112_v15  ;;  %v7963_v53 = vld [vmem:[#allocation15_spill] sm:$0xff] }
 0x236   : > { %v2324_v35 = vpop.xlane.xlu1 %2323  ;;  %v1784_v32 = vrot.slane %v1783_v20, 1  ;;  %v1778_v59 = vrot.slane %v1777_v29, 1  ;;  %v2321_v5 = vpop.xlane.xlu0 %2320  ;;  %v1531_v19 = vadd.f32 %v6517_v43, %v1194_v0  ;;  %v1787_v28 = vadd.f32 %v1786_v11, %v1653_v24 }
 0x237   : > { %v2540_v10 = vadd.f32 %v2447_v30, %v2203_v26  ;;  %v2454_v62 = vrot.slane %v2324_v35, 4  ;;  %v2539_v49 = vadd.f32 %v2441_v40, %v2202_v50  ;;  %v2448_v58 = vrot.slane %v2321_v5, 4 }
 0x238   : > { %v2121_v34 = vrot.slane %v2120_v37, 1  ;;  %v1792_v3 = vrot.slane %v1656_v16, 4  ;;  %v1452_v13 = vadd.f32 %v1451_v38, %v6546_v25  ;;  %v2115_v22 = vrot.slane %v2114_v57, 1 }
 0x239   : > { %v2455_v2 = vadd.f32 %v2454_v62, %v2324_v35  ;;  %v2568_v33 = vmax.f32 %v2540_v10, 0.0  ;;  %v2449_v61 = vadd.f32 %v2448_v58, %v2321_v5  ;;  %v2567_v8 = vmax.f32 %v2539_v49, 0.0 }
 0x23a   : > { %v1993_v36 = vpop.xlane.xlu1 %1992  ;;  %v1530_v43 = vadd.f32 %v1442_v18, %v1193_v12  ;;  %v1785_v44 = vadd.f32 %v1784_v32, %v1783_v20  ;;  %v1779_v21 = vadd.f32 %v1778_v59, %v1777_v29  ;;  %v1990_v45 = vpop.xlane.xlu0 %1989  ;;  %v1788_v31 = vrot.slane %v1787_v28, 2 }
 0x23b   : > { %v2456_v51 = vrot.slane %v2455_v2, 2  ;;  %2597 = vst.msk [vmem:[%s6425_s27 + $0xe] sm:$0x1] %vm2582_vm1, %v2568_v33  ;;  %v2450_v1 = vrot.slane %v2449_v61, 2  ;;  %v2129_v48 = vrot.slane %v1993_v36, 4  ;;  %v2123_v9 = vrot.slane %v1990_v45, 4 }
 0x23c   : > { %2596 = vst.msk [vmem:[%s6425_s27 + $0xd] sm:$0x1] %vm2582_vm1, %v2567_v8  ;;  %v2122_v54 = vadd.f32 %v2121_v34, %v2120_v37  ;;  %v1793_v63 = vadd.f32 %v1792_v3, %v1656_v16  ;;  %v2698_v39 = vrot.slane %v2568_v33, %v6323_v46  ;;  %v2116_v6 = vadd.f32 %v2115_v22, %v2114_v57 }
 0x23d   : > { %v2457_v25 = vadd.f32 %v2456_v51, %v2455_v2  ;;  %v2451_v42 = vadd.f32 %v2450_v1, %v2449_v61  ;;  %v2124_v41 = vadd.f32 %v2123_v9, %v1990_v45  ;;  %v2694_v17 = vrot.slane %v2567_v8, %v6323_v46  ;;  %v1195_v2 = vld [vmem:[%s7956_s7 + $0x11] sm:$0x1] }
 0x23e   : > { %v6572_v55 = vpop.xlane.xlu1 %1327  ;;  %v1461_v15 = vrot.slane %v7963_v53, 4  ;;  %v1868_v23 = vadd.f32 %v1785_v44, %v1531_v19  ;;  %v1867_v20 = vadd.f32 %v1779_v21, %v1530_v43  ;;  %2808 = vperm.xlu0 %4804, %v2698_v39   ;;  %v1659_v14 = vpop.xlane.xlu0 %1658  ;;  %v1789_v56 = vadd.f32 %v1788_v31, %v1787_v28 }
 0x23f   : > { %v2458_v29 = vrot.slane %v2457_v25, 1  ;;  %v2452_v24 = vrot.slane %v2451_v42, 1  ;;  %v2130_v16 = vadd.f32 %v2129_v48, %v1993_v36  ;;  %v2125_v47 = vrot.slane %v2124_v41, 2  ;;  %2804 = vperm.xlu1 %4803, %v2694_v17  }
 0x240   : > { %v1468_v7 = vadd.f32 %v1467_v4, %v6304_v60  ;;  %v2205_v52 = vadd.f32 %v2122_v54, %v1868_v23  ;;  %v1794_v11 = vrot.slane %v1793_v63, 2  ;;  %v1453_v38 = vrot.slane %v1452_v13, 1 }
 0x241   : > { %v2459_v0 = vadd.f32 %v2458_v29, %v2457_v25  ;;  %v2204_v26 = vadd.f32 %v2116_v6, %v1867_v20  ;;  %v2453_v30 = vadd.f32 %v2452_v24, %v2451_v42  ;;  %v2126_v37 = vadd.f32 %v2125_v47, %v2124_v41  ;;  %v1196_v42 = vld [vmem:[%s7956_s7 + $0x12] sm:$0x1] }
 0x242   : > { %v1996_v18 = vpop.xlane.xlu1 %1995  ;;  %v1459_v50 = vrot.slane %v6522_v27, 1  ;;  %v1462_v40 = vadd.f32 %v1461_v15, %v7963_v53  ;;  %v1798_v35 = vrot.slane %v1659_v14, 4  ;;  %v2327_v32 = vpop.xlane.xlu0 %2326  ;;  %v1790_v59 = vrot.slane %v1789_v56, 1 }
 0x243   : > { %v2542_v57 = vadd.f32 %v2459_v0, %v2205_v52  ;;  %v2541_v10 = vadd.f32 %v2453_v30, %v2204_v26  ;;  %v2131_v62 = vrot.slane %v2130_v16, 2  ;;  %v2460_v60 = vrot.slane %v2327_v32, 4 }
 0x244   : > { %v1795_v4 = vadd.f32 %v1794_v11, %v1793_v63  ;;  %v2135_v5 = vrot.slane %v1996_v18, 4  ;;  %v1454_v12 = vadd.f32 %v1453_v38, %v1452_v13  ;;  %v2127_v49 = vrot.slane %v2126_v37, 1 }
 0x245   : > { %v2570_v19 = vmax.f32 %v2542_v57, 0.0  ;;  %v2461_v28 = vadd.f32 %v2460_v60, %v2327_v32  ;;  %v2569_v34 = vmax.f32 %v2541_v10, 0.0  ;;  %v1469_v3 = vrot.slane %v1468_v7, 2 }
 0x246   : > { %v6580_v58 = vpop.xlane.xlu1 %1330  ;;  %v1463_v33 = vrot.slane %v1462_v40, 2  ;;  %v1799_v22 = vadd.f32 %v1798_v35, %v1659_v14  ;;  %v1662_v61 = vpop.xlane.xlu0 %1661  ;;  %v1460_v36 = vadd.f32 %v1459_v50, %v6522_v27  ;;  %v1791_v8 = vadd.f32 %v1790_v59, %v1789_v56 }
 0x247   : > { %2599 = vst.msk [vmem:[%s6425_s27 + $0x10] sm:$0x1] %vm2582_vm1, %v2570_v19  ;;  %v2132_v43 = vadd.f32 %v2131_v62, %v2130_v16  ;;  %v2462_v13 = vrot.slane %v2461_v28, 2  ;;  %2598 = vst.msk [vmem:[%s6425_s27 + $0xf] sm:$0x1] %vm2582_vm1, %v2569_v34  ;;  %v1796_v44 = vrot.slane %v1795_v4, 1  ;;  %v2136_v21 = vadd.f32 %v2135_v5, %v1996_v18 }
 0x248   : > { %v1804_v51 = vrot.slane %v1662_v61, 4  ;;  %v2706_v45 = vrot.slane %v2570_v19, %v6323_v46  ;;  %v1532_v31 = vadd.f32 %v1454_v12, %v1195_v2  ;;  %v2128_v1 = vadd.f32 %v2127_v49, %v2126_v37  ;;  %v1198_v12 = vld [vmem:[%s7956_s7 + $0x14] sm:$0x1] }
 0x249   : > { %v2463_v48 = vadd.f32 %v2462_v13, %v2461_v28  ;;  %v2702_v9 = vrot.slane %v2569_v34, %v6323_v46  ;;  %v1470_v63 = vadd.f32 %v1469_v3, %v1468_v7  ;;  %v1464_v25 = vadd.f32 %v1463_v33, %v1462_v40 }
 0x24a   : > { %v1999_v54 = vpop.xlane.xlu1 %1998  ;;  %v1473_v27 = vrot.slane %v6572_v55, 4  ;;  %v1800_v39 = vrot.slane %v1799_v22, 2  ;;  %2816 = vperm.xlu0 %4804, %v2706_v45   ;;  %v2330_v6 = vpop.xlane.xlu0 %2329  ;;  %v1869_v41 = vadd.f32 %v1791_v8, %v1532_v31  ;;  %v2133_v17 = vrot.slane %v2132_v43, 1 }
 0x24b   : > { %v2464_v53 = vrot.slane %v2463_v48, 1  ;;  %2812 = vperm.xlu1 %4803, %v2702_v9   ;;  %v2466_v15 = vrot.slane %v2330_v6, 4  ;;  %v1797_v23 = vadd.f32 %v1796_v44, %v1795_v4  ;;  %v2137_v20 = vrot.slane %v2136_v21, 2 }
 0x24c   : > { %v1805_v29 = vadd.f32 %v1804_v51, %v1662_v61  ;;  %v2206_v14 = vadd.f32 %v2128_v1, %v1869_v41  ;;  %v2141_v24 = vrot.slane %v1999_v54, 4  ;;  %v1533_v7 = vadd.f32 %v1460_v36, %v1196_v42  ;;  %v1197_v61 = vld [vmem:[%s7956_s7 + $0x13] sm:$0x1] }
 0x24d   : > { %v2465_v56 = vadd.f32 %v2464_v53, %v2463_v48  ;;  %v2467_v16 = vadd.f32 %v2466_v15, %v2330_v6  ;;  %v1471_v52 = vrot.slane %v1470_v63, 1  ;;  %v1465_v11 = vrot.slane %v1464_v25, 1 }
 0x24e   : > { %v1334_v47 = vpop.xlane.xlu1 %1333  ;;  %v1801_v0 = vadd.f32 %v1800_v39, %v1799_v22  ;;  %v1665_v38 = vpop.xlane.xlu0 %1664  ;;  %v2134_v26 = vadd.f32 %v2133_v17, %v2132_v43  ;;  %v1474_v30 = vadd.f32 %v1473_v27, %v6572_v55  ;;  %v2138_v50 = vadd.f32 %v2137_v20, %v2136_v21 }
 0x24f   : > { %v2543_v37 = vadd.f32 %v2465_v56, %v2206_v14  ;;  %v2468_v18 = vrot.slane %v2467_v16, 2  ;;  %v1806_v40 = vrot.slane %v1805_v29, 2  ;;  %v1870_v57 = vadd.f32 %v1797_v23, %v1533_v7 }
 0x250   : > { %v2142_v32 = vadd.f32 %v2141_v24, %v1999_v54  ;;  %v1472_v62 = vadd.f32 %v1471_v52, %v1470_v63  ;;  %v1466_v60 = vadd.f32 %v1465_v11, %v1464_v25  ;;  %v1802_v4 = vrot.slane %v1801_v0, 1 }
 0x251   : > { %v2571_v35 = vmax.f32 %v2543_v37, 0.0  ;;  %v2469_v59 = vadd.f32 %v2468_v18, %v2467_v16  ;;  %v1810_v5 = vrot.slane %v1665_v38, 4  ;;  %v2207_v55 = vadd.f32 %v2134_v26, %v1870_v57 }
 0x252   : > { %v2002_v10 = vpop.xlane.xlu1 %2001  ;;  %v2333_v19 = vpop.xlane.xlu0 %2332  ;;  %v1475_v49 = vrot.slane %v1474_v30, 2  ;;  %v2139_v3 = vrot.slane %v2138_v50, 1  ;;  %v1479_v2 = vrot.slane %v6580_v58, 4  ;;  %v1807_v33 = vadd.f32 %v1806_v40, %v1805_v29 }
 0x253   : > { %2600 = vst.msk [vmem:[%s6425_s27 + $0x11] sm:$0x1] %vm2582_vm1, %v2571_v35  ;;  %v2470_v28 = vrot.slane %v2469_v59, 1  ;;  %v2472_v34 = vrot.slane %v2333_v19, 4  ;;  %v2710_v22 = vrot.slane %v2571_v35, %v6323_v46  ;;  %v2143_v36 = vrot.slane %v2142_v32, 2 }
 0x254   : > { %v2147_v43 = vrot.slane %v2002_v10, 4  ;;  %v1535_v21 = vadd.f32 %v1472_v62, %v1198_v12  ;;  %v1803_v51 = vadd.f32 %v1802_v4, %v1801_v0  ;;  %v1485_v45 = vrot.slane %v1334_v47, 4 }
 0x255   : > { %v2471_v8 = vadd.f32 %v2470_v28, %v2469_v59  ;;  %v2473_v13 = vadd.f32 %v2472_v34, %v2333_v19  ;;  %v1811_v31 = vadd.f32 %v1810_v5, %v1665_v38  ;;  %2820 = vperm.xlu1 %4803, %v2710_v22   ;;  %v1476_v48 = vadd.f32 %v1475_v49, %v1474_v30 }
 0x256   : > { %v1337_v44 = vpop.xlane.xlu1 %1336  ;;  %v1668_v1 = vpop.xlane.xlu0 %1667  ;;  %v1534_v25 = vadd.f32 %v1466_v60, %v1197_v61  ;;  %v2140_v27 = vadd.f32 %v2139_v3, %v2138_v50  ;;  %v1480_v39 = vadd.f32 %v1479_v2, %v6580_v58  ;;  %v1808_v6 = vrot.slane %v1807_v33, 1 }
 0x257   : > { %v2544_v9 = vadd.f32 %v2471_v8, %v2207_v55  ;;  %v2474_v54 = vrot.slane %v2473_v13, 2  ;;  %v1816_v63 = vrot.slane %v1668_v1, 4  ;;  %v2144_v42 = vadd.f32 %v2143_v36, %v2142_v32 }
 0x258   : > { %v2148_v17 = vadd.f32 %v2147_v43, %v2002_v10  ;;  %v1871_v23 = vadd.f32 %v1803_v51, %v1534_v25  ;;  %v1486_v20 = vadd.f32 %v1485_v45, %v1334_v47  ;;  %v1812_v29 = vrot.slane %v1811_v31, 2 }
 0x259   : > { %v2572_v41 = vmax.f32 %v2544_v9, 0.0  ;;  %v2475_v53 = vadd.f32 %v2474_v54, %v2473_v13  ;;  %v1477_v24 = vrot.slane %v1476_v48, 1  ;;  %v1817_v7 = vadd.f32 %v1816_v63, %v1668_v1 }
 0x25a   : > { %v2005_v15 = vpop.xlane.xlu1 %2004  ;;  %v2336_v56 = vpop.xlane.xlu0 %2335  ;;  %v2208_v11 = vadd.f32 %v2140_v27, %v1871_v23  ;;  %v1481_v0 = vrot.slane %v1480_v39, 2  ;;  %v1809_v58 = vadd.f32 %v1808_v6, %v1807_v33  ;;  %v2145_v26 = vrot.slane %v2144_v42, 1 }
 0x25b   : > { %v2153_v14 = vrot.slane %v2005_v15, 4  ;;  %2601 = vst.msk [vmem:[%s6425_s27 + $0x12] sm:$0x1] %vm2582_vm1, %v2572_v41  ;;  %v2476_v16 = vrot.slane %v2475_v53, 1  ;;  %v2478_v52 = vrot.slane %v2336_v56, 4  ;;  %v2714_v38 = vrot.slane %v2572_v41, %v6323_v46 }
 0x25c   : > { %v2149_v30 = vrot.slane %v2148_v17, 2  ;;  %v1487_v47 = vrot.slane %v1486_v20, 2  ;;  %v1813_v40 = vadd.f32 %v1812_v29, %v1811_v31  ;;  %v1491_v57 = vrot.slane %v1337_v44, 4 }
 0x25d   : > { %v2477_v37 = vadd.f32 %v2476_v16, %v2475_v53  ;;  %v2479_v18 = vadd.f32 %v2478_v52, %v2336_v56  ;;  %v2154_v35 = vadd.f32 %v2153_v14, %v2005_v15  ;;  %2824 = vperm.xlu0 %4804, %v2714_v38   ;;  %v1478_v59 = vadd.f32 %v1477_v24, %v1476_v48  ;;  %v1199_v48 = vld [vmem:[%s7956_s7 + $0x15] sm:$0x1] }
 0x25e   : > { %v1340_v50 = vpop.xlane.xlu1 %1339  ;;  %v1671_v32 = vpop.xlane.xlu0 %1670  ;;  %v1818_v62 = vrot.slane %v1817_v7, 2  ;;  %v1482_v4 = vadd.f32 %v1481_v0, %v1480_v39  ;;  %v1872_v5 = vadd.f32 %v1809_v58, %v1535_v21  ;;  %v2146_v55 = vadd.f32 %v2145_v26, %v2144_v42  ;;  %v1200_v0 = vld [vmem:[%s7956_s7 + $0x16] sm:$0x1] }
 0x25f   : > { %v2545_v10 = vadd.f32 %v2477_v37, %v2208_v11  ;;  %v2480_v60 = vrot.slane %v2479_v18, 2  ;;  %v1497_v19 = vrot.slane %v1340_v50, 4  ;;  %v1822_v12 = vrot.slane %v1671_v32, 4 }
 0x260   : > { %v2150_v49 = vadd.f32 %v2149_v30, %v2148_v17  ;;  %v1488_v2 = vadd.f32 %v1487_v47, %v1486_v20  ;;  %v1814_v33 = vrot.slane %v1813_v40, 1  ;;  %v1492_v22 = vadd.f32 %v1491_v57, %v1337_v44 }
 0x261   : > { %v2573_v28 = vmax.f32 %v2545_v10, 0.0  ;;  %v2481_v34 = vadd.f32 %v2480_v60, %v2479_v18  ;;  %v2155_v61 = vrot.slane %v2154_v35, 2  ;;  %v1819_v8 = vadd.f32 %v1818_v62, %v1817_v7  ;;  %v1201_v18 = vld [vmem:[%s7956_s7 + $0x17] sm:$0x1] }
 0x262   : > { %v2008_v3 = vpop.xlane.xlu1 %2007  ;;  %v2339_v36 = vpop.xlane.xlu0 %2338  ;;  %v1483_v45 = vrot.slane %v1482_v4, 1  ;;  %v1498_v21 = vadd.f32 %v1497_v19, %v1340_v50  ;;  %v1823_v31 = vadd.f32 %v1822_v12, %v1671_v32  ;;  %v2209_v9 = vadd.f32 %v2146_v55, %v1872_v5 }
 0x263   : > { %2602 = vst.msk [vmem:[%s6425_s27 + $0x13] sm:$0x1] %vm2582_vm1, %v2573_v28  ;;  %v2482_v43 = vrot.slane %v2481_v34, 1  ;;  %v2159_v13 = vrot.slane %v2008_v3, 4  ;;  %v2484_v51 = vrot.slane %v2339_v36, 4  ;;  %v2718_v1 = vrot.slane %v2573_v28, %v6323_v46 }
 0x264   : > { %v2151_v54 = vrot.slane %v2150_v49, 1  ;;  %v1489_v27 = vrot.slane %v1488_v2, 1  ;;  %v1815_v39 = vadd.f32 %v1814_v33, %v1813_v40  ;;  %v1493_v6 = vrot.slane %v1492_v22, 2 }
 0x265   : > { %v2483_v44 = vadd.f32 %v2482_v43, %v2481_v34  ;;  %v2485_v63 = vadd.f32 %v2484_v51, %v2339_v36  ;;  %v2156_v42 = vadd.f32 %v2155_v61, %v2154_v35  ;;  %2828 = vperm.xlu1 %4803, %v2718_v1   ;;  %v1820_v17 = vrot.slane %v1819_v8, 1 }
 0x266   : > { %v6617_v25 = vpop.xlane.xlu1 %1342  ;;  %v1674_v41 = vpop.xlane.xlu0 %1673  ;;  %v2160_v15 = vadd.f32 %v2159_v13, %v2008_v3  ;;  %v1536_v20 = vadd.f32 %v1478_v59, %v1199_v48  ;;  %v1499_v29 = vrot.slane %v1498_v21, 2  ;;  %v1824_v14 = vrot.slane %v1823_v31, 2 }
 0x267   : > { %v2546_v53 = vadd.f32 %v2483_v44, %v2209_v9  ;;  %v2486_v23 = vrot.slane %v2485_v63, 2  ;;  %v1828_v56 = vrot.slane %v1674_v41, 4  ;;  %v1484_v24 = vadd.f32 %v1483_v45, %v1482_v4 }
 0x268   : > { %v2152_v16 = vadd.f32 %v2151_v54, %v2150_v49  ;;  %v1490_v58 = vadd.f32 %v1489_v27, %v1488_v2  ;;  %v1873_v38 = vadd.f32 %v1815_v39, %v1536_v20  ;;  %v1494_v26 = vadd.f32 %v1493_v6, %v1492_v22 }
 0x269   : > { %v2574_v7 = vmax.f32 %v2546_v53, 0.0  ;;  %v2487_v52 = vadd.f32 %v2486_v23, %v2485_v63  ;;  %v2157_v30 = vrot.slane %v2156_v42, 1  ;;  %v1821_v50 = vadd.f32 %v1820_v17, %v1819_v8  ;;  %v1202_v63 = vld [vmem:[%s7956_s7 + $0x18] sm:$0x1]  ;;  %v1203_v23 = vld [vmem:[%s7956_s7 + $0x19] sm:$0x1] }
 0x26a   : > { %v2011_v11 = vpop.xlane.xlu1 %2010  ;;  %v2342_v37 = vpop.xlane.xlu0 %2341  ;;  %v2161_v47 = vrot.slane %v2160_v15, 2  ;;  %v1500_v35 = vadd.f32 %v1499_v29, %v1498_v21  ;;  %v1825_v32 = vadd.f32 %v1824_v14, %v1823_v31  ;;  %v1829_v59 = vadd.f32 %v1828_v56, %v1674_v41 }
 0x26b   : > { %2603 = vst.msk [vmem:[%s6425_s27 + $0x14] sm:$0x1] %vm2582_vm1, %v2574_v7  ;;  %v2488_v40 = vrot.slane %v2487_v52, 1  ;;  %v2490_v57 = vrot.slane %v2342_v37, 4  ;;  %v2722_v10 = vrot.slane %v2574_v7, %v6323_v46  ;;  %v2210_v62 = vadd.f32 %v2152_v16, %v1873_v38 }
 0x26c   : > { %v2165_v4 = vrot.slane %v2011_v11, 4  ;;  %v1537_v12 = vadd.f32 %v1484_v24, %v1200_v0  ;;  %v1538_v55 = vadd.f32 %v1490_v58, %v1201_v18  ;;  %v1495_v49 = vrot.slane %v1494_v26, 1 }
 0x26d   : > { %v2489_v60 = vadd.f32 %v2488_v40, %v2487_v52  ;;  %v2491_v5 = vadd.f32 %v2490_v57, %v2342_v37  ;;  %v2158_v28 = vadd.f32 %v2157_v30, %v2156_v42  ;;  %2832 = vperm.xlu0 %4804, %v2722_v10   ;;  %v2162_v3 = vadd.f32 %v2161_v47, %v2160_v15 }
 0x26e   : > { %v6628_v19 = vpop.xlane.xlu1 %1345  ;;  %v1874_v61 = vadd.f32 %v1821_v50, %v1537_v12  ;;  %v1501_v36 = vrot.slane %v1500_v35, 1  ;;  %v1826_v8 = vrot.slane %v1825_v32, 1  ;;  %v1830_v43 = vrot.slane %v1829_v59, 2 }
 0x26f   : > { %v1677_v34 = vpop.xlane.xlu0 %1676  ;;  %v2547_v2 = vadd.f32 %v2489_v60, %v2210_v62  ;;  %v2492_v33 = vrot.slane %v2491_v5, 2  ;;  %v2166_v51 = vadd.f32 %v2165_v4, %v2011_v11  ;;  %v1496_v1 = vadd.f32 %v1495_v49, %v1494_v26 }
 0x270   : > { %v1834_v22 = vrot.slane %v1677_v34, 4  ;;  %v2211_v48 = vadd.f32 %v2158_v28, %v1874_v61  ;;  %v1503_v9 = vrot.slane %v6617_v25, 4  ;;  %v2163_v27 = vrot.slane %v2162_v3, 1 }
 0x271   : > { %v2575_v13 = vmax.f32 %v2547_v2, 0.0  ;;  %v2493_v45 = vadd.f32 %v2492_v33, %v2491_v5  ;;  %v1502_v41 = vadd.f32 %v1501_v36, %v1500_v35  ;;  %v1827_v17 = vadd.f32 %v1826_v8, %v1825_v32 }
 0x272   : > { %v1835_v21 = vadd.f32 %v1834_v22, %v1677_v34  ;;  %v2014_v31 = vpop.xlane.xlu1 %2013  ;;  %v1831_v20 = vadd.f32 %v1830_v43, %v1829_v59  ;;  %v2167_v29 = vrot.slane %v2166_v51, 2  ;;  %v1539_v16 = vadd.f32 %v1496_v1, %v1202_v63 }
 0x273   : > { %v2171_v54 = vrot.slane %v2014_v31, 4  ;;  %v2345_v44 = vpop.xlane.xlu0 %2344  ;;  %2604 = vst.msk [vmem:[%s6425_s27 + $0x15] sm:$0x1] %vm2582_vm1, %v2575_v13  ;;  %v2494_v39 = vrot.slane %v2493_v45, 1  ;;  %v2726_v15 = vrot.slane %v2575_v13, %v6323_v46  ;;  %v1504_v7 = vadd.f32 %v1503_v9, %v6617_v25 }
 0x274   : > { %v1836_v6 = vrot.slane %v1835_v21, 2  ;;  %v2496_v42 = vrot.slane %v2345_v44, 4  ;;  %v2164_v58 = vadd.f32 %v2163_v27, %v2162_v3  ;;  %v1540_v37 = vadd.f32 %v1502_v41, %v1203_v23 }
 0x275   : > { %v2172_v53 = vadd.f32 %v2171_v54, %v2014_v31  ;;  %v2495_v14 = vadd.f32 %v2494_v39, %v2493_v45  ;;  %2836 = vperm.xlu1 %4803, %v2726_v15   ;;  %v1875_v18 = vadd.f32 %v1827_v17, %v1538_v55  ;;  %v1509_v50 = vrot.slane %v6628_v19, 4 }
 0x276   : > { %v2497_v56 = vadd.f32 %v2496_v42, %v2345_v44  ;;  %v1683_v24 = vpop.xlane.xlu1 %1682  ;;  %v1837_v52 = vadd.f32 %v1836_v6, %v1835_v21  ;;  %v1832_v40 = vrot.slane %v1831_v20, 1  ;;  %v2168_v57 = vadd.f32 %v2167_v29, %v2166_v51 }
 0x277   : > { %v2173_v11 = vrot.slane %v2172_v53, 2  ;;  %v1680_v0 = vpop.xlane.xlu0 %1679  ;;  %v2548_v38 = vadd.f32 %v2495_v14, %v2211_v48  ;;  %v1846_v10 = vrot.slane %v1683_v24, 4  ;;  %v2212_v5 = vadd.f32 %v2164_v58, %v1875_v18 }
 0x278   : > { %v2498_v26 = vrot.slane %v2497_v56, 2  ;;  %v1840_v30 = vrot.slane %v1680_v0, 4  ;;  %v1838_v25 = vrot.slane %v1837_v52, 1  ;;  %v1505_v12 = vrot.slane %v1504_v7, 2 }
 0x279   : > { %v2174_v47 = vadd.f32 %v2173_v11, %v2172_v53  ;;  %v2576_v35 = vmax.f32 %v2548_v38, 0.0  ;;  %v1510_v55 = vadd.f32 %v1509_v50, %v6628_v19  ;;  %v1833_v33 = vadd.f32 %v1832_v40, %v1831_v20 }
 0x27a   : > { %v2499_v32 = vadd.f32 %v2498_v26, %v2497_v56  ;;  %v2351_v59 = vpop.xlane.xlu1 %2350  ;;  %v1841_v62 = vadd.f32 %v1840_v30, %v1680_v0  ;;  %v2169_v22 = vrot.slane %v2168_v57, 1  ;;  %v1839_v43 = vadd.f32 %v1838_v25, %v1837_v52 }
 0x27b   : > { %v2508_v60 = vrot.slane %v2351_v59, 4  ;;  %v2348_v4 = vpop.xlane.xlu0 %2347  ;;  %2605 = vst.msk [vmem:[%s6425_s27 + $0x16] sm:$0x1] %vm2582_vm1, %v2576_v35  ;;  %v2175_v34 = vrot.slane %v2174_v47, 1  ;;  %v2730_v2 = vrot.slane %v2576_v35, %v6323_v46  ;;  %v1847_v13 = vadd.f32 %v1846_v10, %v1683_v24 }
 0x27c   : > { %v2500_v49 = vrot.slane %v2499_v32, 1  ;;  %v2502_v28 = vrot.slane %v2348_v4, 4  ;;  %v1842_v51 = vrot.slane %v1841_v62, 2  ;;  %v1506_v9 = vadd.f32 %v1505_v12, %v1504_v7 }
 0x27d   : > { %v2509_v3 = vadd.f32 %v2508_v60, %v2351_v59  ;;  %2840 = vperm.xlu0 %4804, %v2730_v2   ;;  %v1511_v54 = vrot.slane %v1510_v55, 2  ;;  %v2176_v44 = vadd.f32 %v2175_v34, %v2174_v47  ;;  %v2170_v27 = vadd.f32 %v2169_v22, %v2168_v57  ;;  %v1205_v2 = vld [vmem:[%s7956_s7 + $0x1b] sm:$0x1] }
 0x27e   : > { %v2501_v61 = vadd.f32 %v2500_v49, %v2499_v32  ;;  %v2503_v36 = vadd.f32 %v2502_v28, %v2348_v4  ;;  %v2354_v8 = vpop.xlane.xlu1 %2353  ;;  %v1876_v41 = vadd.f32 %v1833_v33, %v1539_v16  ;;  %v1877_v17 = vadd.f32 %v1839_v43, %v1540_v37 }
 0x27f   : > { %v2510_v45 = vrot.slane %v2509_v3, 2  ;;  %v2017_v21 = vpop.xlane.xlu0 %2016  ;;  %v2514_v48 = vrot.slane %v2354_v8, 4  ;;  %v1848_v53 = vrot.slane %v1847_v13, 2  ;;  %v1843_v20 = vadd.f32 %v1842_v51, %v1841_v62  ;;  %v1204_v62 = vld [vmem:[%s7956_s7 + $0x1a] sm:$0x1]  ;;  %s7116_s7 = sld [smem:[#allocation7 + $0x58]] }
 0x280   : > { %v2549_v31 = vadd.f32 %v2501_v61, %v2212_v5  ;;  %v2504_v1 = vrot.slane %v2503_v36, 2  ;;  %v2177_v19 = vrot.slane %v2017_v21, 4  ;;  %v1512_v24 = vadd.f32 %v1511_v54, %v1510_v55 }
 0x281   : > { %v2511_v63 = vadd.f32 %v2510_v45, %v2509_v3  ;;  %v2515_v14 = vadd.f32 %v2514_v48, %v2354_v8  ;;  %v2214_v7 = vadd.f32 %v2176_v44, %v1877_v17  ;;  %v1507_v11 = vrot.slane %v1506_v9, 1 }
 0x282   : > { %v2577_v39 = vmax.f32 %v2549_v31, 0.0  ;;  %v2505_v6 = vadd.f32 %v2504_v1, %v2503_v36  ;;  %v2178_v42 = vadd.f32 %v2177_v19, %v2017_v21  ;;  %v2213_v0 = vadd.f32 %v2170_v27, %v1876_v41 }
 0x283   : > { %v2512_v15 = vrot.slane %v2511_v63, 1  ;;  %v2020_v23 = vpop.xlane.xlu0 %2019  ;;  %v1849_v26 = vadd.f32 %v1848_v53, %v1847_v13  ;;  %v1844_v37 = vrot.slane %v1843_v20, 1  ;;  %v2516_v50 = vrot.slane %v2515_v14, 2  ;;  %v2753_v53 = vpop.permute.xlu1 %2752 }
 0x284   : > { %2606 = vst.msk [vmem:[%s6425_s27 + $0x17] sm:$0x1] %vm2582_vm1, %v2577_v39  ;;  %v2506_v29 = vrot.slane %v2505_v6, 1  ;;  %v2179_v56 = vrot.slane %v2178_v42, 2  ;;  %v2183_v16 = vrot.slane %v2020_v23, 4  ;;  %v2734_v47 = vrot.slane %v2577_v39, %v6323_v46 }
 0x285   : > { %v2513_v52 = vadd.f32 %v2512_v15, %v2511_v63  ;;  %v1513_v57 = vrot.slane %v1512_v24, 1  ;;  %v1508_v59 = vadd.f32 %v1507_v11, %v1506_v9  ;;  %v1850_v60 = vrot.slane %v1849_v26, 1  ;;  %v4579_v11 = vld [vmem:[%s7964_s8 + $0x2a8] sm:$0xff]  ;;  %7980 = sst [smem:[#allocation33_spill]] %s7116_s7 }
 0x286   : > { %v2507_v58 = vadd.f32 %v2506_v29, %v2505_v6  ;;  %v2180_v38 = vadd.f32 %v2179_v56, %v2178_v42  ;;  %v2184_v32 = vadd.f32 %v2183_v16, %v2020_v23  ;;  %2844 = vperm.xlu1 %4803, %v2734_v47   ;;  %v1845_v12 = vadd.f32 %v1844_v37, %v1843_v20  ;;  %v2874_v20 = vld [vmem:[%s7964_s8 + $0x8] sm:$0xff]  ;;  %v2873_v56 = vld [vmem:[%s7964_s8] sm:$0xff]  ;;  %v4522_v47 = vld [vmem:[%s7964_s8 + $0xf0] sm:$0xff] }
 0x287   : > { %v2551_v30 = vadd.f32 %v2513_v52, %v2214_v7  ;;  %v2357_v40 = vpop.xlane.xlu0 %2356  ;;  %v2517_v49 = vadd.f32 %v2516_v50, %v2515_v14  ;;  %v1514_v28 = vadd.f32 %v1513_v57, %v1512_v24  ;;  %v1541_v3 = vadd.f32 %v1508_v59, %v1204_v62  ;;  %v2761_v15 = vpop.permute.xlu1 %2760  ;;  %v4550_v14 = vld [vmem:[%s7964_s8 + $0x1c8] sm:$0xff]  ;;  %v4520_v24 = vld [vmem:[%s7964_s8 + $0xe0] sm:$0xff] }
 0x288   : > { %v2550_v18 = vadd.f32 %v2507_v58, %v2213_v0  ;;  %v2181_v10 = vrot.slane %v2180_v38, 1  ;;  %v2185_v4 = vrot.slane %v2184_v32, 2  ;;  %v2520_v5 = vrot.slane %v2357_v40, 4  ;;  %v4549_v7 = vld [vmem:[%s7964_s8 + $0x1c0] sm:$0xff] }
 0x289   : > { %v2579_v35 = vmax.f32 %v2551_v30, 0.0  ;;  %v1851_v22 = vadd.f32 %v1850_v60, %v1849_v26  ;;  %v1878_v43 = vadd.f32 %v1845_v12, %v1541_v3  ;;  %v2518_v13 = vrot.slane %v2517_v49, 1  ;;  %v4578_v26 = vld [vmem:[%s7964_s8 + $0x2a0] sm:$0xff]  ;;  %v4580_v60 = vld [vmem:[%s7964_s8 + $0x2b0] sm:$0xff] }
 0x28a   : > { %v2578_v25 = vmax.f32 %v2550_v18, 0.0  ;;  %v2186_v55 = vadd.f32 %v2185_v4, %v2184_v32  ;;  %v2521_v34 = vadd.f32 %v2520_v5, %v2357_v40  ;;  %v2182_v33 = vadd.f32 %v2181_v10, %v2180_v38  ;;  %v2875_v18 = vld [vmem:[%s7964_s8 + $0x10] sm:$0xff] }
 0x28b   : > { %2608 = vst.msk [vmem:[%s6425_s27 + $0x19] sm:$0x1] %vm2582_vm1, %v2579_v35  ;;  %v2742_v8 = vrot.slane %v2579_v35, %v6323_v46  ;;  %v1542_v45 = vadd.f32 %v1514_v28, %v1205_v2  ;;  %v2519_v9 = vadd.f32 %v2518_v13, %v2517_v49  ;;  %v4939_v17 = vmov 0.0   ;;  %v2765_v23 = vpop.permute.xlu1 %2764  ;;  %v4551_v40 = vld [vmem:[%s7964_s8 + $0x1d0] sm:$0xff]  ;;  %v2876_v28 = vld [vmem:[%s7964_s8 + $0x18] sm:$0xff] }
 0x28c   : > { %2607 = vst.msk [vmem:[%s6425_s27 + $0x18] sm:$0x1] %vm2582_vm1, %v2578_v25  ;;  %v2187_v61 = vrot.slane %v2186_v55, 1  ;;  %v2522_v36 = vrot.slane %v2521_v34, 2  ;;  %v2738_v51 = vrot.slane %v2578_v25, %v6323_v46  ;;  %v2215_v1 = vadd.f32 %v2182_v33, %v1878_v43  ;;  %v4552_v2 = vld [vmem:[%s7964_s8 + $0x1d8] sm:$0xff] }
 0x28d   : > { %2852 = vperm.xlu1 %4803, %v2742_v8   ;;  %v1879_v48 = vadd.f32 %v1851_v22, %v1542_v45  ;;  %2864 = vst.msk [vmem:[#allocation2] sm:$0xff] %vm2863_vm2, %v4939_v17  ;;  %2867 = vst.msk [vmem:[#allocation2 + $0x10] sm:$0xff] %vm2863_vm2, %v4939_v17  ;;  %v2901_v30 = vmul.f32 %v2873_v56, %v2753_v53  ;;  %v3017_v16 = vmul.f32 %v4520_v24, %v2753_v53  ;;  %v4581_v43 = vld [vmem:[%s7964_s8 + $0x2b8] sm:$0xff]  ;;  %v4525_v56 = vld [vmem:[%s7964_s8 + $0x108] sm:$0xff] }
 0x28e   : > { %v2188_v21 = vadd.f32 %v2187_v61, %v2186_v55  ;;  %v2523_v31 = vadd.f32 %v2522_v36, %v2521_v34  ;;  %2848 = vperm.xlu0 %4804, %v2738_v51   ;;  %v2552_v63 = vadd.f32 %v2519_v9, %v2215_v1  ;;  %2869 = vst.msk [vmem:[#allocation2 + $0x20] sm:$0xff] %vm2863_vm2, %v4939_v17  ;;  %2871 = vst.msk [vmem:[#allocation2 + $0x30] sm:$0xff] %vm2863_vm2, %v4939_v17  ;;  %v4523_v55 = vld [vmem:[%s7964_s8 + $0xf8] sm:$0xff]  ;;  %v4524_v9 = vld [vmem:[%s7964_s8 + $0x100] sm:$0xff] }
 0x28f   : > { %v2757_v29 = vpop.permute.xlu0 %2756  ;;  %v6689_v52 = vpop.permute.xlu1 %2768  ;;  %v3135_v37 = vmul.f32 %v4549_v7, %v2753_v53  ;;  %v3253_v35 = vmul.f32 %v4578_v26, %v2753_v53  ;;  %v2929_v25 = vsel %vm1262_vm0, %v2901_v30, 0.0  ;;  %v3045_v10 = vsel %vm1262_vm0, %v3017_v16, 0.0  ;;  %v4582_v53 = vld [vmem:[%s7964_s8 + $0x2c0] sm:$0xff]  ;;  %v4554_v7 = vld [vmem:[%s7964_s8 + $0x1e8] sm:$0xff]  ;;  %2866 = vst.msk [vmem:[#allocation2 + $0x8] sm:$0x1] %vm2865_vm3, %v4939_v17 }
 0x290   : > { %v2524_v19 = vrot.slane %v2523_v31, 1  ;;  %v2216_v54 = vadd.f32 %v2188_v21, %v1879_v48  ;;  %v2580_v6 = vmax.f32 %v2552_v63, 0.0  ;;  %v2902_v0 = vmul.f32 %v2874_v20, %v2757_v29  ;;  %v2877_v48 = vld [vmem:[%s7964_s8 + $0x20] sm:$0xff]  ;;  %2868 = vst.msk [vmem:[#allocation2 + $0x18] sm:$0x1] %vm2865_vm3, %v4939_v17  ;;  %v4583_v30 = vld [vmem:[%s7964_s8 + $0x2c8] sm:$0xff] }
 0x291   : > { %v3136_v38 = vmul.f32 %v4550_v14, %v2757_v29  ;;  %v3254_v50 = vmul.f32 %v4579_v11, %v2757_v29  ;;  %v3163_v62 = vsel %vm1262_vm0, %v3135_v37, 0.0  ;;  %v2903_v4 = vmul.f32 %v2875_v18, %v2761_v15  ;;  %2870 = vst.msk [vmem:[#allocation2 + $0x28] sm:$0x1] %vm2865_vm3, %v4939_v17  ;;  %2872 = vst.msk [vmem:[#allocation2 + $0x38] sm:$0x1] %vm2865_vm3, %v4939_v17 }
 0x292   : > { %v2525_v44 = vadd.f32 %v2524_v19, %v2523_v31  ;;  %v2746_v42 = vrot.slane %v2580_v6, %v6323_v46  ;;  %2609 = vst.msk [vmem:[%s6425_s27 + $0x1a] sm:$0x1] %vm2582_vm1, %v2580_v6  ;;  %v2930_v57 = vsel %vm1262_vm0, %v2902_v0, 0.0  ;;  %v3019_v12 = vmul.f32 %v4522_v47, %v2761_v15 }
 0x293   : > { %v3164_v59 = vsel %vm1262_vm0, %v3136_v38, 0.0  ;;  %v6715_v5 = vpop.permute.xlu1 %2772  ;;  %v3137_v49 = vmul.f32 %v4551_v40, %v2761_v15  ;;  %v2931_v34 = vadd.f32 %v2930_v57, %v2929_v25  ;;  %v3282_v3 = vsel %vm1262_vm0, %v3254_v50, 0.0  ;;  %v4555_v25 = vld [vmem:[%s7964_s8 + $0x1f0] sm:$0xff] }
 0x294   : > { %v2553_v27 = vadd.f32 %v2525_v44, %v2216_v54  ;;  %2856 = vperm.xlu0 %4804, %v2746_v42   ;;  %v3165_v22 = vadd.f32 %v3164_v59, %v3163_v62  ;;  %v3281_v61 = vsel %vm1262_vm0, %v3253_v35, 0.0  ;;  %v3255_v36 = vmul.f32 %v4580_v60, %v2761_v15  ;;  %v4553_v54 = vld [vmem:[%s7964_s8 + $0x1e0] sm:$0xff]  ;;  %v4526_v59 = vld [vmem:[%s7964_s8 + $0x110] sm:$0xff] }
 0x295   : > { %v2932_v8 = vsel %vm1262_vm0, %v2903_v4, 0.0  ;;  %v2904_v13 = vmul.f32 %v2876_v28, %v2765_v23  ;;  %v3020_v51 = vmul.f32 %v4523_v55, %v2765_v23  ;;  %v3283_v45 = vadd.f32 %v3282_v3, %v3281_v61  ;;  %v4584_v60 = vld [vmem:[%s7964_s8 + $0x2d0] sm:$0xff]  ;;  %v4585_v61 = vld [vmem:[%s7964_s8 + $0x2d8] sm:$0xff] }
 0x296   : > { %v2581_v39 = vmax.f32 %v2553_v27, 0.0  ;;  %v3048_v21 = vsel %vm1262_vm0, %v3019_v12, 0.0  ;;  %v3166_v31 = vsel %vm1262_vm0, %v3137_v49, 0.0  ;;  %v3138_v1 = vmul.f32 %v4552_v2, %v2765_v23  ;;  %v2880_v12 = vld [vmem:[%s7964_s8 + $0x38] sm:$0xff] }
 0x297   : > { %v2933_v19 = vadd.f32 %v2932_v8, %v2931_v34  ;;  %v3167_v63 = vadd.f32 %v3166_v31, %v3165_v22  ;;  %v2777_v27 = vpop.permute.xlu1 %2776  ;;  %v3256_v6 = vmul.f32 %v4581_v43, %v2765_v23  ;;  %v2934_v42 = vsel %vm1262_vm0, %v2904_v13, 0.0  ;;  %v2878_v23 = vld [vmem:[%s7964_s8 + $0x28] sm:$0xff]  ;;  %v4556_v22 = vld [vmem:[%s7964_s8 + $0x1f8] sm:$0xff]  ;;  %v2881_v31 = vld [vmem:[%s7964_s8 + $0x40] sm:$0xff] }
 0x298   : > { %2610 = vst.msk [vmem:[%s6425_s27 + $0x1b] sm:$0x1] %vm2582_vm1, %v2581_v39  ;;  %v2750_v41 = vrot.slane %v2581_v39, %v6323_v46  ;;  %v4521_v46 = vld [vmem:[%s7964_s8 + $0xe8] sm:$0xff]  ;;  %v3284_v39 = vsel %vm1262_vm0, %v3255_v36, 0.0  ;;  %v2905_v15 = vmul.f32 %v2877_v48, %v6689_v52  ;;  %v3139_v14 = vmul.f32 %v4553_v54, %v6689_v52  ;;  %v4528_v54 = vld [vmem:[%s7964_s8 + $0x120] sm:$0xff]  ;;  %s7104_s27 = sld [smem:[#allocation7 + $0x7]] }
 0x299   : > { %v3018_v58 = vmul.f32 %v4521_v46, %v2757_v29  ;;  %v3285_v20 = vadd.f32 %v3284_v39, %v3283_v45  ;;  %v3168_v29 = vsel %vm1262_vm0, %v3138_v1, 0.0  ;;  %v3021_v46 = vmul.f32 %v4524_v9, %v6689_v52 }
 0x29a   : > { %2860 = vperm.xlu1 %4803, %v2750_v41   ;;  %v3050_v41 = vsel %vm1262_vm0, %v3020_v51, 0.0  ;;  %v2935_v24 = vadd.f32 %v2934_v42, %v2933_v19  ;;  %v3169_v0 = vadd.f32 %v3168_v29, %v3167_v63  ;;  %v3257_v38 = vmul.f32 %v4582_v53, %v6689_v52  ;;  %v2879_v52 = vld [vmem:[%s7964_s8 + $0x30] sm:$0xff]  ;;  %v4586_v63 = vld [vmem:[%s7964_s8 + $0x2e0] sm:$0xff]  ;;  %v2882_v42 = vld [vmem:[%s7964_s8 + $0x48] sm:$0xff] }
 0x29b   : > { %v3046_v32 = vsel %vm1262_vm0, %v3018_v58, 0.0  ;;  %v3286_v58 = vsel %vm1262_vm0, %v3256_v6, 0.0  ;;  %v2936_v26 = vsel %vm1262_vm0, %v2905_v15, 0.0  ;;  %v2906_v16 = vmul.f32 %v2878_v23, %v6715_v5  ;;  %v2781_v50 = vpop.permute.xlu1 %2780  ;;  %v4529_v29 = vld [vmem:[%s7964_s8 + $0x128] sm:$0xff] }
 0x29c   : > { %v3047_v33 = vadd.f32 %v3046_v32, %v3045_v10  ;;  %v3022_v37 = vmul.f32 %v4525_v56, %v6715_v5  ;;  %v3287_v18 = vadd.f32 %v3286_v58, %v3285_v20  ;;  %v3052_v47 = vsel %vm1262_vm0, %v3021_v46, 0.0  ;;  %v4558_v46 = vld [vmem:[%s7964_s8 + $0x208] sm:$0xff] }
 0x29d   : > { %v3170_v17 = vsel %vm1262_vm0, %v3139_v14, 0.0  ;;  %v2937_v40 = vadd.f32 %v2936_v26, %v2935_v24  ;;  %v3140_v57 = vmul.f32 %v4554_v7, %v6715_v5  ;;  %v3288_v10 = vsel %vm1262_vm0, %v3257_v38, 0.0  ;;  %v4587_v14 = vld [vmem:[%s7964_s8 + $0x2e8] sm:$0xff] }
 0x29e   : > { %v3049_v44 = vadd.f32 %v3048_v21, %v3047_v33  ;;  %v3171_v32 = vadd.f32 %v3170_v17, %v3169_v0  ;;  %v3258_v62 = vmul.f32 %v4583_v30, %v6715_v5  ;;  %v2907_v4 = vmul.f32 %v2879_v52, %v2777_v27  ;;  %v4527_v5 = vld [vmem:[%s7964_s8 + $0x118] sm:$0xff]  ;;  %7977 = sst [smem:[#allocation30_spill]] %s7104_s27 }
 0x29f   : > { %v2938_v49 = vsel %vm1262_vm0, %v2906_v16, 0.0  ;;  %v3054_v28 = vsel %vm1262_vm0, %v3022_v37, 0.0  ;;  %v3289_v55 = vadd.f32 %v3288_v10, %v3287_v18  ;;  %v3172_v3 = vsel %vm1262_vm0, %v3140_v57, 0.0  ;;  %v2785_v51 = vpop.permute.xlu1 %2784  ;;  %v4559_v10 = vld [vmem:[%s7964_s8 + $0x210] sm:$0xff] }
 0x2a0   : > { %v3051_v11 = vadd.f32 %v3050_v41, %v3049_v44  ;;  %v2939_v34 = vadd.f32 %v2938_v49, %v2937_v40  ;;  %v3023_v2 = vmul.f32 %v4526_v59, %v2777_v27  ;;  %v3141_v33 = vmul.f32 %v4555_v25, %v2777_v27  ;;  %v4557_v44 = vld [vmem:[%s7964_s8 + $0x200] sm:$0xff]  ;;  %v2883_v40 = vld [vmem:[%s7964_s8 + $0x50] sm:$0xff] }
 0x2a1   : > { %v3173_v8 = vadd.f32 %v3172_v3, %v3171_v32  ;;  %v3259_v43 = vmul.f32 %v4584_v60, %v2777_v27  ;;  %v2908_v13 = vmul.f32 %v2880_v12, %v2781_v50  ;;  %v3290_v45 = vsel %vm1262_vm0, %v3258_v62, 0.0  ;;  %v4530_v25 = vld [vmem:[%s7964_s8 + $0x130] sm:$0xff] }
 0x2a2   : > { %v3053_v35 = vadd.f32 %v3052_v47, %v3051_v11  ;;  %v2940_v21 = vsel %vm1262_vm0, %v2907_v4, 0.0  ;;  %v3291_v1 = vadd.f32 %v3290_v45, %v3289_v55  ;;  %v3024_v48 = vmul.f32 %v4527_v5, %v2781_v50  ;;  %v4588_v62 = vld [vmem:[%s7964_s8 + $0x2f0] sm:$0xff]  ;;  %v2884_v55 = vld [vmem:[%s7964_s8 + $0x58] sm:$0xff] }
 0x2a3   : > { %v3142_v19 = vmul.f32 %v4556_v22, %v2781_v50  ;;  %v3260_v9 = vmul.f32 %v4585_v61, %v2781_v50  ;;  %v2941_v27 = vadd.f32 %v2940_v21, %v2939_v34  ;;  %v3056_v39 = vsel %vm1262_vm0, %v3023_v2, 0.0  ;;  %v4531_v5 = vld [vmem:[%s7964_s8 + $0x138] sm:$0xff] }
 0x2a4   : > { %v3055_v36 = vadd.f32 %v3054_v28, %v3053_v35  ;;  %v3174_v6 = vsel %vm1262_vm0, %v3141_v33, 0.0  ;;  %v3292_v15 = vsel %vm1262_vm0, %v3259_v43, 0.0  ;;  %v2942_v20 = vsel %vm1262_vm0, %v2908_v13, 0.0  ;;  %v4560_v22 = vld [vmem:[%s7964_s8 + $0x218] sm:$0xff] }
 0x2a5   : > { %v3175_v53 = vadd.f32 %v3174_v6, %v3173_v8  ;;  %v2789_v23 = vpop.permute.xlu1 %2788  ;;  %v2909_v56 = vmul.f32 %v2881_v31, %v2785_v51  ;;  %v3025_v24 = vmul.f32 %v4528_v54, %v2785_v51  ;;  %v3143_v7 = vmul.f32 %v4557_v44, %v2785_v51  ;;  %v2793_v60 = vpop.permute.xlu0 %2792  ;;  %v4589_v61 = vld [vmem:[%s7964_s8 + $0x2f8] sm:$0xff]  ;;  %v2885_v44 = vld [vmem:[%s7964_s8 + $0x60] sm:$0xff] }
 0x2a6   : > { %v3057_v41 = vadd.f32 %v3056_v39, %v3055_v36  ;;  %v3261_v11 = vmul.f32 %v4586_v63, %v2785_v51  ;;  %v3293_v0 = vadd.f32 %v3292_v15, %v3291_v1  ;;  %v3058_v58 = vsel %vm1262_vm0, %v3024_v48, 0.0  ;;  %v4532_v63 = vld [vmem:[%s7964_s8 + $0x140] sm:$0xff] }
 0x2a7   : > { %v3176_v38 = vsel %vm1262_vm0, %v3142_v19, 0.0  ;;  %v3294_v26 = vsel %vm1262_vm0, %v3260_v9, 0.0  ;;  %v2910_v30 = vmul.f32 %v2882_v42, %v2789_v23  ;;  %v3026_v16 = vmul.f32 %v4529_v29, %v2789_v23 }
 0x2a8   : > { %v3144_v37 = vmul.f32 %v4558_v46, %v2789_v23  ;;  %v3262_v18 = vmul.f32 %v4587_v14, %v2789_v23  ;;  %v2944_v52 = vsel %vm1262_vm0, %v2909_v56, 0.0  ;;  %v3060_v50 = vsel %vm1262_vm0, %v3025_v24, 0.0  ;;  %v4533_v56 = vld [vmem:[%s7964_s8 + $0x148] sm:$0xff] }
 0x2a9   : > { %v3178_v47 = vsel %vm1262_vm0, %v3143_v7, 0.0  ;;  %v3296_v17 = vsel %vm1262_vm0, %v3261_v11, 0.0  ;;  %v2943_v57 = vadd.f32 %v2942_v20, %v2941_v27  ;;  %v3059_v35 = vadd.f32 %v3058_v58, %v3057_v41  ;;  %v4561_v27 = vld [vmem:[%s7964_s8 + $0x220] sm:$0xff]  ;;  %v2886_v20 = vld [vmem:[%s7964_s8 + $0x68] sm:$0xff] }
 0x2aa   : > { %v3177_v32 = vadd.f32 %v3176_v38, %v3175_v53  ;;  %v3295_v59 = vadd.f32 %v3294_v26, %v3293_v0  ;;  %v2946_v4 = vsel %vm1262_vm0, %v2910_v30, 0.0  ;;  %v3062_v12 = vsel %vm1262_vm0, %v3026_v16, 0.0  ;;  %v4590_v53 = vld [vmem:[%s7964_s8 + $0x300] sm:$0xff]  ;;  %v4562_v24 = vld [vmem:[%s7964_s8 + $0x228] sm:$0xff] }
 0x2ab   : > { %v3180_v49 = vsel %vm1262_vm0, %v3144_v37, 0.0  ;;  %v3298_v28 = vsel %vm1262_vm0, %v3262_v18, 0.0  ;;  %v2945_v34 = vadd.f32 %v2944_v52, %v2943_v57  ;;  %v3061_v3 = vadd.f32 %v3060_v50, %v3059_v35  ;;  %v4591_v7 = vld [vmem:[%s7964_s8 + $0x308] sm:$0xff] }
 0x2ac   : > { %v3179_v2 = vadd.f32 %v3178_v47, %v3177_v32  ;;  %v3297_v33 = vadd.f32 %v3296_v17, %v3295_v59  ;;  %v2911_v8 = vmul.f32 %v2883_v40, %v2793_v60  ;;  %v3027_v43 = vmul.f32 %v4530_v25, %v2793_v60  ;;  %v2887_v59 = vld [vmem:[%s7964_s8 + $0x70] sm:$0xff] }
 0x2ad   : > { %v3145_v13 = vmul.f32 %v4559_v10, %v2793_v60  ;;  %v3263_v51 = vmul.f32 %v4588_v62, %v2793_v60  ;;  %v2947_v45 = vadd.f32 %v2946_v4, %v2945_v34  ;;  %v3063_v21 = vadd.f32 %v3062_v12, %v3061_v3  ;;  %v4534_v25 = vld [vmem:[%s7964_s8 + $0x150] sm:$0xff] }
 0x2ae   : > { %v3181_v31 = vadd.f32 %v3180_v49, %v3179_v2  ;;  %v3299_v1 = vadd.f32 %v3298_v28, %v3297_v33  ;;  %v2948_v39 = vsel %vm1262_vm0, %v2911_v8, 0.0  ;;  %v3064_v6 = vsel %vm1262_vm0, %v3027_v43, 0.0  ;;  %v4563_v12 = vld [vmem:[%s7964_s8 + $0x230] sm:$0xff] }
 0x2af   : > { %v3182_v42 = vsel %vm1262_vm0, %v3145_v13, 0.0  ;;  %v3300_v41 = vsel %vm1262_vm0, %v3263_v51, 0.0  ;;  %v2949_v29 = vadd.f32 %v2948_v39, %v2947_v45  ;;  %v3065_v46 = vadd.f32 %v3064_v6, %v3063_v21  ;;  %v4592_v49 = vld [vmem:[%s7964_s8 + $0x310] sm:$0xff]  ;;  %v4535_v45 = vld [vmem:[%s7964_s8 + $0x158] sm:$0xff] }
 0x2b0   : > { %v3183_v14 = vadd.f32 %v3182_v42, %v3181_v31  ;;  %v3301_v23 = vadd.f32 %v3300_v41, %v3299_v1  ;;  %v4564_v21 = vld [vmem:[%s7964_s8 + $0x238] sm:$0xff]  ;;  %v4536_v42 = vld [vmem:[%s7964_s8 + $0x160] sm:$0xff] }
 0x2b1   : > { %v2797_v36 = vpop.permute.xlu1 %2796  ;;  %v2801_v15 = vpop.permute.xlu0 %2800  ;;  %v4593_v31 = vld [vmem:[%s7964_s8 + $0x318] sm:$0xff]  ;;  %v4565_v41 = vld [vmem:[%s7964_s8 + $0x240] sm:$0xff] }
 0x2b2   : > { %v2912_v48 = vmul.f32 %v2884_v55, %v2797_v36  ;;  %v3028_v19 = vmul.f32 %v4531_v5, %v2797_v36  ;;  %v3146_v9 = vmul.f32 %v4560_v22, %v2797_v36  ;;  %v3264_v54 = vmul.f32 %v4589_v61, %v2797_v36  ;;  %v2888_v36 = vld [vmem:[%s7964_s8 + $0x78] sm:$0xff] }
 0x2b3   : > { %v2913_v30 = vmul.f32 %v2885_v44, %v2801_v15  ;;  %v3029_v16 = vmul.f32 %v4532_v63, %v2801_v15  ;;  %v3147_v37 = vmul.f32 %v4561_v27, %v2801_v15  ;;  %v3265_v18 = vmul.f32 %v4590_v53, %v2801_v15  ;;  %v2889_v44 = vld [vmem:[%s7964_s8 + $0x80] sm:$0xff] }
 0x2b4   : > { %v2950_v0 = vsel %vm1262_vm0, %v2912_v48, 0.0  ;;  %v3066_v58 = vsel %vm1262_vm0, %v3028_v19, 0.0  ;;  %v3184_v38 = vsel %vm1262_vm0, %v3146_v9, 0.0  ;;  %v3302_v26 = vsel %vm1262_vm0, %v3264_v54, 0.0  ;;  %v4594_v53 = vld [vmem:[%s7964_s8 + $0x320] sm:$0xff] }
 0x2b5   : > { %v2951_v40 = vadd.f32 %v2950_v0, %v2949_v29  ;;  %v3067_v57 = vadd.f32 %v3066_v58, %v3065_v46  ;;  %v3185_v35 = vadd.f32 %v3184_v38, %v3183_v14  ;;  %v3303_v32 = vadd.f32 %v3302_v26, %v3301_v23  ;;  %v2890_v23 = vld [vmem:[%s7964_s8 + $0x88] sm:$0xff] }
 0x2b6   : > { %v2952_v10 = vsel %vm1262_vm0, %v2913_v30, 0.0  ;;  %v3068_v62 = vsel %vm1262_vm0, %v3029_v16, 0.0  ;;  %v3186_v60 = vsel %vm1262_vm0, %v3147_v37, 0.0  ;;  %v3304_v4 = vsel %vm1262_vm0, %v3265_v18, 0.0  ;;  %v4537_v0 = vld [vmem:[%s7964_s8 + $0x168] sm:$0xff] }
 0x2b7   : > { %v2953_v33 = vadd.f32 %v2952_v10, %v2951_v40  ;;  %v3069_v5 = vadd.f32 %v3068_v62, %v3067_v57  ;;  %v3187_v22 = vadd.f32 %v3186_v60, %v3185_v35  ;;  %v3305_v61 = vadd.f32 %v3304_v4, %v3303_v32  ;;  %v4566_v58 = vld [vmem:[%s7964_s8 + $0x248] sm:$0xff]  ;;  %v4538_v4 = vld [vmem:[%s7964_s8 + $0x170] sm:$0xff] }
 0x2b8   : > { %v4595_v38 = vld [vmem:[%s7964_s8 + $0x328] sm:$0xff] }
 0x2bd   : > { %v2809_v28 = vpop.permute.xlu0 %2808 }
 0x2be   : > { %v2805_v11 = vpop.permute.xlu1 %2804  ;;  %v2915_v8 = vmul.f32 %v2887_v59, %v2809_v28  ;;  %v3031_v43 = vmul.f32 %v4534_v25, %v2809_v28  ;;  %v3149_v13 = vmul.f32 %v4563_v12, %v2809_v28  ;;  %v3267_v51 = vmul.f32 %v4592_v49, %v2809_v28  ;;  %v2891_v59 = vld [vmem:[%s7964_s8 + $0x90] sm:$0xff] }
 0x2bf   : > { %v2914_v52 = vmul.f32 %v2886_v20, %v2805_v11  ;;  %v3030_v50 = vmul.f32 %v4533_v56, %v2805_v11  ;;  %v3148_v47 = vmul.f32 %v4562_v24, %v2805_v11  ;;  %v3266_v17 = vmul.f32 %v4591_v7, %v2805_v11  ;;  %v4567_v12 = vld [vmem:[%s7964_s8 + $0x250] sm:$0xff] }
 0x2c0   : > { %v2956_v20 = vsel %vm1262_vm0, %v2915_v8, 0.0  ;;  %v3072_v29 = vsel %vm1262_vm0, %v3031_v43, 0.0  ;;  %v3190_v46 = vsel %vm1262_vm0, %v3149_v13, 0.0  ;;  %v3308_v14 = vsel %vm1262_vm0, %v3267_v51, 0.0  ;;  %v4596_v49 = vld [vmem:[%s7964_s8 + $0x330] sm:$0xff] }
 0x2c1   : > { %v2954_v55 = vsel %vm1262_vm0, %v2914_v52, 0.0  ;;  %v3070_v34 = vsel %vm1262_vm0, %v3030_v50, 0.0  ;;  %v3188_v3 = vsel %vm1262_vm0, %v3148_v47, 0.0  ;;  %v3306_v2 = vsel %vm1262_vm0, %v3266_v17, 0.0 }
 0x2c2   : > { %v2955_v48 = vadd.f32 %v2954_v55, %v2953_v33  ;;  %v3071_v19 = vadd.f32 %v3070_v34, %v3069_v5  ;;  %v3189_v9 = vadd.f32 %v3188_v3, %v3187_v22  ;;  %v3307_v54 = vadd.f32 %v3306_v2, %v3305_v61 }
 0x2c4   : > { %v2957_v56 = vadd.f32 %v2956_v20, %v2955_v48  ;;  %v3073_v24 = vadd.f32 %v3072_v29, %v3071_v19  ;;  %v3191_v7 = vadd.f32 %v3190_v46, %v3189_v9  ;;  %v3309_v11 = vadd.f32 %v3308_v14, %v3307_v54  ;;  %v4539_v48 = vld [vmem:[%s7964_s8 + $0x178] sm:$0xff] }
 0x2c5   : > { %v4568_v19 = vld [vmem:[%s7964_s8 + $0x258] sm:$0xff] }
 0x2c6   : > { %v4597_v9 = vld [vmem:[%s7964_s8 + $0x338] sm:$0xff] }
 0x2c9   : > { %v2817_v15 = vpop.permute.xlu0 %2816 }
 0x2ca   : > { %v2813_v1 = vpop.permute.xlu1 %2812  ;;  %v2917_v30 = vmul.f32 %v2889_v44, %v2817_v15  ;;  %v3033_v16 = vmul.f32 %v4536_v42, %v2817_v15  ;;  %v3151_v37 = vmul.f32 %v4565_v41, %v2817_v15  ;;  %v3269_v18 = vmul.f32 %v4594_v53, %v2817_v15  ;;  %v2893_v44 = vld [vmem:[%s7964_s8 + $0xa0] sm:$0xff] }
 0x2cb   : > { %v2916_v63 = vmul.f32 %v2888_v36, %v2813_v1  ;;  %v3032_v27 = vmul.f32 %v4535_v45, %v2813_v1  ;;  %v3150_v39 = vmul.f32 %v4564_v21, %v2813_v1  ;;  %v3268_v6 = vmul.f32 %v4593_v31, %v2813_v1  ;;  %v2892_v1 = vld [vmem:[%s7964_s8 + $0x98] sm:$0xff]  ;;  %v4540_v42 = vld [vmem:[%s7964_s8 + $0x180] sm:$0xff] }
 0x2cc   : > { %v2960_v55 = vsel %vm1262_vm0, %v2917_v30, 0.0  ;;  %v3076_v34 = vsel %vm1262_vm0, %v3033_v16, 0.0  ;;  %v3194_v3 = vsel %vm1262_vm0, %v3151_v37, 0.0  ;;  %v3312_v2 = vsel %vm1262_vm0, %v3269_v18, 0.0  ;;  %v4569_v41 = vld [vmem:[%s7964_s8 + $0x260] sm:$0xff]  ;;  %v4541_v30 = vld [vmem:[%s7964_s8 + $0x188] sm:$0xff] }
 0x2cd   : > { %v2958_v52 = vsel %vm1262_vm0, %v2916_v63, 0.0  ;;  %v3074_v50 = vsel %vm1262_vm0, %v3032_v27, 0.0  ;;  %v3192_v47 = vsel %vm1262_vm0, %v3150_v39, 0.0  ;;  %v3310_v17 = vsel %vm1262_vm0, %v3268_v6, 0.0  ;;  %v4598_v53 = vld [vmem:[%s7964_s8 + $0x340] sm:$0xff] }
 0x2ce   : > { %v2959_v25 = vadd.f32 %v2958_v52, %v2957_v56  ;;  %v3075_v10 = vadd.f32 %v3074_v50, %v3073_v24  ;;  %v3193_v62 = vadd.f32 %v3192_v47, %v3191_v7  ;;  %v3311_v60 = vadd.f32 %v3310_v17, %v3309_v11  ;;  %v4570_v50 = vld [vmem:[%s7964_s8 + $0x268] sm:$0xff] }
 0x2cf   : > { %v4599_v47 = vld [vmem:[%s7964_s8 + $0x348] sm:$0xff] }
 0x2d0   : > { %v2961_v51 = vadd.f32 %v2960_v55, %v2959_v25  ;;  %v3077_v45 = vadd.f32 %v3076_v34, %v3075_v10  ;;  %v3195_v21 = vadd.f32 %v3194_v3, %v3193_v62  ;;  %v3313_v31 = vadd.f32 %v3312_v2, %v3311_v60  ;;  %v4542_v55 = vld [vmem:[%s7964_s8 + $0x190] sm:$0xff] }
 0x2d4   : > { %v2821_v26 = vpop.permute.xlu1 %2820 }
 0x2d5   : > { %v2918_v40 = vmul.f32 %v2890_v23, %v2821_v26  ;;  %v3034_v57 = vmul.f32 %v4537_v0, %v2821_v26  ;;  %v3152_v35 = vmul.f32 %v4566_v58, %v2821_v26  ;;  %v3270_v32 = vmul.f32 %v4595_v38, %v2821_v26  ;;  %v2894_v26 = vld [vmem:[%s7964_s8 + $0xa8] sm:$0xff] }
 0x2d7   : > { %v2962_v33 = vsel %vm1262_vm0, %v2918_v40, 0.0  ;;  %v3078_v5 = vsel %vm1262_vm0, %v3034_v57, 0.0  ;;  %v3196_v22 = vsel %vm1262_vm0, %v3152_v35, 0.0  ;;  %v3314_v61 = vsel %vm1262_vm0, %v3270_v32, 0.0 }
 0x2d8   : > { %v2963_v63 = vadd.f32 %v2962_v33, %v2961_v51  ;;  %v3079_v27 = vadd.f32 %v3078_v5, %v3077_v45  ;;  %v3197_v39 = vadd.f32 %v3196_v22, %v3195_v21  ;;  %v3315_v6 = vadd.f32 %v3314_v61, %v3313_v31  ;;  %v4571_v5 = vld [vmem:[%s7964_s8 + $0x270] sm:$0xff]  ;;  %v2896_v61 = vld [vmem:[%s7964_s8 + $0xb8] sm:$0xff] }
 0x2d9   : > { %v4600_v22 = vld [vmem:[%s7964_s8 + $0x350] sm:$0xff]  ;;  %v3351_v51 = vstv %s7019_s26  ;;  %s7194_s26 = sld [smem:[#allocation7 + $0x2]] }
 0x2dc   : > { %v2825_v28 = vpop.permute.xlu0 %2824 }
 0x2dd   : > { %v2919_v36 = vmul.f32 %v2891_v59, %v2825_v28  ;;  %v3035_v8 = vmul.f32 %v4538_v4, %v2825_v28  ;;  %v3153_v43 = vmul.f32 %v4567_v12, %v2825_v28  ;;  %v3271_v13 = vmul.f32 %v4596_v49, %v2825_v28  ;;  %v2895_v28 = vld [vmem:[%s7964_s8 + $0xb0] sm:$0xff] }
 0x2df   : > { %v2964_v20 = vsel %vm1262_vm0, %v2919_v36, 0.0  ;;  %v3080_v29 = vsel %vm1262_vm0, %v3035_v8, 0.0  ;;  %v3198_v46 = vsel %vm1262_vm0, %v3153_v43, 0.0  ;;  %v3316_v14 = vsel %vm1262_vm0, %v3271_v13, 0.0  ;;  %v4543_v8 = vld [vmem:[%s7964_s8 + $0x198] sm:$0xff] }
 0x2e0   : > { %v2965_v16 = vadd.f32 %v2964_v20, %v2963_v63  ;;  %v3081_v37 = vadd.f32 %v3080_v29, %v3079_v27  ;;  %v3199_v18 = vadd.f32 %v3198_v46, %v3197_v39  ;;  %v3317_v52 = vadd.f32 %v3316_v14, %v3315_v6  ;;  %v2897_v46 = vld [vmem:[%s7964_s8 + $0xc0] sm:$0xff] }
 0x2e1   : > { %v7070_v43 = vstv %s7015_s30  ;;  %v3346_v13 = vstv %s7017_s21  ;;  %s7084_s30 = sld [smem:[#allocation8 + $0x2]]  ;;  %v4544_v14 = vld [vmem:[%s7964_s8 + $0x1a0] sm:$0xff]  ;;  %s7202_s21 = sld [smem:[#allocation7 + $0x25]] }
 0x2e4   : > { %v2829_v54 = vpop.permute.xlu1 %2828 }
 0x2e5   : > { %v2920_v23 = vmul.f32 %v2892_v1, %v2829_v54  ;;  %v3036_v56 = vmul.f32 %v4539_v48, %v2829_v54  ;;  %v3154_v24 = vmul.f32 %v4568_v19, %v2829_v54  ;;  %v3272_v7 = vmul.f32 %v4597_v9, %v2829_v54  ;;  %v4572_v48 = vld [vmem:[%s7964_s8 + $0x278] sm:$0xff] }
 0x2e6   : > { %v4601_v19 = vld [vmem:[%s7964_s8 + $0x358] sm:$0xff] }
 0x2e7   : > { %v2966_v40 = vsel %vm1262_vm0, %v2920_v23, 0.0  ;;  %v3082_v57 = vsel %vm1262_vm0, %v3036_v56, 0.0  ;;  %v3200_v35 = vsel %vm1262_vm0, %v3154_v24, 0.0  ;;  %v3318_v32 = vsel %vm1262_vm0, %v3272_v7, 0.0  ;;  %7995 = sst [smem:[#allocation48_spill]] %s7202_s21  ;;  %s7234_s21 = sld [smem:[#allocation7 + $0x26]] }
 0x2e8   : > { %v2967_v34 = vadd.f32 %v2966_v40, %v2965_v16  ;;  %v3083_v3 = vadd.f32 %v3082_v57, %v3081_v37  ;;  %v3201_v2 = vadd.f32 %v3200_v35, %v3199_v18  ;;  %v3319_v33 = vadd.f32 %v3318_v32, %v3317_v52  ;;  %v2898_v35 = vld [vmem:[%s7964_s8 + $0xc8] sm:$0xff] }
 0x2e9   : > { %v3356_v23 = vstv %s7033_s17  ;;  %v3361_v56 = vstv %s7035_s18  ;;  %v7111_v24 = vstv %s7041_s22  ;;  %v3375_v7 = vstv %s7047_s23  ;;  %s7124_s22 = sld [smem:[#allocation7 + $0x10]]  ;;  %s7166_s18 = sld [smem:[#allocation7 + $0x1]] }
 0x2ea   : > { %v4545_v32 = vld [vmem:[%s7964_s8 + $0x1a8] sm:$0xff]  ;;  %s7168_s17 = sld [smem:[#allocation7 + $0xa]]  ;;  %s7200_s23 = sld [smem:[#allocation7 + $0x1c]] }
 0x2ec   : > { %v2833_v15 = vpop.permute.xlu0 %2832 }
 0x2ed   : > { %v2921_v11 = vmul.f32 %v2893_v44, %v2833_v15  ;;  %v3037_v0 = vmul.f32 %v4540_v42, %v2833_v15  ;;  %v3155_v58 = vmul.f32 %v4569_v41, %v2833_v15  ;;  %v3273_v38 = vmul.f32 %v4598_v53, %v2833_v15  ;;  %8000 = sst [smem:[#allocation53_spill]] %s7234_s21  ;;  %s7246_s21 = sld [smem:[#allocation7 + $0x49]] }
 0x2ef   : > { %v2968_v59 = vsel %vm1262_vm0, %v2921_v11, 0.0  ;;  %v3084_v25 = vsel %vm1262_vm0, %v3037_v0, 0.0  ;;  %v3202_v10 = vsel %vm1262_vm0, %v3155_v58, 0.0  ;;  %v3320_v62 = vsel %vm1262_vm0, %v3273_v38, 0.0  ;;  %7981 = sst [smem:[#allocation34_spill]] %s7124_s22 }
 0x2f0   : > { %v2969_v45 = vadd.f32 %v2968_v59, %v2967_v34  ;;  %v3085_v21 = vadd.f32 %v3084_v25, %v3083_v3  ;;  %v3203_v31 = vadd.f32 %v3202_v10, %v3201_v2  ;;  %v3321_v1 = vadd.f32 %v3320_v62, %v3319_v33  ;;  %7989 = sst [smem:[#allocation42_spill]] %s7166_s18 }
 0x2f1   : > { %v3380_v3 = vstv %s7064_s4  ;;  %v3385_v2 = vstv %s7074_s24  ;;  %v3390_v33 = vstv %s7076_s28  ;;  %7990 = sst [smem:[#allocation43_spill]] %s7168_s17  ;;  %s7192_s4 = sld [smem:[#allocation7]] }
 0x2f2   : > { %s7176_s28 = sld [smem:[#allocation7 + $0x13]]  ;;  %7994 = sst [smem:[#allocation47_spill]] %s7200_s23 }
 0x2f3   : > { %s7222_s24 = sld [smem:[#allocation7 + $0x14]]  ;;  %s7236_s23 = sld [smem:[#allocation7 + $0x37]] }
 0x2f4   : > { %v2837_v17 = vpop.permute.xlu1 %2836 }
 0x2f5   : > { %v2922_v60 = vmul.f32 %v2894_v26, %v2837_v17  ;;  %v3038_v4 = vmul.f32 %v4541_v30, %v2837_v17  ;;  %v3156_v12 = vmul.f32 %v4570_v50, %v2837_v17  ;;  %v3274_v49 = vmul.f32 %v4599_v47, %v2837_v17  ;;  %v4573_v26 = vld [vmem:[%s7964_s8 + $0x280] sm:$0xff] }
 0x2f6   : > { %v4602_v30 = vld [vmem:[%s7964_s8 + $0x360] sm:$0xff] }
 0x2f7   : > { %v2970_v54 = vsel %vm1262_vm0, %v2922_v60, 0.0  ;;  %v3086_v44 = vsel %vm1262_vm0, %v3038_v4, 0.0  ;;  %v3204_v63 = vsel %vm1262_vm0, %v3156_v12, 0.0  ;;  %v3322_v27 = vsel %vm1262_vm0, %v3274_v49, 0.0  ;;  %7993 = sst [smem:[#allocation46_spill]] %s7192_s4  ;;  %s7328_s4 = sld [smem:[#allocation7 + $0x20]] }
 0x2f8   : > { %v2971_v11 = vadd.f32 %v2970_v54, %v2969_v45  ;;  %v3087_v0 = vadd.f32 %v3086_v44, %v3085_v21  ;;  %v3205_v58 = vadd.f32 %v3204_v63, %v3203_v31  ;;  %v3323_v38 = vadd.f32 %v3322_v27, %v3321_v1  ;;  %v2899_v45 = vld [vmem:[%s7964_s8 + $0xd0] sm:$0xff]  ;;  %7991 = sst [smem:[#allocation44_spill]] %s7176_s28 }
 0x2f9   : > { %v4546_v21 = vld [vmem:[%s7964_s8 + $0x1b0] sm:$0xff]  ;;  %7998 = sst [smem:[#allocation51_spill]] %s7222_s24  ;;  %s7248_s24 = sld [smem:[#allocation7 + $0x41]] }
 0x2fa   : > { %v4575_v27 = vld [vmem:[%s7964_s8 + $0x290] sm:$0xff]  ;;  %8001 = sst [smem:[#allocation54_spill]] %s7236_s23  ;;  %s7264_s23 = sld [smem:[#allocation7 + $0x5b]] }
 0x2fc   : > { %v2841_v36 = vpop.permute.xlu0 %2840 }
 0x2fd   : > { %v2923_v39 = vmul.f32 %v2895_v28, %v2841_v36  ;;  %v3039_v6 = vmul.f32 %v4542_v55, %v2841_v36  ;;  %v3157_v42 = vmul.f32 %v4571_v5, %v2841_v36  ;;  %v3275_v41 = vmul.f32 %v4600_v22, %v2841_v36  ;;  %v4574_v28 = vld [vmem:[%s7964_s8 + $0x288] sm:$0xff] }
 0x2fe   : > { %v4603_v55 = vld [vmem:[%s7964_s8 + $0x368] sm:$0xff]  ;;  %v7164_v5 = vstv %s7084_s30  ;;  %s7178_s30 = sld [smem:[#allocation7 + $0x9]] }
 0x2ff   : > { %v2972_v37 = vsel %vm1262_vm0, %v2923_v39, 0.0  ;;  %v3088_v18 = vsel %vm1262_vm0, %v3039_v6, 0.0  ;;  %v3206_v52 = vsel %vm1262_vm0, %v3157_v42, 0.0  ;;  %v3324_v50 = vsel %vm1262_vm0, %v3275_v41, 0.0  ;;  %v4604_v39 = vld [vmem:[%s7964_s8 + $0x370] sm:$0xff]  ;;  %8004 = sst [smem:[#allocation56_spill]] %s7248_s24 }
 0x300   : > { %v2973_v60 = vadd.f32 %v2972_v37, %v2971_v11  ;;  %v3089_v4 = vadd.f32 %v3088_v18, %v3087_v0  ;;  %v3207_v12 = vadd.f32 %v3206_v52, %v3205_v58  ;;  %v3325_v49 = vadd.f32 %v3324_v50, %v3323_v38  ;;  %v2900_v11 = vld [vmem:[%s7964_s8 + $0xd8] sm:$0xff] }
 0x301   : > { %v3405_v6 = vstv %s7086_s0  ;;  %v3410_v42 = vstv %s7092_s19  ;;  %v3415_v41 = vstv %s7094_s3  ;;  %v4547_v0 = vld [vmem:[%s7964_s8 + $0x1b8] sm:$0xff]  ;;  %s7210_s19 = sld [smem:[#allocation7 + $0x2e]]  ;;  %s7238_s0 = sld [smem:[#allocation7 + $0x40]] }
 0x302   : > { %v4605_v37 = vld [vmem:[%s7964_s8 + $0x378] sm:$0xff]  ;;  %s7268_s3 = sld [smem:[#allocation7 + $0x53]] }
 0x304   : > { %7992 = sst [smem:[#allocation45_spill]] %s7178_s30 }
 0x305   : > { %v2845_v9 = vpop.permute.xlu1 %2844 }
 0x306   : > { %v2924_v53 = vmul.f32 %v2896_v61, %v2845_v9  ;;  %v3040_v15 = vmul.f32 %v4543_v8, %v2845_v9  ;;  %v3158_v20 = vmul.f32 %v4572_v48, %v2845_v9  ;;  %v3276_v29 = vmul.f32 %v4601_v19, %v2845_v9 }
 0x307   : > { %8002 = sst [smem:[#allocation55_spill]] %s7238_s0  ;;  %s7266_s0 = sld [smem:[#allocation7 + $0x64]] }
 0x308   : > { %v2974_v47 = vsel %vm1262_vm0, %v2924_v53, 0.0  ;;  %v3090_v17 = vsel %vm1262_vm0, %v3040_v15, 0.0  ;;  %v3208_v40 = vsel %vm1262_vm0, %v3158_v20, 0.0  ;;  %v3326_v57 = vsel %vm1262_vm0, %v3276_v29, 0.0  ;;  %8007 = sst [smem:[#allocation59_spill]] %s7268_s3  ;;  %s7280_s3 = sld [smem:[#allocation7 + $0xc]] }
 0x309   : > { %v2975_v22 = vadd.f32 %v2974_v47, %v2973_v60  ;;  %v3091_v61 = vadd.f32 %v3090_v17, %v3089_v4  ;;  %v3209_v36 = vadd.f32 %v3208_v40, %v3207_v12  ;;  %v3327_v8 = vadd.f32 %v3326_v57, %v3325_v49  ;;  %v2984_v60 = vld [vmem:[%s8003_s9] sm:$0xff]  ;;  %v4548_v4 = vld [vmem:[%s8003_s9 + $0x8] sm:$0xff] }
 0x30a   : > { %v3420_v53 = vstv %s7096_s20  ;;  %s7212_s20 = sld [smem:[#allocation7 + $0x1d]] }
 0x30c   : > { %v2853_v34 = vpop.permute.xlu1 %2852 }
 0x30d   : > { %v2849_v16 = vpop.permute.xlu0 %2848  ;;  %v2926_v9 = vmul.f32 %v2898_v35, %v2853_v34  ;;  %v3042_v54 = vmul.f32 %v4545_v32, %v2853_v34  ;;  %v3160_v44 = vmul.f32 %v4574_v28, %v2853_v34  ;;  %v3278_v63 = vmul.f32 %v4603_v55, %v2853_v34  ;;  %8006 = sst [smem:[#allocation58_spill]] %s7266_s0  ;;  %s7278_s0 = sld [smem:[#allocation7 + $0x5c]] }
 0x30e   : > { %v2925_v59 = vmul.f32 %v2897_v46, %v2849_v16  ;;  %v3041_v25 = vmul.f32 %v4544_v14, %v2849_v16  ;;  %v3159_v10 = vmul.f32 %v4573_v26, %v2849_v16  ;;  %v3277_v62 = vmul.f32 %v4602_v30, %v2849_v16  ;;  %v4576_v16 = vld [vmem:[%s7964_s8 + $0x298] sm:$0xff]  ;;  %s7274_s8 = sld [smem:[#allocation7 + $0x4a]]  ;;  %8011 = sst [smem:[#allocation63_spill]] %s7280_s3 }
 0x30f   : > { %v2978_v18 = vsel %vm1262_vm0, %v2926_v9, 0.0  ;;  %v3094_v52 = vsel %vm1262_vm0, %v3042_v54, 0.0  ;;  %v3212_v50 = vsel %vm1262_vm0, %v3160_v44, 0.0  ;;  %v3330_v47 = vsel %vm1262_vm0, %v3278_v63, 0.0 }
 0x310   : > { %v2976_v31 = vsel %vm1262_vm0, %v2925_v59, 0.0  ;;  %v3092_v1 = vsel %vm1262_vm0, %v3041_v25, 0.0  ;;  %v3210_v48 = vsel %vm1262_vm0, %v3159_v10, 0.0  ;;  %v3328_v19 = vsel %vm1262_vm0, %v3277_v62, 0.0  ;;  %7996 = sst [smem:[#allocation49_spill]] %s7212_s20 }
 0x311   : > { %v2977_v15 = vadd.f32 %v2976_v31, %v2975_v22  ;;  %v3093_v20 = vadd.f32 %v3092_v1, %v3091_v61  ;;  %v3211_v29 = vadd.f32 %v3210_v48, %v3209_v36  ;;  %v3329_v46 = vadd.f32 %v3328_v19, %v3327_v8  ;;  %v4577_v8 = vld [vmem:[%s8003_s9 + $0x10] sm:$0xff] }
 0x312   : > { %v3653_v63 = vstv %s7104_s27  ;;  %s7308_s27 = sld [smem:[#allocation7 + $0x17]] }
 0x313   : > { %v2857_v14 = vpop.permute.xlu0 %2856  ;;  %v2979_v59 = vadd.f32 %v2978_v18, %v2977_v15  ;;  %v3095_v25 = vadd.f32 %v3094_v52, %v3093_v20  ;;  %v3213_v10 = vadd.f32 %v3212_v50, %v3211_v29  ;;  %v3331_v62 = vadd.f32 %v3330_v47, %v3329_v46  ;;  %8010 = sst [smem:[#allocation62_spill]] %s7278_s0  ;;  %s7360_s0 = sld [smem:[#allocation7 + $0x51]] }
 0x314   : > { %v2927_v58 = vmul.f32 %v2899_v45, %v2857_v14  ;;  %v3043_v38 = vmul.f32 %v4546_v21, %v2857_v14  ;;  %v3161_v26 = vmul.f32 %v4575_v27, %v2857_v14  ;;  %v3279_v30 = vmul.f32 %v4604_v39, %v2857_v14  ;;  %v4606_v45 = vld [vmem:[%s8003_s9 + $0x18] sm:$0xff]  ;;  %8008 = sst [smem:[#allocation60_spill]] %s7274_s8  ;;  %s7276_s9 = sld [smem:[#allocation7 + $0x65]] }
 0x315   : > { %v3658_v27 = vstv %s7106_s5  ;;  %v3663_v39 = vstv %s7114_s6  ;;  %v3668_v15 = vstv %s7116_s7  ;;  %s7286_s7 = sld [smem:[#allocation7 + $0xe]]  ;;  %s7288_s6 = sld [smem:[#allocation7 + $0x3]]  ;;  %v3753_v18 = vstv %s7146_s25 }
 0x316   : > { %v2980_v40 = vsel %vm1262_vm0, %v2927_v58, 0.0  ;;  %v3096_v57 = vsel %vm1262_vm0, %v3043_v38, 0.0  ;;  %v3214_v35 = vsel %vm1262_vm0, %v3161_v26, 0.0  ;;  %v3332_v32 = vsel %vm1262_vm0, %v3279_v30, 0.0  ;;  %s7290_s5 = sld [smem:[#allocation7 + $0x5]]  ;;  %s8021_s25 = sld [smem:[#allocation54_spill]] }
 0x317   : > { %v2981_v34 = vadd.f32 %v2980_v40, %v2979_v59  ;;  %v3097_v22 = vadd.f32 %v3096_v57, %v3095_v25  ;;  %v3215_v61 = vadd.f32 %v3214_v35, %v3213_v10  ;;  %v3333_v36 = vadd.f32 %v3332_v32, %v3331_v62 }
 0x318   : > { %v3713_v58 = vstv %s7132_s11  ;;  %v3718_v38 = vstv %s7138_s1  ;;  %v3758_v52 = vstv %s7148_s2  ;;  %v3763_v50 = vstv %s7156_s13  ;;  %s8014_s1 = sld [smem:[#allocation47_spill]]  ;;  %s7296_s11 = sld [smem:[#allocation7 + $0x8]] }
 0x319   : > { %v2861_v17 = vpop.permute.xlu1 %2860  ;;  %v3768_v47 = vstv %s7158_s29  ;;  %s8018_s13 = sld [smem:[#allocation51_spill]]  ;;  %v3683_v40 = vstv %s7168_s17  ;;  %s8019_s29 = sld [smem:[#allocation52_spill]]  ;;  %v3733_v57 = vstv %s7176_s28  ;;  %v3901_v35 = vstv %s7178_s30 }
 0x31a   : > { %v2928_v12 = vmul.f32 %v2900_v11, %v2861_v17  ;;  %v3044_v49 = vmul.f32 %v4547_v0, %v2861_v17  ;;  %v3162_v28 = vmul.f32 %v4576_v16, %v2861_v17  ;;  %v3280_v55 = vmul.f32 %v4605_v37, %v2861_v17  ;;  %8009 = sst [smem:[#allocation61_spill]] %s7276_s9  ;;  %s7318_s17 = sld [smem:[#allocation7 + $0x29]] }
 0x31b   : > { %v3703_v11 = vstv %s7124_s22  ;;  %v3708_v0 = vstv %s7126_s10  ;;  %8012 = sst [smem:[#allocation64_spill]] %s7288_s6  ;;  %s7298_s10 = sld [smem:[#allocation7 + $0x15]]  ;;  %v3633_v17 = vstv %s7166_s18  ;;  %v3920_v32 = vstv %s7184_s15 }
 0x31c   : > { %v2982_v21 = vsel %vm1262_vm0, %v2928_v12, 0.0  ;;  %v3098_v31 = vsel %vm1262_vm0, %v3044_v49, 0.0  ;;  %v3216_v1 = vsel %vm1262_vm0, %v3162_v28, 0.0  ;;  %v3334_v48 = vsel %vm1262_vm0, %v3280_v55, 0.0  ;;  %8013 = sst [smem:[#allocation65_spill]] %s7290_s5  ;;  %s8017_s22 = sld [smem:[#allocation48_spill]] }
 0x31d   : > { %v2983_v19 = vadd.f32 %v2982_v21, %v2981_v34  ;;  %v3099_v9 = vadd.f32 %v3098_v31, %v3097_v22  ;;  %v3217_v54 = vadd.f32 %v3216_v1, %v3215_v61  ;;  %v3335_v44 = vadd.f32 %v3334_v48, %v3333_v36  ;;  %s8020_s2 = sld [smem:[#allocation53_spill]]  ;;  %s7316_s18 = sld [smem:[#allocation7 + $0x11]] }
 0x31e   : > { %8015 = sst [smem:[#allocation66_spill]] %s7296_s11  ;;  %s8022_s11 = sld [smem:[#allocation55_spill]]  ;;  %v3802_v25 = vstv %s7194_s26  ;;  %v3638_v10 = vstv %s8014_s1  ;;  %v3643_v34 = vstv %s8021_s25  ;;  %v3743_v61 = vstv %s7246_s21 }
 0x31f   : > { %v2985_v20 = vadd.f32 %v2984_v60, %v2983_v19  ;;  %v3102_v29 = vadd.f32 %v4548_v4, %v3099_v9  ;;  %v3220_v46 = vadd.f32 %v4577_v8, %v3217_v54  ;;  %v3338_v14 = vadd.f32 %v4606_v45, %v3335_v44  ;;  %s8024_s30 = sld [smem:[#allocation58_spill]]  ;;  %s8025_s28 = sld [smem:[#allocation59_spill]] }
 0x320   : > { %8023 = sst [smem:[#allocation48_spill]] %s7318_s17  ;;  %v3738_v60 = vstv %s7210_s19  ;;  %v3810_v4 = vstv %s7212_s20  ;;  %v4038_v49 = vstv %s8018_s13  ;;  %v4046_v28 = vstv %s8019_s29  ;;  %s7330_s1 = sld [smem:[#allocation7 + $0x24]] }
 0x321   : > { %v2986_v26 = vmax.f32 %v2985_v20, 0.0  ;;  %v3103_v30 = vmax.f32 %v3102_v29, 0.0  ;;  %v3221_v16 = vmax.f32 %v3220_v46, 0.0  ;;  %v3339_v37 = vmax.f32 %v3338_v14, 0.0  ;;  %8016 = sst [smem:[#allocation67_spill]] %s7298_s10  ;;  %s7310_s10 = sld [smem:[#allocation7 + $0x1a]] }
 0x322   : > { %v3688_v62 = vstv %s8017_s22  ;;  %8026 = sst [smem:[#allocation55_spill]] %s7328_s4  ;;  %v3936_v36 = vstv %s7248_s24  ;;  %v3818_v8 = vstv %s7256_s12  ;;  %v3648_v45 = vstv %s7258_s16  ;;  %s7342_s25 = sld [smem:[#allocation7 + $0x5a]] }
 0x323   : > { %2987 = vst.msk [vmem:[#allocation2] sm:$0xff] %vm1262_vm0, %v2986_v26  ;;  %3105 = vst.msk [vmem:[#allocation2 + $0x10] sm:$0xff] %vm1262_vm0, %v3103_v30  ;;  %v3928_v55 = vstv %s8020_s2  ;;  %v3698_v21 = vstv %s7264_s23  ;;  %s7340_s29 = sld [smem:[#allocation7 + $0x3f]]  ;;  %v4054_v48 = vstv %s7274_s8  ;;  %s8030_s20 = sld [smem:[#allocation67_spill]]  ;;  %v4062_v19 = vstv %s7276_s9 }
 0x324   : > { %3223 = vst.msk [vmem:[#allocation2 + $0x20] sm:$0xff] %vm1262_vm0, %v3221_v16  ;;  %3341 = vst.msk [vmem:[#allocation2 + $0x30] sm:$0xff] %vm1262_vm0, %v3339_v37  ;;  %v3693_v22 = vstv %s8022_s11  ;;  %s7348_s12 = sld [smem:[#allocation7 + $0x1b]]  ;;  %s7378_s6 = sld [smem:[#allocation7 + $0x2d]] }
 0x325   : > { %v3748_v31 = vstv %s8024_s30  ;;  %v3826_v1 = vstv %s8025_s28  ;;  %s7358_s28 = sld [smem:[#allocation7 + $0x36]]  ;;  %s7398_s17 = sld [smem:[#allocation7 + $0x48]] }
 0x326   : > { %s7414_s9 = sld [smem:[#allocation7 + $0x63]]  ;;  %s7425_s5 = sld [smem:[#allocation8 + $0x1]] }
 0x327   : > { %s7432_s2 = sld [smem:[#allocation7 + $0x42]]  ;;  %s7922_s24 = smov 1  }
 0x328   : > { %v3916_v59 = vstv %s7342_s25  ;;  %s7517_s23 = sld [smem:[#allocation7 + $0x5d]]  ;;  %s7519_s13 = sld [smem:[#allocation8]] }
 0x329   : > { %s7528_s22 = sld [smem:[#allocation7 + $0x1e]]  ;;  %s7530_s15 = sld [smem:[#allocation7 + $0x39]] }
 0x32a   : > { %v7350_v44 = vld [vmem:[#allocation2] sm:$0xff]  ;;  %v7352_v20 = vld [vmem:[#allocation2 + $0x10] sm:$0xff]  ;;  %s7541_s30 = sld [smem:[#allocation7 + $0x54]]  ;;  %s7556_s21 = sld [smem:[#allocation8 + $0x2]] }
 0x32b   : > { %v3347_v30 = vmul.f32 %v3346_v13, %v7350_v44  ;;  %v7365_v16 = vld [vmem:[#allocation2 + $0x20] sm:$0xff]  ;;  %v3376_v37 = vmul.f32 %v3375_v7, %v7350_v44  ;;  %v3352_v14 = vmul.f32 %v3351_v51, %v7352_v20  ;;  %v7381_v9 = vld [vmem:[#allocation2 + $0x30] sm:$0xff]  ;;  %v3381_v26 = vmul.f32 %v3380_v3, %v7352_v20  ;;  %s7558_s26 = sld [smem:[#allocation7 + $0x30]]  ;;  %s7564_s8 = sld [smem:[#allocation7 + $0x4b]] }
 0x32c   : > { %v3406_v51 = vmul.f32 %v3405_v6, %v7350_v44  ;;  %v3357_v12 = vmul.f32 %v3356_v23, %v7365_v16  ;;  %v3386_v29 = vmul.f32 %v3385_v2, %v7365_v16  ;;  %v3411_v6 = vmul.f32 %v3410_v42, %v7352_v20  ;;  %v7410_v54 = vld [vmem:[#allocation2 + $0x1] sm:$0xff]  ;;  %8044 = sst [smem:[#allocation18_spill]] %s7425_s5  ;;  %s7566_s4 = sld [smem:[#allocation7 + $0x66]] }
 0x32d   : > { %v3348_v13 = vadd.f32 %v3347_v30, %v7070_v43  ;;  %v3377_v7 = vadd.f32 %v3376_v37, %v7111_v24  ;;  %v3362_v23 = vmul.f32 %v3361_v56, %v7381_v9  ;;  %v3391_v2 = vmul.f32 %v3390_v33, %v7381_v9  ;;  %8046 = sst [smem:[#allocation67_spill]] %s7432_s2  ;;  %s8077_s11 = sld [smem:[#allocation50_spill]] }
 0x32e   : > { %v3407_v3 = vadd.f32 %v3406_v51, %v7164_v5  ;;  %v3911_v30 = vstv %s7340_s29  ;;  %v3416_v42 = vmul.f32 %v3415_v41, %v7365_v16  ;;  %v3421_v56 = vmul.f32 %v3420_v53, %v7381_v9  ;;  %8064 = sst [smem:[#allocation19_spill]] %s7517_s23  ;;  %s8082_s19 = sld [smem:[#allocation65_spill]] }
 0x32f   : > { %v3353_v37 = vadd.f32 %v3352_v14, %v3348_v13  ;;  %v3382_v46 = vadd.f32 %v3381_v26, %v3377_v7  ;;  %v3788_v33 = vstv %s7348_s12  ;;  %v3793_v7 = vstv %s7358_s28  ;;  %s8083_s3 = sld [smem:[#allocation64_spill]]  ;;  %s7726_s12 = sld [smem:[#allocation7 + $0x44]] }
 0x330   : > { %v3412_v13 = vadd.f32 %v3411_v6, %v3407_v3  ;;  %v3798_v51 = vstv %s7360_s0  ;;  %v3634_v41 = vmul.f32 %v7410_v54, %v3633_v17  ;;  %v3684_v53 = vmul.f32 %v7410_v54, %v3683_v40  ;;  %v7443_v6 = vld [vmem:[#allocation2 + $0x11] sm:$0xff]  ;;  %s4632_s0 = sld [smem:[#allocation7 + $0x3b]]  ;;  %s7796_s29 = sld [smem:[#allocation7 + $0x45]] }
 0x331   : > { %v3358_v14 = vadd.f32 %v3357_v12, %v3353_v37  ;;  %v3387_v26 = vadd.f32 %v3386_v29, %v3382_v46  ;;  %v3921_v46 = vmul.f32 %v3920_v32, %v7410_v54  ;;  %v3734_v3 = vmul.f32 %v7410_v54, %v3733_v57  ;;  %s7800_s28 = sld [smem:[#allocation7 + $0x69]]  ;;  %s8104_s25 = smov 127  }
 0x332   : > { %v3417_v29 = vadd.f32 %v3416_v42, %v3412_v13  ;;  %v3803_v17 = vmul.f32 %v7410_v54, %v3802_v25  ;;  %v3635_v40 = vadd.f32 %v3634_v41, %v7070_v43  ;;  %v3685_v57 = vadd.f32 %v3684_v53, %v7111_v24  ;;  %v7473_v53 = vld [vmem:[#allocation2 + $0x31] sm:$0xff] }
 0x333   : > { %v3363_v12 = vadd.f32 %v3362_v23, %v3358_v14  ;;  %v3392_v37 = vadd.f32 %v3391_v2, %v3387_v26  ;;  %v4024_v23 = vstv %s7378_s6  ;;  %3923 = vrot.lane.b32.xlu1 %v3921_v46, %s7922_s24  ;;  %v3735_v26 = vadd.f32 %v3734_v3, %v7164_v5  ;;  %s8093_s6 = sld [smem:[#allocation48_spill]] }
 0x334   : > { %v3422_v32 = vadd.f32 %v3421_v56, %v3417_v29  ;;  %v4029_v13 = vstv %s7398_s17  ;;  %3805 = vrot.lane.b32.xlu0 %v3803_v17, %s7922_s24  ;;  %v3639_v56 = vmul.f32 %v3638_v10, %v7443_v6  ;;  %v3689_v25 = vmul.f32 %v3688_v62, %v7443_v6  ;;  %s7673_s17 = sld [smem:[#allocation7 + $0x32]] }
 0x335   : > { %v4611_v2 = vmul.f32 -1.442695, %v3363_v12  ;;  %v4617_v14 = vmul.f32 -1.442695, %v3392_v37  ;;  %v7461_v12 = vld [vmem:[#allocation2 + $0x21] sm:$0xff]  ;;  %v3739_v37 = vmul.f32 %v3738_v60, %v7443_v6  ;;  %v3811_v29 = vmul.f32 %v3810_v4, %v7443_v6 }
 0x336   : > { %v4624_v42 = vmul.f32 -1.442695, %v3422_v32  ;;  %v4034_v46 = vstv %s7414_s9  ;;  %v3640_v10 = vadd.f32 %v3639_v56, %v3635_v40  ;;  %v3690_v41 = vadd.f32 %v3689_v25, %v3685_v57  ;;  %s4703_s9 = sld [smem:[#allocation7 + $0x3e]] }
 0x337   : > { %4805 = vpow2.f32 %v4611_v2  ;;  %v4039_v62 = vmul.f32 %v4038_v49, %v7410_v54  ;;  %3813 = vrot.lane.b32.xlu1 %v3811_v29, %s7922_s24  ;;  %v3740_v60 = vadd.f32 %v3739_v37, %v3735_v26  ;;  %v3644_v4 = vmul.f32 %v3643_v34, %v7461_v12 }
 0x338   : > { %4807 = vpow2.f32 %v4617_v14  ;;  %v3498_v3 = vstv %s7425_s5  ;;  %v3506_v2 = vstv %s7427_s14  ;;  %v3654_v14 = vmul.f32 %v3653_v63, %v7350_v44  ;;  %s8075_s5 = smov 1   ;;  %s8076_s14 = sld [smem:[#allocation62_spill]] }
 0x339   : > { %4809 = vpow2.f32 %v4624_v42  ;;  %4041 = vrot.lane.b32.xlu0 %v4039_v62, %s7922_s24  ;;  %v3694_v49 = vmul.f32 %v3693_v22, %v7461_v12  ;;  %v3744_v32 = vmul.f32 %v3743_v61, %v7461_v12  ;;  %v3511_v17 = vstv %s7432_s2  ;;  %s8074_s2 = sld [smem:[#allocation46_spill]] }
 0x33a   : > { %v4047_v34 = vmul.f32 %v4046_v28, %v7443_v6  ;;  %v3929_v40 = vmul.f32 %v3928_v55, %v7443_v6  ;;  %v3645_v57 = vadd.f32 %v3644_v4, %v3640_v10  ;;  %v3649_v63 = vmul.f32 %v3648_v45, %v7473_v53 }
 0x33b   : > { %v3695_v26 = vadd.f32 %v3694_v49, %v3690_v41  ;;  %v3745_v42 = vadd.f32 %v3744_v32, %v3740_v60  ;;  %v3699_v22 = vmul.f32 %v3698_v21, %v7473_v53  ;;  %v3749_v61 = vmul.f32 %v3748_v31, %v7473_v53 }
 0x33c   : > { %v3659_v28 = vmul.f32 %v3658_v27, %v7352_v20  ;;  %v3664_v55 = vmul.f32 %v3663_v39, %v7365_v16  ;;  %v3669_v45 = vmul.f32 %v3668_v15, %v7381_v9  ;;  %4049 = vrot.lane.b32.xlu1 %v4047_v34, %s7922_s24  ;;  %v3650_v56 = vadd.f32 %v3649_v63, %v3645_v57 }
 0x33d   : > { %v3704_v21 = vmul.f32 %v3703_v11, %v7350_v44  ;;  %v3754_v27 = vmul.f32 %v3753_v18, %v7350_v44  ;;  %3931 = vrot.lane.b32.xlu0 %v3929_v40, %s7922_s24  ;;  %v3700_v39 = vadd.f32 %v3699_v22, %v3695_v26  ;;  %v3750_v15 = vadd.f32 %v3749_v61, %v3745_v42 }
 0x33e   : > { %v3709_v31 = vmul.f32 %v3708_v0, %v7352_v20  ;;  %v3714_v25 = vmul.f32 %v3713_v58, %v7365_v16  ;;  %v3937_v11 = vmul.f32 %v3936_v36, %v7461_v12  ;;  %v3655_v18 = vadd.f32 %v3654_v14, %v3650_v56 }
 0x33f   : > { %v3759_v29 = vmul.f32 %v3758_v52, %v7352_v20  ;;  %v3819_v10 = vmul.f32 %v3818_v8, %v7461_v12  ;;  %v3705_v41 = vadd.f32 %v3704_v21, %v3700_v39  ;;  %v3755_v62 = vadd.f32 %v3754_v27, %v3750_v15 }
 0x340   : > { %v3719_v58 = vmul.f32 %v3718_v38, %v7381_v9  ;;  %v3764_v36 = vmul.f32 %v3763_v50, %v7365_v16  ;;  %3939 = vrot.lane.b32.xlu1 %v3937_v11, %s7922_s24  ;;  %v3660_v4 = vadd.f32 %v3659_v28, %v3655_v18  ;;  %v3769_v14 = vmul.f32 %v3768_v47, %v7381_v9 }
 0x341   : > { %v4806_v37 = vpop.eup %4805  ;;  %3821 = vrot.lane.b32.xlu0 %v3819_v10, %s7922_s24  ;;  %v3710_v38 = vadd.f32 %v3709_v31, %v3705_v41  ;;  %v3760_v49 = vadd.f32 %v3759_v29, %v3755_v62  ;;  %v3827_v32 = vmul.f32 %v3826_v1, %v7473_v53  ;;  %s8073_s24 = sld [smem:[#allocation14_spill]]  ;;  %v4055_v57 = vmul.f32 %v4054_v48, %v7461_v12 }
 0x342   : > { %v4808_v0 = vpop.eup %4807  ;;  %v3367_v60 = vadd.f32 1.0, %v4806_v37  ;;  %v3665_v34 = vadd.f32 %v3664_v55, %v3660_v4  ;;  %v3516_v26 = vstv %s7517_s23  ;;  %v3432_v1 = vstv %s7519_s13  ;;  %s8079_s23 = sld [smem:[#allocation63_spill]]  ;;  %s4741_s13 = sld [smem:[#allocation7 + $0x50]] }
 0x343   : > { %v4810_v52 = vpop.eup %4809  ;;  %v3396_v8 = vadd.f32 1.0, %v4808_v0  ;;  %v3715_v47 = vadd.f32 %v3714_v25, %v3710_v38  ;;  %v3765_v40 = vadd.f32 %v3764_v36, %v3760_v49  ;;  %v3440_v61 = vstv %s7528_s22  ;;  %s4722_s22 = sld [smem:[#allocation7 + $0x47]] }
 0x344   : > { %4811 = vrcp.f32 %v3367_v60  ;;  %v3426_v50 = vadd.f32 1.0, %v4810_v52  ;;  %3829 = vrot.lane.b32.xlu1 %v3827_v32, %s8075_s5  ;;  %v3670_v63 = vadd.f32 %v3669_v45, %v3665_v34  ;;  %v3445_v28 = vstv %s7530_s15  ;;  %s4644_s15 = sld [smem:[#allocation7 + $0x5f]] }
 0x345   : > { %4813 = vrcp.f32 %v3396_v8  ;;  %v3720_v42 = vadd.f32 %v3719_v58, %v3715_v47  ;;  %v3770_v22 = vadd.f32 %v3769_v14, %v3765_v40  ;;  %4057 = vrot.lane.b32.xlu0 %v4055_v57, %s8075_s5  ;;  %v3902_v48 = vmul.f32 %v3901_v35, %v7410_v54 }
 0x346   : > { %4815 = vrcp.f32 %v3426_v50  ;;  %v4666_v55 = vmul.f32 -1.442695, %v3670_v63  ;;  %v4063_v45 = vmul.f32 %v4062_v19, %v7473_v53  ;;  %v3450_v56 = vstv %s7541_s30  ;;  %s4633_s30 = sld [smem:[#allocation7 + $0x56]] }
 0x347   : > { %s4749_s16 = smul.u32 96, %s8073_s24  ;;  %v8078_v21 = vstv %s8074_s2  ;;  %v4677_v39 = vmul.f32 -1.442695, %v3720_v42  ;;  %v4688_v15 = vmul.f32 -1.442695, %v3770_v22  ;;  %v8080_v31 = vstv %s8076_s14  ;;  %s8087_s14 = sld [smem:[#allocation66_spill]] }
 0x348   : > { %v3784_v27 = vmul.f32 %v7410_v54, %v8078_v21  ;;  %v3945_v25 = vmul.f32 %v8080_v31, %v7473_v53  ;;  %v8081_v35 = vstv %s8077_s11  ;;  %4817 = vpow2.f32 %v4666_v55  ;;  %4065 = vrot.lane.b32.xlu1 %v4063_v45, %s8075_s5  ;;  %s4723_s11 = sld [smem:[#allocation7 + $0x62]]  ;;  %s7786_s2 = sld [smem:[#allocation7 + $0x33]] }
 0x349   : > { %v4020_v11 = vmul.f32 %v8081_v35, %v7410_v54  ;;  %v3564_v19 = vstv %s7556_s21  ;;  %v3572_v18 = vstv %s7558_s26  ;;  %4819 = vpow2.f32 %v4677_v39  ;;  %s8088_s21 = sld [smem:[#allocation81_spill]]  ;;  %s4704_s26 = sld [smem:[#allocation7 + $0x59]] }
 0x34a   : > { %3947 = vrot.lane.b32.xlu0 %v3945_v25, %s8075_s5  ;;  %v8084_v37 = vstv %s7286_s7  ;;  %v3577_v10 = vstv %s7564_s8  ;;  %v3582_v41 = vstv %s7566_s4  ;;  %4821 = vpow2.f32 %v4688_v15  ;;  %s4655_s8 = sld [smem:[#allocation7 + $0x68]]  ;;  %s4742_s4 = sld [smem:[#allocation7 + $0x6b]] }
 0x34b   : > { %v3521_v29 = vmul.f32 %v8084_v37, %v7350_v44  ;;  %v8085_v54 = vstv %s8079_s23  ;;  %v8086_v0 = vstv %s7330_s1  ;;  %v3903_v58 = vadd.f32 %v3902_v48, %v7111_v24  ;;  %s7707_s1 = sld [smem:[#allocation7 + $0x2c]]  ;;  %s4654_s23 = sld [smem:[#allocation7 + $0x4d]] }
 0x34c   : > { %v3502_v62 = vmul.f32 %v8085_v54, %v7350_v44  ;;  %v3907_v60 = vmul.f32 %v8086_v0, %v7443_v6  ;;  %v8089_v36 = vstv %s8082_s19  ;;  %v8090_v52 = vstv %s8083_s3  ;;  %s4698_s19 = sld [smem:[#allocation7 + $0x21]]  ;;  %s7781_s3 = sld [smem:[#allocation7 + $0x18]] }
 0x34d   : > { %v3455_v4 = vmul.f32 %v8089_v36, %v7350_v44  ;;  %v3436_v8 = vmul.f32 %v8090_v52, %v7350_v44  ;;  %v3789_v14 = vmul.f32 %v3788_v33, %v7443_v6  ;;  %v3785_v38 = vadd.f32 %v3784_v27, %v7070_v43  ;;  %3523 = vrot.lane.b32.xlu1 %v3521_v29, %s8075_s5  ;;  %s7788_s24 = sld [smem:[#allocation7 + $0xf]] }
 0x34e   : > { %v4812_v24 = vpop.eup %4811  ;;  %v3912_v49 = vmul.f32 %v3911_v30, %v7461_v12  ;;  %v3908_v50 = vadd.f32 %v3907_v60, %v3903_v58  ;;  %v4021_v32 = vadd.f32 %v4020_v11, %v7164_v5  ;;  %v4025_v34 = vmul.f32 %v4024_v23, %v7443_v6 }
 0x34f   : > { %s7616_s7 = scalar_lea.vmem %s8088_s21, %s4749_s16  ;;  %v4814_v33 = vpop.eup %4813  ;;  %3457 = vrot.lane.b32.xlu0 %v3455_v4, %s8075_s5  ;;  %v8091_v43 = vstv %s8087_s14  ;;  %v8092_v40 = vstv %s8030_s20  ;;  %v3794_v57 = vmul.f32 %v3793_v7, %v7461_v12  ;;  %v3790_v5 = vadd.f32 %v3789_v14, %v3785_v38  ;;  %s7662_s20 = sld [smem:[#allocation7 + $0x23]] }
 0x350   : > { %v3855_v47 = vmul.f32 %v8091_v43, %v7350_v44  ;;  %v3568_v30 = vmul.f32 %v8092_v40, %v7350_v44  ;;  %3370 = vst.msk [vmem:[%s7616_s7] sm:$0xff] %vm1262_vm0, %v4812_v24  ;;  %v4816_v63 = vpop.eup %4815  ;;  %v3917_v6 = vmul.f32 %v3916_v59, %v7473_v53  ;;  %v3913_v23 = vadd.f32 %v3912_v49, %v3908_v50  ;;  %s4697_s16 = sld [smem:[#allocation7 + $0x6]]  ;;  %s7783_s14 = sld [smem:[#allocation7 + $0x3c]] }
 0x351   : > { %v4026_v42 = vadd.f32 %v4025_v34, %v4021_v32  ;;  %v4030_v22 = vmul.f32 %v4029_v13, %v7461_v12  ;;  %4618 = vst.msk [vmem:[%s7616_s7 + $0x8] sm:$0xff] %vm1262_vm0, %v4814_v33  ;;  %v8094_v48 = vstv %s7308_s27  ;;  %v8096_v55 = vstv %s7310_s10  ;;  %4625 = vst.msk [vmem:[%s7616_s7 + $0x10] sm:$0xff] %vm1262_vm0, %v4816_v63  ;;  %s8102_s27 = sld [smem:[#allocation55_spill]] }
 0x352   : > { %v3587_v7 = vmul.f32 %v8094_v48, %v7350_v44  ;;  %v4091_v45 = vmul.f32 %v8096_v55, %v7350_v44  ;;  %v3799_v59 = vmul.f32 %v3798_v51, %v7473_v53  ;;  %v3795_v21 = vadd.f32 %v3794_v57, %v3790_v5  ;;  %3857 = vrot.lane.b32.xlu1 %v3855_v47, %s8075_s5  ;;  %v4818_v37 = vpop.eup %4817  ;;  %s7792_s21 = sld [smem:[#allocation7 + $0x57]] }
 0x353   : > { %v8099_v13 = vstv %s7316_s18  ;;  %v7675_v27 = vadd.f32 %v3917_v6, %v3913_v23  ;;  %v4031_v39 = vadd.f32 %v4030_v22, %v4026_v42  ;;  %v4035_v51 = vmul.f32 %v4034_v46, %v7473_v53  ;;  %v4820_v0 = vpop.eup %4819  ;;  %s7701_s18 = sld [smem:[#allocation7 + $0x35]] }
 0x354   : > { %v3973_v12 = vmul.f32 %v8099_v13, %v7350_v44  ;;  %3589 = vrot.lane.b32.xlu0 %v3587_v7, %s8075_s5  ;;  %v8101_v15 = vstv %s8093_s6  ;;  %v7684_v25 = vadd.f32 %v3799_v59, %v3795_v21  ;;  %v3507_v35 = vmul.f32 %v3506_v2, %v7352_v20  ;;  %v4822_v58 = vpop.eup %4821  ;;  %s7794_s6 = sld [smem:[#allocation7 + $0x4e]] }
 0x355   : > { %v3529_v31 = vmul.f32 %v8101_v15, %v7352_v20  ;;  %v3503_v11 = vadd.f32 %v3502_v62, %v3498_v3  ;;  %v7691_v29 = vadd.f32 %v4035_v51, %v4031_v39  ;;  %v3512_v46 = vmul.f32 %v3511_v17, %v7365_v16 }
 0x356   : > { %v3441_v53 = vmul.f32 %v3440_v61, %v7352_v20  ;;  %v3437_v54 = vadd.f32 %v3436_v8, %v3432_v1  ;;  %v3674_v60 = vadd.f32 1.0, %v4818_v37  ;;  %v3517_v3 = vmul.f32 %v3516_v26, %v7381_v9  ;;  %4093 = vrot.lane.b32.xlu1 %v4091_v45, %s8075_s5 }
 0x357   : > { %v3508_v2 = vadd.f32 %v3507_v35, %v3503_v11  ;;  %v3569_v62 = vadd.f32 %v3568_v30, %v3564_v19  ;;  %v3724_v36 = vadd.f32 1.0, %v4820_v0  ;;  %v3446_v17 = vmul.f32 %v3445_v28, %v7365_v16 }
 0x358   : > { %v3442_v1 = vadd.f32 %v3441_v53, %v3437_v54  ;;  %v3573_v61 = vmul.f32 %v3572_v18, %v7352_v20  ;;  %4823 = vrcp.f32 %v3674_v60  ;;  %v3774_v26 = vadd.f32 1.0, %v4822_v58  ;;  %3975 = vrot.lane.b32.xlu0 %v3973_v12, %s8075_s5 }
 0x359   : > { %v3513_v19 = vadd.f32 %v3512_v46, %v3508_v2  ;;  %v3451_v4 = vmul.f32 %v3450_v56, %v7381_v9  ;;  %4825 = vrcp.f32 %v3724_v36  ;;  %v3578_v28 = vmul.f32 %v3577_v10, %v7365_v16 }
 0x35a   : > { %v3447_v52 = vadd.f32 %v3446_v17, %v3442_v1  ;;  %v3574_v8 = vadd.f32 %v3573_v61, %v3569_v62  ;;  %4827 = vrcp.f32 %v3774_v26  ;;  %v8103_v18 = vstv %s8102_s27  ;;  %3531 = vrot.lane.b32.xlu1 %v3529_v31, %s8075_s5 }
 0x35b   : > { %v3463_v14 = vmul.f32 %v8103_v18, %v7352_v20  ;;  %v3862_v38 = vstv %s7662_s20  ;;  %v7728_v24 = vadd.f32 %v3517_v3, %v3513_v19  ;;  %v3594_v56 = vstv %s7673_s17  ;;  %s7803_s20 = sld [smem:[#allocation7 + $0x60]] }
 0x35c   : > { %v7732_v49 = vadd.f32 %v3451_v4, %v3447_v52  ;;  %v3579_v50 = vadd.f32 %v3578_v28, %v3574_v8  ;;  %v3583_v10 = vmul.f32 %v3582_v41, %v7381_v9  ;;  %v3863_v32 = vmul.f32 %v3862_v38, %v7352_v20 }
 0x35d   : > { %3465 = vrot.lane.b32.xlu0 %v3463_v14, %s8075_s5  ;;  %v3595_v33 = vmul.f32 %v3594_v56, %v7352_v20  ;;  %v4098_v43 = vstv %s7701_s18  ;;  %v3980_v47 = vstv %s7707_s1  ;;  %v3536_v57 = vstv %s7726_s12 }
 0x35e   : > { %v7739_v34 = vadd.f32 %v3583_v10, %v3579_v50  ;;  %3865 = vrot.lane.b32.xlu1 %v3863_v32, %s8075_s5  ;;  %v4099_v41 = vmul.f32 %v4098_v43, %v7352_v20  ;;  %v3981_v30 = vmul.f32 %v3980_v47, %v7352_v20  ;;  %v3470_v63 = vstv %s4632_s0 }
 0x35f   : > { %v3537_v23 = vmul.f32 %v3536_v57, %v7365_v16  ;;  %v3471_v42 = vmul.f32 %v3470_v63, %v7365_v16  ;;  %v3870_v22 = vstv %s4703_s9  ;;  %v3602_v48 = vstv %s4654_s23 }
 0x360   : > { %v3871_v7 = vmul.f32 %v3870_v22, %v7365_v16  ;;  %v3603_v55 = vmul.f32 %v3602_v48, %v7365_v16  ;;  %v4106_v45 = vstv %s4741_s13  ;;  %v3988_v59 = vstv %s4722_s22 }
 0x361   : > { %3597 = vrot.lane.b32.xlu0 %v3595_v33, %s8075_s5  ;;  %v4107_v21 = vmul.f32 %v4106_v45, %v7365_v16  ;;  %v3989_v13 = vmul.f32 %v3988_v59, %v7365_v16  ;;  %v3544_v12 = vstv %s4644_s15  ;;  %v3478_v39 = vstv %s4633_s30 }
 0x362   : > { %v4824_v40 = vpop.eup %4823  ;;  %4101 = vrot.lane.b32.xlu1 %v4099_v41, %s8075_s5  ;;  %v3545_v51 = vmul.f32 %v3544_v12, %v7381_v9  ;;  %v3479_v15 = vmul.f32 %v3478_v39, %v7381_v9  ;;  %v3878_v31 = vstv %s4704_s26  ;;  %v3610_v35 = vstv %s4655_s8 }
 0x363   : > { %v4826_v5 = vpop.eup %4825  ;;  %4667 = vst.msk [vmem:[%s7616_s7 + $0x30] sm:$0xff] %vm1262_vm0, %v4824_v40  ;;  %v3879_v11 = vmul.f32 %v3878_v31, %v7381_v9  ;;  %v3611_v37 = vmul.f32 %v3610_v35, %v7381_v9  ;;  %v4114_v46 = vstv %s4742_s4  ;;  %v3996_v53 = vstv %s4723_s11 }
 0x364   : > { %v4828_v6 = vpop.eup %4827  ;;  %4678 = vst.msk [vmem:[%s7616_s7 + $0x38] sm:$0xff] %vm1262_vm0, %v4826_v5  ;;  %v4115_v54 = vmul.f32 %v4114_v46, %v7381_v9  ;;  %v3997_v0 = vmul.f32 %v3996_v53, %v7381_v9  ;;  %v3835_v19 = vstv %s4697_s16  ;;  %v3840_v8 = vstv %s4698_s19 }
 0x365   : > { %3983 = vrot.lane.b32.xlu0 %v3981_v30, %s8075_s5  ;;  %4689 = vst.msk [vmem:[%s7616_s7 + $0x40] sm:$0xff] %vm1262_vm0, %v4828_v6  ;;  %v3836_v38 = vmul.f32 %v3835_v19, %v7350_v44  ;;  %v3845_v10 = vstv %s7783_s14  ;;  %v3841_v32 = vmul.f32 %v3840_v8, %v7352_v20  ;;  %v3953_v43 = vstv %s7788_s24 }
 0x366   : > { %3539 = vrot.lane.b32.xlu1 %v3537_v23, %s8075_s5  ;;  %v4076_v41 = vstv %s7786_s2  ;;  %v3850_v57 = vstv %s7792_s21  ;;  %v3954_v22 = vmul.f32 %v3953_v43, %v7350_v44 }
 0x367   : > { %v4077_v45 = vmul.f32 %v4076_v41, %v7352_v20 }
 0x369   : > { %3473 = vrot.lane.b32.xlu0 %v3471_v42, %s8075_s5  ;;  %v3846_v42 = vmul.f32 %v3845_v10, %v7365_v16 }
 0x36a   : > { %3873 = vrot.lane.b32.xlu1 %v3871_v7, %s8075_s5  ;;  %v4081_v7 = vstv %s7794_s6 }
 0x36d   : > { %3605 = vrot.lane.b32.xlu0 %v3603_v55, %s8075_s5  ;;  %v3963_v55 = vstv %s7796_s29 }
 0x36e   : > { %4109 = vrot.lane.b32.xlu1 %v4107_v21, %s8075_s5  ;;  %v3964_v53 = vmul.f32 %v3963_v55, %v7365_v16 }
 0x371   : > { %3991 = vrot.lane.b32.xlu0 %v3989_v13, %s8075_s5  ;;  %v3851_v13 = vmul.f32 %v3850_v57, %v7381_v9 }
 0x372   : > { %3547 = vrot.lane.b32.xlu1 %v3545_v51, %s8075_s5 }
 0x375   : > { %3481 = vrot.lane.b32.xlu0 %v3479_v15, %s8075_s5  ;;  %v4086_v15 = vstv %s7800_s28 }
 0x376   : > { %3881 = vrot.lane.b32.xlu1 %v3879_v11, %s8075_s5 }
 0x379   : > { %3613 = vrot.lane.b32.xlu0 %v3611_v37, %s8075_s5  ;;  %v3968_v37 = vstv %s7803_s20 }
 0x37a   : > { %4117 = vrot.lane.b32.xlu1 %v4115_v54, %s8075_s5 }
 0x37d   : > { %3999 = vrot.lane.b32.xlu0 %v3997_v0, %s8075_s5  ;;  %s7790_s5 = sld [smem:[#allocation7 + $0x2a]]  ;;  %v4087_v0 = vmul.f32 %v4086_v15, %v7381_v9 }
 0x383   : > { %v3958_v30 = vstv %s7790_s5 }
 0x384   : > { %v3959_v12 = vmul.f32 %v3958_v30, %v7352_v20 }
 0x3a5   : > { %v3924_v60 = vpop.permute.xlu1 %3923 }
 0x3a6   : > { %v3806_v3 = vpop.permute.xlu0 %3805  ;;  %v3926_v52 = vadd.f32 %v3924_v60, %v7675_v27 }
 0x3a7   : > { %v3808_v17 = vadd.f32 %v3806_v3, %v7684_v25 }
 0x3a9   : > { %v3814_v2 = vpop.permute.xlu1 %3813 }
 0x3aa   : > { %v3816_v61 = vadd.f32 %v3814_v2, %v3808_v17  ;;  %v3969_v2 = vmul.f32 %v3968_v37, %v7381_v9 }
 0x3ab   : > { %v4042_v62 = vpop.permute.xlu0 %4041 }
 0x3ac   : > { %v4044_v25 = vadd.f32 %v4042_v62, %v7691_v29  ;;  %v4071_v29 = vstv %s7781_s3 }
 0x3ad   : > { %v4072_v63 = vmul.f32 %v4071_v29, %v7350_v44  ;;  %v4082_v44 = vmul.f32 %v4081_v7, %v7365_v16 }
 0x3ae   : > { %v4050_v58 = vpop.permute.xlu1 %4049 }
 0x3af   : > { %v3932_v36 = vpop.permute.xlu0 %3931  ;;  %v4052_v18 = vadd.f32 %v4050_v58, %v4044_v25 }
 0x3b0   : > { %v3934_v50 = vadd.f32 %v3932_v36, %v3926_v52 }
 0x3b2   : > { %v3940_v1 = vpop.permute.xlu1 %3939 }
 0x3b3   : > { %v3822_v26 = vpop.permute.xlu0 %3821  ;;  %v3942_v47 = vadd.f32 %v3940_v1, %v3934_v50 }
 0x3b4   : > { %v3824_v4 = vadd.f32 %v3822_v26, %v3816_v61 }
 0x3b6   : > { %v3830_v28 = vpop.permute.xlu1 %3829 }
 0x3b7   : > { %v3832_v14 = vadd.f32 %v3830_v28, %v3824_v4  ;;  %v4058_v56 = vpop.permute.xlu0 %4057 }
 0x3b8   : > { %v4060_v33 = vadd.f32 %v4058_v56, %v4052_v18 }
 0x3b9   : > { %v3837_v27 = vadd.f32 %v3836_v38, %v3832_v14 }
 0x3ba   : > { %v4066_v40 = vpop.permute.xlu1 %4065 }
 0x3bb   : > { %v3842_v5 = vadd.f32 %v3841_v32, %v3837_v27  ;;  %v4068_v6 = vadd.f32 %v4066_v40, %v4060_v33 }
 0x3bc   : > { %v3948_v23 = vpop.permute.xlu0 %3947 }
 0x3bd   : > { %v3950_v48 = vadd.f32 %v3948_v23, %v3942_v47  ;;  %v4073_v59 = vadd.f32 %v4072_v63, %v4068_v6  ;;  %v3847_v21 = vadd.f32 %v3846_v42, %v3842_v5 }
 0x3bf   : > { %v3955_v39 = vadd.f32 %v3954_v22, %v3950_v48  ;;  %v3524_v51 = vpop.permute.xlu1 %3523  ;;  %v4078_v31 = vadd.f32 %v4077_v45, %v4073_v59  ;;  %v3852_v11 = vadd.f32 %v3851_v13, %v3847_v21 }
 0x3c0   : > { %v3526_v18 = vadd.f32 %v3524_v51, %v7728_v24 }
 0x3c1   : > { %v3458_v35 = vpop.permute.xlu0 %3457  ;;  %v3960_v46 = vadd.f32 %v3959_v12, %v3955_v39  ;;  %v4083_v54 = vadd.f32 %v4082_v44, %v4078_v31 }
 0x3c2   : > { %v3460_v14 = vadd.f32 %v3458_v35, %v7732_v49 }
 0x3c3   : > { %v3965_v3 = vadd.f32 %v3964_v53, %v3960_v46  ;;  %v4088_v62 = vadd.f32 %v4087_v0, %v4083_v54 }
 0x3c4   : > { %v3858_v60 = vpop.permute.xlu1 %3857 }
 0x3c5   : > { %v3970_v58 = vadd.f32 %v3969_v2, %v3965_v3  ;;  %v3860_v29 = vadd.f32 %v3858_v60, %v3852_v11 }
 0x3c6   : > { %v3590_v20 = vpop.permute.xlu0 %3589 }
 0x3c7   : > { %v3592_v32 = vadd.f32 %v3590_v20, %v7739_v34 }
 0x3c8   : > { %v4094_v36 = vpop.permute.xlu1 %4093 }
 0x3c9   : > { %v4096_v57 = vadd.f32 %v4094_v36, %v4088_v62 }
 0x3ca   : > { %v3976_v17 = vpop.permute.xlu0 %3975 }
 0x3cb   : > { %v3978_v63 = vadd.f32 %v3976_v17, %v3970_v58 }
 0x3cc   : > { %v3532_v1 = vpop.permute.xlu1 %3531 }
 0x3cd   : > { %v3534_v38 = vadd.f32 %v3532_v1, %v3526_v18 }
 0x3cf   : > { %v3466_v61 = vpop.permute.xlu0 %3465 }
 0x3d0   : > { %v3866_v26 = vpop.permute.xlu1 %3865  ;;  %v3468_v50 = vadd.f32 %v3466_v61, %v3460_v14 }
 0x3d1   : > { %v3868_v43 = vadd.f32 %v3866_v26, %v3860_v29 }
 0x3d3   : > { %v3598_v19 = vpop.permute.xlu0 %3597 }
 0x3d4   : > { %v4102_v25 = vpop.permute.xlu1 %4101  ;;  %v3600_v40 = vadd.f32 %v3598_v19, %v3592_v32 }
 0x3d5   : > { %v4104_v42 = vadd.f32 %v4102_v25, %v4096_v57 }
 0x3d7   : > { %v3984_v4 = vpop.permute.xlu0 %3983 }
 0x3d8   : > { %v3540_v52 = vpop.permute.xlu1 %3539  ;;  %v3986_v7 = vadd.f32 %v3984_v4, %v3978_v63 }
 0x3d9   : > { %v3542_v10 = vadd.f32 %v3540_v52, %v3534_v38 }
 0x3db   : > { %v3474_v16 = vpop.permute.xlu0 %3473 }
 0x3dc   : > { %v3874_v8 = vpop.permute.xlu1 %3873  ;;  %v3476_v27 = vadd.f32 %v3474_v16, %v3468_v50 }
 0x3dd   : > { %v3876_v5 = vadd.f32 %v3874_v8, %v3868_v43 }
 0x3df   : > { %v3606_v28 = vpop.permute.xlu0 %3605 }
 0x3e0   : > { %v4110_v9 = vpop.permute.xlu1 %4109  ;;  %v3608_v49 = vadd.f32 %v3606_v28, %v3600_v40 }
 0x3e1   : > { %v4112_v55 = vadd.f32 %v4110_v9, %v4104_v42 }
 0x3e3   : > { %v3992_v56 = vpop.permute.xlu0 %3991 }
 0x3e4   : > { %v3548_v33 = vpop.permute.xlu1 %3547  ;;  %v3994_v59 = vadd.f32 %v3992_v56, %v3986_v7 }
 0x3e5   : > { %v3550_v47 = vadd.f32 %v3548_v33, %v3542_v10 }
 0x3e7   : > { %v3482_v41 = vpop.permute.xlu0 %3481  ;;  %v4645_v24 = vmul.f32 -1.442695, %v3550_v47 }
 0x3e8   : > { %v3484_v30 = vadd.f32 %v3482_v41, %v3476_v27  ;;  %v3882_v23 = vpop.permute.xlu1 %3881 }
 0x3e9   : > { %4829 = vpow2.f32 %v4645_v24  ;;  %v3884_v22 = vadd.f32 %v3882_v23, %v3876_v5 }
 0x3ea   : > { %v4634_v6 = vmul.f32 -1.442695, %v3484_v30 }
 0x3eb   : > { %v3614_v48 = vpop.permute.xlu0 %3613  ;;  %v4705_v45 = vmul.f32 -1.442695, %v3884_v22 }
 0x3ec   : > { %4831 = vpow2.f32 %v4634_v6  ;;  %v3616_v34 = vadd.f32 %v3614_v48, %v3608_v49  ;;  %v4118_v13 = vpop.permute.xlu1 %4117 }
 0x3ed   : > { %4833 = vpow2.f32 %v4705_v45  ;;  %v4120_v12 = vadd.f32 %v4118_v13, %v4112_v55 }
 0x3ee   : > { %v4656_v21 = vmul.f32 -1.442695, %v3616_v34 }
 0x3ef   : > { %v4000_v39 = vpop.permute.xlu0 %3999  ;;  %v4743_v15 = vmul.f32 -1.442695, %v4120_v12 }
 0x3f0   : > { %4835 = vpow2.f32 %v4656_v21  ;;  %v4002_v51 = vadd.f32 %v4000_v39, %v3994_v59 }
 0x3f1   : > { %4837 = vpow2.f32 %v4743_v15 }
 0x3f2   : > { %v4724_v31 = vmul.f32 -1.442695, %v4002_v51 }
 0x3f3   : > { %v4830_v35 = vpop.eup %4829 }
 0x3f4   : > { %4839 = vpow2.f32 %v4724_v31  ;;  %v3554_v44 = vadd.f32 1.0, %v4830_v35 }
 0x3f6   : > { %v4832_v11 = vpop.eup %4831  ;;  %4841 = vrcp.f32 %v3554_v44 }
 0x3f7   : > { %v3488_v37 = vadd.f32 1.0, %v4832_v11  ;;  %v4834_v46 = vpop.eup %4833 }
 0x3f8   : > { %v3888_v54 = vadd.f32 1.0, %v4834_v46 }
 0x3f9   : > { %4843 = vrcp.f32 %v3488_v37 }
 0x3fa   : > { %v4836_v53 = vpop.eup %4835  ;;  %4845 = vrcp.f32 %v3888_v54 }
 0x3fb   : > { %v3620_v0 = vadd.f32 1.0, %v4836_v53  ;;  %v4838_v60 = vpop.eup %4837 }
 0x3fc   : > { %v4124_v2 = vadd.f32 1.0, %v4838_v60 }
 0x3fd   : > { %4847 = vrcp.f32 %v3620_v0 }
 0x3fe   : > { %v4840_v3 = vpop.eup %4839  ;;  %4849 = vrcp.f32 %v4124_v2 }
 0x3ff   : > { %v4006_v20 = vadd.f32 1.0, %v4840_v3 }
 0x400   : > { %v4842_v62 = vpop.eup %4841 }
 0x401   : > { %4851 = vrcp.f32 %v4006_v20  ;;  %3558 = vrot.lane.b32.xlu1 %v4842_v62, %s8104_s25 }
 0x403   : > { %v4844_v58 = vpop.eup %4843 }
 0x404   : > { %3492 = vrot.lane.b32.xlu0 %v4844_v58, %s8104_s25  ;;  %v4846_v36 = vpop.eup %4845 }
 0x405   : > { %3892 = vrot.lane.b32.xlu1 %v4846_v36, %s8104_s25 }
 0x407   : > { %v4848_v17 = vpop.eup %4847 }
 0x408   : > { %3624 = vrot.lane.b32.xlu0 %v4848_v17, %s8104_s25  ;;  %v4850_v1 = vpop.eup %4849 }
 0x409   : > { %4128 = vrot.lane.b32.xlu1 %v4850_v1, %s8104_s25 }
 0x40b   : > { %v4852_v61 = vpop.eup %4851 }
 0x40c   : > { %4010 = vrot.lane.b32.xlu0 %v4852_v61, %s8104_s25 }
 0x473   : > { %v3559_v26 = vpop.permute.xlu1 %3558 }
 0x474   : > { %4646 = vst.msk [vmem:[%s7616_s7 + $0x20] sm:$0xff] %vm1262_vm0, %v3559_v26 }
 0x476   : > { %v3493_v19 = vpop.permute.xlu0 %3492 }
 0x477   : > { %4635 = vst.msk [vmem:[%s7616_s7 + $0x18] sm:$0xff] %vm1262_vm0, %v3493_v19  ;;  %v3893_v25 = vpop.permute.xlu1 %3892 }
 0x478   : > { %4706 = vst.msk [vmem:[%s7616_s7 + $0x48] sm:$0xff] %vm1262_vm0, %v3893_v25 }
 0x47a   : > { %v3625_v4 = vpop.permute.xlu0 %3624 }
 0x47b   : > { %4657 = vst.msk [vmem:[%s7616_s7 + $0x28] sm:$0xff] %vm1262_vm0, %v3625_v4  ;;  %v4129_v52 = vpop.permute.xlu1 %4128 }
 0x47c   : > { %4744 = vst.msk [vmem:[%s7616_s7 + $0x58] sm:$0xff] %vm1262_vm0, %v4129_v52 }
 0x47e   : > { %v4011_v16 = vpop.permute.xlu0 %4010 }
 0x47f   : > { %4725 = vst.msk [vmem:[%s7616_s7 + $0x50] sm:$0xff] %vm1262_vm0, %v4011_v16 }
 0x480 PF: > { %s8105_s17 = sld [smem:[#allocation13_spill]] }
 0x486   : > { %s27_s25 = sadd.s32 1, %s8105_s17  }
 0x487   : > { %p24_p2 = scmp.ge.s32.totalorder %s27_s25, 4  }
 0x489   :  { %26 = sbr.rel (!%p24_p2) target bundleno = 18 (0x12), region = 167 }
 0x490   :  { %4168 = vsyncpa [#allocation4], 1 }
 0x491   :  { %4170 = vsyncpa [#allocation4 + $0x1], 1 }
 0x492   :  { %4171 = vsyncpa [#allocation6], 1 }
 0x493   :  { %4172 = vsyncpa [#allocation9], 1 }

</bundles_post_ra>
